<compile_context>
chip_gen: v7x
topology: tpu7x:2x2x1
jax: 0.10.0
libtpu: 0.0.40
codegen_flags: <defaults>
</compile_context>

<pallas_src>
import functools
import numpy as np
import jax
import jax.numpy as jnp
from jax import lax
from jax.experimental import pallas as pl
from jax.experimental.pallas import tpu as pltpu


def _fused_gtn_kernel(x_ref, adj_ref, edge_ref, pool_ref, fp_ref,
                      wf_ref, bf_ref, we_ref,
                      w1a_ref, w1b_ref, b1_ref, bns_ref, bnb_ref, w2_ref, b2_ref,
                      out_ref, *, num_layers, heads, head_dim, num_edge_features):
    H, D, E = heads, head_dim, num_edge_features
    hd = H * D

    adj = adj_ref[...]                                    # [N, N]  (target, source)
    mask = (adj > 0.0)[None, :, :]                        # [1, N, N]
    edge_t = edge_ref[...]                                # [E, N, N]
    neg = jnp.float32(-1e30)
    scale = jnp.float32(1.0 / (D ** 0.5))

    h = x_ref[...]                                        # [N, F_pad] f32 (zero-padded features)
    n = h.shape[0]

    for layer in range(num_layers):                       # static unroll; h stays on-chip
        wf = wf_ref[layer]                                # [F_pad, 4*hd] bf16
        bfv = bf_ref[layer]                               # [1, 4*hd]   f32
        we = we_ref[layer]                                # [E, hd]     f32

        # Fused Q|K|V|skip projection: one lane-dense [N, 4*hd] MXU matmul + one bias add.
        proj = jnp.dot(h.astype(jnp.bfloat16), wf,
                       preferred_element_type=jnp.float32) + bfv
        q = proj[:, 0:hd]
        k = proj[:, hd:2 * hd]
        v = proj[:, 2 * hd:3 * hd]
        skip = proj[:, 3 * hd:4 * hd]

        # Heads batched on a leading axis: [H, N, D] / [H, E, D].
        qh = jnp.stack([q[:, hh * D:(hh + 1) * D] for hh in range(H)], axis=0)
        kh = jnp.stack([k[:, hh * D:(hh + 1) * D] for hh in range(H)], axis=0)
        vh = jnp.stack([v[:, hh * D:(hh + 1) * D] for hh in range(H)], axis=0)
        we_h = jnp.stack([we[:, hh * D:(hh + 1) * D] for hh in range(H)], axis=0)

        # <q_i, k_j> for all heads at once (MXU, bf16 operands, f32 accumulate).
        logits = jnp.einsum('hnd,hmd->hnm',
                            qh.astype(jnp.bfloat16), kh.astype(jnp.bfloat16),
                            preferred_element_type=jnp.float32)          # [H, N, N]

        # <q_i, e_ij> with edge_attr stored [E, N, N]: static VPU loop over the tiny E axis.
        for e in range(E):
            qe_e = jnp.sum(qh * we_h[:, e, :][:, None, :], axis=-1)      # [H, N]
            logits = logits + qe_e[:, :, None] * edge_t[e][None, :, :]

        # Masked softmax over source nodes (every node has >= 1 incoming edge in this graph,
        # so the denominator is >= 1 and the old `* adj` / zero-denominator guards are redundant).
        logits = jnp.where(mask, logits * scale, neg)
        m = jnp.max(logits, axis=-1, keepdims=True)
        p = jnp.exp(logits - m)
        denom = jnp.sum(p, axis=-1, keepdims=True)
        alpha = p * pl.reciprocal(denom, approx=True)                    # [H, N, N]

        # sum_j alpha_ij v_j (MXU) + sum_j alpha_ij e_ij (VPU over E).
        agg = jnp.einsum('hnm,hmd->hnd',
                         alpha.astype(jnp.bfloat16), vh.astype(jnp.bfloat16),
                         preferred_element_type=jnp.float32)             # [H, N, D]
        for e in range(E):
            ae_e = jnp.sum(alpha * edge_t[e][None, :, :], axis=-1)       # [H, N]
            agg = agg + ae_e[:, :, None] * we_h[:, e, :][:, None, :]

        # Concat heads back onto lanes, add root weight, ReLU: one lane-dense [N, hd] value.
        out_heads = jnp.concatenate([agg[hh] for hh in range(H)], axis=-1)
        h = jnp.maximum(out_heads + skip, 0.0)

    # global_mean_pool (matmul) -> cat(pooled, fingerprint) -> fc1 -> bn1(eval) -> relu -> fc2.
    pooled = jnp.dot(pool_ref[...].astype(jnp.bfloat16), h.astype(jnp.bfloat16),
                     preferred_element_type=jnp.float32)                 # [B, hd]
    z = (jnp.dot(pooled.astype(jnp.bfloat16), w1a_ref[...], preferred_element_type=jnp.float32)
         + jnp.dot(fp_ref[...].astype(jnp.bfloat16), w1b_ref[...], preferred_element_type=jnp.float32)
         + b1_ref[...])
    z = jnp.maximum(z * bns_ref[...] + bnb_ref[...], 0.0)   # BN folded to scale/shift; Dropout=id
    out_ref[...] = jnp.dot(z.astype(jnp.bfloat16), w2_ref[...],
                           preferred_element_type=jnp.float32) + b2_ref[...]


def graph_transformer_forward(x, adj, edge_t, pool_mat, fingerprint, params,
                              *, num_node_features, num_edge_features,
                              hidden_dim, num_layers, heads):
    head_dim = hidden_dim // heads
    n = x.shape[0]
    b = pool_mat.shape[0]
    f_pad = params['wf'].shape[1]
    # Zero-pad the layer-0 node features to the common (hidden_dim) width so all layers share
    # one stacked fused weight; zero feature columns x zero weight rows contribute exactly 0.
    x_pad = jnp.zeros((n, f_pad), jnp.float32).at[:, :num_node_features].set(x)

    args = (x_pad, adj, edge_t, pool_mat, fingerprint,
            params['wf'], params['bf'], params['we'],
            params['w1a'], params['w1b'], params['b1'],
            params['bn_scale'], params['bn_shift'], params['w2'], params['b2'])

    kernel = functools.partial(_fused_gtn_kernel,
                               num_layers=num_layers, heads=heads,
                               head_dim=head_dim, num_edge_features=num_edge_features)
    out = pl.pallas_call(
        kernel,
        out_shape=jax.ShapeDtypeStruct((b, 1), jnp.float32),
        in_specs=[pl.BlockSpec(memory_space=pltpu.MemorySpace.VMEM)] * len(args),
        out_specs=pl.BlockSpec(memory_space=pltpu.MemorySpace.VMEM),
    )(*args)
    return out[:, 0]  # .squeeze()


def init_params(key, num_node_features, num_edge_features, fingerprint_size,
                hidden_dim, num_layers, heads):
    head_dim = hidden_dim // heads
    hd = heads * head_dim
    assert num_node_features <= hidden_dim
    f_pad = hidden_dim

    counter = [0]

    def nk():
        counter[0] += 1
        return jax.random.fold_in(key, counter[0])

    def w(shape):
        return 0.1 * jax.random.normal(nk(), shape, jnp.float32)

    wf_layers, bf_layers, we_layers = [], [], []
    for layer in range(num_layers):
        fin = num_node_features if layer == 0 else hidden_dim
        wq, wk, wv, ws = w((fin, hd)), w((fin, hd)), w((fin, hd)), w((fin, hd))
        bq, bk, bv, bs = w((1, hd)), w((1, hd)), w((1, hd)), w((1, hd))
        we = w((num_edge_features, hd))
        w_fused = jnp.concatenate([wq, wk, wv, ws], axis=1)              # [fin, 4*hd]
        w_fused = jnp.zeros((f_pad, 4 * hd), jnp.float32).at[:fin].set(w_fused)
        b_fused = jnp.concatenate([bq, bk, bv, bs], axis=1)              # [1, 4*hd]
        wf_layers.append(w_fused)
        bf_layers.append(b_fused)
        we_layers.append(we)

    # BatchNorm1d (eval) folded into a single scale/shift.
    eps = 1e-5
    gamma, beta = w((1, hidden_dim)), w((1, hidden_dim))
    running_mean = jnp.zeros((1, hidden_dim), jnp.float32)
    running_var = jnp.ones((1, hidden_dim), jnp.float32)
    bn_scale = gamma * lax.rsqrt(running_var + eps)
    bn_shift = beta - running_mean * bn_scale

    return dict(
        wf=jnp.stack(wf_layers).astype(jnp.bfloat16),      # [L, F_pad, 4*hd] MXU operand
        bf=jnp.stack(bf_layers),                           # [L, 1, 4*hd] f32
        we=jnp.stack(we_layers),                           # [L, E, hd]   f32
        w1a=w((hidden_dim, hidden_dim)).astype(jnp.bfloat16),       # fc1 weight, pooled part
        w1b=w((fingerprint_size, hidden_dim)).astype(jnp.bfloat16),  # fc1 weight, fp part
        b1=w((1, hidden_dim)),                             # fc1 bias
        bn_scale=bn_scale,
        bn_shift=bn_shift,
        w2=w((hidden_dim, 1)).astype(jnp.bfloat16),        # fc2 weight
        b2=w((1, 1)),                                      # fc2 bias
    )


if __name__ == "__main__":
    num_node_features = 6
    num_edge_features = 4
    fingerprint_size = 32
    hidden_dim = 32
    num_layers = 4
    heads = 4
    num_graphs = 2
    nodes_per_graph = 8
    n_nodes = num_graphs * nodes_per_graph

    key = jax.random.PRNGKey(0)
    k_x, k_e, k_fp, k_p = jax.random.split(key, 4)

    x = jax.random.normal(k_x, (n_nodes, num_node_features), jnp.float32)
    fingerprint = jax.random.normal(k_fp, (num_graphs, fingerprint_size), jnp.float32)

    # Bidirectional ring graph inside each molecule (every node has incoming edges).
    src, dst = [], []
    for g in range(num_graphs):
        base = g * nodes_per_graph
        for i in range(nodes_per_graph):
            a = base + i
            bnode = base + (i + 1) % nodes_per_graph
            src += [a, bnode]
            dst += [bnode, a]
    edge_index = np.array([src, dst], dtype=np.int32)                    # [2, E_edges]
    n_edges = edge_index.shape[1]
    edge_attr = jax.random.normal(k_e, (n_edges, num_edge_features), jnp.float32)
    ea_np = np.asarray(edge_attr)

    adj_np = np.zeros((n_nodes, n_nodes), np.float32)
    edge_t_np = np.zeros((num_edge_features, n_nodes, n_nodes), np.float32)  # [E, tgt, src]
    for e in range(n_edges):
        j_src, i_dst = int(edge_index[0, e]), int(edge_index[1, e])      # message j -> i
        adj_np[i_dst, j_src] = 1.0
        edge_t_np[:, i_dst, j_src] = ea_np[e]
    adj = jnp.asarray(adj_np)
    edge_t = jnp.asarray(edge_t_np)

    batch = np.repeat(np.arange(num_graphs), nodes_per_graph)
    pool_np = np.zeros((num_graphs, n_nodes), np.float32)
    for nidx in range(n_nodes):
        pool_np[batch[nidx], nidx] = 1.0 / nodes_per_graph
    pool_mat = jnp.asarray(pool_np)

    params = init_params(k_p, num_node_features, num_edge_features, fingerprint_size,
                         hidden_dim, num_layers, heads)

    fwd = jax.jit(functools.partial(
        graph_transformer_forward,
        num_node_features=num_node_features,
        num_edge_features=num_edge_features,
        hidden_dim=hidden_dim,
        num_layers=num_layers,
        heads=heads))

    out = jax.block_until_ready(fwd(x, adj, edge_t, pool_mat, fingerprint, params))
    assert out.shape == (num_graphs,), out.shape
    assert bool(jnp.all(jnp.isfinite(out)))
    print("KERNEL_OK")
</pallas_src>

<mosaic_0001>
module attributes {stable_mosaic.version = 11 : i64} {
  func.func @_fused_gtn_kernel(%arg0: memref<16x32xf32, #tpu.memory_space<vmem>>, %arg1: memref<16x16xf32, #tpu.memory_space<vmem>>, %arg2: memref<4x16x16xf32, #tpu.memory_space<vmem>>, %arg3: memref<2x16xf32, #tpu.memory_space<vmem>>, %arg4: memref<2x32xf32, #tpu.memory_space<vmem>>, %arg5: memref<4x32x128xbf16, #tpu.memory_space<vmem>>, %arg6: memref<4x1x128xf32, #tpu.memory_space<vmem>>, %arg7: memref<4x4x32xf32, #tpu.memory_space<vmem>>, %arg8: memref<32x32xbf16, #tpu.memory_space<vmem>>, %arg9: memref<32x32xbf16, #tpu.memory_space<vmem>>, %arg10: memref<1x32xf32, #tpu.memory_space<vmem>>, %arg11: memref<1x32xf32, #tpu.memory_space<vmem>>, %arg12: memref<1x32xf32, #tpu.memory_space<vmem>>, %arg13: memref<32x1xbf16, #tpu.memory_space<vmem>>, %arg14: memref<1x1xf32, #tpu.memory_space<vmem>>, %arg15: memref<2x1xf32, #tpu.memory_space<vmem>>) attributes {dimension_semantics = [], scalar_prefetch = 0 : i64, scratch_operands = 0 : i64, tpu.core_type = #tpu.core_type<tc>} {
    %c0 = arith.constant 0 : index
    %c0_0 = arith.constant 0 : index
    %0 = vector.load %arg1[%c0, %c0_0] : memref<16x16xf32, #tpu.memory_space<vmem>>, vector<16x16xf32>
    %cst = arith.constant 0.000000e+00 : f32
    %1 = vector.broadcast %cst : f32 to vector<16x16xf32>
    %2 = arith.cmpf ogt, %0, %1 : vector<16x16xf32>
    %3 = vector.shape_cast %2 : vector<16x16xi1> to vector<1x16x16xi1>
    %c0_1 = arith.constant 0 : index
    %c0_2 = arith.constant 0 : index
    %c0_3 = arith.constant 0 : index
    %4 = vector.load %arg2[%c0_1, %c0_2, %c0_3] : memref<4x16x16xf32, #tpu.memory_space<vmem>>, vector<4x16x16xf32>
    %c0_4 = arith.constant 0 : index
    %c0_5 = arith.constant 0 : index
    %5 = vector.load %arg0[%c0_4, %c0_5] : memref<16x32xf32, #tpu.memory_space<vmem>>, vector<16x32xf32>
    %c0_6 = arith.constant 0 : index
    %c0_7 = arith.constant 0 : index
    %c0_8 = arith.constant 0 : index
    %6 = vector.load %arg5[%c0_6, %c0_7, %c0_8] : memref<4x32x128xbf16, #tpu.memory_space<vmem>>, vector<1x32x128xbf16>
    %7 = vector.shape_cast %6 : vector<1x32x128xbf16> to vector<32x128xbf16>
    %c0_9 = arith.constant 0 : index
    %c0_10 = arith.constant 0 : index
    %c0_11 = arith.constant 0 : index
    %8 = vector.load %arg6[%c0_9, %c0_10, %c0_11] : memref<4x1x128xf32, #tpu.memory_space<vmem>>, vector<1x1x128xf32>
    %9 = vector.shape_cast %8 : vector<1x1x128xf32> to vector<1x128xf32>
    %c0_12 = arith.constant 0 : index
    %c0_13 = arith.constant 0 : index
    %c0_14 = arith.constant 0 : index
    %10 = vector.load %arg7[%c0_12, %c0_13, %c0_14] : memref<4x4x32xf32, #tpu.memory_space<vmem>>, vector<1x4x32xf32>
    %11 = vector.shape_cast %10 : vector<1x4x32xf32> to vector<4x32xf32>
    %12 = arith.truncf %5 : vector<16x32xf32> to vector<16x32xbf16>
    %cst_15 = arith.constant dense<0.000000e+00> : vector<16x128xf32>
    %13 = tpu.matmul %12, %7, %cst_15 {dimension_numbers = #tpu.dot_dimension_numbers<[1], [0], [0], [1], [0, 0, 1, 1], [], []>} : vector<16x32xbf16>, vector<32x128xbf16>, vector<16x128xf32> -> vector<16x128xf32>
    %14 = vector.broadcast %9 : vector<1x128xf32> to vector<16x128xf32>
    %15 = arith.addf %13, %14 : vector<16x128xf32>
    %16 = vector.extract_strided_slice %15 {offsets = [0, 0], sizes = [16, 32], strides = [1, 1]} : vector<16x128xf32> to vector<16x32xf32>
    %17 = vector.extract_strided_slice %15 {offsets = [0, 32], sizes = [16, 32], strides = [1, 1]} : vector<16x128xf32> to vector<16x32xf32>
    %18 = vector.extract_strided_slice %15 {offsets = [0, 64], sizes = [16, 32], strides = [1, 1]} : vector<16x128xf32> to vector<16x32xf32>
    %19 = vector.extract_strided_slice %15 {offsets = [0, 96], sizes = [16, 32], strides = [1, 1]} : vector<16x128xf32> to vector<16x32xf32>
    %20 = vector.extract_strided_slice %16 {offsets = [0, 0], sizes = [16, 8], strides = [1, 1]} : vector<16x32xf32> to vector<16x8xf32>
    %21 = vector.extract_strided_slice %16 {offsets = [0, 8], sizes = [16, 8], strides = [1, 1]} : vector<16x32xf32> to vector<16x8xf32>
    %22 = vector.extract_strided_slice %16 {offsets = [0, 16], sizes = [16, 8], strides = [1, 1]} : vector<16x32xf32> to vector<16x8xf32>
    %23 = vector.extract_strided_slice %16 {offsets = [0, 24], sizes = [16, 8], strides = [1, 1]} : vector<16x32xf32> to vector<16x8xf32>
    %24 = vector.shape_cast %20 : vector<16x8xf32> to vector<1x16x8xf32>
    %25 = vector.shape_cast %21 : vector<16x8xf32> to vector<1x16x8xf32>
    %26 = vector.shape_cast %22 : vector<16x8xf32> to vector<1x16x8xf32>
    %27 = vector.shape_cast %23 : vector<16x8xf32> to vector<1x16x8xf32>
    %28 = tpu.concatenate %24, %25, %26, %27 in 0 : vector<1x16x8xf32>, vector<1x16x8xf32>, vector<1x16x8xf32>, vector<1x16x8xf32> -> vector<4x16x8xf32>
    %29 = vector.extract_strided_slice %17 {offsets = [0, 0], sizes = [16, 8], strides = [1, 1]} : vector<16x32xf32> to vector<16x8xf32>
    %30 = vector.extract_strided_slice %17 {offsets = [0, 8], sizes = [16, 8], strides = [1, 1]} : vector<16x32xf32> to vector<16x8xf32>
    %31 = vector.extract_strided_slice %17 {offsets = [0, 16], sizes = [16, 8], strides = [1, 1]} : vector<16x32xf32> to vector<16x8xf32>
    %32 = vector.extract_strided_slice %17 {offsets = [0, 24], sizes = [16, 8], strides = [1, 1]} : vector<16x32xf32> to vector<16x8xf32>
    %33 = vector.shape_cast %29 : vector<16x8xf32> to vector<1x16x8xf32>
    %34 = vector.shape_cast %30 : vector<16x8xf32> to vector<1x16x8xf32>
    %35 = vector.shape_cast %31 : vector<16x8xf32> to vector<1x16x8xf32>
    %36 = vector.shape_cast %32 : vector<16x8xf32> to vector<1x16x8xf32>
    %37 = tpu.concatenate %33, %34, %35, %36 in 0 : vector<1x16x8xf32>, vector<1x16x8xf32>, vector<1x16x8xf32>, vector<1x16x8xf32> -> vector<4x16x8xf32>
    %38 = vector.extract_strided_slice %18 {offsets = [0, 0], sizes = [16, 8], strides = [1, 1]} : vector<16x32xf32> to vector<16x8xf32>
    %39 = vector.extract_strided_slice %18 {offsets = [0, 8], sizes = [16, 8], strides = [1, 1]} : vector<16x32xf32> to vector<16x8xf32>
    %40 = vector.extract_strided_slice %18 {offsets = [0, 16], sizes = [16, 8], strides = [1, 1]} : vector<16x32xf32> to vector<16x8xf32>
    %41 = vector.extract_strided_slice %18 {offsets = [0, 24], sizes = [16, 8], strides = [1, 1]} : vector<16x32xf32> to vector<16x8xf32>
    %42 = vector.shape_cast %38 : vector<16x8xf32> to vector<1x16x8xf32>
    %43 = vector.shape_cast %39 : vector<16x8xf32> to vector<1x16x8xf32>
    %44 = vector.shape_cast %40 : vector<16x8xf32> to vector<1x16x8xf32>
    %45 = vector.shape_cast %41 : vector<16x8xf32> to vector<1x16x8xf32>
    %46 = tpu.concatenate %42, %43, %44, %45 in 0 : vector<1x16x8xf32>, vector<1x16x8xf32>, vector<1x16x8xf32>, vector<1x16x8xf32> -> vector<4x16x8xf32>
    %47 = vector.extract_strided_slice %11 {offsets = [0, 0], sizes = [4, 8], strides = [1, 1]} : vector<4x32xf32> to vector<4x8xf32>
    %48 = vector.extract_strided_slice %11 {offsets = [0, 8], sizes = [4, 8], strides = [1, 1]} : vector<4x32xf32> to vector<4x8xf32>
    %49 = vector.extract_strided_slice %11 {offsets = [0, 16], sizes = [4, 8], strides = [1, 1]} : vector<4x32xf32> to vector<4x8xf32>
    %50 = vector.extract_strided_slice %11 {offsets = [0, 24], sizes = [4, 8], strides = [1, 1]} : vector<4x32xf32> to vector<4x8xf32>
    %51 = vector.shape_cast %47 : vector<4x8xf32> to vector<1x4x8xf32>
    %52 = vector.shape_cast %48 : vector<4x8xf32> to vector<1x4x8xf32>
    %53 = vector.shape_cast %49 : vector<4x8xf32> to vector<1x4x8xf32>
    %54 = vector.shape_cast %50 : vector<4x8xf32> to vector<1x4x8xf32>
    %55 = tpu.concatenate %51, %52, %53, %54 in 0 : vector<1x4x8xf32>, vector<1x4x8xf32>, vector<1x4x8xf32>, vector<1x4x8xf32> -> vector<4x4x8xf32>
    %56 = arith.truncf %28 : vector<4x16x8xf32> to vector<4x16x8xbf16>
    %57 = arith.truncf %37 : vector<4x16x8xf32> to vector<4x16x8xbf16>
    "tpu.trace_start"() <{level = 10 : i32, message = "hnd,hmd->hnm"}> : () -> ()
    %cst_16 = arith.constant dense<0.000000e+00> : vector<4x16x16xf32>
    %58 = tpu.matmul %56, %57, %cst_16 {dimension_numbers = #tpu.dot_dimension_numbers<[2], [2], [1], [1], [0, 0, 0, 1, 1, 1], [0], [0]>} : vector<4x16x8xbf16>, vector<4x16x8xbf16>, vector<4x16x16xf32> -> vector<4x16x16xf32>
    "tpu.trace_stop"() : () -> ()
    %59 = vector.extract_strided_slice %55 {offsets = [0, 0, 0], sizes = [4, 1, 8], strides = [1, 1, 1]} : vector<4x4x8xf32> to vector<4x1x8xf32>
    %60 = vector.shape_cast %59 : vector<4x1x8xf32> to vector<4x8xf32>
    %61 = vector.shape_cast %60 : vector<4x8xf32> to vector<4x1x8xf32>
    %62 = vector.broadcast %61 : vector<4x1x8xf32> to vector<4x16x8xf32>
    %63 = arith.mulf %28, %62 : vector<4x16x8xf32>
    %cst_17 = arith.constant dense<0.000000e+00> : vector<4x16xf32>
    %64 = vector.multi_reduction <add>, %63, %cst_17 [2] : vector<4x16x8xf32> to vector<4x16xf32>
    %65 = vector.shape_cast %64 : vector<4x16xf32> to vector<4x16x1xf32>
    %66 = vector.extract_strided_slice %4 {offsets = [0, 0, 0], sizes = [1, 16, 16], strides = [1, 1, 1]} : vector<4x16x16xf32> to vector<1x16x16xf32>
    %67 = vector.shape_cast %66 : vector<1x16x16xf32> to vector<16x16xf32>
    %68 = vector.shape_cast %67 : vector<16x16xf32> to vector<1x16x16xf32>
    %69 = vector.broadcast %65 : vector<4x16x1xf32> to vector<4x16x16xf32>
    %70 = vector.broadcast %68 : vector<1x16x16xf32> to vector<4x16x16xf32>
    %71 = arith.mulf %69, %70 : vector<4x16x16xf32>
    %72 = arith.addf %58, %71 : vector<4x16x16xf32>
    %73 = vector.extract_strided_slice %55 {offsets = [0, 1, 0], sizes = [4, 1, 8], strides = [1, 1, 1]} : vector<4x4x8xf32> to vector<4x1x8xf32>
    %74 = vector.shape_cast %73 : vector<4x1x8xf32> to vector<4x8xf32>
    %75 = vector.shape_cast %74 : vector<4x8xf32> to vector<4x1x8xf32>
    %76 = vector.broadcast %75 : vector<4x1x8xf32> to vector<4x16x8xf32>
    %77 = arith.mulf %28, %76 : vector<4x16x8xf32>
    %cst_18 = arith.constant dense<0.000000e+00> : vector<4x16xf32>
    %78 = vector.multi_reduction <add>, %77, %cst_18 [2] : vector<4x16x8xf32> to vector<4x16xf32>
    %79 = vector.shape_cast %78 : vector<4x16xf32> to vector<4x16x1xf32>
    %80 = vector.extract_strided_slice %4 {offsets = [1, 0, 0], sizes = [1, 16, 16], strides = [1, 1, 1]} : vector<4x16x16xf32> to vector<1x16x16xf32>
    %81 = vector.shape_cast %80 : vector<1x16x16xf32> to vector<16x16xf32>
    %82 = vector.shape_cast %81 : vector<16x16xf32> to vector<1x16x16xf32>
    %83 = vector.broadcast %79 : vector<4x16x1xf32> to vector<4x16x16xf32>
    %84 = vector.broadcast %82 : vector<1x16x16xf32> to vector<4x16x16xf32>
    %85 = arith.mulf %83, %84 : vector<4x16x16xf32>
    %86 = arith.addf %72, %85 : vector<4x16x16xf32>
    %87 = vector.extract_strided_slice %55 {offsets = [0, 2, 0], sizes = [4, 1, 8], strides = [1, 1, 1]} : vector<4x4x8xf32> to vector<4x1x8xf32>
    %88 = vector.shape_cast %87 : vector<4x1x8xf32> to vector<4x8xf32>
    %89 = vector.shape_cast %88 : vector<4x8xf32> to vector<4x1x8xf32>
    %90 = vector.broadcast %89 : vector<4x1x8xf32> to vector<4x16x8xf32>
    %91 = arith.mulf %28, %90 : vector<4x16x8xf32>
    %cst_19 = arith.constant dense<0.000000e+00> : vector<4x16xf32>
    %92 = vector.multi_reduction <add>, %91, %cst_19 [2] : vector<4x16x8xf32> to vector<4x16xf32>
    %93 = vector.shape_cast %92 : vector<4x16xf32> to vector<4x16x1xf32>
    %94 = vector.extract_strided_slice %4 {offsets = [2, 0, 0], sizes = [1, 16, 16], strides = [1, 1, 1]} : vector<4x16x16xf32> to vector<1x16x16xf32>
    %95 = vector.shape_cast %94 : vector<1x16x16xf32> to vector<16x16xf32>
    %96 = vector.shape_cast %95 : vector<16x16xf32> to vector<1x16x16xf32>
    %97 = vector.broadcast %93 : vector<4x16x1xf32> to vector<4x16x16xf32>
    %98 = vector.broadcast %96 : vector<1x16x16xf32> to vector<4x16x16xf32>
    %99 = arith.mulf %97, %98 : vector<4x16x16xf32>
    %100 = arith.addf %86, %99 : vector<4x16x16xf32>
    %101 = vector.extract_strided_slice %55 {offsets = [0, 3, 0], sizes = [4, 1, 8], strides = [1, 1, 1]} : vector<4x4x8xf32> to vector<4x1x8xf32>
    %102 = vector.shape_cast %101 : vector<4x1x8xf32> to vector<4x8xf32>
    %103 = vector.shape_cast %102 : vector<4x8xf32> to vector<4x1x8xf32>
    %104 = vector.broadcast %103 : vector<4x1x8xf32> to vector<4x16x8xf32>
    %105 = arith.mulf %28, %104 : vector<4x16x8xf32>
    %cst_20 = arith.constant dense<0.000000e+00> : vector<4x16xf32>
    %106 = vector.multi_reduction <add>, %105, %cst_20 [2] : vector<4x16x8xf32> to vector<4x16xf32>
    %107 = vector.shape_cast %106 : vector<4x16xf32> to vector<4x16x1xf32>
    %108 = vector.extract_strided_slice %4 {offsets = [3, 0, 0], sizes = [1, 16, 16], strides = [1, 1, 1]} : vector<4x16x16xf32> to vector<1x16x16xf32>
    %109 = vector.shape_cast %108 : vector<1x16x16xf32> to vector<16x16xf32>
    %110 = vector.shape_cast %109 : vector<16x16xf32> to vector<1x16x16xf32>
    %111 = vector.broadcast %107 : vector<4x16x1xf32> to vector<4x16x16xf32>
    %112 = vector.broadcast %110 : vector<1x16x16xf32> to vector<4x16x16xf32>
    %113 = arith.mulf %111, %112 : vector<4x16x16xf32>
    %114 = arith.addf %100, %113 : vector<4x16x16xf32>
    %cst_21 = arith.constant 0.353553385 : f32
    %115 = vector.broadcast %cst_21 : f32 to vector<4x16x16xf32>
    %116 = arith.mulf %114, %115 : vector<4x16x16xf32>
    %cst_22 = arith.constant -1.000000e+30 : f32
    %117 = vector.shape_cast %3 : vector<1x16x16xi1> to vector<1x16x16xi1>
    %118 = vector.broadcast %117 : vector<1x16x16xi1> to vector<4x16x16xi1>
    %119 = vector.broadcast %cst_22 : f32 to vector<4x16x16xf32>
    %120 = arith.select %118, %116, %119 : vector<4x16x16xi1>, vector<4x16x16xf32>
    %cst_23 = arith.constant dense<0xFF800000> : vector<4x16xf32>
    %121 = vector.multi_reduction <maximumf>, %120, %cst_23 [2] : vector<4x16x16xf32> to vector<4x16xf32>
    %122 = vector.shape_cast %121 : vector<4x16xf32> to vector<4x16x1xf32>
    %123 = vector.broadcast %122 : vector<4x16x1xf32> to vector<4x16x16xf32>
    %124 = arith.subf %120, %123 : vector<4x16x16xf32>
    %125 = math.exp %124 : vector<4x16x16xf32>
    %cst_24 = arith.constant dense<0.000000e+00> : vector<4x16xf32>
    %126 = vector.multi_reduction <add>, %125, %cst_24 [2] : vector<4x16x16xf32> to vector<4x16xf32>
    %127 = vector.shape_cast %126 : vector<4x16xf32> to vector<4x16x1xf32>
    %128 = tpu.reciprocal %127 {approx = true} : vector<4x16x1xf32> -> vector<4x16x1xf32>
    %129 = vector.broadcast %128 : vector<4x16x1xf32> to vector<4x16x16xf32>
    %130 = arith.mulf %125, %129 : vector<4x16x16xf32>
    %131 = arith.truncf %130 : vector<4x16x16xf32> to vector<4x16x16xbf16>
    %132 = arith.truncf %46 : vector<4x16x8xf32> to vector<4x16x8xbf16>
    "tpu.trace_start"() <{level = 10 : i32, message = "hnm,hmd->hnd"}> : () -> ()
    %cst_25 = arith.constant dense<0.000000e+00> : vector<4x16x8xf32>
    %133 = tpu.matmul %131, %132, %cst_25 {dimension_numbers = #tpu.dot_dimension_numbers<[2], [1], [1], [2], [0, 0, 0, 1, 1, 2], [0], [0]>} : vector<4x16x16xbf16>, vector<4x16x8xbf16>, vector<4x16x8xf32> -> vector<4x16x8xf32>
    "tpu.trace_stop"() : () -> ()
    %134 = vector.extract_strided_slice %4 {offsets = [0, 0, 0], sizes = [1, 16, 16], strides = [1, 1, 1]} : vector<4x16x16xf32> to vector<1x16x16xf32>
    %135 = vector.shape_cast %134 : vector<1x16x16xf32> to vector<16x16xf32>
    %136 = vector.shape_cast %135 : vector<16x16xf32> to vector<1x16x16xf32>
    %137 = vector.broadcast %136 : vector<1x16x16xf32> to vector<4x16x16xf32>
    %138 = arith.mulf %130, %137 : vector<4x16x16xf32>
    %cst_26 = arith.constant dense<0.000000e+00> : vector<4x16xf32>
    %139 = vector.multi_reduction <add>, %138, %cst_26 [2] : vector<4x16x16xf32> to vector<4x16xf32>
    %140 = vector.shape_cast %139 : vector<4x16xf32> to vector<4x16x1xf32>
    %141 = vector.extract_strided_slice %55 {offsets = [0, 0, 0], sizes = [4, 1, 8], strides = [1, 1, 1]} : vector<4x4x8xf32> to vector<4x1x8xf32>
    %142 = vector.shape_cast %141 : vector<4x1x8xf32> to vector<4x8xf32>
    %143 = vector.shape_cast %142 : vector<4x8xf32> to vector<4x1x8xf32>
    %144 = vector.broadcast %140 : vector<4x16x1xf32> to vector<4x16x8xf32>
    %145 = vector.broadcast %143 : vector<4x1x8xf32> to vector<4x16x8xf32>
    %146 = arith.mulf %144, %145 : vector<4x16x8xf32>
    %147 = arith.addf %133, %146 : vector<4x16x8xf32>
    %148 = vector.extract_strided_slice %4 {offsets = [1, 0, 0], sizes = [1, 16, 16], strides = [1, 1, 1]} : vector<4x16x16xf32> to vector<1x16x16xf32>
    %149 = vector.shape_cast %148 : vector<1x16x16xf32> to vector<16x16xf32>
    %150 = vector.shape_cast %149 : vector<16x16xf32> to vector<1x16x16xf32>
    %151 = vector.broadcast %150 : vector<1x16x16xf32> to vector<4x16x16xf32>
    %152 = arith.mulf %130, %151 : vector<4x16x16xf32>
    %cst_27 = arith.constant dense<0.000000e+00> : vector<4x16xf32>
    %153 = vector.multi_reduction <add>, %152, %cst_27 [2] : vector<4x16x16xf32> to vector<4x16xf32>
    %154 = vector.shape_cast %153 : vector<4x16xf32> to vector<4x16x1xf32>
    %155 = vector.extract_strided_slice %55 {offsets = [0, 1, 0], sizes = [4, 1, 8], strides = [1, 1, 1]} : vector<4x4x8xf32> to vector<4x1x8xf32>
    %156 = vector.shape_cast %155 : vector<4x1x8xf32> to vector<4x8xf32>
    %157 = vector.shape_cast %156 : vector<4x8xf32> to vector<4x1x8xf32>
    %158 = vector.broadcast %154 : vector<4x16x1xf32> to vector<4x16x8xf32>
    %159 = vector.broadcast %157 : vector<4x1x8xf32> to vector<4x16x8xf32>
    %160 = arith.mulf %158, %159 : vector<4x16x8xf32>
    %161 = arith.addf %147, %160 : vector<4x16x8xf32>
    %162 = vector.extract_strided_slice %4 {offsets = [2, 0, 0], sizes = [1, 16, 16], strides = [1, 1, 1]} : vector<4x16x16xf32> to vector<1x16x16xf32>
    %163 = vector.shape_cast %162 : vector<1x16x16xf32> to vector<16x16xf32>
    %164 = vector.shape_cast %163 : vector<16x16xf32> to vector<1x16x16xf32>
    %165 = vector.broadcast %164 : vector<1x16x16xf32> to vector<4x16x16xf32>
    %166 = arith.mulf %130, %165 : vector<4x16x16xf32>
    %cst_28 = arith.constant dense<0.000000e+00> : vector<4x16xf32>
    %167 = vector.multi_reduction <add>, %166, %cst_28 [2] : vector<4x16x16xf32> to vector<4x16xf32>
    %168 = vector.shape_cast %167 : vector<4x16xf32> to vector<4x16x1xf32>
    %169 = vector.extract_strided_slice %55 {offsets = [0, 2, 0], sizes = [4, 1, 8], strides = [1, 1, 1]} : vector<4x4x8xf32> to vector<4x1x8xf32>
    %170 = vector.shape_cast %169 : vector<4x1x8xf32> to vector<4x8xf32>
    %171 = vector.shape_cast %170 : vector<4x8xf32> to vector<4x1x8xf32>
    %172 = vector.broadcast %168 : vector<4x16x1xf32> to vector<4x16x8xf32>
    %173 = vector.broadcast %171 : vector<4x1x8xf32> to vector<4x16x8xf32>
    %174 = arith.mulf %172, %173 : vector<4x16x8xf32>
    %175 = arith.addf %161, %174 : vector<4x16x8xf32>
    %176 = vector.extract_strided_slice %4 {offsets = [3, 0, 0], sizes = [1, 16, 16], strides = [1, 1, 1]} : vector<4x16x16xf32> to vector<1x16x16xf32>
    %177 = vector.shape_cast %176 : vector<1x16x16xf32> to vector<16x16xf32>
    %178 = vector.shape_cast %177 : vector<16x16xf32> to vector<1x16x16xf32>
    %179 = vector.broadcast %178 : vector<1x16x16xf32> to vector<4x16x16xf32>
    %180 = arith.mulf %130, %179 : vector<4x16x16xf32>
    %cst_29 = arith.constant dense<0.000000e+00> : vector<4x16xf32>
    %181 = vector.multi_reduction <add>, %180, %cst_29 [2] : vector<4x16x16xf32> to vector<4x16xf32>
    %182 = vector.shape_cast %181 : vector<4x16xf32> to vector<4x16x1xf32>
    %183 = vector.extract_strided_slice %55 {offsets = [0, 3, 0], sizes = [4, 1, 8], strides = [1, 1, 1]} : vector<4x4x8xf32> to vector<4x1x8xf32>
    %184 = vector.shape_cast %183 : vector<4x1x8xf32> to vector<4x8xf32>
    %185 = vector.shape_cast %184 : vector<4x8xf32> to vector<4x1x8xf32>
    %186 = vector.broadcast %182 : vector<4x16x1xf32> to vector<4x16x8xf32>
    %187 = vector.broadcast %185 : vector<4x1x8xf32> to vector<4x16x8xf32>
    %188 = arith.mulf %186, %187 : vector<4x16x8xf32>
    %189 = arith.addf %175, %188 : vector<4x16x8xf32>
    %190 = vector.extract_strided_slice %189 {offsets = [0, 0, 0], sizes = [1, 16, 8], strides = [1, 1, 1]} : vector<4x16x8xf32> to vector<1x16x8xf32>
    %191 = vector.shape_cast %190 : vector<1x16x8xf32> to vector<16x8xf32>
    %192 = vector.extract_strided_slice %189 {offsets = [1, 0, 0], sizes = [1, 16, 8], strides = [1, 1, 1]} : vector<4x16x8xf32> to vector<1x16x8xf32>
    %193 = vector.shape_cast %192 : vector<1x16x8xf32> to vector<16x8xf32>
    %194 = vector.extract_strided_slice %189 {offsets = [2, 0, 0], sizes = [1, 16, 8], strides = [1, 1, 1]} : vector<4x16x8xf32> to vector<1x16x8xf32>
    %195 = vector.shape_cast %194 : vector<1x16x8xf32> to vector<16x8xf32>
    %196 = vector.extract_strided_slice %189 {offsets = [3, 0, 0], sizes = [1, 16, 8], strides = [1, 1, 1]} : vector<4x16x8xf32> to vector<1x16x8xf32>
    %197 = vector.shape_cast %196 : vector<1x16x8xf32> to vector<16x8xf32>
    %198 = tpu.concatenate %191, %193, %195, %197 in 1 : vector<16x8xf32>, vector<16x8xf32>, vector<16x8xf32>, vector<16x8xf32> -> vector<16x32xf32>
    %199 = arith.addf %198, %19 : vector<16x32xf32>
    %cst_30 = arith.constant 0.000000e+00 : f32
    %200 = vector.broadcast %cst_30 : f32 to vector<16x32xf32>
    %201 = arith.maximumf %199, %200 : vector<16x32xf32>
    %c1 = arith.constant 1 : index
    %c0_31 = arith.constant 0 : index
    %c0_32 = arith.constant 0 : index
    %202 = vector.load %arg5[%c1, %c0_31, %c0_32] : memref<4x32x128xbf16, #tpu.memory_space<vmem>>, vector<1x32x128xbf16>
    %203 = vector.shape_cast %202 : vector<1x32x128xbf16> to vector<32x128xbf16>
    %c1_33 = arith.constant 1 : index
    %c0_34 = arith.constant 0 : index
    %c0_35 = arith.constant 0 : index
    %204 = vector.load %arg6[%c1_33, %c0_34, %c0_35] : memref<4x1x128xf32, #tpu.memory_space<vmem>>, vector<1x1x128xf32>
    %205 = vector.shape_cast %204 : vector<1x1x128xf32> to vector<1x128xf32>
    %c1_36 = arith.constant 1 : index
    %c0_37 = arith.constant 0 : index
    %c0_38 = arith.constant 0 : index
    %206 = vector.load %arg7[%c1_36, %c0_37, %c0_38] : memref<4x4x32xf32, #tpu.memory_space<vmem>>, vector<1x4x32xf32>
    %207 = vector.shape_cast %206 : vector<1x4x32xf32> to vector<4x32xf32>
    %208 = arith.truncf %201 : vector<16x32xf32> to vector<16x32xbf16>
    %cst_39 = arith.constant dense<0.000000e+00> : vector<16x128xf32>
    %209 = tpu.matmul %208, %203, %cst_39 {dimension_numbers = #tpu.dot_dimension_numbers<[1], [0], [0], [1], [0, 0, 1, 1], [], []>} : vector<16x32xbf16>, vector<32x128xbf16>, vector<16x128xf32> -> vector<16x128xf32>
    %210 = vector.broadcast %205 : vector<1x128xf32> to vector<16x128xf32>
    %211 = arith.addf %209, %210 : vector<16x128xf32>
    %212 = vector.extract_strided_slice %211 {offsets = [0, 0], sizes = [16, 32], strides = [1, 1]} : vector<16x128xf32> to vector<16x32xf32>
    %213 = vector.extract_strided_slice %211 {offsets = [0, 32], sizes = [16, 32], strides = [1, 1]} : vector<16x128xf32> to vector<16x32xf32>
    %214 = vector.extract_strided_slice %211 {offsets = [0, 64], sizes = [16, 32], strides = [1, 1]} : vector<16x128xf32> to vector<16x32xf32>
    %215 = vector.extract_strided_slice %211 {offsets = [0, 96], sizes = [16, 32], strides = [1, 1]} : vector<16x128xf32> to vector<16x32xf32>
    %216 = vector.extract_strided_slice %212 {offsets = [0, 0], sizes = [16, 8], strides = [1, 1]} : vector<16x32xf32> to vector<16x8xf32>
    %217 = vector.extract_strided_slice %212 {offsets = [0, 8], sizes = [16, 8], strides = [1, 1]} : vector<16x32xf32> to vector<16x8xf32>
    %218 = vector.extract_strided_slice %212 {offsets = [0, 16], sizes = [16, 8], strides = [1, 1]} : vector<16x32xf32> to vector<16x8xf32>
    %219 = vector.extract_strided_slice %212 {offsets = [0, 24], sizes = [16, 8], strides = [1, 1]} : vector<16x32xf32> to vector<16x8xf32>
    %220 = vector.shape_cast %216 : vector<16x8xf32> to vector<1x16x8xf32>
    %221 = vector.shape_cast %217 : vector<16x8xf32> to vector<1x16x8xf32>
    %222 = vector.shape_cast %218 : vector<16x8xf32> to vector<1x16x8xf32>
    %223 = vector.shape_cast %219 : vector<16x8xf32> to vector<1x16x8xf32>
    %224 = tpu.concatenate %220, %221, %222, %223 in 0 : vector<1x16x8xf32>, vector<1x16x8xf32>, vector<1x16x8xf32>, vector<1x16x8xf32> -> vector<4x16x8xf32>
    %225 = vector.extract_strided_slice %213 {offsets = [0, 0], sizes = [16, 8], strides = [1, 1]} : vector<16x32xf32> to vector<16x8xf32>
    %226 = vector.extract_strided_slice %213 {offsets = [0, 8], sizes = [16, 8], strides = [1, 1]} : vector<16x32xf32> to vector<16x8xf32>
    %227 = vector.extract_strided_slice %213 {offsets = [0, 16], sizes = [16, 8], strides = [1, 1]} : vector<16x32xf32> to vector<16x8xf32>
    %228 = vector.extract_strided_slice %213 {offsets = [0, 24], sizes = [16, 8], strides = [1, 1]} : vector<16x32xf32> to vector<16x8xf32>
    %229 = vector.shape_cast %225 : vector<16x8xf32> to vector<1x16x8xf32>
    %230 = vector.shape_cast %226 : vector<16x8xf32> to vector<1x16x8xf32>
    %231 = vector.shape_cast %227 : vector<16x8xf32> to vector<1x16x8xf32>
    %232 = vector.shape_cast %228 : vector<16x8xf32> to vector<1x16x8xf32>
    %233 = tpu.concatenate %229, %230, %231, %232 in 0 : vector<1x16x8xf32>, vector<1x16x8xf32>, vector<1x16x8xf32>, vector<1x16x8xf32> -> vector<4x16x8xf32>
    %234 = vector.extract_strided_slice %214 {offsets = [0, 0], sizes = [16, 8], strides = [1, 1]} : vector<16x32xf32> to vector<16x8xf32>
    %235 = vector.extract_strided_slice %214 {offsets = [0, 8], sizes = [16, 8], strides = [1, 1]} : vector<16x32xf32> to vector<16x8xf32>
    %236 = vector.extract_strided_slice %214 {offsets = [0, 16], sizes = [16, 8], strides = [1, 1]} : vector<16x32xf32> to vector<16x8xf32>
    %237 = vector.extract_strided_slice %214 {offsets = [0, 24], sizes = [16, 8], strides = [1, 1]} : vector<16x32xf32> to vector<16x8xf32>
    %238 = vector.shape_cast %234 : vector<16x8xf32> to vector<1x16x8xf32>
    %239 = vector.shape_cast %235 : vector<16x8xf32> to vector<1x16x8xf32>
    %240 = vector.shape_cast %236 : vector<16x8xf32> to vector<1x16x8xf32>
    %241 = vector.shape_cast %237 : vector<16x8xf32> to vector<1x16x8xf32>
    %242 = tpu.concatenate %238, %239, %240, %241 in 0 : vector<1x16x8xf32>, vector<1x16x8xf32>, vector<1x16x8xf32>, vector<1x16x8xf32> -> vector<4x16x8xf32>
    %243 = vector.extract_strided_slice %207 {offsets = [0, 0], sizes = [4, 8], strides = [1, 1]} : vector<4x32xf32> to vector<4x8xf32>
    %244 = vector.extract_strided_slice %207 {offsets = [0, 8], sizes = [4, 8], strides = [1, 1]} : vector<4x32xf32> to vector<4x8xf32>
    %245 = vector.extract_strided_slice %207 {offsets = [0, 16], sizes = [4, 8], strides = [1, 1]} : vector<4x32xf32> to vector<4x8xf32>
    %246 = vector.extract_strided_slice %207 {offsets = [0, 24], sizes = [4, 8], strides = [1, 1]} : vector<4x32xf32> to vector<4x8xf32>
    %247 = vector.shape_cast %243 : vector<4x8xf32> to vector<1x4x8xf32>
    %248 = vector.shape_cast %244 : vector<4x8xf32> to vector<1x4x8xf32>
    %249 = vector.shape_cast %245 : vector<4x8xf32> to vector<1x4x8xf32>
    %250 = vector.shape_cast %246 : vector<4x8xf32> to vector<1x4x8xf32>
    %251 = tpu.concatenate %247, %248, %249, %250 in 0 : vector<1x4x8xf32>, vector<1x4x8xf32>, vector<1x4x8xf32>, vector<1x4x8xf32> -> vector<4x4x8xf32>
    %252 = arith.truncf %224 : vector<4x16x8xf32> to vector<4x16x8xbf16>
    %253 = arith.truncf %233 : vector<4x16x8xf32> to vector<4x16x8xbf16>
    "tpu.trace_start"() <{level = 10 : i32, message = "hnd,hmd->hnm"}> : () -> ()
    %cst_40 = arith.constant dense<0.000000e+00> : vector<4x16x16xf32>
    %254 = tpu.matmul %252, %253, %cst_40 {dimension_numbers = #tpu.dot_dimension_numbers<[2], [2], [1], [1], [0, 0, 0, 1, 1, 1], [0], [0]>} : vector<4x16x8xbf16>, vector<4x16x8xbf16>, vector<4x16x16xf32> -> vector<4x16x16xf32>
    "tpu.trace_stop"() : () -> ()
    %255 = vector.extract_strided_slice %251 {offsets = [0, 0, 0], sizes = [4, 1, 8], strides = [1, 1, 1]} : vector<4x4x8xf32> to vector<4x1x8xf32>
    %256 = vector.shape_cast %255 : vector<4x1x8xf32> to vector<4x8xf32>
    %257 = vector.shape_cast %256 : vector<4x8xf32> to vector<4x1x8xf32>
    %258 = vector.broadcast %257 : vector<4x1x8xf32> to vector<4x16x8xf32>
    %259 = arith.mulf %224, %258 : vector<4x16x8xf32>
    %cst_41 = arith.constant dense<0.000000e+00> : vector<4x16xf32>
    %260 = vector.multi_reduction <add>, %259, %cst_41 [2] : vector<4x16x8xf32> to vector<4x16xf32>
    %261 = vector.shape_cast %260 : vector<4x16xf32> to vector<4x16x1xf32>
    %262 = vector.extract_strided_slice %4 {offsets = [0, 0, 0], sizes = [1, 16, 16], strides = [1, 1, 1]} : vector<4x16x16xf32> to vector<1x16x16xf32>
    %263 = vector.shape_cast %262 : vector<1x16x16xf32> to vector<16x16xf32>
    %264 = vector.shape_cast %263 : vector<16x16xf32> to vector<1x16x16xf32>
    %265 = vector.broadcast %261 : vector<4x16x1xf32> to vector<4x16x16xf32>
    %266 = vector.broadcast %264 : vector<1x16x16xf32> to vector<4x16x16xf32>
    %267 = arith.mulf %265, %266 : vector<4x16x16xf32>
    %268 = arith.addf %254, %267 : vector<4x16x16xf32>
    %269 = vector.extract_strided_slice %251 {offsets = [0, 1, 0], sizes = [4, 1, 8], strides = [1, 1, 1]} : vector<4x4x8xf32> to vector<4x1x8xf32>
    %270 = vector.shape_cast %269 : vector<4x1x8xf32> to vector<4x8xf32>
    %271 = vector.shape_cast %270 : vector<4x8xf32> to vector<4x1x8xf32>
    %272 = vector.broadcast %271 : vector<4x1x8xf32> to vector<4x16x8xf32>
    %273 = arith.mulf %224, %272 : vector<4x16x8xf32>
    %cst_42 = arith.constant dense<0.000000e+00> : vector<4x16xf32>
    %274 = vector.multi_reduction <add>, %273, %cst_42 [2] : vector<4x16x8xf32> to vector<4x16xf32>
    %275 = vector.shape_cast %274 : vector<4x16xf32> to vector<4x16x1xf32>
    %276 = vector.extract_strided_slice %4 {offsets = [1, 0, 0], sizes = [1, 16, 16], strides = [1, 1, 1]} : vector<4x16x16xf32> to vector<1x16x16xf32>
    %277 = vector.shape_cast %276 : vector<1x16x16xf32> to vector<16x16xf32>
    %278 = vector.shape_cast %277 : vector<16x16xf32> to vector<1x16x16xf32>
    %279 = vector.broadcast %275 : vector<4x16x1xf32> to vector<4x16x16xf32>
    %280 = vector.broadcast %278 : vector<1x16x16xf32> to vector<4x16x16xf32>
    %281 = arith.mulf %279, %280 : vector<4x16x16xf32>
    %282 = arith.addf %268, %281 : vector<4x16x16xf32>
    %283 = vector.extract_strided_slice %251 {offsets = [0, 2, 0], sizes = [4, 1, 8], strides = [1, 1, 1]} : vector<4x4x8xf32> to vector<4x1x8xf32>
    %284 = vector.shape_cast %283 : vector<4x1x8xf32> to vector<4x8xf32>
    %285 = vector.shape_cast %284 : vector<4x8xf32> to vector<4x1x8xf32>
    %286 = vector.broadcast %285 : vector<4x1x8xf32> to vector<4x16x8xf32>
    %287 = arith.mulf %224, %286 : vector<4x16x8xf32>
    %cst_43 = arith.constant dense<0.000000e+00> : vector<4x16xf32>
    %288 = vector.multi_reduction <add>, %287, %cst_43 [2] : vector<4x16x8xf32> to vector<4x16xf32>
    %289 = vector.shape_cast %288 : vector<4x16xf32> to vector<4x16x1xf32>
    %290 = vector.extract_strided_slice %4 {offsets = [2, 0, 0], sizes = [1, 16, 16], strides = [1, 1, 1]} : vector<4x16x16xf32> to vector<1x16x16xf32>
    %291 = vector.shape_cast %290 : vector<1x16x16xf32> to vector<16x16xf32>
    %292 = vector.shape_cast %291 : vector<16x16xf32> to vector<1x16x16xf32>
    %293 = vector.broadcast %289 : vector<4x16x1xf32> to vector<4x16x16xf32>
    %294 = vector.broadcast %292 : vector<1x16x16xf32> to vector<4x16x16xf32>
    %295 = arith.mulf %293, %294 : vector<4x16x16xf32>
    %296 = arith.addf %282, %295 : vector<4x16x16xf32>
    %297 = vector.extract_strided_slice %251 {offsets = [0, 3, 0], sizes = [4, 1, 8], strides = [1, 1, 1]} : vector<4x4x8xf32> to vector<4x1x8xf32>
    %298 = vector.shape_cast %297 : vector<4x1x8xf32> to vector<4x8xf32>
    %299 = vector.shape_cast %298 : vector<4x8xf32> to vector<4x1x8xf32>
    %300 = vector.broadcast %299 : vector<4x1x8xf32> to vector<4x16x8xf32>
    %301 = arith.mulf %224, %300 : vector<4x16x8xf32>
    %cst_44 = arith.constant dense<0.000000e+00> : vector<4x16xf32>
    %302 = vector.multi_reduction <add>, %301, %cst_44 [2] : vector<4x16x8xf32> to vector<4x16xf32>
    %303 = vector.shape_cast %302 : vector<4x16xf32> to vector<4x16x1xf32>
    %304 = vector.extract_strided_slice %4 {offsets = [3, 0, 0], sizes = [1, 16, 16], strides = [1, 1, 1]} : vector<4x16x16xf32> to vector<1x16x16xf32>
    %305 = vector.shape_cast %304 : vector<1x16x16xf32> to vector<16x16xf32>
    %306 = vector.shape_cast %305 : vector<16x16xf32> to vector<1x16x16xf32>
    %307 = vector.broadcast %303 : vector<4x16x1xf32> to vector<4x16x16xf32>
    %308 = vector.broadcast %306 : vector<1x16x16xf32> to vector<4x16x16xf32>
    %309 = arith.mulf %307, %308 : vector<4x16x16xf32>
    %310 = arith.addf %296, %309 : vector<4x16x16xf32>
    %cst_45 = arith.constant 0.353553385 : f32
    %311 = vector.broadcast %cst_45 : f32 to vector<4x16x16xf32>
    %312 = arith.mulf %310, %311 : vector<4x16x16xf32>
    %cst_46 = arith.constant -1.000000e+30 : f32
    %313 = vector.shape_cast %3 : vector<1x16x16xi1> to vector<1x16x16xi1>
    %314 = vector.broadcast %313 : vector<1x16x16xi1> to vector<4x16x16xi1>
    %315 = vector.broadcast %cst_46 : f32 to vector<4x16x16xf32>
    %316 = arith.select %314, %312, %315 : vector<4x16x16xi1>, vector<4x16x16xf32>
    %cst_47 = arith.constant dense<0xFF800000> : vector<4x16xf32>
    %317 = vector.multi_reduction <maximumf>, %316, %cst_47 [2] : vector<4x16x16xf32> to vector<4x16xf32>
    %318 = vector.shape_cast %317 : vector<4x16xf32> to vector<4x16x1xf32>
    %319 = vector.broadcast %318 : vector<4x16x1xf32> to vector<4x16x16xf32>
    %320 = arith.subf %316, %319 : vector<4x16x16xf32>
    %321 = math.exp %320 : vector<4x16x16xf32>
    %cst_48 = arith.constant dense<0.000000e+00> : vector<4x16xf32>
    %322 = vector.multi_reduction <add>, %321, %cst_48 [2] : vector<4x16x16xf32> to vector<4x16xf32>
    %323 = vector.shape_cast %322 : vector<4x16xf32> to vector<4x16x1xf32>
    %324 = tpu.reciprocal %323 {approx = true} : vector<4x16x1xf32> -> vector<4x16x1xf32>
    %325 = vector.broadcast %324 : vector<4x16x1xf32> to vector<4x16x16xf32>
    %326 = arith.mulf %321, %325 : vector<4x16x16xf32>
    %327 = arith.truncf %326 : vector<4x16x16xf32> to vector<4x16x16xbf16>
    %328 = arith.truncf %242 : vector<4x16x8xf32> to vector<4x16x8xbf16>
    "tpu.trace_start"() <{level = 10 : i32, message = "hnm,hmd->hnd"}> : () -> ()
    %cst_49 = arith.constant dense<0.000000e+00> : vector<4x16x8xf32>
    %329 = tpu.matmul %327, %328, %cst_49 {dimension_numbers = #tpu.dot_dimension_numbers<[2], [1], [1], [2], [0, 0, 0, 1, 1, 2], [0], [0]>} : vector<4x16x16xbf16>, vector<4x16x8xbf16>, vector<4x16x8xf32> -> vector<4x16x8xf32>
    "tpu.trace_stop"() : () -> ()
    %330 = vector.extract_strided_slice %4 {offsets = [0, 0, 0], sizes = [1, 16, 16], strides = [1, 1, 1]} : vector<4x16x16xf32> to vector<1x16x16xf32>
    %331 = vector.shape_cast %330 : vector<1x16x16xf32> to vector<16x16xf32>
    %332 = vector.shape_cast %331 : vector<16x16xf32> to vector<1x16x16xf32>
    %333 = vector.broadcast %332 : vector<1x16x16xf32> to vector<4x16x16xf32>
    %334 = arith.mulf %326, %333 : vector<4x16x16xf32>
    %cst_50 = arith.constant dense<0.000000e+00> : vector<4x16xf32>
    %335 = vector.multi_reduction <add>, %334, %cst_50 [2] : vector<4x16x16xf32> to vector<4x16xf32>
    %336 = vector.shape_cast %335 : vector<4x16xf32> to vector<4x16x1xf32>
    %337 = vector.extract_strided_slice %251 {offsets = [0, 0, 0], sizes = [4, 1, 8], strides = [1, 1, 1]} : vector<4x4x8xf32> to vector<4x1x8xf32>
    %338 = vector.shape_cast %337 : vector<4x1x8xf32> to vector<4x8xf32>
    %339 = vector.shape_cast %338 : vector<4x8xf32> to vector<4x1x8xf32>
    %340 = vector.broadcast %336 : vector<4x16x1xf32> to vector<4x16x8xf32>
    %341 = vector.broadcast %339 : vector<4x1x8xf32> to vector<4x16x8xf32>
    %342 = arith.mulf %340, %341 : vector<4x16x8xf32>
    %343 = arith.addf %329, %342 : vector<4x16x8xf32>
    %344 = vector.extract_strided_slice %4 {offsets = [1, 0, 0], sizes = [1, 16, 16], strides = [1, 1, 1]} : vector<4x16x16xf32> to vector<1x16x16xf32>
    %345 = vector.shape_cast %344 : vector<1x16x16xf32> to vector<16x16xf32>
    %346 = vector.shape_cast %345 : vector<16x16xf32> to vector<1x16x16xf32>
    %347 = vector.broadcast %346 : vector<1x16x16xf32> to vector<4x16x16xf32>
    %348 = arith.mulf %326, %347 : vector<4x16x16xf32>
    %cst_51 = arith.constant dense<0.000000e+00> : vector<4x16xf32>
    %349 = vector.multi_reduction <add>, %348, %cst_51 [2] : vector<4x16x16xf32> to vector<4x16xf32>
    %350 = vector.shape_cast %349 : vector<4x16xf32> to vector<4x16x1xf32>
    %351 = vector.extract_strided_slice %251 {offsets = [0, 1, 0], sizes = [4, 1, 8], strides = [1, 1, 1]} : vector<4x4x8xf32> to vector<4x1x8xf32>
    %352 = vector.shape_cast %351 : vector<4x1x8xf32> to vector<4x8xf32>
    %353 = vector.shape_cast %352 : vector<4x8xf32> to vector<4x1x8xf32>
    %354 = vector.broadcast %350 : vector<4x16x1xf32> to vector<4x16x8xf32>
    %355 = vector.broadcast %353 : vector<4x1x8xf32> to vector<4x16x8xf32>
    %356 = arith.mulf %354, %355 : vector<4x16x8xf32>
    %357 = arith.addf %343, %356 : vector<4x16x8xf32>
    %358 = vector.extract_strided_slice %4 {offsets = [2, 0, 0], sizes = [1, 16, 16], strides = [1, 1, 1]} : vector<4x16x16xf32> to vector<1x16x16xf32>
    %359 = vector.shape_cast %358 : vector<1x16x16xf32> to vector<16x16xf32>
    %360 = vector.shape_cast %359 : vector<16x16xf32> to vector<1x16x16xf32>
    %361 = vector.broadcast %360 : vector<1x16x16xf32> to vector<4x16x16xf32>
    %362 = arith.mulf %326, %361 : vector<4x16x16xf32>
    %cst_52 = arith.constant dense<0.000000e+00> : vector<4x16xf32>
    %363 = vector.multi_reduction <add>, %362, %cst_52 [2] : vector<4x16x16xf32> to vector<4x16xf32>
    %364 = vector.shape_cast %363 : vector<4x16xf32> to vector<4x16x1xf32>
    %365 = vector.extract_strided_slice %251 {offsets = [0, 2, 0], sizes = [4, 1, 8], strides = [1, 1, 1]} : vector<4x4x8xf32> to vector<4x1x8xf32>
    %366 = vector.shape_cast %365 : vector<4x1x8xf32> to vector<4x8xf32>
    %367 = vector.shape_cast %366 : vector<4x8xf32> to vector<4x1x8xf32>
    %368 = vector.broadcast %364 : vector<4x16x1xf32> to vector<4x16x8xf32>
    %369 = vector.broadcast %367 : vector<4x1x8xf32> to vector<4x16x8xf32>
    %370 = arith.mulf %368, %369 : vector<4x16x8xf32>
    %371 = arith.addf %357, %370 : vector<4x16x8xf32>
    %372 = vector.extract_strided_slice %4 {offsets = [3, 0, 0], sizes = [1, 16, 16], strides = [1, 1, 1]} : vector<4x16x16xf32> to vector<1x16x16xf32>
    %373 = vector.shape_cast %372 : vector<1x16x16xf32> to vector<16x16xf32>
    %374 = vector.shape_cast %373 : vector<16x16xf32> to vector<1x16x16xf32>
    %375 = vector.broadcast %374 : vector<1x16x16xf32> to vector<4x16x16xf32>
    %376 = arith.mulf %326, %375 : vector<4x16x16xf32>
    %cst_53 = arith.constant dense<0.000000e+00> : vector<4x16xf32>
    %377 = vector.multi_reduction <add>, %376, %cst_53 [2] : vector<4x16x16xf32> to vector<4x16xf32>
    %378 = vector.shape_cast %377 : vector<4x16xf32> to vector<4x16x1xf32>
    %379 = vector.extract_strided_slice %251 {offsets = [0, 3, 0], sizes = [4, 1, 8], strides = [1, 1, 1]} : vector<4x4x8xf32> to vector<4x1x8xf32>
    %380 = vector.shape_cast %379 : vector<4x1x8xf32> to vector<4x8xf32>
    %381 = vector.shape_cast %380 : vector<4x8xf32> to vector<4x1x8xf32>
    %382 = vector.broadcast %378 : vector<4x16x1xf32> to vector<4x16x8xf32>
    %383 = vector.broadcast %381 : vector<4x1x8xf32> to vector<4x16x8xf32>
    %384 = arith.mulf %382, %383 : vector<4x16x8xf32>
    %385 = arith.addf %371, %384 : vector<4x16x8xf32>
    %386 = vector.extract_strided_slice %385 {offsets = [0, 0, 0], sizes = [1, 16, 8], strides = [1, 1, 1]} : vector<4x16x8xf32> to vector<1x16x8xf32>
    %387 = vector.shape_cast %386 : vector<1x16x8xf32> to vector<16x8xf32>
    %388 = vector.extract_strided_slice %385 {offsets = [1, 0, 0], sizes = [1, 16, 8], strides = [1, 1, 1]} : vector<4x16x8xf32> to vector<1x16x8xf32>
    %389 = vector.shape_cast %388 : vector<1x16x8xf32> to vector<16x8xf32>
    %390 = vector.extract_strided_slice %385 {offsets = [2, 0, 0], sizes = [1, 16, 8], strides = [1, 1, 1]} : vector<4x16x8xf32> to vector<1x16x8xf32>
    %391 = vector.shape_cast %390 : vector<1x16x8xf32> to vector<16x8xf32>
    %392 = vector.extract_strided_slice %385 {offsets = [3, 0, 0], sizes = [1, 16, 8], strides = [1, 1, 1]} : vector<4x16x8xf32> to vector<1x16x8xf32>
    %393 = vector.shape_cast %392 : vector<1x16x8xf32> to vector<16x8xf32>
    %394 = tpu.concatenate %387, %389, %391, %393 in 1 : vector<16x8xf32>, vector<16x8xf32>, vector<16x8xf32>, vector<16x8xf32> -> vector<16x32xf32>
    %395 = arith.addf %394, %215 : vector<16x32xf32>
    %cst_54 = arith.constant 0.000000e+00 : f32
    %396 = vector.broadcast %cst_54 : f32 to vector<16x32xf32>
    %397 = arith.maximumf %395, %396 : vector<16x32xf32>
    %c2 = arith.constant 2 : index
    %c0_55 = arith.constant 0 : index
    %c0_56 = arith.constant 0 : index
    %398 = vector.load %arg5[%c2, %c0_55, %c0_56] : memref<4x32x128xbf16, #tpu.memory_space<vmem>>, vector<1x32x128xbf16>
    %399 = vector.shape_cast %398 : vector<1x32x128xbf16> to vector<32x128xbf16>
    %c2_57 = arith.constant 2 : index
    %c0_58 = arith.constant 0 : index
    %c0_59 = arith.constant 0 : index
    %400 = vector.load %arg6[%c2_57, %c0_58, %c0_59] : memref<4x1x128xf32, #tpu.memory_space<vmem>>, vector<1x1x128xf32>
    %401 = vector.shape_cast %400 : vector<1x1x128xf32> to vector<1x128xf32>
    %c2_60 = arith.constant 2 : index
    %c0_61 = arith.constant 0 : index
    %c0_62 = arith.constant 0 : index
    %402 = vector.load %arg7[%c2_60, %c0_61, %c0_62] : memref<4x4x32xf32, #tpu.memory_space<vmem>>, vector<1x4x32xf32>
    %403 = vector.shape_cast %402 : vector<1x4x32xf32> to vector<4x32xf32>
    %404 = arith.truncf %397 : vector<16x32xf32> to vector<16x32xbf16>
    %cst_63 = arith.constant dense<0.000000e+00> : vector<16x128xf32>
    %405 = tpu.matmul %404, %399, %cst_63 {dimension_numbers = #tpu.dot_dimension_numbers<[1], [0], [0], [1], [0, 0, 1, 1], [], []>} : vector<16x32xbf16>, vector<32x128xbf16>, vector<16x128xf32> -> vector<16x128xf32>
    %406 = vector.broadcast %401 : vector<1x128xf32> to vector<16x128xf32>
    %407 = arith.addf %405, %406 : vector<16x128xf32>
    %408 = vector.extract_strided_slice %407 {offsets = [0, 0], sizes = [16, 32], strides = [1, 1]} : vector<16x128xf32> to vector<16x32xf32>
    %409 = vector.extract_strided_slice %407 {offsets = [0, 32], sizes = [16, 32], strides = [1, 1]} : vector<16x128xf32> to vector<16x32xf32>
    %410 = vector.extract_strided_slice %407 {offsets = [0, 64], sizes = [16, 32], strides = [1, 1]} : vector<16x128xf32> to vector<16x32xf32>
    %411 = vector.extract_strided_slice %407 {offsets = [0, 96], sizes = [16, 32], strides = [1, 1]} : vector<16x128xf32> to vector<16x32xf32>
    %412 = vector.extract_strided_slice %408 {offsets = [0, 0], sizes = [16, 8], strides = [1, 1]} : vector<16x32xf32> to vector<16x8xf32>
    %413 = vector.extract_strided_slice %408 {offsets = [0, 8], sizes = [16, 8], strides = [1, 1]} : vector<16x32xf32> to vector<16x8xf32>
    %414 = vector.extract_strided_slice %408 {offsets = [0, 16], sizes = [16, 8], strides = [1, 1]} : vector<16x32xf32> to vector<16x8xf32>
    %415 = vector.extract_strided_slice %408 {offsets = [0, 24], sizes = [16, 8], strides = [1, 1]} : vector<16x32xf32> to vector<16x8xf32>
    %416 = vector.shape_cast %412 : vector<16x8xf32> to vector<1x16x8xf32>
    %417 = vector.shape_cast %413 : vector<16x8xf32> to vector<1x16x8xf32>
    %418 = vector.shape_cast %414 : vector<16x8xf32> to vector<1x16x8xf32>
    %419 = vector.shape_cast %415 : vector<16x8xf32> to vector<1x16x8xf32>
    %420 = tpu.concatenate %416, %417, %418, %419 in 0 : vector<1x16x8xf32>, vector<1x16x8xf32>, vector<1x16x8xf32>, vector<1x16x8xf32> -> vector<4x16x8xf32>
    %421 = vector.extract_strided_slice %409 {offsets = [0, 0], sizes = [16, 8], strides = [1, 1]} : vector<16x32xf32> to vector<16x8xf32>
    %422 = vector.extract_strided_slice %409 {offsets = [0, 8], sizes = [16, 8], strides = [1, 1]} : vector<16x32xf32> to vector<16x8xf32>
    %423 = vector.extract_strided_slice %409 {offsets = [0, 16], sizes = [16, 8], strides = [1, 1]} : vector<16x32xf32> to vector<16x8xf32>
    %424 = vector.extract_strided_slice %409 {offsets = [0, 24], sizes = [16, 8], strides = [1, 1]} : vector<16x32xf32> to vector<16x8xf32>
    %425 = vector.shape_cast %421 : vector<16x8xf32> to vector<1x16x8xf32>
    %426 = vector.shape_cast %422 : vector<16x8xf32> to vector<1x16x8xf32>
    %427 = vector.shape_cast %423 : vector<16x8xf32> to vector<1x16x8xf32>
    %428 = vector.shape_cast %424 : vector<16x8xf32> to vector<1x16x8xf32>
    %429 = tpu.concatenate %425, %426, %427, %428 in 0 : vector<1x16x8xf32>, vector<1x16x8xf32>, vector<1x16x8xf32>, vector<1x16x8xf32> -> vector<4x16x8xf32>
    %430 = vector.extract_strided_slice %410 {offsets = [0, 0], sizes = [16, 8], strides = [1, 1]} : vector<16x32xf32> to vector<16x8xf32>
    %431 = vector.extract_strided_slice %410 {offsets = [0, 8], sizes = [16, 8], strides = [1, 1]} : vector<16x32xf32> to vector<16x8xf32>
    %432 = vector.extract_strided_slice %410 {offsets = [0, 16], sizes = [16, 8], strides = [1, 1]} : vector<16x32xf32> to vector<16x8xf32>
    %433 = vector.extract_strided_slice %410 {offsets = [0, 24], sizes = [16, 8], strides = [1, 1]} : vector<16x32xf32> to vector<16x8xf32>
    %434 = vector.shape_cast %430 : vector<16x8xf32> to vector<1x16x8xf32>
    %435 = vector.shape_cast %431 : vector<16x8xf32> to vector<1x16x8xf32>
    %436 = vector.shape_cast %432 : vector<16x8xf32> to vector<1x16x8xf32>
    %437 = vector.shape_cast %433 : vector<16x8xf32> to vector<1x16x8xf32>
    %438 = tpu.concatenate %434, %435, %436, %437 in 0 : vector<1x16x8xf32>, vector<1x16x8xf32>, vector<1x16x8xf32>, vector<1x16x8xf32> -> vector<4x16x8xf32>
    %439 = vector.extract_strided_slice %403 {offsets = [0, 0], sizes = [4, 8], strides = [1, 1]} : vector<4x32xf32> to vector<4x8xf32>
    %440 = vector.extract_strided_slice %403 {offsets = [0, 8], sizes = [4, 8], strides = [1, 1]} : vector<4x32xf32> to vector<4x8xf32>
    %441 = vector.extract_strided_slice %403 {offsets = [0, 16], sizes = [4, 8], strides = [1, 1]} : vector<4x32xf32> to vector<4x8xf32>
    %442 = vector.extract_strided_slice %403 {offsets = [0, 24], sizes = [4, 8], strides = [1, 1]} : vector<4x32xf32> to vector<4x8xf32>
    %443 = vector.shape_cast %439 : vector<4x8xf32> to vector<1x4x8xf32>
    %444 = vector.shape_cast %440 : vector<4x8xf32> to vector<1x4x8xf32>
    %445 = vector.shape_cast %441 : vector<4x8xf32> to vector<1x4x8xf32>
    %446 = vector.shape_cast %442 : vector<4x8xf32> to vector<1x4x8xf32>
    %447 = tpu.concatenate %443, %444, %445, %446 in 0 : vector<1x4x8xf32>, vector<1x4x8xf32>, vector<1x4x8xf32>, vector<1x4x8xf32> -> vector<4x4x8xf32>
    %448 = arith.truncf %420 : vector<4x16x8xf32> to vector<4x16x8xbf16>
    %449 = arith.truncf %429 : vector<4x16x8xf32> to vector<4x16x8xbf16>
    "tpu.trace_start"() <{level = 10 : i32, message = "hnd,hmd->hnm"}> : () -> ()
    %cst_64 = arith.constant dense<0.000000e+00> : vector<4x16x16xf32>
    %450 = tpu.matmul %448, %449, %cst_64 {dimension_numbers = #tpu.dot_dimension_numbers<[2], [2], [1], [1], [0, 0, 0, 1, 1, 1], [0], [0]>} : vector<4x16x8xbf16>, vector<4x16x8xbf16>, vector<4x16x16xf32> -> vector<4x16x16xf32>
    "tpu.trace_stop"() : () -> ()
    %451 = vector.extract_strided_slice %447 {offsets = [0, 0, 0], sizes = [4, 1, 8], strides = [1, 1, 1]} : vector<4x4x8xf32> to vector<4x1x8xf32>
    %452 = vector.shape_cast %451 : vector<4x1x8xf32> to vector<4x8xf32>
    %453 = vector.shape_cast %452 : vector<4x8xf32> to vector<4x1x8xf32>
    %454 = vector.broadcast %453 : vector<4x1x8xf32> to vector<4x16x8xf32>
    %455 = arith.mulf %420, %454 : vector<4x16x8xf32>
    %cst_65 = arith.constant dense<0.000000e+00> : vector<4x16xf32>
    %456 = vector.multi_reduction <add>, %455, %cst_65 [2] : vector<4x16x8xf32> to vector<4x16xf32>
    %457 = vector.shape_cast %456 : vector<4x16xf32> to vector<4x16x1xf32>
    %458 = vector.extract_strided_slice %4 {offsets = [0, 0, 0], sizes = [1, 16, 16], strides = [1, 1, 1]} : vector<4x16x16xf32> to vector<1x16x16xf32>
    %459 = vector.shape_cast %458 : vector<1x16x16xf32> to vector<16x16xf32>
    %460 = vector.shape_cast %459 : vector<16x16xf32> to vector<1x16x16xf32>
    %461 = vector.broadcast %457 : vector<4x16x1xf32> to vector<4x16x16xf32>
    %462 = vector.broadcast %460 : vector<1x16x16xf32> to vector<4x16x16xf32>
    %463 = arith.mulf %461, %462 : vector<4x16x16xf32>
    %464 = arith.addf %450, %463 : vector<4x16x16xf32>
    %465 = vector.extract_strided_slice %447 {offsets = [0, 1, 0], sizes = [4, 1, 8], strides = [1, 1, 1]} : vector<4x4x8xf32> to vector<4x1x8xf32>
    %466 = vector.shape_cast %465 : vector<4x1x8xf32> to vector<4x8xf32>
    %467 = vector.shape_cast %466 : vector<4x8xf32> to vector<4x1x8xf32>
    %468 = vector.broadcast %467 : vector<4x1x8xf32> to vector<4x16x8xf32>
    %469 = arith.mulf %420, %468 : vector<4x16x8xf32>
    %cst_66 = arith.constant dense<0.000000e+00> : vector<4x16xf32>
    %470 = vector.multi_reduction <add>, %469, %cst_66 [2] : vector<4x16x8xf32> to vector<4x16xf32>
    %471 = vector.shape_cast %470 : vector<4x16xf32> to vector<4x16x1xf32>
    %472 = vector.extract_strided_slice %4 {offsets = [1, 0, 0], sizes = [1, 16, 16], strides = [1, 1, 1]} : vector<4x16x16xf32> to vector<1x16x16xf32>
    %473 = vector.shape_cast %472 : vector<1x16x16xf32> to vector<16x16xf32>
    %474 = vector.shape_cast %473 : vector<16x16xf32> to vector<1x16x16xf32>
    %475 = vector.broadcast %471 : vector<4x16x1xf32> to vector<4x16x16xf32>
    %476 = vector.broadcast %474 : vector<1x16x16xf32> to vector<4x16x16xf32>
    %477 = arith.mulf %475, %476 : vector<4x16x16xf32>
    %478 = arith.addf %464, %477 : vector<4x16x16xf32>
    %479 = vector.extract_strided_slice %447 {offsets = [0, 2, 0], sizes = [4, 1, 8], strides = [1, 1, 1]} : vector<4x4x8xf32> to vector<4x1x8xf32>
    %480 = vector.shape_cast %479 : vector<4x1x8xf32> to vector<4x8xf32>
    %481 = vector.shape_cast %480 : vector<4x8xf32> to vector<4x1x8xf32>
    %482 = vector.broadcast %481 : vector<4x1x8xf32> to vector<4x16x8xf32>
    %483 = arith.mulf %420, %482 : vector<4x16x8xf32>
    %cst_67 = arith.constant dense<0.000000e+00> : vector<4x16xf32>
    %484 = vector.multi_reduction <add>, %483, %cst_67 [2] : vector<4x16x8xf32> to vector<4x16xf32>
    %485 = vector.shape_cast %484 : vector<4x16xf32> to vector<4x16x1xf32>
    %486 = vector.extract_strided_slice %4 {offsets = [2, 0, 0], sizes = [1, 16, 16], strides = [1, 1, 1]} : vector<4x16x16xf32> to vector<1x16x16xf32>
    %487 = vector.shape_cast %486 : vector<1x16x16xf32> to vector<16x16xf32>
    %488 = vector.shape_cast %487 : vector<16x16xf32> to vector<1x16x16xf32>
    %489 = vector.broadcast %485 : vector<4x16x1xf32> to vector<4x16x16xf32>
    %490 = vector.broadcast %488 : vector<1x16x16xf32> to vector<4x16x16xf32>
    %491 = arith.mulf %489, %490 : vector<4x16x16xf32>
    %492 = arith.addf %478, %491 : vector<4x16x16xf32>
    %493 = vector.extract_strided_slice %447 {offsets = [0, 3, 0], sizes = [4, 1, 8], strides = [1, 1, 1]} : vector<4x4x8xf32> to vector<4x1x8xf32>
    %494 = vector.shape_cast %493 : vector<4x1x8xf32> to vector<4x8xf32>
    %495 = vector.shape_cast %494 : vector<4x8xf32> to vector<4x1x8xf32>
    %496 = vector.broadcast %495 : vector<4x1x8xf32> to vector<4x16x8xf32>
    %497 = arith.mulf %420, %496 : vector<4x16x8xf32>
    %cst_68 = arith.constant dense<0.000000e+00> : vector<4x16xf32>
    %498 = vector.multi_reduction <add>, %497, %cst_68 [2] : vector<4x16x8xf32> to vector<4x16xf32>
    %499 = vector.shape_cast %498 : vector<4x16xf32> to vector<4x16x1xf32>
    %500 = vector.extract_strided_slice %4 {offsets = [3, 0, 0], sizes = [1, 16, 16], strides = [1, 1, 1]} : vector<4x16x16xf32> to vector<1x16x16xf32>
    %501 = vector.shape_cast %500 : vector<1x16x16xf32> to vector<16x16xf32>
    %502 = vector.shape_cast %501 : vector<16x16xf32> to vector<1x16x16xf32>
    %503 = vector.broadcast %499 : vector<4x16x1xf32> to vector<4x16x16xf32>
    %504 = vector.broadcast %502 : vector<1x16x16xf32> to vector<4x16x16xf32>
    %505 = arith.mulf %503, %504 : vector<4x16x16xf32>
    %506 = arith.addf %492, %505 : vector<4x16x16xf32>
    %cst_69 = arith.constant 0.353553385 : f32
    %507 = vector.broadcast %cst_69 : f32 to vector<4x16x16xf32>
    %508 = arith.mulf %506, %507 : vector<4x16x16xf32>
    %cst_70 = arith.constant -1.000000e+30 : f32
    %509 = vector.shape_cast %3 : vector<1x16x16xi1> to vector<1x16x16xi1>
    %510 = vector.broadcast %509 : vector<1x16x16xi1> to vector<4x16x16xi1>
    %511 = vector.broadcast %cst_70 : f32 to vector<4x16x16xf32>
    %512 = arith.select %510, %508, %511 : vector<4x16x16xi1>, vector<4x16x16xf32>
    %cst_71 = arith.constant dense<0xFF800000> : vector<4x16xf32>
    %513 = vector.multi_reduction <maximumf>, %512, %cst_71 [2] : vector<4x16x16xf32> to vector<4x16xf32>
    %514 = vector.shape_cast %513 : vector<4x16xf32> to vector<4x16x1xf32>
    %515 = vector.broadcast %514 : vector<4x16x1xf32> to vector<4x16x16xf32>
    %516 = arith.subf %512, %515 : vector<4x16x16xf32>
    %517 = math.exp %516 : vector<4x16x16xf32>
    %cst_72 = arith.constant dense<0.000000e+00> : vector<4x16xf32>
    %518 = vector.multi_reduction <add>, %517, %cst_72 [2] : vector<4x16x16xf32> to vector<4x16xf32>
    %519 = vector.shape_cast %518 : vector<4x16xf32> to vector<4x16x1xf32>
    %520 = tpu.reciprocal %519 {approx = true} : vector<4x16x1xf32> -> vector<4x16x1xf32>
    %521 = vector.broadcast %520 : vector<4x16x1xf32> to vector<4x16x16xf32>
    %522 = arith.mulf %517, %521 : vector<4x16x16xf32>
    %523 = arith.truncf %522 : vector<4x16x16xf32> to vector<4x16x16xbf16>
    %524 = arith.truncf %438 : vector<4x16x8xf32> to vector<4x16x8xbf16>
    "tpu.trace_start"() <{level = 10 : i32, message = "hnm,hmd->hnd"}> : () -> ()
    %cst_73 = arith.constant dense<0.000000e+00> : vector<4x16x8xf32>
    %525 = tpu.matmul %523, %524, %cst_73 {dimension_numbers = #tpu.dot_dimension_numbers<[2], [1], [1], [2], [0, 0, 0, 1, 1, 2], [0], [0]>} : vector<4x16x16xbf16>, vector<4x16x8xbf16>, vector<4x16x8xf32> -> vector<4x16x8xf32>
    "tpu.trace_stop"() : () -> ()
    %526 = vector.extract_strided_slice %4 {offsets = [0, 0, 0], sizes = [1, 16, 16], strides = [1, 1, 1]} : vector<4x16x16xf32> to vector<1x16x16xf32>
    %527 = vector.shape_cast %526 : vector<1x16x16xf32> to vector<16x16xf32>
    %528 = vector.shape_cast %527 : vector<16x16xf32> to vector<1x16x16xf32>
    %529 = vector.broadcast %528 : vector<1x16x16xf32> to vector<4x16x16xf32>
    %530 = arith.mulf %522, %529 : vector<4x16x16xf32>
    %cst_74 = arith.constant dense<0.000000e+00> : vector<4x16xf32>
    %531 = vector.multi_reduction <add>, %530, %cst_74 [2] : vector<4x16x16xf32> to vector<4x16xf32>
    %532 = vector.shape_cast %531 : vector<4x16xf32> to vector<4x16x1xf32>
    %533 = vector.extract_strided_slice %447 {offsets = [0, 0, 0], sizes = [4, 1, 8], strides = [1, 1, 1]} : vector<4x4x8xf32> to vector<4x1x8xf32>
    %534 = vector.shape_cast %533 : vector<4x1x8xf32> to vector<4x8xf32>
    %535 = vector.shape_cast %534 : vector<4x8xf32> to vector<4x1x8xf32>
    %536 = vector.broadcast %532 : vector<4x16x1xf32> to vector<4x16x8xf32>
    %537 = vector.broadcast %535 : vector<4x1x8xf32> to vector<4x16x8xf32>
    %538 = arith.mulf %536, %537 : vector<4x16x8xf32>
    %539 = arith.addf %525, %538 : vector<4x16x8xf32>
    %540 = vector.extract_strided_slice %4 {offsets = [1, 0, 0], sizes = [1, 16, 16], strides = [1, 1, 1]} : vector<4x16x16xf32> to vector<1x16x16xf32>
    %541 = vector.shape_cast %540 : vector<1x16x16xf32> to vector<16x16xf32>
    %542 = vector.shape_cast %541 : vector<16x16xf32> to vector<1x16x16xf32>
    %543 = vector.broadcast %542 : vector<1x16x16xf32> to vector<4x16x16xf32>
    %544 = arith.mulf %522, %543 : vector<4x16x16xf32>
    %cst_75 = arith.constant dense<0.000000e+00> : vector<4x16xf32>
    %545 = vector.multi_reduction <add>, %544, %cst_75 [2] : vector<4x16x16xf32> to vector<4x16xf32>
    %546 = vector.shape_cast %545 : vector<4x16xf32> to vector<4x16x1xf32>
    %547 = vector.extract_strided_slice %447 {offsets = [0, 1, 0], sizes = [4, 1, 8], strides = [1, 1, 1]} : vector<4x4x8xf32> to vector<4x1x8xf32>
    %548 = vector.shape_cast %547 : vector<4x1x8xf32> to vector<4x8xf32>
    %549 = vector.shape_cast %548 : vector<4x8xf32> to vector<4x1x8xf32>
    %550 = vector.broadcast %546 : vector<4x16x1xf32> to vector<4x16x8xf32>
    %551 = vector.broadcast %549 : vector<4x1x8xf32> to vector<4x16x8xf32>
    %552 = arith.mulf %550, %551 : vector<4x16x8xf32>
    %553 = arith.addf %539, %552 : vector<4x16x8xf32>
    %554 = vector.extract_strided_slice %4 {offsets = [2, 0, 0], sizes = [1, 16, 16], strides = [1, 1, 1]} : vector<4x16x16xf32> to vector<1x16x16xf32>
    %555 = vector.shape_cast %554 : vector<1x16x16xf32> to vector<16x16xf32>
    %556 = vector.shape_cast %555 : vector<16x16xf32> to vector<1x16x16xf32>
    %557 = vector.broadcast %556 : vector<1x16x16xf32> to vector<4x16x16xf32>
    %558 = arith.mulf %522, %557 : vector<4x16x16xf32>
    %cst_76 = arith.constant dense<0.000000e+00> : vector<4x16xf32>
    %559 = vector.multi_reduction <add>, %558, %cst_76 [2] : vector<4x16x16xf32> to vector<4x16xf32>
    %560 = vector.shape_cast %559 : vector<4x16xf32> to vector<4x16x1xf32>
    %561 = vector.extract_strided_slice %447 {offsets = [0, 2, 0], sizes = [4, 1, 8], strides = [1, 1, 1]} : vector<4x4x8xf32> to vector<4x1x8xf32>
    %562 = vector.shape_cast %561 : vector<4x1x8xf32> to vector<4x8xf32>
    %563 = vector.shape_cast %562 : vector<4x8xf32> to vector<4x1x8xf32>
    %564 = vector.broadcast %560 : vector<4x16x1xf32> to vector<4x16x8xf32>
    %565 = vector.broadcast %563 : vector<4x1x8xf32> to vector<4x16x8xf32>
    %566 = arith.mulf %564, %565 : vector<4x16x8xf32>
    %567 = arith.addf %553, %566 : vector<4x16x8xf32>
    %568 = vector.extract_strided_slice %4 {offsets = [3, 0, 0], sizes = [1, 16, 16], strides = [1, 1, 1]} : vector<4x16x16xf32> to vector<1x16x16xf32>
    %569 = vector.shape_cast %568 : vector<1x16x16xf32> to vector<16x16xf32>
    %570 = vector.shape_cast %569 : vector<16x16xf32> to vector<1x16x16xf32>
    %571 = vector.broadcast %570 : vector<1x16x16xf32> to vector<4x16x16xf32>
    %572 = arith.mulf %522, %571 : vector<4x16x16xf32>
    %cst_77 = arith.constant dense<0.000000e+00> : vector<4x16xf32>
    %573 = vector.multi_reduction <add>, %572, %cst_77 [2] : vector<4x16x16xf32> to vector<4x16xf32>
    %574 = vector.shape_cast %573 : vector<4x16xf32> to vector<4x16x1xf32>
    %575 = vector.extract_strided_slice %447 {offsets = [0, 3, 0], sizes = [4, 1, 8], strides = [1, 1, 1]} : vector<4x4x8xf32> to vector<4x1x8xf32>
    %576 = vector.shape_cast %575 : vector<4x1x8xf32> to vector<4x8xf32>
    %577 = vector.shape_cast %576 : vector<4x8xf32> to vector<4x1x8xf32>
    %578 = vector.broadcast %574 : vector<4x16x1xf32> to vector<4x16x8xf32>
    %579 = vector.broadcast %577 : vector<4x1x8xf32> to vector<4x16x8xf32>
    %580 = arith.mulf %578, %579 : vector<4x16x8xf32>
    %581 = arith.addf %567, %580 : vector<4x16x8xf32>
    %582 = vector.extract_strided_slice %581 {offsets = [0, 0, 0], sizes = [1, 16, 8], strides = [1, 1, 1]} : vector<4x16x8xf32> to vector<1x16x8xf32>
    %583 = vector.shape_cast %582 : vector<1x16x8xf32> to vector<16x8xf32>
    %584 = vector.extract_strided_slice %581 {offsets = [1, 0, 0], sizes = [1, 16, 8], strides = [1, 1, 1]} : vector<4x16x8xf32> to vector<1x16x8xf32>
    %585 = vector.shape_cast %584 : vector<1x16x8xf32> to vector<16x8xf32>
    %586 = vector.extract_strided_slice %581 {offsets = [2, 0, 0], sizes = [1, 16, 8], strides = [1, 1, 1]} : vector<4x16x8xf32> to vector<1x16x8xf32>
    %587 = vector.shape_cast %586 : vector<1x16x8xf32> to vector<16x8xf32>
    %588 = vector.extract_strided_slice %581 {offsets = [3, 0, 0], sizes = [1, 16, 8], strides = [1, 1, 1]} : vector<4x16x8xf32> to vector<1x16x8xf32>
    %589 = vector.shape_cast %588 : vector<1x16x8xf32> to vector<16x8xf32>
    %590 = tpu.concatenate %583, %585, %587, %589 in 1 : vector<16x8xf32>, vector<16x8xf32>, vector<16x8xf32>, vector<16x8xf32> -> vector<16x32xf32>
    %591 = arith.addf %590, %411 : vector<16x32xf32>
    %cst_78 = arith.constant 0.000000e+00 : f32
    %592 = vector.broadcast %cst_78 : f32 to vector<16x32xf32>
    %593 = arith.maximumf %591, %592 : vector<16x32xf32>
    %c3 = arith.constant 3 : index
    %c0_79 = arith.constant 0 : index
    %c0_80 = arith.constant 0 : index
    %594 = vector.load %arg5[%c3, %c0_79, %c0_80] : memref<4x32x128xbf16, #tpu.memory_space<vmem>>, vector<1x32x128xbf16>
    %595 = vector.shape_cast %594 : vector<1x32x128xbf16> to vector<32x128xbf16>
    %c3_81 = arith.constant 3 : index
    %c0_82 = arith.constant 0 : index
    %c0_83 = arith.constant 0 : index
    %596 = vector.load %arg6[%c3_81, %c0_82, %c0_83] : memref<4x1x128xf32, #tpu.memory_space<vmem>>, vector<1x1x128xf32>
    %597 = vector.shape_cast %596 : vector<1x1x128xf32> to vector<1x128xf32>
    %c3_84 = arith.constant 3 : index
    %c0_85 = arith.constant 0 : index
    %c0_86 = arith.constant 0 : index
    %598 = vector.load %arg7[%c3_84, %c0_85, %c0_86] : memref<4x4x32xf32, #tpu.memory_space<vmem>>, vector<1x4x32xf32>
    %599 = vector.shape_cast %598 : vector<1x4x32xf32> to vector<4x32xf32>
    %600 = arith.truncf %593 : vector<16x32xf32> to vector<16x32xbf16>
    %cst_87 = arith.constant dense<0.000000e+00> : vector<16x128xf32>
    %601 = tpu.matmul %600, %595, %cst_87 {dimension_numbers = #tpu.dot_dimension_numbers<[1], [0], [0], [1], [0, 0, 1, 1], [], []>} : vector<16x32xbf16>, vector<32x128xbf16>, vector<16x128xf32> -> vector<16x128xf32>
    %602 = vector.broadcast %597 : vector<1x128xf32> to vector<16x128xf32>
    %603 = arith.addf %601, %602 : vector<16x128xf32>
    %604 = vector.extract_strided_slice %603 {offsets = [0, 0], sizes = [16, 32], strides = [1, 1]} : vector<16x128xf32> to vector<16x32xf32>
    %605 = vector.extract_strided_slice %603 {offsets = [0, 32], sizes = [16, 32], strides = [1, 1]} : vector<16x128xf32> to vector<16x32xf32>
    %606 = vector.extract_strided_slice %603 {offsets = [0, 64], sizes = [16, 32], strides = [1, 1]} : vector<16x128xf32> to vector<16x32xf32>
    %607 = vector.extract_strided_slice %603 {offsets = [0, 96], sizes = [16, 32], strides = [1, 1]} : vector<16x128xf32> to vector<16x32xf32>
    %608 = vector.extract_strided_slice %604 {offsets = [0, 0], sizes = [16, 8], strides = [1, 1]} : vector<16x32xf32> to vector<16x8xf32>
    %609 = vector.extract_strided_slice %604 {offsets = [0, 8], sizes = [16, 8], strides = [1, 1]} : vector<16x32xf32> to vector<16x8xf32>
    %610 = vector.extract_strided_slice %604 {offsets = [0, 16], sizes = [16, 8], strides = [1, 1]} : vector<16x32xf32> to vector<16x8xf32>
    %611 = vector.extract_strided_slice %604 {offsets = [0, 24], sizes = [16, 8], strides = [1, 1]} : vector<16x32xf32> to vector<16x8xf32>
    %612 = vector.shape_cast %608 : vector<16x8xf32> to vector<1x16x8xf32>
    %613 = vector.shape_cast %609 : vector<16x8xf32> to vector<1x16x8xf32>
    %614 = vector.shape_cast %610 : vector<16x8xf32> to vector<1x16x8xf32>
    %615 = vector.shape_cast %611 : vector<16x8xf32> to vector<1x16x8xf32>
    %616 = tpu.concatenate %612, %613, %614, %615 in 0 : vector<1x16x8xf32>, vector<1x16x8xf32>, vector<1x16x8xf32>, vector<1x16x8xf32> -> vector<4x16x8xf32>
    %617 = vector.extract_strided_slice %605 {offsets = [0, 0], sizes = [16, 8], strides = [1, 1]} : vector<16x32xf32> to vector<16x8xf32>
    %618 = vector.extract_strided_slice %605 {offsets = [0, 8], sizes = [16, 8], strides = [1, 1]} : vector<16x32xf32> to vector<16x8xf32>
    %619 = vector.extract_strided_slice %605 {offsets = [0, 16], sizes = [16, 8], strides = [1, 1]} : vector<16x32xf32> to vector<16x8xf32>
    %620 = vector.extract_strided_slice %605 {offsets = [0, 24], sizes = [16, 8], strides = [1, 1]} : vector<16x32xf32> to vector<16x8xf32>
    %621 = vector.shape_cast %617 : vector<16x8xf32> to vector<1x16x8xf32>
    %622 = vector.shape_cast %618 : vector<16x8xf32> to vector<1x16x8xf32>
    %623 = vector.shape_cast %619 : vector<16x8xf32> to vector<1x16x8xf32>
    %624 = vector.shape_cast %620 : vector<16x8xf32> to vector<1x16x8xf32>
    %625 = tpu.concatenate %621, %622, %623, %624 in 0 : vector<1x16x8xf32>, vector<1x16x8xf32>, vector<1x16x8xf32>, vector<1x16x8xf32> -> vector<4x16x8xf32>
    %626 = vector.extract_strided_slice %606 {offsets = [0, 0], sizes = [16, 8], strides = [1, 1]} : vector<16x32xf32> to vector<16x8xf32>
    %627 = vector.extract_strided_slice %606 {offsets = [0, 8], sizes = [16, 8], strides = [1, 1]} : vector<16x32xf32> to vector<16x8xf32>
    %628 = vector.extract_strided_slice %606 {offsets = [0, 16], sizes = [16, 8], strides = [1, 1]} : vector<16x32xf32> to vector<16x8xf32>
    %629 = vector.extract_strided_slice %606 {offsets = [0, 24], sizes = [16, 8], strides = [1, 1]} : vector<16x32xf32> to vector<16x8xf32>
    %630 = vector.shape_cast %626 : vector<16x8xf32> to vector<1x16x8xf32>
    %631 = vector.shape_cast %627 : vector<16x8xf32> to vector<1x16x8xf32>
    %632 = vector.shape_cast %628 : vector<16x8xf32> to vector<1x16x8xf32>
    %633 = vector.shape_cast %629 : vector<16x8xf32> to vector<1x16x8xf32>
    %634 = tpu.concatenate %630, %631, %632, %633 in 0 : vector<1x16x8xf32>, vector<1x16x8xf32>, vector<1x16x8xf32>, vector<1x16x8xf32> -> vector<4x16x8xf32>
    %635 = vector.extract_strided_slice %599 {offsets = [0, 0], sizes = [4, 8], strides = [1, 1]} : vector<4x32xf32> to vector<4x8xf32>
    %636 = vector.extract_strided_slice %599 {offsets = [0, 8], sizes = [4, 8], strides = [1, 1]} : vector<4x32xf32> to vector<4x8xf32>
    %637 = vector.extract_strided_slice %599 {offsets = [0, 16], sizes = [4, 8], strides = [1, 1]} : vector<4x32xf32> to vector<4x8xf32>
    %638 = vector.extract_strided_slice %599 {offsets = [0, 24], sizes = [4, 8], strides = [1, 1]} : vector<4x32xf32> to vector<4x8xf32>
    %639 = vector.shape_cast %635 : vector<4x8xf32> to vector<1x4x8xf32>
    %640 = vector.shape_cast %636 : vector<4x8xf32> to vector<1x4x8xf32>
    %641 = vector.shape_cast %637 : vector<4x8xf32> to vector<1x4x8xf32>
    %642 = vector.shape_cast %638 : vector<4x8xf32> to vector<1x4x8xf32>
    %643 = tpu.concatenate %639, %640, %641, %642 in 0 : vector<1x4x8xf32>, vector<1x4x8xf32>, vector<1x4x8xf32>, vector<1x4x8xf32> -> vector<4x4x8xf32>
    %644 = arith.truncf %616 : vector<4x16x8xf32> to vector<4x16x8xbf16>
    %645 = arith.truncf %625 : vector<4x16x8xf32> to vector<4x16x8xbf16>
    "tpu.trace_start"() <{level = 10 : i32, message = "hnd,hmd->hnm"}> : () -> ()
    %cst_88 = arith.constant dense<0.000000e+00> : vector<4x16x16xf32>
    %646 = tpu.matmul %644, %645, %cst_88 {dimension_numbers = #tpu.dot_dimension_numbers<[2], [2], [1], [1], [0, 0, 0, 1, 1, 1], [0], [0]>} : vector<4x16x8xbf16>, vector<4x16x8xbf16>, vector<4x16x16xf32> -> vector<4x16x16xf32>
    "tpu.trace_stop"() : () -> ()
    %647 = vector.extract_strided_slice %643 {offsets = [0, 0, 0], sizes = [4, 1, 8], strides = [1, 1, 1]} : vector<4x4x8xf32> to vector<4x1x8xf32>
    %648 = vector.shape_cast %647 : vector<4x1x8xf32> to vector<4x8xf32>
    %649 = vector.shape_cast %648 : vector<4x8xf32> to vector<4x1x8xf32>
    %650 = vector.broadcast %649 : vector<4x1x8xf32> to vector<4x16x8xf32>
    %651 = arith.mulf %616, %650 : vector<4x16x8xf32>
    %cst_89 = arith.constant dense<0.000000e+00> : vector<4x16xf32>
    %652 = vector.multi_reduction <add>, %651, %cst_89 [2] : vector<4x16x8xf32> to vector<4x16xf32>
    %653 = vector.shape_cast %652 : vector<4x16xf32> to vector<4x16x1xf32>
    %654 = vector.extract_strided_slice %4 {offsets = [0, 0, 0], sizes = [1, 16, 16], strides = [1, 1, 1]} : vector<4x16x16xf32> to vector<1x16x16xf32>
    %655 = vector.shape_cast %654 : vector<1x16x16xf32> to vector<16x16xf32>
    %656 = vector.shape_cast %655 : vector<16x16xf32> to vector<1x16x16xf32>
    %657 = vector.broadcast %653 : vector<4x16x1xf32> to vector<4x16x16xf32>
    %658 = vector.broadcast %656 : vector<1x16x16xf32> to vector<4x16x16xf32>
    %659 = arith.mulf %657, %658 : vector<4x16x16xf32>
    %660 = arith.addf %646, %659 : vector<4x16x16xf32>
    %661 = vector.extract_strided_slice %643 {offsets = [0, 1, 0], sizes = [4, 1, 8], strides = [1, 1, 1]} : vector<4x4x8xf32> to vector<4x1x8xf32>
    %662 = vector.shape_cast %661 : vector<4x1x8xf32> to vector<4x8xf32>
    %663 = vector.shape_cast %662 : vector<4x8xf32> to vector<4x1x8xf32>
    %664 = vector.broadcast %663 : vector<4x1x8xf32> to vector<4x16x8xf32>
    %665 = arith.mulf %616, %664 : vector<4x16x8xf32>
    %cst_90 = arith.constant dense<0.000000e+00> : vector<4x16xf32>
    %666 = vector.multi_reduction <add>, %665, %cst_90 [2] : vector<4x16x8xf32> to vector<4x16xf32>
    %667 = vector.shape_cast %666 : vector<4x16xf32> to vector<4x16x1xf32>
    %668 = vector.extract_strided_slice %4 {offsets = [1, 0, 0], sizes = [1, 16, 16], strides = [1, 1, 1]} : vector<4x16x16xf32> to vector<1x16x16xf32>
    %669 = vector.shape_cast %668 : vector<1x16x16xf32> to vector<16x16xf32>
    %670 = vector.shape_cast %669 : vector<16x16xf32> to vector<1x16x16xf32>
    %671 = vector.broadcast %667 : vector<4x16x1xf32> to vector<4x16x16xf32>
    %672 = vector.broadcast %670 : vector<1x16x16xf32> to vector<4x16x16xf32>
    %673 = arith.mulf %671, %672 : vector<4x16x16xf32>
    %674 = arith.addf %660, %673 : vector<4x16x16xf32>
    %675 = vector.extract_strided_slice %643 {offsets = [0, 2, 0], sizes = [4, 1, 8], strides = [1, 1, 1]} : vector<4x4x8xf32> to vector<4x1x8xf32>
    %676 = vector.shape_cast %675 : vector<4x1x8xf32> to vector<4x8xf32>
    %677 = vector.shape_cast %676 : vector<4x8xf32> to vector<4x1x8xf32>
    %678 = vector.broadcast %677 : vector<4x1x8xf32> to vector<4x16x8xf32>
    %679 = arith.mulf %616, %678 : vector<4x16x8xf32>
    %cst_91 = arith.constant dense<0.000000e+00> : vector<4x16xf32>
    %680 = vector.multi_reduction <add>, %679, %cst_91 [2] : vector<4x16x8xf32> to vector<4x16xf32>
    %681 = vector.shape_cast %680 : vector<4x16xf32> to vector<4x16x1xf32>
    %682 = vector.extract_strided_slice %4 {offsets = [2, 0, 0], sizes = [1, 16, 16], strides = [1, 1, 1]} : vector<4x16x16xf32> to vector<1x16x16xf32>
    %683 = vector.shape_cast %682 : vector<1x16x16xf32> to vector<16x16xf32>
    %684 = vector.shape_cast %683 : vector<16x16xf32> to vector<1x16x16xf32>
    %685 = vector.broadcast %681 : vector<4x16x1xf32> to vector<4x16x16xf32>
    %686 = vector.broadcast %684 : vector<1x16x16xf32> to vector<4x16x16xf32>
    %687 = arith.mulf %685, %686 : vector<4x16x16xf32>
    %688 = arith.addf %674, %687 : vector<4x16x16xf32>
    %689 = vector.extract_strided_slice %643 {offsets = [0, 3, 0], sizes = [4, 1, 8], strides = [1, 1, 1]} : vector<4x4x8xf32> to vector<4x1x8xf32>
    %690 = vector.shape_cast %689 : vector<4x1x8xf32> to vector<4x8xf32>
    %691 = vector.shape_cast %690 : vector<4x8xf32> to vector<4x1x8xf32>
    %692 = vector.broadcast %691 : vector<4x1x8xf32> to vector<4x16x8xf32>
    %693 = arith.mulf %616, %692 : vector<4x16x8xf32>
    %cst_92 = arith.constant dense<0.000000e+00> : vector<4x16xf32>
    %694 = vector.multi_reduction <add>, %693, %cst_92 [2] : vector<4x16x8xf32> to vector<4x16xf32>
    %695 = vector.shape_cast %694 : vector<4x16xf32> to vector<4x16x1xf32>
    %696 = vector.extract_strided_slice %4 {offsets = [3, 0, 0], sizes = [1, 16, 16], strides = [1, 1, 1]} : vector<4x16x16xf32> to vector<1x16x16xf32>
    %697 = vector.shape_cast %696 : vector<1x16x16xf32> to vector<16x16xf32>
    %698 = vector.shape_cast %697 : vector<16x16xf32> to vector<1x16x16xf32>
    %699 = vector.broadcast %695 : vector<4x16x1xf32> to vector<4x16x16xf32>
    %700 = vector.broadcast %698 : vector<1x16x16xf32> to vector<4x16x16xf32>
    %701 = arith.mulf %699, %700 : vector<4x16x16xf32>
    %702 = arith.addf %688, %701 : vector<4x16x16xf32>
    %cst_93 = arith.constant 0.353553385 : f32
    %703 = vector.broadcast %cst_93 : f32 to vector<4x16x16xf32>
    %704 = arith.mulf %702, %703 : vector<4x16x16xf32>
    %cst_94 = arith.constant -1.000000e+30 : f32
    %705 = vector.shape_cast %3 : vector<1x16x16xi1> to vector<1x16x16xi1>
    %706 = vector.broadcast %705 : vector<1x16x16xi1> to vector<4x16x16xi1>
    %707 = vector.broadcast %cst_94 : f32 to vector<4x16x16xf32>
    %708 = arith.select %706, %704, %707 : vector<4x16x16xi1>, vector<4x16x16xf32>
    %cst_95 = arith.constant dense<0xFF800000> : vector<4x16xf32>
    %709 = vector.multi_reduction <maximumf>, %708, %cst_95 [2] : vector<4x16x16xf32> to vector<4x16xf32>
    %710 = vector.shape_cast %709 : vector<4x16xf32> to vector<4x16x1xf32>
    %711 = vector.broadcast %710 : vector<4x16x1xf32> to vector<4x16x16xf32>
    %712 = arith.subf %708, %711 : vector<4x16x16xf32>
    %713 = math.exp %712 : vector<4x16x16xf32>
    %cst_96 = arith.constant dense<0.000000e+00> : vector<4x16xf32>
    %714 = vector.multi_reduction <add>, %713, %cst_96 [2] : vector<4x16x16xf32> to vector<4x16xf32>
    %715 = vector.shape_cast %714 : vector<4x16xf32> to vector<4x16x1xf32>
    %716 = tpu.reciprocal %715 {approx = true} : vector<4x16x1xf32> -> vector<4x16x1xf32>
    %717 = vector.broadcast %716 : vector<4x16x1xf32> to vector<4x16x16xf32>
    %718 = arith.mulf %713, %717 : vector<4x16x16xf32>
    %719 = arith.truncf %718 : vector<4x16x16xf32> to vector<4x16x16xbf16>
    %720 = arith.truncf %634 : vector<4x16x8xf32> to vector<4x16x8xbf16>
    "tpu.trace_start"() <{level = 10 : i32, message = "hnm,hmd->hnd"}> : () -> ()
    %cst_97 = arith.constant dense<0.000000e+00> : vector<4x16x8xf32>
    %721 = tpu.matmul %719, %720, %cst_97 {dimension_numbers = #tpu.dot_dimension_numbers<[2], [1], [1], [2], [0, 0, 0, 1, 1, 2], [0], [0]>} : vector<4x16x16xbf16>, vector<4x16x8xbf16>, vector<4x16x8xf32> -> vector<4x16x8xf32>
    "tpu.trace_stop"() : () -> ()
    %722 = vector.extract_strided_slice %4 {offsets = [0, 0, 0], sizes = [1, 16, 16], strides = [1, 1, 1]} : vector<4x16x16xf32> to vector<1x16x16xf32>
    %723 = vector.shape_cast %722 : vector<1x16x16xf32> to vector<16x16xf32>
    %724 = vector.shape_cast %723 : vector<16x16xf32> to vector<1x16x16xf32>
    %725 = vector.broadcast %724 : vector<1x16x16xf32> to vector<4x16x16xf32>
    %726 = arith.mulf %718, %725 : vector<4x16x16xf32>
    %cst_98 = arith.constant dense<0.000000e+00> : vector<4x16xf32>
    %727 = vector.multi_reduction <add>, %726, %cst_98 [2] : vector<4x16x16xf32> to vector<4x16xf32>
    %728 = vector.shape_cast %727 : vector<4x16xf32> to vector<4x16x1xf32>
    %729 = vector.extract_strided_slice %643 {offsets = [0, 0, 0], sizes = [4, 1, 8], strides = [1, 1, 1]} : vector<4x4x8xf32> to vector<4x1x8xf32>
    %730 = vector.shape_cast %729 : vector<4x1x8xf32> to vector<4x8xf32>
    %731 = vector.shape_cast %730 : vector<4x8xf32> to vector<4x1x8xf32>
    %732 = vector.broadcast %728 : vector<4x16x1xf32> to vector<4x16x8xf32>
    %733 = vector.broadcast %731 : vector<4x1x8xf32> to vector<4x16x8xf32>
    %734 = arith.mulf %732, %733 : vector<4x16x8xf32>
    %735 = arith.addf %721, %734 : vector<4x16x8xf32>
    %736 = vector.extract_strided_slice %4 {offsets = [1, 0, 0], sizes = [1, 16, 16], strides = [1, 1, 1]} : vector<4x16x16xf32> to vector<1x16x16xf32>
    %737 = vector.shape_cast %736 : vector<1x16x16xf32> to vector<16x16xf32>
    %738 = vector.shape_cast %737 : vector<16x16xf32> to vector<1x16x16xf32>
    %739 = vector.broadcast %738 : vector<1x16x16xf32> to vector<4x16x16xf32>
    %740 = arith.mulf %718, %739 : vector<4x16x16xf32>
    %cst_99 = arith.constant dense<0.000000e+00> : vector<4x16xf32>
    %741 = vector.multi_reduction <add>, %740, %cst_99 [2] : vector<4x16x16xf32> to vector<4x16xf32>
    %742 = vector.shape_cast %741 : vector<4x16xf32> to vector<4x16x1xf32>
    %743 = vector.extract_strided_slice %643 {offsets = [0, 1, 0], sizes = [4, 1, 8], strides = [1, 1, 1]} : vector<4x4x8xf32> to vector<4x1x8xf32>
    %744 = vector.shape_cast %743 : vector<4x1x8xf32> to vector<4x8xf32>
    %745 = vector.shape_cast %744 : vector<4x8xf32> to vector<4x1x8xf32>
    %746 = vector.broadcast %742 : vector<4x16x1xf32> to vector<4x16x8xf32>
    %747 = vector.broadcast %745 : vector<4x1x8xf32> to vector<4x16x8xf32>
    %748 = arith.mulf %746, %747 : vector<4x16x8xf32>
    %749 = arith.addf %735, %748 : vector<4x16x8xf32>
    %750 = vector.extract_strided_slice %4 {offsets = [2, 0, 0], sizes = [1, 16, 16], strides = [1, 1, 1]} : vector<4x16x16xf32> to vector<1x16x16xf32>
    %751 = vector.shape_cast %750 : vector<1x16x16xf32> to vector<16x16xf32>
    %752 = vector.shape_cast %751 : vector<16x16xf32> to vector<1x16x16xf32>
    %753 = vector.broadcast %752 : vector<1x16x16xf32> to vector<4x16x16xf32>
    %754 = arith.mulf %718, %753 : vector<4x16x16xf32>
    %cst_100 = arith.constant dense<0.000000e+00> : vector<4x16xf32>
    %755 = vector.multi_reduction <add>, %754, %cst_100 [2] : vector<4x16x16xf32> to vector<4x16xf32>
    %756 = vector.shape_cast %755 : vector<4x16xf32> to vector<4x16x1xf32>
    %757 = vector.extract_strided_slice %643 {offsets = [0, 2, 0], sizes = [4, 1, 8], strides = [1, 1, 1]} : vector<4x4x8xf32> to vector<4x1x8xf32>
    %758 = vector.shape_cast %757 : vector<4x1x8xf32> to vector<4x8xf32>
    %759 = vector.shape_cast %758 : vector<4x8xf32> to vector<4x1x8xf32>
    %760 = vector.broadcast %756 : vector<4x16x1xf32> to vector<4x16x8xf32>
    %761 = vector.broadcast %759 : vector<4x1x8xf32> to vector<4x16x8xf32>
    %762 = arith.mulf %760, %761 : vector<4x16x8xf32>
    %763 = arith.addf %749, %762 : vector<4x16x8xf32>
    %764 = vector.extract_strided_slice %4 {offsets = [3, 0, 0], sizes = [1, 16, 16], strides = [1, 1, 1]} : vector<4x16x16xf32> to vector<1x16x16xf32>
    %765 = vector.shape_cast %764 : vector<1x16x16xf32> to vector<16x16xf32>
    %766 = vector.shape_cast %765 : vector<16x16xf32> to vector<1x16x16xf32>
    %767 = vector.broadcast %766 : vector<1x16x16xf32> to vector<4x16x16xf32>
    %768 = arith.mulf %718, %767 : vector<4x16x16xf32>
    %cst_101 = arith.constant dense<0.000000e+00> : vector<4x16xf32>
    %769 = vector.multi_reduction <add>, %768, %cst_101 [2] : vector<4x16x16xf32> to vector<4x16xf32>
    %770 = vector.shape_cast %769 : vector<4x16xf32> to vector<4x16x1xf32>
    %771 = vector.extract_strided_slice %643 {offsets = [0, 3, 0], sizes = [4, 1, 8], strides = [1, 1, 1]} : vector<4x4x8xf32> to vector<4x1x8xf32>
    %772 = vector.shape_cast %771 : vector<4x1x8xf32> to vector<4x8xf32>
    %773 = vector.shape_cast %772 : vector<4x8xf32> to vector<4x1x8xf32>
    %774 = vector.broadcast %770 : vector<4x16x1xf32> to vector<4x16x8xf32>
    %775 = vector.broadcast %773 : vector<4x1x8xf32> to vector<4x16x8xf32>
    %776 = arith.mulf %774, %775 : vector<4x16x8xf32>
    %777 = arith.addf %763, %776 : vector<4x16x8xf32>
    %778 = vector.extract_strided_slice %777 {offsets = [0, 0, 0], sizes = [1, 16, 8], strides = [1, 1, 1]} : vector<4x16x8xf32> to vector<1x16x8xf32>
    %779 = vector.shape_cast %778 : vector<1x16x8xf32> to vector<16x8xf32>
    %780 = vector.extract_strided_slice %777 {offsets = [1, 0, 0], sizes = [1, 16, 8], strides = [1, 1, 1]} : vector<4x16x8xf32> to vector<1x16x8xf32>
    %781 = vector.shape_cast %780 : vector<1x16x8xf32> to vector<16x8xf32>
    %782 = vector.extract_strided_slice %777 {offsets = [2, 0, 0], sizes = [1, 16, 8], strides = [1, 1, 1]} : vector<4x16x8xf32> to vector<1x16x8xf32>
    %783 = vector.shape_cast %782 : vector<1x16x8xf32> to vector<16x8xf32>
    %784 = vector.extract_strided_slice %777 {offsets = [3, 0, 0], sizes = [1, 16, 8], strides = [1, 1, 1]} : vector<4x16x8xf32> to vector<1x16x8xf32>
    %785 = vector.shape_cast %784 : vector<1x16x8xf32> to vector<16x8xf32>
    %786 = tpu.concatenate %779, %781, %783, %785 in 1 : vector<16x8xf32>, vector<16x8xf32>, vector<16x8xf32>, vector<16x8xf32> -> vector<16x32xf32>
    %787 = arith.addf %786, %607 : vector<16x32xf32>
    %cst_102 = arith.constant 0.000000e+00 : f32
    %788 = vector.broadcast %cst_102 : f32 to vector<16x32xf32>
    %789 = arith.maximumf %787, %788 : vector<16x32xf32>
    %c0_103 = arith.constant 0 : index
    %c0_104 = arith.constant 0 : index
    %790 = vector.load %arg3[%c0_103, %c0_104] : memref<2x16xf32, #tpu.memory_space<vmem>>, vector<2x16xf32>
    %791 = arith.truncf %790 : vector<2x16xf32> to vector<2x16xbf16>
    %792 = arith.truncf %789 : vector<16x32xf32> to vector<16x32xbf16>
    %cst_105 = arith.constant dense<0.000000e+00> : vector<2x32xf32>
    %793 = tpu.matmul %791, %792, %cst_105 {dimension_numbers = #tpu.dot_dimension_numbers<[1], [0], [0], [1], [0, 0, 1, 1], [], []>} : vector<2x16xbf16>, vector<16x32xbf16>, vector<2x32xf32> -> vector<2x32xf32>
    %794 = arith.truncf %793 : vector<2x32xf32> to vector<2x32xbf16>
    %c0_106 = arith.constant 0 : index
    %c0_107 = arith.constant 0 : index
    %795 = vector.load %arg8[%c0_106, %c0_107] : memref<32x32xbf16, #tpu.memory_space<vmem>>, vector<32x32xbf16>
    %cst_108 = arith.constant dense<0.000000e+00> : vector<2x32xf32>
    %796 = tpu.matmul %794, %795, %cst_108 {dimension_numbers = #tpu.dot_dimension_numbers<[1], [0], [0], [1], [0, 0, 1, 1], [], []>} : vector<2x32xbf16>, vector<32x32xbf16>, vector<2x32xf32> -> vector<2x32xf32>
    %c0_109 = arith.constant 0 : index
    %c0_110 = arith.constant 0 : index
    %797 = vector.load %arg4[%c0_109, %c0_110] : memref<2x32xf32, #tpu.memory_space<vmem>>, vector<2x32xf32>
    %798 = arith.truncf %797 : vector<2x32xf32> to vector<2x32xbf16>
    %c0_111 = arith.constant 0 : index
    %c0_112 = arith.constant 0 : index
    %799 = vector.load %arg9[%c0_111, %c0_112] : memref<32x32xbf16, #tpu.memory_space<vmem>>, vector<32x32xbf16>
    %cst_113 = arith.constant dense<0.000000e+00> : vector<2x32xf32>
    %800 = tpu.matmul %798, %799, %cst_113 {dimension_numbers = #tpu.dot_dimension_numbers<[1], [0], [0], [1], [0, 0, 1, 1], [], []>} : vector<2x32xbf16>, vector<32x32xbf16>, vector<2x32xf32> -> vector<2x32xf32>
    %801 = arith.addf %796, %800 : vector<2x32xf32>
    %c0_114 = arith.constant 0 : index
    %c0_115 = arith.constant 0 : index
    %802 = vector.load %arg10[%c0_114, %c0_115] : memref<1x32xf32, #tpu.memory_space<vmem>>, vector<1x32xf32>
    %803 = vector.broadcast %802 : vector<1x32xf32> to vector<2x32xf32>
    %804 = arith.addf %801, %803 : vector<2x32xf32>
    %c0_116 = arith.constant 0 : index
    %c0_117 = arith.constant 0 : index
    %805 = vector.load %arg11[%c0_116, %c0_117] : memref<1x32xf32, #tpu.memory_space<vmem>>, vector<1x32xf32>
    %806 = vector.broadcast %805 : vector<1x32xf32> to vector<2x32xf32>
    %807 = arith.mulf %804, %806 : vector<2x32xf32>
    %c0_118 = arith.constant 0 : index
    %c0_119 = arith.constant 0 : index
    %808 = vector.load %arg12[%c0_118, %c0_119] : memref<1x32xf32, #tpu.memory_space<vmem>>, vector<1x32xf32>
    %809 = vector.broadcast %808 : vector<1x32xf32> to vector<2x32xf32>
    %810 = arith.addf %807, %809 : vector<2x32xf32>
    %cst_120 = arith.constant 0.000000e+00 : f32
    %811 = vector.broadcast %cst_120 : f32 to vector<2x32xf32>
    %812 = arith.maximumf %810, %811 : vector<2x32xf32>
    %813 = arith.truncf %812 : vector<2x32xf32> to vector<2x32xbf16>
    %c0_121 = arith.constant 0 : index
    %c0_122 = arith.constant 0 : index
    %814 = vector.load %arg13[%c0_121, %c0_122] : memref<32x1xbf16, #tpu.memory_space<vmem>>, vector<32x1xbf16>
    %cst_123 = arith.constant dense<0.000000e+00> : vector<2x1xf32>
    %815 = tpu.matmul %813, %814, %cst_123 {dimension_numbers = #tpu.dot_dimension_numbers<[1], [0], [0], [1], [0, 0, 1, 1], [], []>} : vector<2x32xbf16>, vector<32x1xbf16>, vector<2x1xf32> -> vector<2x1xf32>
    %c0_124 = arith.constant 0 : index
    %c0_125 = arith.constant 0 : index
    %816 = vector.load %arg14[%c0_124, %c0_125] : memref<1x1xf32, #tpu.memory_space<vmem>>, vector<1x1xf32>
    %817 = vector.broadcast %816 : vector<1x1xf32> to vector<2x1xf32>
    %818 = arith.addf %815, %817 : vector<2x1xf32>
    %c0_126 = arith.constant 0 : index
    %c0_127 = arith.constant 0 : index
    %819 = vector.load %arg15[%c0_126, %c0_127] : memref<2x1xf32, #tpu.memory_space<vmem>>, vector<2x1xf32>
    tpu.vector_store %arg15[%c0_126, %c0_127], %818 {strides = array<i32>} : memref<2x1xf32, #tpu.memory_space<vmem>>, vector<2x1xf32>,
    return
  }
}

</mosaic_0001>

<bundles_post_ra>
// kernel: graph_transformer_forward.1
= control target key start
LH: loop header
LB: loop body
LE: loop exit
PB: predicated region body
PF: predicated region fallthrough
CT: control target
= control target key end

     0   :  { %s7944_s0 = inlined_call_operand.vmem [shape: f32[16,32], index: 0, kind: input, shape index: {}]   ;;  %s7945_s1 = inlined_call_operand.hbm [shape: f32[16,16], index: 1, kind: input, shape index: {}]   ;;  %s7946_s2 = inlined_call_operand.vmem [shape: f32[4,16,16], index: 2, kind: input, shape index: {}]   ;;  %s7947_s3 = inlined_call_operand.hbm [shape: f32[2,16], index: 3, kind: input, shape index: {}]   ;;  %s7948_s4 = inlined_call_operand.hbm [shape: f32[2,32], index: 4, kind: input, shape index: {}]   ;;  %s7949_s5 = inlined_call_operand.vmem [shape: bf16[4,32,128], index: 5, kind: input, shape index: {}]   ;;  %s7950_s6 = inlined_call_operand.hbm [shape: f32[4,1,128], index: 6, kind: input, shape index: {}]   ;;  %s7951_s7 = inlined_call_operand.vmem [shape: f32[4,4,32], index: 7, kind: input, shape index: {}]   ;;  %s7952_s8 = inlined_call_operand.hbm [shape: bf16[32,32], index: 8, kind: input, shape index: {}]   ;;  %s7953_s9 = inlined_call_operand.hbm [shape: bf16[32,32], index: 9, kind: input, shape index: {}]   ;;  %s7954_s10 = inlined_call_operand.hbm [shape: f32[1,32], index: 10, kind: input, shape index: {}]   ;;  %s7955_s11 = inlined_call_operand.hbm [shape: f32[1,32], index: 11, kind: input, shape index: {}]   ;;  %s7956_s12 = inlined_call_operand.hbm [shape: f32[1,32], index: 12, kind: input, shape index: {}]   ;;  %s7957_s13 = inlined_call_operand.vmem [shape: bf16[32,1], index: 13, kind: input, shape index: {}]   ;;  %s7958_s14 = inlined_call_operand.<no memory space> [shape: f32[1,1], index: 14, kind: input, shape index: {}]   ;;  %s7959_s15 = inlined_call_operand.vmem [shape: f32[2,1], index: 15, kind: output, shape index: {}]  }
   0x1   :  { %v20_v0 = vstv %s7958_s14 }
   0x2   :  { %21 = vst [vmem:[#allocation2] sm:$0x1] %v20_v0 }
   0x3   :  { %22 = vsyncpa [#allocation4], 0 }
   0x4   :  { %23 = vsyncpa [#allocation6], 0 }
   0x5   :  { %24 = vsyncpa [#allocation9], 0 }
   0x6   :  { %25 = vsyncpa [#allocation12], 0 }
   0x7   :  { %26 = vsyncpa [#allocation15], 0  ;;  %s5565_s20 = smov [#allocation5]   ;;  %s5566_s22 = smov [#allocation8]  }
   0x8   :  { %s49_s21 = sshll.u32 %s5565_s20, 4  ;;  %s70_s23 = sshll.u32 %s5566_s22, 4  ;;  %s50_s21 = int_to_ptr.vmem [resolvable:$true] %s49_s21  ;;  %s5671_s23 = int_to_ptr.vmem [resolvable:$true] %s70_s23 }
   0x9   :  { %s5357_s26 = scalar_lea.hbm %s7947_s3, 32 }
   0xa   :  { %p5358_p0 = scmp.ne.s32.totalorder %s7947_s3, %s5357_s26  ;;  %p5361_p1 = scmp.lt.u32.totalorder %s5357_s26, %s7947_s3 }
   0xc   :  { %p5363_p2 = pnand %p5361_p1, %p5358_p0 }
   0xe   :  { %5366 = shalt.err (!%p5363_p2)
}
   0xf   :  { %s5367_s30 = scalar_lea.vmem %s50_s21, 32  ;;  %p5372_p4 = scmp.lt.s32.totalorder %s50_s21, %s50_s21 }
  0x10   :  { %p5368_p3 = scmp.ne.s32.totalorder %s50_s21, %s5367_s30  ;;  %p5373_p5 = scmp.lt.s32.totalorder %s5367_s30, %s5367_s30 }
  0x12   :  { %p5374_p6 = por %p5373_p5, %p5372_p4 }
  0x14   :  { %p5375_p7 = pnand %p5374_p6, %p5368_p3 }
  0x16   :  { %5378 = shalt.err (!%p5375_p7)
}
  0x17   :  { %52 = dma.hbm_to_vmem [thread:$0]  %s7947_s3, 32, %s50_s21, [#allocation6]  }
  0x18   :  { %s5379_s20 = scalar_lea.hbm %s7950_s6, 64 }
  0x19   :  { %p5380_p8 = scmp.ne.s32.totalorder %s7950_s6, %s5379_s20  ;;  %p5383_p9 = scmp.lt.u32.totalorder %s5379_s20, %s7950_s6 }
  0x1b   :  { %p5385_p10 = pnand %p5383_p9, %p5380_p8 }
  0x1d   :  { %5388 = shalt.err (!%p5385_p10)
}
  0x1e   :  { %s5389_s27 = scalar_lea.vmem %s5671_s23, 64  ;;  %p5394_p12 = scmp.lt.s32.totalorder %s5671_s23, %s5671_s23 }
  0x1f   :  { %p5390_p11 = scmp.ne.s32.totalorder %s5671_s23, %s5389_s27  ;;  %p5395_p13 = scmp.lt.s32.totalorder %s5389_s27, %s5389_s27 }
  0x21   :  { %p5396_p0 = por %p5395_p13, %p5394_p12 }
  0x23   :  { %p5397_p1 = pnand %p5396_p0, %p5390_p11 }
  0x25   :  { %5400 = shalt.err (!%p5397_p1)
}
  0x26   :  { %s5567_s3 = smov 16   ;;  %s5568_s21 = smov 1  }
  0x27   :  { %76 = dma.hbm_to_vmem [thread:$0]  %s7950_s6, 64, %s5671_s23, [#allocation9], %s5567_s3, %s5567_s3, %s5568_s21  }
  0x28   :  { %s5569_s29 = smov [#allocation11]   ;;  %s5570_s16 = smov [#allocation14]  }
  0x29   :  { %s96_s30 = sshll.u32 %s5569_s29, 4  ;;  %s119_s17 = sshll.u32 %s5570_s16, 4  ;;  %s97_s30 = int_to_ptr.vmem [resolvable:$true] %s96_s30  ;;  %s5704_s17 = int_to_ptr.vmem [resolvable:$true] %s119_s17 }
  0x2a   :  { %s5401_s20 = scalar_lea.hbm %s7953_s9, 256 }
  0x2b   :  { %p5402_p2 = scmp.ne.s32.totalorder %s7953_s9, %s5401_s20  ;;  %p5405_p3 = scmp.lt.u32.totalorder %s5401_s20, %s7953_s9 }
  0x2d   :  { %p5407_p4 = pnand %p5405_p3, %p5402_p2 }
  0x2f   :  { %5410 = shalt.err (!%p5407_p4)
}
  0x30   :  { %s5411_s6 = scalar_lea.vmem %s97_s30, 256  ;;  %p5416_p6 = scmp.lt.s32.totalorder %s97_s30, %s97_s30 }
  0x31   :  { %p5412_p5 = scmp.ne.s32.totalorder %s97_s30, %s5411_s6  ;;  %p5417_p7 = scmp.lt.s32.totalorder %s5411_s6, %s5411_s6 }
  0x33   :  { %p5418_p8 = por %p5417_p7, %p5416_p6 }
  0x35   :  { %p5419_p9 = pnand %p5418_p8, %p5412_p5 }
  0x37   :  { %5422 = shalt.err (!%p5419_p9)
}
  0x38   :  { %s5571_s23 = smov 64   ;;  %s5572_s27 = smov 4  }
  0x39   :  { %102 = dma.hbm_to_vmem [thread:$0]  %s7953_s9, 256, %s97_s30, [#allocation12], %s5571_s23, %s5571_s23, %s5572_s27  }
  0x3a   :  { %s5423_s16 = scalar_lea.hbm %s7955_s11, 16 }
  0x3b   :  { %p5424_p10 = scmp.ne.s32.totalorder %s7955_s11, %s5423_s16  ;;  %p5427_p11 = scmp.lt.u32.totalorder %s5423_s16, %s7955_s11 }
  0x3d   :  { %p5429_p12 = pnand %p5427_p11, %p5424_p10 }
  0x3f   :  { %5432 = shalt.err (!%p5429_p12)
}
  0x40   :  { %s5433_s24 = scalar_lea.vmem %s5704_s17, 16  ;;  %s5437_s9 = scalar_lea.vmem %s5704_s17, 32 }
  0x41   :  { %p5434_p13 = scmp.ne.s32.totalorder %s5704_s17, %s5433_s24  ;;  %p5438_p0 = scmp.lt.s32.totalorder %s5704_s17, %s5704_s17 }
  0x42   :  { %p5439_p1 = scmp.lt.s32.totalorder %s5437_s9, %s5433_s24 }
  0x44   :  { %p5440_p2 = por %p5439_p1, %p5438_p0 }
  0x46   :  { %p5441_p3 = pnand %p5440_p2, %p5434_p13 }
  0x48   :  { %5444 = shalt.err (!%p5441_p3)
}
  0x49   :  { %122 = dma.hbm_to_vmem [thread:$0]  %s7955_s11, 16, %s5704_s17, [#allocation15]  }
  0x4a   :  { %s5573_s26 = smov [#allocation3]   ;;  %s5445_s14 = scalar_lea.hbm %s7945_s1, 256 }
  0x4b   :  { %s34_s6 = sshll.u32 %s5573_s26, 4  ;;  %p5446_p4 = scmp.ne.s32.totalorder %s7945_s1, %s5445_s14  ;;  %s35_s6 = int_to_ptr.vmem [resolvable:$true] %s34_s6 }
  0x4c   :  { %p5449_p5 = scmp.lt.u32.totalorder %s5445_s14, %s7945_s1 }
  0x4e   :  { %p5451_p6 = pnand %p5449_p5, %p5446_p4 }
  0x50   :  { %5454 = shalt.err (!%p5451_p6)
}
  0x51   :  { %s5455_s20 = scalar_lea.vmem %s35_s6, 256  ;;  %p5460_p8 = scmp.lt.s32.totalorder %s35_s6, %s35_s6 }
  0x52   :  { %p5456_p7 = scmp.ne.s32.totalorder %s35_s6, %s5455_s20  ;;  %p5461_p9 = scmp.lt.s32.totalorder %s5455_s20, %s5455_s20 }
  0x54   :  { %p5462_p10 = por %p5461_p9, %p5460_p8 }
  0x56   :  { %p5463_p11 = pnand %p5462_p10, %p5456_p7 }
  0x58   :  { %5466 = shalt.err (!%p5463_p11)
}
  0x59   :  { %s5574_s11 = smov 128   ;;  %s5575_s17 = smov 8  }
  0x5a   :  { %40 = dma.hbm_to_vmem [thread:$0]  %s7945_s1, 256, %s35_s6, [#allocation4], %s5574_s11, %s5574_s11, %s5575_s17  }
  0x5b   :  { %s5576_s9 = smov [#allocation7]   ;;  %s5577_s25 = smov [#allocation10]  }
  0x5c   :  { %s59_s30 = sshll.u32 %s5576_s9, 4  ;;  %s84_s26 = sshll.u32 %s5577_s25, 4  ;;  %s60_s30 = int_to_ptr.vmem [resolvable:$true] %s59_s30  ;;  %s85_s26 = int_to_ptr.vmem [resolvable:$true] %s84_s26 }
  0x5d   :  { %s5467_s14 = scalar_lea.hbm %s7948_s4, 32 }
  0x5e   :  { %p5468_p12 = scmp.ne.s32.totalorder %s7948_s4, %s5467_s14  ;;  %p5471_p13 = scmp.lt.u32.totalorder %s5467_s14, %s7948_s4 }
  0x60   :  { %p5473_p0 = pnand %p5471_p13, %p5468_p12 }
  0x62   :  { %5476 = shalt.err (!%p5473_p0)
}
  0x63   :  { %s5477_s1 = scalar_lea.vmem %s60_s30, 32  ;;  %p5482_p2 = scmp.lt.s32.totalorder %s60_s30, %s60_s30 }
  0x64   :  { %p5478_p1 = scmp.ne.s32.totalorder %s60_s30, %s5477_s1  ;;  %p5483_p3 = scmp.lt.s32.totalorder %s5477_s1, %s5477_s1 }
  0x66   :  { %p5484_p4 = por %p5483_p3, %p5482_p2 }
  0x68   :  { %p5485_p5 = pnand %p5484_p4, %p5478_p1 }
  0x6a   :  { %5488 = shalt.err (!%p5485_p5)
}
  0x6b   :  { %62 = dma.hbm_to_vmem [thread:$0]  %s7948_s4, 32, %s60_s30, [#allocation6]  }
  0x6c   :  { %s5489_s24 = scalar_lea.hbm %s7952_s8, 256 }
  0x6d   :  { %p5490_p6 = scmp.ne.s32.totalorder %s7952_s8, %s5489_s24  ;;  %p5493_p7 = scmp.lt.u32.totalorder %s5489_s24, %s7952_s8 }
  0x6f   :  { %p5495_p8 = pnand %p5493_p7, %p5490_p6 }
  0x71   :  { %5498 = shalt.err (!%p5495_p8)
}
  0x72   :  { %s5499_s14 = scalar_lea.vmem %s85_s26, 256  ;;  %p5504_p10 = scmp.lt.s32.totalorder %s85_s26, %s85_s26 }
  0x73   :  { %p5500_p9 = scmp.ne.s32.totalorder %s85_s26, %s5499_s14  ;;  %p5505_p11 = scmp.lt.s32.totalorder %s5499_s14, %s5499_s14 }
  0x75   :  { %p5506_p12 = por %p5505_p11, %p5504_p10 }
  0x77   :  { %p5507_p13 = pnand %p5506_p12, %p5500_p9 }
  0x79   :  { %5510 = shalt.err (!%p5507_p13)
}
  0x7a   :  { %90 = dma.hbm_to_vmem [thread:$0]  %s7952_s8, 256, %s85_s26, [#allocation9], %s5571_s23, %s5571_s23, %s5572_s27  }
  0x7b   :  { %s5578_s29 = smov [#allocation13]   ;;  %s5579_s18 = smov [#allocation16]  }
  0x7c   :  { %s109_s16 = sshll.u32 %s5578_s29, 4  ;;  %s129_s19 = sshll.u32 %s5579_s18, 4  ;;  %s110_s16 = int_to_ptr.vmem [resolvable:$true] %s109_s16  ;;  %s130_s19 = int_to_ptr.vmem [resolvable:$true] %s129_s19 }
  0x7d   :  { %s5511_s20 = scalar_lea.hbm %s7954_s10, 16 }
  0x7e   :  { %p5512_p0 = scmp.ne.s32.totalorder %s7954_s10, %s5511_s20  ;;  %p5515_p1 = scmp.lt.u32.totalorder %s5511_s20, %s7954_s10 }
  0x80   :  { %p5517_p2 = pnand %p5515_p1, %p5512_p0 }
  0x82   :  { %5520 = shalt.err (!%p5517_p2)
}
  0x83   :  { %s5521_s8 = scalar_lea.vmem %s110_s16, 16  ;;  %s5525_s27 = scalar_lea.vmem %s110_s16, 32 }
  0x84   :  { %p5522_p3 = scmp.ne.s32.totalorder %s110_s16, %s5521_s8  ;;  %p5526_p4 = scmp.lt.s32.totalorder %s110_s16, %s110_s16 }
  0x85   :  { %p5527_p5 = scmp.lt.s32.totalorder %s5525_s27, %s5521_s8 }
  0x87   :  { %p5528_p6 = por %p5527_p5, %p5526_p4 }
  0x89   :  { %p5529_p7 = pnand %p5528_p6, %p5522_p3 }
  0x8b   :  { %5532 = shalt.err (!%p5529_p7)
}
  0x8c   :  { %112 = dma.hbm_to_vmem [thread:$0]  %s7954_s10, 16, %s110_s16, [#allocation12]  }
  0x8d   :  { %s5533_s14 = scalar_lea.hbm %s7956_s12, 16 }
  0x8e   :  { %p5534_p8 = scmp.ne.s32.totalorder %s7956_s12, %s5533_s14  ;;  %p5537_p9 = scmp.lt.u32.totalorder %s5533_s14, %s7956_s12 }
  0x90   :  { %p5539_p10 = pnand %p5537_p9, %p5534_p8 }
  0x92   :  { %5542 = shalt.err (!%p5539_p10)
}
  0x93   :  { %s5543_s1 = scalar_lea.vmem %s130_s19, 16  ;;  %s5547_s6 = scalar_lea.vmem %s130_s19, 32 }
  0x94   :  { %p5544_p11 = scmp.ne.s32.totalorder %s130_s19, %s5543_s1  ;;  %p5548_p12 = scmp.lt.s32.totalorder %s130_s19, %s130_s19 }
  0x95   :  { %p5549_p13 = scmp.lt.s32.totalorder %s5547_s6, %s5543_s1 }
  0x97   :  { %p5550_p0 = por %p5549_p13, %p5548_p12 }
  0x99   :  { %p5551_p1 = pnand %p5550_p0, %p5544_p11 }
  0x9b   :  { %5554 = shalt.err (!%p5551_p1)
}
  0x9c   :  { %132 = dma.hbm_to_vmem [thread:$0]  %s7956_s12, 16, %s130_s19, [#allocation15]  }
  0x9d   :  { %5555 = dma.done.wait [#allocation4], 256  }
  0x9e   :  { %5556 = vsyncadd [#allocation4], 4294967040 }
  0x9f   :  { %5557 = dma.done.wait [#allocation6], 64  }
  0xa0   :  { %5558 = vsyncadd [#allocation6], 4294967232 }
  0xa1   :  { %5559 = dma.done.wait [#allocation9], 320  }
  0xa2   :  { %5560 = vsyncadd [#allocation9], 4294966976 }
  0xa3   :  { %5561 = dma.done.wait [#allocation12], 272  }
  0xa4   :  { %5562 = vsyncadd [#allocation12], 4294967024 }
  0xa5   :  { %5563 = dma.done.wait [#allocation15], 32  }
  0xa6   :  { %5564 = vsyncadd [#allocation15], 4294967264  ;;  %v7960_v1 = vmov 0.0   ;;  %vm5581_vm0 = vmmov 0   ;;  %v5191_v2 = vld [vmem:[%s7949_s5] sm:$0xff]   ;;  %v5192_v3 = vld [vmem:[%s7949_s5 + $0x8] sm:$0xff]   ;;  %v283_v27 = vlaneseq }
  0xa7   :  { %4914 = vmatprep.subr.bf16.mxu0 %v7960_v1  ;;  %4918 = vmatprep.mubr.msk.bf16.mxu0 %vm5581_vm0, %v7960_v1  ;;  %v177_v4 = vld [vmem:[%s7944_s0] sm:$0xff]  ;;  %v178_v5 = vld [vmem:[%s7944_s0 + $0x8] sm:$0xff]  ;;  %vm204_vm1 = vcmask 261120   ;;  %v4750_v7 = vld [vmem:[#allocation8] ss:$0 sm:$0xff]  ;;  %s5582_s27 = smov 112  }
  0xa8   :  { %4922 = vmatprep.subr.bf16.mxu1 %v7960_v1  ;;  %4924 = vmatprep.mubr.msk.bf16.mxu1 %vm5581_vm0, %v7960_v1  ;;  %v185_v6 = vpack.c.bf16 %v178_v5, %v177_v4  ;;  %s5583_s0 = smov 120   ;;  %s5584_s26 = smov 104   ;;  %v184_v24 = vld [vmem:[%s7951_s7] sm:$0xf]  ;;  %vm307_vm2 = vcmask 64512   ;;  %v284_v28 = vshrl.u32 %v283_v27, 7 }
  0xa9   :  { %4915 = vmatpush3.bf16.msra.mxu0 %v5191_v2  ;;  %s5585_s25 = smov 96   ;;  %vm752_vm4 = vcmask 130048   ;;  %s5586_s4 = smov 24   ;;  %vm1245_vm6 = vcmask 195584   ;;  %vm4739_vm7 = vcmask 1024  }
  0xaa   :  { %4916 = vmatprep.subr.bf16.mxu0 %v7960_v1  ;;  %v5890_v29 = vsub.s32 0, %v284_v28  ;;  %v5897_v32 = vsub.s32 1, %v284_v28  ;;  %v5905_v36 = vsub.s32 2, %v284_v28  ;;  %v5913_v40 = vsub.s32 3, %v284_v28  ;;  %s5587_s30 = smov 32  }
  0xac   :  { %8034 = vst [vmem:[#allocation24_spill] sm:$0xff] %v5890_v29  ;;  %v5893_v30 = vrot.slane %v184_v24, %v5890_v29  ;;  %8036 = vst [vmem:[#allocation26_spill] sm:$0xff] %v5897_v32  ;;  %v5903_v35 = vrot.slane %v184_v24, %v5897_v32  ;;  %v5911_v39 = vrot.slane %v184_v24, %v5905_v36 }
  0xad   :  { %4917 = vmatpush3.bf16.msra.mxu0 %v5192_v3  ;;  %8038 = vst [vmem:[#allocation28_spill] sm:$0xff] %v5905_v36  ;;  %8040 = vst [vmem:[#allocation30_spill] sm:$0xff] %v5913_v40  ;;  %v5919_v43 = vrot.slane %v184_v24, %v5913_v40 }
  0xae   :  { %4928 = vmatprep.subr.bf16.mxu0 %v7960_v1  ;;  %8035 = vst [vmem:[#allocation25_spill] sm:$0xff] %v5893_v30  ;;  %8037 = vst [vmem:[#allocation27_spill] sm:$0xff] %v5903_v35 }
  0xaf   :  { %8039 = vst [vmem:[#allocation29_spill] sm:$0xff] %v5911_v39  ;;  %8041 = vst [vmem:[#allocation31_spill] sm:$0xff] %v5919_v43 }
  0xb0   :  { %4919 = vmatmul.mubr.msk.bf16.vlgmr.msra.gmra.mrb[0].mxu0 %vm204_vm1, %v185_v6 }
  0xb1   :  { %4930 = vmatprep.mubr.msk.bf16.mxu0 %vm5581_vm0, %v7960_v1 }
 0x183   :  { %v242_v8 = vpop.f32.mrb[0].mxu0 }
 0x184   :  { %v5826_v9 = vadd.f32 %v4750_v7, %v242_v8  ;;  %v4920_v10 = vpop.f32.mrb[1].mxu0 }
 0x185   :  { %v245_v11 = vpop.f32.mrb[2].mxu0 }
 0x186   :  { %8032 = vst [vmem:[#allocation22_spill] sm:$0xff] %v5826_v9  ;;  %257 = vrot.lane.b32.xlu1 %v5826_v9, %s5582_s27  ;;  %251 = vrot.lane.b32.xlu0 %v5826_v9, %s5583_s0  ;;  %v4921_v12 = vpop.f32.mrb[3].mxu0  ;;  %v5832_v13 = vadd.f32 %v4750_v7, %v245_v11  ;;  %v299_v34 = vmul.f32 %v5893_v30, %v5826_v9 }
 0x187   :  { %v556_v58 = vmul.f32 %v5903_v35, %v5826_v9  ;;  %v620_v6 = vmul.f32 %v5911_v39, %v5826_v9 }
 0x188   :  { %8033 = vst [vmem:[#allocation23_spill] sm:$0xff] %v5832_v13  ;;  %v5844_v14 = vpack.c.bf16 %v5832_v13, %v5826_v9  ;;  %v300_v31 = vmul.f32 %v5893_v30, %v5832_v13  ;;  %v308_v37 = vsel %vm307_vm2, %v299_v34, 0.0  ;;  %v557_v38 = vmul.f32 %v5903_v35, %v5832_v13 }
 0x189   :  { %v621_v42 = vmul.f32 %v5911_v39, %v5832_v13  ;;  %v685_v45 = vmul.f32 %v5919_v43, %v5832_v13  ;;  %v564_v63 = vsel %vm307_vm2, %v556_v58, 0.0 }
 0x18a   :  { %259 = vrot.lane.b32.xlu1 %v5832_v13, %s5582_s27  ;;  %253 = vrot.lane.b32.xlu0 %v5832_v13, %s5583_s0  ;;  %v311_v33 = vsel %vm307_vm2, %v300_v31, 0.0  ;;  %v567_v41 = vsel %vm307_vm2, %v557_v38, 0.0 }
 0x18b   :  { %v631_v44 = vsel %vm307_vm2, %v621_v42, 0.0  ;;  %v695_v46 = vsel %vm307_vm2, %v685_v45, 0.0 }
 0x18e   :  { %265 = vrot.lane.b32.xlu1 %v5832_v13, %s5584_s26  ;;  %263 = vrot.lane.b32.xlu0 %v5826_v9, %s5584_s26 }
 0x192   :  { %341 = vrot.lane.b32.xlu0 %v5844_v14, %s5585_s25 }
 0x1f8   :  { %v5848_v15 = vpop.permute.xlu1 %257  ;;  %v5850_v16 = vpop.permute.xlu0 %251 }
 0x1fc   :  { %v5852_v17 = vpop.permute.xlu1 %259  ;;  %v5854_v18 = vpop.permute.xlu0 %253 }
 0x1fd   :  { %v5858_v19 = vpack.c.bf16 %v5854_v18, %v5850_v16  ;;  %v5862_v20 = vpack.c.bf16 %v5852_v17, %v5848_v15 }
 0x1ff   :  { %391 = vrot.lane.b32.xlu1 %v5858_v19, %s5585_s25  ;;  %441 = vrot.lane.b32.xlu0 %v5862_v20, %s5585_s25 }
 0x200   :  { %v5868_v21 = vpop.permute.xlu1 %265  ;;  %v5870_v22 = vpop.permute.xlu0 %263 }
 0x201   :  { %v5874_v23 = vpack.c.bf16 %v5868_v21, %v5870_v22 }
 0x203   :  { %491 = vrot.lane.b32.xlu1 %v5874_v23, %s5585_s25  ;;  %270 = vrot.lane.b32.xlu0 %v184_v24, %s5583_s0 }
 0x204   :  { %v342_v25 = vpop.permute.xlu0 %341 }
 0x205   :  { %v347_v26 = vsel %vm307_vm2, %v342_v25, 0 }
 0x206   :  { %4923 = vmatpush3.bf16.xpose.msra.mxu1 %v347_v26 }
 0x207   :  { %273 = vrot.lane.b32.xlu1 %v184_v24, %s5582_s27  ;;  %276 = vrot.lane.b32.xlu0 %v184_v24, %s5584_s26  ;;  %v628_v24 = vsel %vm307_vm2, %v620_v6, 0.0 }
 0x208   :  { %4934 = vmatprep.subr.bf16.mxu1 %v7960_v1 }
 0x20d   :  { %4925 = vmatmul.mubr.msk.bf16.vlgmr.msra.gmra.mrb[0].mxu1 %vm307_vm2, %v5844_v14 }
 0x20e   :  { %4936 = vmatprep.mubr.msk.bf16.mxu1 %vm5581_vm0, %v7960_v1 }
 0x226   :  { %312 = vadd.xlane.f32.xlu0 %v311_v33 }
 0x22b   :  { %309 = vadd.xlane.f32.xlu1 %v308_v37 }
 0x22f   :  { %568 = vadd.xlane.f32.xlu1 %v567_v41 }
 0x233   :  { %632 = vadd.xlane.f32.xlu1 %v631_v44 }
 0x237   :  { %696 = vadd.xlane.f32.xlu1 %v695_v46 }
 0x271   :  { %v392_v47 = vpop.permute.xlu1 %391  ;;  %v442_v48 = vpop.permute.xlu0 %441 }
 0x272   :  { %v397_v49 = vsel %vm307_vm2, %v392_v47, 0  ;;  %v447_v50 = vsel %vm307_vm2, %v442_v48, 0 }
 0x273   :  { %4929 = vmatpush3.bf16.xpose.msra.mxu0 %v397_v49  ;;  %4935 = vmatpush3.bf16.xpose.msra.mxu1 %v447_v50 }
 0x274   :  { %4940 = vmatprep.subr.bf16.mxu0 %v7960_v1  ;;  %4946 = vmatprep.subr.bf16.mxu1 %v7960_v1 }
 0x275   :  { %v271_v51 = vpop.permute.xlu0 %270  ;;  %v492_v53 = vpop.permute.xlu1 %491 }
 0x276   :  { %v5930_v52 = vrot.slane %v271_v51, %v5890_v29  ;;  %v5933_v54 = vrot.slane %v271_v51, %v5897_v32  ;;  %v497_v57 = vsel %vm307_vm2, %v492_v53, 0  ;;  %v5947_v59 = vrot.slane %v271_v51, %v5905_v36 }
 0x277   :  { %v5960_v0 = vrot.slane %v271_v51, %v5913_v40 }
 0x278   :  { %v302_v55 = vmul.f32 %v5930_v52, %v5854_v18  ;;  %v301_v56 = vmul.f32 %v5930_v52, %v5850_v16  ;;  %v559_v62 = vmul.f32 %v5933_v54, %v5854_v18  ;;  %v623_v3 = vmul.f32 %v5947_v59, %v5854_v18 }
 0x279   :  { %v558_v4 = vmul.f32 %v5933_v54, %v5850_v16  ;;  %v274_v5 = vpop.permute.xlu1 %273  ;;  %v687_v11 = vmul.f32 %v5960_v0, %v5854_v18  ;;  %v277_v12 = vpop.permute.xlu0 %276  ;;  %v622_v28 = vmul.f32 %v5947_v59, %v5850_v16  ;;  %v684_v18 = vmul.f32 %v5919_v43, %v5826_v9 }
 0x27a   :  { %4931 = vmatmul.mubr.msk.bf16.vlgmr.msra.gmra.mrb[4].mxu0 %vm307_vm2, %v5858_v19  ;;  %4937 = vmatmul.mubr.msk.bf16.vlgmr.msra.gmra.mrb[4].mxu1 %vm307_vm2, %v5862_v20  ;;  %v317_v60 = vsel %vm307_vm2, %v302_v55, 0.0  ;;  %v314_v61 = vsel %vm307_vm2, %v301_v56, 0.0  ;;  %v573_v2 = vsel %vm307_vm2, %v559_v62, 0.0  ;;  %v5972_v7 = vrot.slane %v274_v5, %v5890_v29 }
 0x27b   :  { %4941 = vmatpush3.bf16.xpose.msra.mxu0 %v497_v57  ;;  %4942 = vmatprep.mubr.msk.bf16.mxu0 %vm5581_vm0, %v7960_v1  ;;  %v637_v8 = vsel %vm307_vm2, %v623_v3, 0.0  ;;  %v570_v10 = vsel %vm307_vm2, %v558_v4, 0.0  ;;  %v5982_v25 = vrot.slane %v277_v12, %v5890_v29  ;;  %v701_v26 = vsel %vm307_vm2, %v687_v11, 0.0 }
 0x27c   :  { %318 = vadd.xlane.f32.xlu1 %v317_v60  ;;  %315 = vadd.xlane.f32.xlu0 %v314_v61  ;;  %v304_v27 = vmul.f32 %v5972_v7, %v5852_v17  ;;  %v5992_v31 = vrot.slane %v274_v5, %v5897_v32  ;;  %v634_v34 = vsel %vm307_vm2, %v622_v28, 0.0  ;;  %v692_v38 = vsel %vm307_vm2, %v684_v18, 0.0 }
 0x27d   :  { %4952 = vmatprep.subr.bf16.mxu0 %v7960_v1  ;;  %4948 = vmatprep.mubr.msk.bf16.mxu1 %vm5581_vm0, %v7960_v1  ;;  %v306_v37 = vmul.f32 %v5982_v25, %v5868_v21  ;;  %v6000_v41 = vrot.slane %v277_v12, %v5897_v32  ;;  %v686_v44 = vmul.f32 %v5960_v0, %v5850_v16 }
 0x27e   :  { %v323_v33 = vsel %vm307_vm2, %v304_v27, 0.0  ;;  %v561_v45 = vmul.f32 %v5992_v31, %v5852_v17  ;;  %v6008_v46 = vrot.slane %v274_v5, %v5905_v36  ;;  %v303_v49 = vmul.f32 %v5972_v7, %v5848_v15 }
 0x27f   :  { %v329_v42 = vsel %vm307_vm2, %v306_v37, 0.0  ;;  %v698_v47 = vsel %vm307_vm2, %v686_v44, 0.0  ;;  %v563_v50 = vmul.f32 %v6000_v41, %v5868_v21  ;;  %v6017_v16 = vrot.slane %v277_v12, %v5905_v36 }
 0x280   :  { %574 = vadd.xlane.f32.xlu1 %v573_v2  ;;  %565 = vadd.xlane.f32.xlu0 %v564_v63  ;;  %v579_v48 = vsel %vm307_vm2, %v561_v45, 0.0  ;;  %v320_v51 = vsel %vm307_vm2, %v303_v49, 0.0  ;;  %v625_v55 = vmul.f32 %v6008_v46, %v5852_v17  ;;  %v305_v56 = vmul.f32 %v5982_v25, %v5870_v22 }
 0x281   :  { %v585_v53 = vsel %vm307_vm2, %v563_v50, 0.0  ;;  %v6026_v57 = vrot.slane %v274_v5, %v5913_v40  ;;  %v627_v61 = vmul.f32 %v6017_v16, %v5868_v21  ;;  %v560_v62 = vmul.f32 %v5992_v31, %v5848_v15 }
 0x282   :  { %4943 = vmatmul.mubr.msk.bf16.vlgmr.msra.gmra.mrb[8].mxu0 %vm307_vm2, %v5874_v23  ;;  %v643_v58 = vsel %vm307_vm2, %v625_v55, 0.0  ;;  %v326_v60 = vsel %vm307_vm2, %v305_v56, 0.0  ;;  %v6035_v63 = vrot.slane %v277_v12, %v5913_v40  ;;  %v562_v5 = vmul.f32 %v6000_v41, %v5870_v22  ;;  %v6080_v55 = vld [vmem:[%s7946_s2 + $0x38] sm:$0xff] }
 0x283   :  { %4954 = vmatprep.mubr.msk.bf16.mxu0 %vm5581_vm0, %v7960_v1  ;;  %v649_v2 = vsel %vm307_vm2, %v627_v61, 0.0  ;;  %v576_v3 = vsel %vm307_vm2, %v560_v62, 0.0  ;;  %v689_v4 = vmul.f32 %v6026_v57, %v5852_v17  ;;  %v624_v11 = vmul.f32 %v6008_v46, %v5848_v15  ;;  %v6084_v62 = vld [vmem:[#allocation3 + $0x8] sm:$0xff] }
 0x284   :  { %638 = vadd.xlane.f32.xlu1 %v637_v8  ;;  %571 = vadd.xlane.f32.xlu0 %v570_v10  ;;  %8042 = vst [vmem:[#allocation32_spill] sm:$0xff] %v6035_v63  ;;  %v582_v8 = vsel %vm307_vm2, %v562_v5, 0.0  ;;  %v691_v10 = vmul.f32 %v6035_v63, %v5868_v21  ;;  %v688_v27 = vmul.f32 %v6026_v57, %v5848_v15  ;;  %v6068_v15 = vld [vmem:[%s7946_s2 + $0x18] sm:$0xff]  ;;  %vm168_vm3 = vcmp.gt.f32.partialorder %v6084_v62, 0.0 }
 0x285   :  { %v707_v6 = vsel %vm307_vm2, %v689_v4, 0.0  ;;  %v640_v17 = vsel %vm307_vm2, %v624_v11, 0.0  ;;  %v690_v28 = vmul.f32 %v6035_v63, %v5870_v22  ;;  %v6096_v11 = vld [vmem:[%s7946_s2] sm:$0xff] }
 0x286   :  { %v713_v12 = vsel %vm307_vm2, %v691_v10, 0.0  ;;  %v704_v21 = vsel %vm307_vm2, %v688_v27, 0.0 }
 0x287   :  { %v710_v18 = vsel %vm307_vm2, %v690_v28, 0.0 }
 0x288   :  { %702 = vadd.xlane.f32.xlu1 %v701_v26  ;;  %629 = vadd.xlane.f32.xlu0 %v628_v24  ;;  %v626_v24 = vmul.f32 %v6017_v16, %v5870_v22 }
 0x28a   :  { %v646_v26 = vsel %vm307_vm2, %v626_v24, 0.0 }
 0x28c   :  { %324 = vadd.xlane.f32.xlu1 %v323_v33  ;;  %635 = vadd.xlane.f32.xlu0 %v634_v34 }
 0x290   :  { %693 = vadd.xlane.f32.xlu0 %v692_v38  ;;  %330 = vadd.xlane.f32.xlu1 %v329_v42  ;;  %v6063_v38 = vld [vmem:[%s7946_s2 + $0x8] sm:$0xff] }
 0x294   :  { %699 = vadd.xlane.f32.xlu0 %v698_v47  ;;  %580 = vadd.xlane.f32.xlu1 %v579_v48  ;;  %v6074_v47 = vld [vmem:[%s7946_s2 + $0x28] sm:$0xff] }
 0x298   :  { %321 = vadd.xlane.f32.xlu0 %v320_v51  ;;  %586 = vadd.xlane.f32.xlu1 %v585_v53 }
 0x29c   :  { %644 = vadd.xlane.f32.xlu1 %v643_v58  ;;  %327 = vadd.xlane.f32.xlu0 %v326_v60 }
 0x2a0   :  { %650 = vadd.xlane.f32.xlu1 %v649_v2  ;;  %577 = vadd.xlane.f32.xlu0 %v576_v3 }
 0x2a4   :  { %708 = vadd.xlane.f32.xlu1 %v707_v6  ;;  %583 = vadd.xlane.f32.xlu0 %v582_v8 }
 0x2a8   :  { %714 = vadd.xlane.f32.xlu1 %v713_v12  ;;  %641 = vadd.xlane.f32.xlu0 %v640_v17  ;;  %v6101_v17 = vld [vmem:[%s7946_s2 + $0x10] sm:$0xff] }
 0x2ac   :  { %647 = vadd.xlane.f32.xlu0 %v646_v26  ;;  %v6106_v26 = vld [vmem:[%s7946_s2 + $0x20] sm:$0xff] }
 0x2b0   :  { %705 = vadd.xlane.f32.xlu0 %v704_v21 }
 0x2b3   :  { %v313_v37 = vpop.xlane.xlu0 %312 }
 0x2b4   :  { %711 = vadd.xlane.f32.xlu0 %v710_v18  ;;  %v333_v22 = vmul.f32 %v313_v37, %v6063_v38 }
 0x2b8   :  { %v310_v33 = vpop.xlane.xlu1 %309 }
 0x2b9   :  { %v332_v27 = vmul.f32 %v310_v33, %v6096_v11 }
 0x2bc   :  { %v569_v34 = vpop.xlane.xlu1 %568 }
 0x2bd   :  { %v589_v49 = vmul.f32 %v569_v34, %v6068_v15 }
 0x2c0   :  { %v633_v42 = vpop.xlane.xlu1 %632 }
 0x2c1   :  { %v653_v56 = vmul.f32 %v633_v42, %v6074_v47  ;;  %v6114_v42 = vld [vmem:[%s7946_s2 + $0x30] sm:$0xff] }
 0x2c4   :  { %v697_v53 = vpop.xlane.xlu1 %696 }
 0x2c5   :  { %v717_v60 = vmul.f32 %v697_v53, %v6080_v55 }
 0x2e0   :  { %v383_v44 = vpop.f32.mrb[0].mxu1 }
 0x2e1   :  { %v4926_v45 = vpop.f32.mrb[1].mxu1  ;;  %v384_v18 = vadd.f32 %v383_v44, %v332_v27 }
 0x2e2   :  { %v386_v48 = vpop.f32.mrb[2].mxu1 }
 0x2e3   :  { %v387_v50 = vadd.f32 %v386_v48, %v333_v22  ;;  %v4927_v51 = vpop.f32.mrb[3].mxu1 }
 0x2e5   :  { %v597_v58 = vadd.f32 %v589_v49, %v387_v50  ;;  %v6117_v50 = vld [vmem:[#allocation3] sm:$0xff] }
 0x2e6   :  { %vm167_vm5 = vcmp.gt.f32.partialorder %v6117_v50, 0.0 }
 0x2e7   :  { %v661_v61 = vadd.f32 %v653_v56, %v597_v58 }
 0x2e9   :  { %v725_v2 = vadd.f32 %v717_v60, %v661_v61 }
 0x2eb   :  { %v733_v3 = vmul.f32 0.35355338, %v725_v2 }
 0x2ed   :  { %v6089_v4 = vsel %vm168_vm3, %v733_v3, -1e+30 }
 0x2ee   :  { %v756_v5 = vsel %vm752_vm4, %v6089_v4, -inf }
 0x2ef   :  { %757 = vmax.xlane.f32.xlu1 %v756_v5 }
 0x309   :  { %v316_v6 = vpop.xlane.xlu0 %315  ;;  %v319_v12 = vpop.xlane.xlu1 %318 }
 0x30d   :  { %v566_v8 = vpop.xlane.xlu0 %565  ;;  %v575_v37 = vpop.xlane.xlu1 %574 }
 0x30e   :  { %v588_v21 = vmul.f32 %v566_v8, %v6101_v17 }
 0x310   :  { %v596_v22 = vadd.f32 %v588_v21, %v384_v18 }
 0x311   :  { %v572_v10 = vpop.xlane.xlu0 %571  ;;  %v639_v51 = vpop.xlane.xlu1 %638 }
 0x312   :  { %v590_v1 = vmul.f32 %v572_v10, %v6101_v17 }
 0x315   :  { %v630_v24 = vpop.xlane.xlu0 %629  ;;  %v703_v60 = vpop.xlane.xlu1 %702 }
 0x316   :  { %v652_v34 = vmul.f32 %v630_v24, %v6106_v26 }
 0x318   :  { %v660_v48 = vadd.f32 %v652_v34, %v596_v22 }
 0x319   :  { %v636_v28 = vpop.xlane.xlu0 %635  ;;  %v325_v2 = vpop.xlane.xlu1 %324 }
 0x31a   :  { %v337_v29 = vmul.f32 %v325_v2, %v6063_v38 }
 0x31d   :  { %v694_v45 = vpop.xlane.xlu0 %693  ;;  %v331_v5 = vpop.xlane.xlu1 %330 }
 0x31e   :  { %v716_v49 = vmul.f32 %v694_v45, %v6114_v42  ;;  %v334_v45 = vmul.f32 %v316_v6, %v6096_v11  ;;  %v591_v6 = vmul.f32 %v575_v37, %v6068_v15 }
 0x320   :  { %v724_v33 = vadd.f32 %v716_v49, %v660_v48 }
 0x321   :  { %v700_v44 = vpop.xlane.xlu0 %699  ;;  %v581_v24 = vpop.xlane.xlu1 %580 }
 0x322   :  { %v732_v53 = vmul.f32 0.35355338, %v724_v33  ;;  %v593_v10 = vmul.f32 %v581_v24, %v6068_v15  ;;  %v719_v24 = vmul.f32 %v703_v60, %v6080_v55 }
 0x324   :  { %v6122_v56 = vsel %vm167_vm5, %v732_v53, -1e+30 }
 0x325   :  { %v753_v58 = vsel %vm752_vm4, %v6122_v56, -inf  ;;  %v322_v61 = vpop.xlane.xlu0 %321  ;;  %v587_v21 = vpop.xlane.xlu1 %586 }
 0x326   :  { %754 = vmax.xlane.f32.xlu0 %v753_v58  ;;  %v336_v49 = vmul.f32 %v322_v61, %v6096_v11  ;;  %v335_v58 = vmul.f32 %v319_v12, %v6063_v38  ;;  %v654_v61 = vmul.f32 %v636_v28, %v6106_v26  ;;  %v595_v60 = vmul.f32 %v587_v21, %v6068_v15 }
 0x329   :  { %v328_v3 = vpop.xlane.xlu0 %327  ;;  %v645_v34 = vpop.xlane.xlu1 %644 }
 0x32a   :  { %v657_v28 = vmul.f32 %v645_v34, %v6074_v47 }
 0x32d   :  { %v578_v8 = vpop.xlane.xlu0 %577  ;;  %v651_v48 = vpop.xlane.xlu1 %650 }
 0x32e   :  { %v592_v43 = vmul.f32 %v578_v8, %v6101_v17  ;;  %v655_v8 = vmul.f32 %v639_v51, %v6074_v47  ;;  %v339_v51 = vmul.f32 %v331_v5, %v6063_v38 }
 0x331   :  { %v584_v27 = vpop.xlane.xlu0 %583 }
 0x332   :  { %v594_v34 = vmul.f32 %v584_v27, %v6101_v17  ;;  %v659_v27 = vmul.f32 %v651_v48, %v6074_v47 }
 0x335   :  { %v642_v18 = vpop.xlane.xlu0 %641 }
 0x339   :  { %v648_v22 = vpop.xlane.xlu0 %647 }
 0x33d   :  { %v706_v33 = vpop.xlane.xlu0 %705 }
 0x34d   :  { %v433_v53 = vpop.f32.mrb[4].mxu0  ;;  %v483_v36 = vpop.f32.mrb[4].mxu1 }
 0x34e   :  { %v434_v40 = vadd.f32 %v433_v53, %v334_v45  ;;  %v4932_v32 = vpop.f32.mrb[5].mxu0  ;;  %v484_v39 = vadd.f32 %v483_v36, %v336_v49  ;;  %v4938_v35 = vpop.f32.mrb[5].mxu1  ;;  %v656_v45 = vmul.f32 %v642_v18, %v6106_v26 }
 0x34f   :  { %v436_v30 = vpop.f32.mrb[6].mxu0  ;;  %v486_v63 = vpop.f32.mrb[6].mxu1  ;;  %v718_v35 = vmul.f32 %v700_v44, %v6114_v42 }
 0x350   :  { %v598_v9 = vadd.f32 %v590_v1, %v434_v40  ;;  %v437_v13 = vadd.f32 %v436_v30, %v335_v58  ;;  %v4933_v12 = vpop.f32.mrb[7].mxu0  ;;  %v600_v32 = vadd.f32 %v592_v43, %v484_v39  ;;  %v487_v53 = vadd.f32 %v486_v63, %v337_v29  ;;  %v4939_v2 = vpop.f32.mrb[7].mxu1 }
 0x351   :  { %v709_v36 = vpop.xlane.xlu1 %708  ;;  %v720_v1 = vmul.f32 %v706_v33, %v6114_v42  ;;  %v338_v29 = vmul.f32 %v328_v3, %v6096_v11 }
 0x352   :  { %v662_v49 = vadd.f32 %v654_v61, %v598_v9  ;;  %v599_v37 = vadd.f32 %v591_v6, %v437_v13  ;;  %v664_v30 = vadd.f32 %v656_v45, %v600_v32  ;;  %v601_v40 = vadd.f32 %v593_v10, %v487_v53  ;;  %v712_v10 = vpop.xlane.xlu0 %711 }
 0x353   :  { %v721_v39 = vmul.f32 %v709_v36, %v6080_v55  ;;  %v658_v53 = vmul.f32 %v648_v22, %v6106_v26 }
 0x354   :  { %v663_v58 = vadd.f32 %v655_v8, %v599_v37  ;;  %v726_v18 = vadd.f32 %v718_v35, %v662_v49  ;;  %v665_v43 = vadd.f32 %v657_v28, %v601_v40  ;;  %v728_v63 = vadd.f32 %v720_v1, %v664_v30 }
 0x355   :  { %v533_v9 = vpop.f32.mrb[8].mxu0  ;;  %v715_v36 = vpop.xlane.xlu1 %714  ;;  %v722_v28 = vmul.f32 %v712_v10, %v6114_v42 }
 0x356   :  { %v734_v13 = vmul.f32 0.35355338, %v726_v18  ;;  %v727_v44 = vadd.f32 %v719_v24, %v663_v58  ;;  %v534_v33 = vadd.f32 %v533_v9, %v338_v29  ;;  %v4944_v6 = vpop.f32.mrb[9].mxu0  ;;  %v736_v61 = vmul.f32 0.35355338, %v728_v63 }
 0x357   :  { %v729_v12 = vadd.f32 %v721_v39, %v665_v43  ;;  %v536_v45 = vpop.f32.mrb[10].mxu0  ;;  %v723_v48 = vmul.f32 %v715_v36, %v6080_v55 }
 0x358   :  { %v746_v3 = vsel %vm167_vm5, %v734_v13, -1e+30  ;;  %v735_v32 = vmul.f32 0.35355338, %v727_v44  ;;  %v602_v5 = vadd.f32 %v594_v34, %v534_v33  ;;  %v537_v2 = vadd.f32 %v536_v45, %v339_v51  ;;  %v4945_v8 = vpop.f32.mrb[11].mxu0 }
 0x359   :  { %v759_v35 = vsel %vm752_vm4, %v746_v3, -inf  ;;  %v748_v49 = vsel %vm167_vm5, %v736_v61, -1e+30  ;;  %v737_v37 = vmul.f32 0.35355338, %v729_v12 }
 0x35a   :  { %760 = vmax.xlane.f32.xlu0 %v759_v35  ;;  %v747_v21 = vsel %vm168_vm3, %v735_v32, -1e+30  ;;  %v666_v1 = vadd.f32 %v658_v53, %v602_v5  ;;  %v603_v22 = vadd.f32 %v595_v60, %v537_v2  ;;  %v765_v58 = vsel %vm752_vm4, %v748_v49, -inf }
 0x35b   :  { %v762_v30 = vsel %vm752_vm4, %v747_v21, -inf  ;;  %v749_v40 = vsel %vm168_vm3, %v737_v37, -1e+30 }
 0x35c   :  { %763 = vmax.xlane.f32.xlu1 %v762_v30  ;;  %v667_v24 = vadd.f32 %v659_v27, %v603_v22  ;;  %v730_v18 = vadd.f32 %v722_v28, %v666_v1  ;;  %v768_v29 = vsel %vm752_vm4, %v749_v40, -inf }
 0x35e   :  { %766 = vmax.xlane.f32.xlu0 %v765_v58  ;;  %v738_v39 = vmul.f32 0.35355338, %v730_v18  ;;  %v731_v43 = vadd.f32 %v723_v48, %v667_v24 }
 0x360   :  { %769 = vmax.xlane.f32.xlu1 %v768_v29  ;;  %v750_v63 = vsel %vm167_vm5, %v738_v39, -1e+30  ;;  %v739_v51 = vmul.f32 0.35355338, %v731_v43  ;;  %v8043_v29 = vmov 0.0  }
 0x361   :  { %v771_v9 = vsel %vm752_vm4, %v750_v63, -inf }
 0x362   :  { %772 = vmax.xlane.f32.xlu0 %v771_v9  ;;  %v751_v13 = vsel %vm168_vm3, %v739_v51, -1e+30 }
 0x363   :  { %v774_v44 = vsel %vm752_vm4, %v751_v13, -inf }
 0x364   :  { %775 = vmax.xlane.f32.xlu1 %v774_v44 }
 0x375   :  { %932 = vrot.lane.b32.xlu1 %v5858_v19, %s5571_s23 }
 0x378   :  { %885 = vrot.lane.b32.xlu0 %v5844_v14, %s5571_s23 }
 0x37c   :  { %v758_v34 = vpop.xlane.xlu1 %757 }
 0x37d   :  { %v778_v33 = vsub.f32 %v6089_v4, %v758_v34 }
 0x37f   :  { %v787_v6 = vmul.f32 1.442695, %v778_v33 }
 0x381   :  { %5205 = vpow2.f32 %v787_v6 }
 0x38b   :  { %v6173_v61 = vpop.eup %5205 }
 0x38c   :  { %v804_v12 = vsel %vm752_vm4, %v6173_v61, 0.0 }
 0x399   :  { %805 = vadd.xlane.f32.xlu1 %v804_v12 }
 0x3b3   :  { %v755_v60 = vpop.xlane.xlu0 %754 }
 0x3b4   :  { %v777_v10 = vsub.f32 %v6122_v56, %v755_v60 }
 0x3b6   :  { %v785_v45 = vmul.f32 1.442695, %v777_v10 }
 0x3b8   :  { %5207 = vpow2.f32 %v785_v45 }
 0x3c2   :  { %v5208_v19 = vpop.eup %5207 }
 0x3c3   :  { %v801_v32 = vsel %vm752_vm4, %v5208_v19, 0.0 }
 0x3c4   :  { %802 = vadd.xlane.f32.xlu0 %v801_v32 }
 0x3e7   :  { %v761_v14 = vpop.xlane.xlu0 %760 }
 0x3e8   :  { %v779_v53 = vsub.f32 %v746_v3, %v761_v14 }
 0x3e9   :  { %v764_v4 = vpop.xlane.xlu1 %763 }
 0x3ea   :  { %v789_v5 = vmul.f32 1.442695, %v779_v53  ;;  %v780_v2 = vsub.f32 %v747_v21, %v764_v4 }
 0x3eb   :  { %v767_v8 = vpop.xlane.xlu0 %766 }
 0x3ec   :  { %5209 = vpow2.f32 %v789_v5  ;;  %v791_v35 = vmul.f32 1.442695, %v780_v2  ;;  %v781_v27 = vsub.f32 %v748_v49, %v767_v8 }
 0x3ed   :  { %v770_v36 = vpop.xlane.xlu1 %769 }
 0x3ee   :  { %5211 = vpow2.f32 %v791_v35  ;;  %v793_v37 = vmul.f32 1.442695, %v781_v27  ;;  %v782_v28 = vsub.f32 %v749_v40, %v770_v36 }
 0x3ef   :  { %v773_v1 = vpop.xlane.xlu0 %772 }
 0x3f0   :  { %5213 = vpow2.f32 %v793_v37  ;;  %v795_v56 = vmul.f32 1.442695, %v782_v28  ;;  %v783_v22 = vsub.f32 %v750_v63, %v773_v1 }
 0x3f1   :  { %v776_v30 = vpop.xlane.xlu1 %775 }
 0x3f2   :  { %5215 = vpow2.f32 %v795_v56  ;;  %v797_v48 = vmul.f32 1.442695, %v783_v22  ;;  %v784_v24 = vsub.f32 %v751_v13, %v776_v30 }
 0x3f3   :  { %v886_v3 = vpop.permute.xlu0 %885 }
 0x3f4   :  { %5217 = vpow2.f32 %v797_v48  ;;  %v799_v58 = vmul.f32 1.442695, %v784_v24  ;;  %4947 = vmatpush3.bf16.msra.mxu1 %v886_v3 }
 0x3f5   :  { %v933_v18 = vpop.permute.xlu1 %932  ;;  %4958 = vmatprep.subr.bf16.mxu1 %v8043_v29 }
 0x3f6   :  { %v5210_v21 = vpop.eup %5209  ;;  %5219 = vpow2.f32 %v799_v58  ;;  %4953 = vmatpush3.bf16.msra.mxu0 %v933_v18 }
 0x3f7   :  { %v807_v49 = vsel %vm752_vm4, %v5210_v21, 0.0  ;;  %4964 = vmatprep.subr.bf16.mxu0 %v8043_v29 }
 0x3f8   :  { %v5212_v40 = vpop.eup %5211  ;;  %808 = vadd.xlane.f32.xlu0 %v807_v49 }
 0x3f9   :  { %v810_v39 = vsel %vm752_vm4, %v5212_v40, 0.0 }
 0x3fa   :  { %v5214_v43 = vpop.eup %5213  ;;  %811 = vadd.xlane.f32.xlu1 %v810_v39 }
 0x3fb   :  { %v813_v63 = vsel %vm752_vm4, %v5214_v43, 0.0 }
 0x3fc   :  { %v5216_v51 = vpop.eup %5215  ;;  %814 = vadd.xlane.f32.xlu0 %v813_v63 }
 0x3fd   :  { %v816_v9 = vsel %vm752_vm4, %v5216_v51, 0.0 }
 0x3fe   :  { %817 = vadd.xlane.f32.xlu1 %v816_v9  ;;  %v5218_v13 = vpop.eup %5217 }
 0x3ff   :  { %v819_v44 = vsel %vm752_vm4, %v5218_v13, 0.0 }
 0x400   :  { %v5220_v34 = vpop.eup %5219  ;;  %820 = vadd.xlane.f32.xlu0 %v819_v44 }
 0x401   :  { %v822_v33 = vsel %vm752_vm4, %v5220_v34, 0.0 }
 0x402   :  { %823 = vadd.xlane.f32.xlu1 %v822_v33 }
 0x413   :  { %979 = vrot.lane.b32.xlu1 %v5862_v20, %s5571_s23 }
 0x416   :  { %1026 = vrot.lane.b32.xlu0 %v5874_v23, %s5571_s23 }
 0x426   :  { %v806_v6 = vpop.xlane.xlu1 %805 }
 0x427   :  { %5221 = vrcp.f32 %v806_v6 }
 0x431   :  { %v5222_v60 = vpop.eup %5221 }
 0x432   :  { %v6192_v45 = vmul.f32 %v5222_v60, %v6173_v61 }
 0x451   :  { %v803_v12 = vpop.xlane.xlu0 %802 }
 0x452   :  { %5223 = vrcp.f32 %v803_v12 }
 0x45c   :  { %v5224_v10 = vpop.eup %5223 }
 0x45d   :  { %v6194_v32 = vmul.f32 %v5224_v10, %v5208_v19 }
 0x45f   :  { %v841_v14 = vpack.c.bf16 %v6192_v45, %v6194_v32 }
 0x461   :  { %4949 = vmatmul.mubr.msk.bf16.vlgmr.msra.gmra.mrb[8].mxu1 %vm752_vm4, %v841_v14 }
 0x462   :  { %4960 = vmatprep.mubr.msk.bf16.mxu1 %vm5581_vm0, %v8043_v29 }
 0x485   :  { %v809_v20 = vpop.xlane.xlu0 %808 }
 0x486   :  { %5225 = vrcp.f32 %v809_v20 }
 0x487   :  { %v812_v23 = vpop.xlane.xlu1 %811 }
 0x488   :  { %5227 = vrcp.f32 %v812_v23 }
 0x489   :  { %v815_v53 = vpop.xlane.xlu0 %814 }
 0x48a   :  { %5229 = vrcp.f32 %v815_v53 }
 0x48b   :  { %v818_v4 = vpop.xlane.xlu1 %817 }
 0x48c   :  { %5231 = vrcp.f32 %v818_v4 }
 0x48d   :  { %v821_v61 = vpop.xlane.xlu0 %820 }
 0x48e   :  { %5233 = vrcp.f32 %v821_v61 }
 0x48f   :  { %v824_v5 = vpop.xlane.xlu1 %823 }
 0x490   :  { %v5226_v19 = vpop.eup %5225  ;;  %5235 = vrcp.f32 %v824_v5 }
 0x491   :  { %v835_v2 = vmul.f32 %v5226_v19, %v5210_v21  ;;  %v1027_v48 = vpop.permute.xlu0 %1026 }
 0x492   :  { %v5228_v8 = vpop.eup %5227 }
 0x493   :  { %v6201_v35 = vmul.f32 %v5228_v8, %v5212_v40  ;;  %v847_v27 = vmul.f32 %v835_v2, %v6096_v11  ;;  %v980_v37 = vpop.permute.xlu1 %979  ;;  %v1075_v49 = vmul.f32 %v835_v2, %v6101_v17  ;;  %v1171_v61 = vmul.f32 %v835_v2, %v6114_v42 }
 0x494   :  { %v5230_v36 = vpop.eup %5229  ;;  %4959 = vmatpush3.bf16.msra.mxu1 %v980_v37 }
 0x495   :  { %v837_v28 = vmul.f32 %v5230_v36, %v5214_v43  ;;  %v859_v56 = vsel %vm752_vm4, %v847_v27, 0.0  ;;  %v842_v1 = vpack.c.bf16 %v6201_v35, %v835_v2  ;;  %4970 = vmatprep.subr.bf16.mxu1 %v8043_v29  ;;  %v1076_v43 = vmul.f32 %v6201_v35, %v6068_v15 }
 0x496   :  { %v5232_v22 = vpop.eup %5231  ;;  %860 = vadd.xlane.f32.xlu1 %v859_v56  ;;  %v1087_v9 = vsel %vm752_vm4, %v1075_v49, 0.0  ;;  %v1124_v10 = vmul.f32 %v6201_v35, %v6074_v47  ;;  %v1172_v5 = vmul.f32 %v6201_v35, %v6080_v55  ;;  %v1183_v8 = vsel %vm752_vm4, %v1171_v61, 0.0 }
 0x497   :  { %v838_v30 = vmul.f32 %v5232_v22, %v5216_v51  ;;  %4955 = vmatmul.mubr.msk.bf16.vlgmr.msra.gmra.mrb[12].mxu0 %vm752_vm4, %v842_v1  ;;  %v849_v24 = vmul.f32 %v837_v28, %v6096_v11  ;;  %v1077_v44 = vmul.f32 %v837_v28, %v6101_v17  ;;  %v1090_v6 = vsel %vm752_vm4, %v1076_v43, 0.0 }
 0x498   :  { %4965 = vmatpush3.bf16.msra.mxu0 %v1027_v48  ;;  %4966 = vmatprep.mubr.msk.bf16.mxu0 %vm5581_vm0, %v8043_v29  ;;  %v5234_v3 = vpop.eup %5233  ;;  %v1125_v20 = vmul.f32 %v837_v28, %v6106_v26  ;;  %v1138_v23 = vsel %vm752_vm4, %v1124_v10, 0.0  ;;  %v1173_v27 = vmul.f32 %v837_v28, %v6114_v42  ;;  %v1186_v36 = vsel %vm752_vm4, %v1172_v5, 0.0 }
 0x499   :  { %v865_v58 = vsel %vm752_vm4, %v849_v24, 0.0  ;;  %v843_v21 = vpack.c.bf16 %v838_v30, %v837_v28  ;;  %v850_v18 = vmul.f32 %v838_v30, %v6063_v38  ;;  %4978 = vmatprep.subr.bf16.mxu0 %v8043_v29  ;;  %v839_v63 = vmul.f32 %v5234_v3, %v5218_v13 }
 0x49a   :  { %866 = vadd.xlane.f32.xlu0 %v865_v58  ;;  %v5236_v40 = vpop.eup %5235  ;;  %v1078_v12 = vmul.f32 %v838_v30, %v6068_v15  ;;  %v1093_v13 = vsel %vm752_vm4, %v1077_v44, 0.0  ;;  %v1126_v53 = vmul.f32 %v838_v30, %v6074_v47  ;;  %v1141_v4 = vsel %vm752_vm4, %v1125_v20, 0.0 }
 0x49b   :  { %4961 = vmatmul.mubr.msk.bf16.vlgmr.msra.gmra.mrb[12].mxu1 %vm752_vm4, %v843_v21  ;;  %v868_v39 = vsel %vm752_vm4, %v850_v18, 0.0  ;;  %v840_v51 = vmul.f32 %v5236_v40, %v5220_v34  ;;  %v1123_v34 = vmul.f32 %v835_v2, %v6106_v26  ;;  %v1174_v37 = vmul.f32 %v838_v30, %v6080_v55 }
 0x49c   :  { %869 = vadd.xlane.f32.xlu1 %v868_v39  ;;  %4974 = vmatprep.mubr.msk.bf16.mxu1 %vm5581_vm0, %v8043_v29  ;;  %v1096_v60 = vsel %vm752_vm4, %v1078_v12, 0.0  ;;  %v1144_v19 = vsel %vm752_vm4, %v1126_v53, 0.0  ;;  %v1189_v56 = vsel %vm752_vm4, %v1173_v27, 0.0  ;;  %v848_v2 = vmul.f32 %v6201_v35, %v6063_v38 }
 0x49d   :  { %v844_v33 = vpack.c.bf16 %v840_v51, %v839_v63  ;;  %v1135_v14 = vsel %vm752_vm4, %v1123_v34, 0.0  ;;  %v1192_v1 = vsel %vm752_vm4, %v1174_v37, 0.0  ;;  %v852_v22 = vmul.f32 %v840_v51, %v6063_v38 }
 0x49e   :  { %1088 = vadd.xlane.f32.xlu0 %v1087_v9  ;;  %v862_v48 = vsel %vm752_vm4, %v848_v2, 0.0  ;;  %v851_v28 = vmul.f32 %v839_v63, %v6096_v11  ;;  %v1080_v30 = vmul.f32 %v840_v51, %v6068_v15  ;;  %v1079_v35 = vmul.f32 %v839_v63, %v6101_v17 }
 0x49f   :  { %4967 = vmatmul.mubr.msk.bf16.vlgmr.msra.gmra.mrb[16].mxu0 %vm752_vm4, %v844_v33  ;;  %v874_v24 = vsel %vm752_vm4, %v852_v22, 0.0  ;;  %v1128_v21 = vmul.f32 %v840_v51, %v6074_v47  ;;  %v1127_v49 = vmul.f32 %v839_v63, %v6106_v26  ;;  %v1176_v39 = vmul.f32 %v840_v51, %v6080_v55 }
 0x4a0   :  { %1091 = vadd.xlane.f32.xlu1 %v1090_v6  ;;  %4980 = vmatprep.mubr.msk.bf16.mxu0 %vm5581_vm0, %v8043_v29  ;;  %v871_v3 = vsel %vm752_vm4, %v851_v28, 0.0  ;;  %v1102_v58 = vsel %vm752_vm4, %v1080_v30, 0.0  ;;  %v1099_v18 = vsel %vm752_vm4, %v1079_v35, 0.0  ;;  %v1175_v9 = vmul.f32 %v839_v63, %v6114_v42 }
 0x4a1   :  { %v1150_v40 = vsel %vm752_vm4, %v1128_v21, 0.0  ;;  %v1147_v43 = vsel %vm752_vm4, %v1127_v49, 0.0  ;;  %v1198_v44 = vsel %vm752_vm4, %v1176_v39, 0.0  ;;  %v846_v33 = vmul.f32 %v6192_v45, %v6063_v38 }
 0x4a2   :  { %1094 = vadd.xlane.f32.xlu0 %v1093_v13  ;;  %v1195_v6 = vsel %vm752_vm4, %v1175_v9, 0.0  ;;  %v845_v12 = vmul.f32 %v6194_v32, %v6096_v11  ;;  %v1074_v13 = vmul.f32 %v6192_v45, %v6068_v15  ;;  %v1073_v34 = vmul.f32 %v6194_v32, %v6101_v17 }
 0x4a3   :  { %v856_v51 = vsel %vm752_vm4, %v846_v33, 0.0  ;;  %v1121_v10 = vmul.f32 %v6194_v32, %v6106_v26  ;;  %v1169_v20 = vmul.f32 %v6194_v32, %v6114_v42 }
 0x4a4   :  { %1097 = vadd.xlane.f32.xlu1 %v1096_v60  ;;  %v853_v63 = vsel %vm752_vm4, %v845_v12, 0.0  ;;  %v1084_v38 = vsel %vm752_vm4, %v1074_v13, 0.0  ;;  %v1122_v60 = vmul.f32 %v6192_v45, %v6074_v47  ;;  %v1081_v11 = vsel %vm752_vm4, %v1073_v34, 0.0 }
 0x4a5   :  { %v1129_v17 = vsel %vm752_vm4, %v1121_v10, 0.0 }
 0x4a6   :  { %1136 = vadd.xlane.f32.xlu0 %v1135_v14  ;;  %v1132_v15 = vsel %vm752_vm4, %v1122_v60, 0.0  ;;  %v1170_v14 = vmul.f32 %v6192_v45, %v6080_v55 }
 0x4a8   :  { %1139 = vadd.xlane.f32.xlu1 %v1138_v23  ;;  %v1180_v47 = vsel %vm752_vm4, %v1170_v14, 0.0  ;;  %v1177_v23 = vsel %vm752_vm4, %v1169_v20, 0.0 }
 0x4aa   :  { %1142 = vadd.xlane.f32.xlu0 %v1141_v4 }
 0x4ac   :  { %1145 = vadd.xlane.f32.xlu1 %v1144_v19 }
 0x4ae   :  { %1184 = vadd.xlane.f32.xlu0 %v1183_v8 }
 0x4b0   :  { %1187 = vadd.xlane.f32.xlu1 %v1186_v36 }
 0x4b2   :  { %1190 = vadd.xlane.f32.xlu0 %v1189_v56 }
 0x4b4   :  { %1193 = vadd.xlane.f32.xlu1 %v1192_v1 }
 0x4b6   :  { %863 = vadd.xlane.f32.xlu0 %v862_v48 }
 0x4b8   :  { %875 = vadd.xlane.f32.xlu1 %v874_v24 }
 0x4ba   :  { %872 = vadd.xlane.f32.xlu0 %v871_v3 }
 0x4bc   :  { %1103 = vadd.xlane.f32.xlu1 %v1102_v58 }
 0x4be   :  { %1100 = vadd.xlane.f32.xlu0 %v1099_v18 }
 0x4c0   :  { %1151 = vadd.xlane.f32.xlu1 %v1150_v40 }
 0x4c2   :  { %1148 = vadd.xlane.f32.xlu0 %v1147_v43 }
 0x4c4   :  { %1199 = vadd.xlane.f32.xlu1 %v1198_v44 }
 0x4c6   :  { %1196 = vadd.xlane.f32.xlu0 %v1195_v6 }
 0x4c8   :  { %857 = vadd.xlane.f32.xlu1 %v856_v51 }
 0x4ca   :  { %854 = vadd.xlane.f32.xlu0 %v853_v63 }
 0x4cc   :  { %1085 = vadd.xlane.f32.xlu1 %v1084_v38 }
 0x4ce   :  { %1082 = vadd.xlane.f32.xlu0 %v1081_v11 }
 0x4d0   :  { %1133 = vadd.xlane.f32.xlu1 %v1132_v15 }
 0x4d2   :  { %1130 = vadd.xlane.f32.xlu0 %v1129_v17 }
 0x4d4   :  { %1181 = vadd.xlane.f32.xlu1 %v1180_v47 }
 0x4d6   :  { %1178 = vadd.xlane.f32.xlu0 %v1177_v23 }
 0x523   :  { %v861_v61 = vpop.xlane.xlu1 %860 }
 0x524   :  { %v879_v3 = vmul.f32 %v861_v61, %v5930_v52 }
 0x527   :  { %v867_v53 = vpop.xlane.xlu0 %866 }
 0x528   :  { %v881_v9 = vmul.f32 %v867_v53, %v5972_v7 }
 0x529   :  { %v870_v45 = vpop.xlane.xlu1 %869 }
 0x52a   :  { %v882_v51 = vmul.f32 %v870_v45, %v5972_v7 }
 0x52b   :  { %v1089_v5 = vpop.xlane.xlu0 %1088 }
 0x52c   :  { %v1107_v58 = vmul.f32 %v1089_v5, %v5933_v54 }
 0x52d   :  { %v1092_v8 = vpop.xlane.xlu1 %1091 }
 0x52e   :  { %v1108_v13 = vmul.f32 %v1092_v8, %v5933_v54 }
 0x52f   :  { %v1095_v27 = vpop.xlane.xlu0 %1094 }
 0x530   :  { %v1109_v34 = vmul.f32 %v1095_v27, %v5992_v31 }
 0x531   :  { %v1098_v42 = vpop.xlane.xlu1 %1097 }
 0x532   :  { %v1110_v10 = vmul.f32 %v1098_v42, %v5992_v31 }
 0x533   :  { %v1137_v32 = vpop.xlane.xlu0 %1136 }
 0x534   :  { %v6291_v26 = vpop.f32.mrb[8].mxu1  ;;  %v1155_v44 = vmul.f32 %v1137_v32, %v5947_v59 }
 0x535   :  { %v4950_v4 = vpop.f32.mrb[9].mxu1  ;;  %v1140_v36 = vpop.xlane.xlu1 %1139 }
 0x536   :  { %v6293_v19 = vpop.f32.mrb[10].mxu1  ;;  %v1156_v54 = vmul.f32 %v1140_v36, %v5947_v59 }
 0x537   :  { %v4951_v55 = vpop.f32.mrb[11].mxu1  ;;  %v1143_v37 = vpop.xlane.xlu0 %1142 }
 0x538   :  { %v1157_v15 = vmul.f32 %v1143_v37, %v6008_v46 }
 0x539   :  { %v1146_v56 = vpop.xlane.xlu1 %1145 }
 0x53a   :  { %v1158_v55 = vmul.f32 %v1146_v56, %v6008_v46 }
 0x53b   :  { %v1185_v2 = vpop.xlane.xlu0 %1184 }
 0x53d   :  { %v1188_v1 = vpop.xlane.xlu1 %1187 }
 0x53f   :  { %v1191_v22 = vpop.xlane.xlu0 %1190 }
 0x540   :  { %v1205_v45 = vmul.f32 %v1191_v22, %v6026_v57 }
 0x541   :  { %v1194_v48 = vpop.xlane.xlu1 %1193 }
 0x542   :  { %v1206_v59 = vmul.f32 %v1194_v48, %v6026_v57  ;;  %v5193_v57 = vld [vmem:[%s7949_s5 + $0x10] sm:$0xff]  }
 0x543   :  { %v864_v28 = vpop.xlane.xlu0 %863  ;;  %4971 = vmatpush3.bf16.msra.mxu1 %v5193_v57 }
 0x544   :  { %v880_v21 = vmul.f32 %v864_v28, %v5930_v52  ;;  %v1203_v52 = vmul.f32 %v1185_v2, %v5960_v0  ;;  %4972 = vmatprep.subr.bf16.mxu1 %v8043_v29 }
 0x545   :  { %v876_v24 = vpop.xlane.xlu1 %875 }
 0x546   :  { %v884_v27 = vmul.f32 %v876_v24, %v5982_v25 }
 0x547   :  { %v873_v30 = vpop.xlane.xlu0 %872 }
 0x548   :  { %v883_v4 = vmul.f32 %v873_v30, %v5982_v25 }
 0x549   :  { %v1104_v18 = vpop.xlane.xlu1 %1103 }
 0x54a   :  { %v1112_v46 = vmul.f32 %v1104_v18, %v6000_v41 }
 0x54b   :  { %v1101_v39 = vpop.xlane.xlu0 %1100 }
 0x54c   :  { %v1111_v42 = vmul.f32 %v1101_v39, %v6000_v41  ;;  %v5194_v39 = vld [vmem:[%s7949_s5 + $0x18] sm:$0xff]  }
 0x54d   :  { %v1152_v17 = vpop.xlane.xlu1 %1151  ;;  %4973 = vmatpush3.bf16.msra.mxu1 %v5194_v39 }
 0x54e   :  { %v1160_v48 = vmul.f32 %v1152_v17, %v6017_v16  ;;  %4984 = vmatprep.subr.bf16.mxu1 %v8043_v29  ;;  %v8049_v17 = vld [vmem:[#allocation29_spill] sm:$0xff] }
 0x54f   :  { %v1149_v61 = vpop.xlane.xlu0 %1148 }
 0x551   :  { %v1200_v25 = vpop.xlane.xlu1 %1199 }
 0x56a   :  { %v972_v35 = vpop.f32.mrb[12].mxu0 }
 0x56b   :  { %v973_v49 = vadd.f32 %v972_v35, %v879_v3  ;;  %v4956_v40 = vpop.f32.mrb[13].mxu0  ;;  %v1204_v35 = vmul.f32 %v1188_v1, %v5960_v0  ;;  %v8044_v0 = vld [vmem:[#allocation32_spill] sm:$0xff] }
 0x56c   :  { %v975_v43 = vpop.f32.mrb[14].mxu0  ;;  %v1208_v1 = vmul.f32 %v1200_v25, %v8044_v0 }
 0x56d   :  { %v1115_v33 = vadd.f32 %v1107_v58, %v973_v49  ;;  %v976_v6 = vadd.f32 %v975_v43, %v880_v21  ;;  %v4957_v12 = vpop.f32.mrb[15].mxu0  ;;  %v1159_v58 = vmul.f32 %v1149_v61, %v6017_v16  ;;  %v1197_v21 = vpop.xlane.xlu0 %1196 }
 0x56e   :  { %v1019_v63 = vpop.f32.mrb[12].mxu1  ;;  %v1207_v43 = vmul.f32 %v1197_v21, %v8044_v0  ;;  %v858_v12 = vpop.xlane.xlu1 %857 }
 0x56f   :  { %v1163_v38 = vadd.f32 %v1155_v44, %v1115_v33  ;;  %v1020_v60 = vadd.f32 %v1019_v63, %v881_v9  ;;  %v4962_v11 = vpop.f32.mrb[13].mxu1  ;;  %v1116_v20 = vadd.f32 %v1108_v13, %v976_v6  ;;  %v8045_v44 = vld [vmem:[#allocation23_spill] sm:$0xff]  ;;  %v8046_v33 = vld [vmem:[#allocation22_spill] sm:$0xff] }
 0x570   :  { %v1022_v14 = vpop.f32.mrb[14].mxu1  ;;  %v8048_v11 = vld [vmem:[#allocation27_spill] sm:$0xff] }
 0x571   :  { %v1117_v47 = vadd.f32 %v1109_v34, %v1020_v60  ;;  %v1023_v23 = vadd.f32 %v1022_v14, %v882_v51  ;;  %v4963_v7 = vpop.f32.mrb[15].mxu1  ;;  %v1211_v53 = vadd.f32 %v1203_v52, %v1163_v38  ;;  %v1164_v36 = vadd.f32 %v1156_v54, %v1116_v20  ;;  %v855_v6 = vpop.xlane.xlu0 %854  ;;  %v8047_v52 = vld [vmem:[#allocation25_spill] sm:$0xff] }
 0x572   :  { %v1066_v31 = vpop.f32.mrb[16].mxu0  ;;  %v1086_v13 = vpop.xlane.xlu1 %1085  ;;  %v878_v38 = vmul.f32 %v858_v12, %v8047_v52 }
 0x573   :  { %v1118_v5 = vadd.f32 %v1110_v10, %v1023_v23  ;;  %1219 = vrot.lane.b32.xlu0 %v1211_v53, %s5575_s17  ;;  %v1165_v8 = vadd.f32 %v1157_v15, %v1117_v47  ;;  %v1067_v32 = vadd.f32 %v1066_v31, %v883_v4  ;;  %v4968_v37 = vpop.f32.mrb[17].mxu0  ;;  %v1212_v18 = vadd.f32 %v1204_v35, %v1164_v36  ;;  %v8050_v53 = vld [vmem:[#allocation31_spill] sm:$0xff] }
 0x574   :  { %v1069_v28 = vpop.f32.mrb[18].mxu0  ;;  %v1106_v10 = vmul.f32 %v1086_v13, %v8048_v11  ;;  %v929_v14 = vadd.f32 %v6293_v19, %v878_v38  ;;  %v877_v47 = vmul.f32 %v855_v6, %v8047_v52  ;;  %v8053_v52 = vld [vmem:[#allocation24_spill] sm:$0xff] }
 0x575   :  { %v1166_v2 = vadd.f32 %v1158_v55, %v1118_v5  ;;  %v1213_v30 = vadd.f32 %v1205_v45, %v1165_v8  ;;  %v1119_v56 = vadd.f32 %v1111_v42, %v1067_v32  ;;  %v1070_v22 = vadd.f32 %v1069_v28, %v884_v27  ;;  %v4969_v3 = vpop.f32.mrb[19].mxu0  ;;  %v1083_v51 = vpop.xlane.xlu0 %1082 }
 0x576   :  { %v1134_v34 = vpop.xlane.xlu1 %1133  ;;  %v1114_v7 = vadd.f32 %v1106_v10, %v929_v14  ;;  %v1105_v4 = vmul.f32 %v1083_v51, %v8048_v11  ;;  %v926_v45 = vadd.f32 %v6291_v26, %v877_v47 }
 0x577   :  { %1227 = vrot.lane.b32.xlu1 %v1213_v30, %s5567_s3  ;;  %v1214_v24 = vadd.f32 %v1206_v59, %v1166_v2  ;;  %v1120_v49 = vadd.f32 %v1112_v46, %v1070_v22  ;;  %v1167_v41 = vadd.f32 %v1159_v58, %v1119_v56  ;;  %v1154_v20 = vmul.f32 %v1134_v34, %v8049_v17 }
 0x578   :  { %v1113_v27 = vadd.f32 %v1105_v4, %v926_v45 }
 0x579   :  { %1229 = vrot.lane.b32.xlu0 %v1214_v24, %s5567_s3  ;;  %v1168_v40 = vadd.f32 %v1160_v48, %v1120_v49  ;;  %v1215_v9 = vadd.f32 %v1207_v43, %v1167_v41  ;;  %v1131_v63 = vpop.xlane.xlu0 %1130  ;;  %v1162_v55 = vadd.f32 %v1154_v20, %v1114_v7  ;;  %v4767_v48 = vld [vmem:[#allocation8 + $0x1] ss:$0 sm:$0xff] }
 0x57a   :  { %v1182_v15 = vpop.xlane.xlu1 %1181  ;;  %v1153_v5 = vmul.f32 %v1131_v63, %v8049_v17  ;;  %v4766_v63 = vld [vmem:[%s7951_s7 + $0x4] sm:$0xf] }
 0x57b   :  { %1221 = vrot.lane.b32.xlu1 %v1212_v18, %s5575_s17  ;;  %v1216_v16 = vadd.f32 %v1208_v1, %v1168_v40  ;;  %v1202_v54 = vmul.f32 %v1182_v15, %v8050_v53  ;;  %v6421_v38 = vrot.slane %v4766_v63, %v8053_v52  ;;  %v8055_v15 = vld [vmem:[#allocation26_spill] sm:$0xff] }
 0x57c   :  { %v1161_v37 = vadd.f32 %v1153_v5, %v1113_v27  ;;  %v6429_v14 = vrot.slane %v4766_v63, %v8055_v15 }
 0x57d   :  { %1237 = vrot.lane.b32.xlu0 %v1216_v16, %s5586_s4  ;;  %v1179_v60 = vpop.xlane.xlu0 %1178  ;;  %v1210_v8 = vadd.f32 %v1202_v54, %v1162_v55  ;;  %8054 = vst [vmem:[#allocation22_spill] sm:$0xff] %v6421_v38 }
 0x57e   :  { %v1201_v19 = vmul.f32 %v1179_v60, %v8050_v53  ;;  %8056 = vst [vmem:[#allocation25_spill] sm:$0xff] %v6429_v14 }
 0x57f   :  { %1235 = vrot.lane.b32.xlu1 %v1215_v9, %s5586_s4 }
 0x580   :  { %v1209_v36 = vadd.f32 %v1201_v19, %v1161_v37 }
 0x581   :  { %1250 = vrot.lane.b32.xlu0 %v8045_v44, %s5587_s30 }
 0x583   :  { %1248 = vrot.lane.b32.xlu1 %v8046_v33, %s5587_s30 }
 0x5e5   :  { %v1220_v23 = vpop.permute.xlu0 %1219 }
 0x5e6   :  { %v1241_v30 = vsel %vm307_vm2, %v1209_v36, %v1220_v23 }
 0x5e9   :  { %v1228_v61 = vpop.permute.xlu1 %1227 }
 0x5ea   :  { %v1243_v26 = vsel %vm752_vm4, %v1241_v30, %v1228_v61 }
 0x5eb   :  { %v1230_v31 = vpop.permute.xlu0 %1229 }
 0x5ed   :  { %v1222_v42 = vpop.permute.xlu1 %1221 }
 0x5ee   :  { %v1242_v32 = vsel %vm307_vm2, %v1210_v8, %v1222_v42 }
 0x5ef   :  { %v1238_v59 = vpop.permute.xlu0 %1237  ;;  %v1244_v2 = vsel %vm752_vm4, %v1242_v32, %v1230_v31  ;;  %v8057_v31 = vld [vmem:[#allocation28_spill] sm:$0xff] }
 0x5f0   :  { %v1247_v46 = vsel %vm1245_vm6, %v1244_v2, %v1238_v59  ;;  %v6451_v8 = vrot.slane %v4766_v63, %v8057_v31  ;;  %v8059_v2 = vld [vmem:[#allocation30_spill] sm:$0xff] }
 0x5f1   :  { %v1236_v28 = vpop.permute.xlu1 %1235 }
 0x5f2   :  { %v1246_v22 = vsel %vm1245_vm6, %v1243_v26, %v1236_v28  ;;  %8058 = vst [vmem:[#allocation27_spill] sm:$0xff] %v6451_v8  ;;  %v6474_v28 = vrot.slane %v4766_v63, %v8059_v2 }
 0x5f3   :  { %v1251_v56 = vpop.permute.xlu0 %1250 }
 0x5f4   :  { %v1255_v3 = vadd.f32 %v1251_v56, %v1247_v46  ;;  %8060 = vst [vmem:[#allocation29_spill] sm:$0xff] %v6474_v28 }
 0x5f5   :  { %v1249_v35 = vpop.permute.xlu1 %1248 }
 0x5f6   :  { %v1254_v58 = vadd.f32 %v1249_v35, %v1246_v22  ;;  %v1257_v25 = vmax.f32 %v1255_v3, 0.0 }
 0x5f8   :  { %v1256_v24 = vmax.f32 %v1254_v58, 0.0 }
 0x5fa   :  { %v1267_v57 = vpack.c.bf16 %v1257_v25, %v1256_v24 }
 0x5fc   :  { %4975 = vmatmul.mubr.msk.bf16.vlgmr.msra.gmra.mrb[16].mxu1 %vm204_vm1, %v1267_v57 }
 0x5fd   :  { %4986 = vmatprep.mubr.msk.bf16.mxu1 %vm5581_vm0, %v8043_v29 }
 0x6cf   :  { %v1323_v21 = vpop.f32.mrb[16].mxu1 }
 0x6d0   :  { %v6356_v49 = vadd.f32 %v4767_v48, %v1323_v21  ;;  %v4976_v41 = vpop.f32.mrb[17].mxu1 }
 0x6d1   :  { %v1326_v18 = vpop.f32.mrb[18].mxu1 }
 0x6d2   :  { %8051 = vst [vmem:[#allocation32_spill] sm:$0xff] %v6356_v49  ;;  %v6358_v0 = vadd.f32 %v4767_v48, %v1326_v18  ;;  %1332 = vrot.lane.b32.xlu1 %v6356_v49, %s5583_s0  ;;  %v4977_v1 = vpop.f32.mrb[19].mxu1  ;;  %v1380_v60 = vmul.f32 %v6421_v38, %v6356_v49  ;;  %v1636_v20 = vmul.f32 %v6429_v14, %v6356_v49 }
 0x6d3   :  { %v1700_v42 = vmul.f32 %v6451_v8, %v6356_v49  ;;  %v1764_v22 = vmul.f32 %v6474_v28, %v6356_v49 }
 0x6d4   :  { %8052 = vst [vmem:[#allocation23_spill] sm:$0xff] %v6358_v0  ;;  %1334 = vrot.lane.b32.xlu0 %v6358_v0, %s5583_s0  ;;  %v6374_v40 = vpack.c.bf16 %v6358_v0, %v6356_v49  ;;  %v1388_v11 = vsel %vm307_vm2, %v1380_v60, 0.0  ;;  %v1381_v10 = vmul.f32 %v6421_v38, %v6358_v0  ;;  %v1644_v47 = vsel %vm307_vm2, %v1636_v20, 0.0 }
 0x6d5   :  { %v1637_v36 = vmul.f32 %v6429_v14, %v6358_v0  ;;  %v1708_v30 = vsel %vm307_vm2, %v1700_v42, 0.0  ;;  %v1701_v56 = vmul.f32 %v6451_v8, %v6358_v0  ;;  %v1765_v25 = vmul.f32 %v6474_v28, %v6358_v0 }
 0x6d6   :  { %1338 = vrot.lane.b32.xlu1 %v6356_v49, %s5582_s27  ;;  %v1391_v17 = vsel %vm307_vm2, %v1381_v10, 0.0  ;;  %v1772_v57 = vsel %vm307_vm2, %v1764_v22, 0.0 }
 0x6d7   :  { %v1647_v26 = vsel %vm307_vm2, %v1637_v36, 0.0  ;;  %v1711_v58 = vsel %vm307_vm2, %v1701_v56, 0.0  ;;  %v1775_v21 = vsel %vm307_vm2, %v1765_v25, 0.0 }
 0x6d8   :  { %1340 = vrot.lane.b32.xlu0 %v6358_v0, %s5582_s27 }
 0x6da   :  { %1344 = vrot.lane.b32.xlu1 %v6356_v49, %s5584_s26 }
 0x6dc   :  { %1346 = vrot.lane.b32.xlu0 %v6358_v0, %s5584_s26 }
 0x6de   :  { %1421 = vrot.lane.b32.xlu1 %v6374_v40, %s5585_s25 }
 0x744   :  { %v6378_v39 = vpop.permute.xlu1 %1332 }
 0x746   :  { %v6380_v43 = vpop.permute.xlu0 %1334 }
 0x747   :  { %v6384_v16 = vpack.c.bf16 %v6380_v43, %v6378_v39 }
 0x748   :  { %v6386_v9 = vpop.permute.xlu1 %1338 }
 0x749   :  { %1471 = vrot.lane.b32.xlu0 %v6384_v16, %s5585_s25 }
 0x74a   :  { %v6390_v44 = vpop.permute.xlu0 %1340 }
 0x74b   :  { %v6394_v33 = vpack.c.bf16 %v6390_v44, %v6386_v9 }
 0x74c   :  { %v6396_v6 = vpop.permute.xlu1 %1344 }
 0x74d   :  { %1521 = vrot.lane.b32.xlu1 %v6394_v33, %s5585_s25 }
 0x74e   :  { %v6400_v12 = vpop.permute.xlu0 %1346 }
 0x74f   :  { %v6404_v51 = vpack.c.bf16 %v6400_v12, %v6396_v6 }
 0x750   :  { %v1422_v13 = vpop.permute.xlu1 %1421 }
 0x751   :  { %v1427_v34 = vsel %vm307_vm2, %v1422_v13, 0  ;;  %1571 = vrot.lane.b32.xlu0 %v6404_v51, %s5585_s25  ;;  %1351 = vrot.lane.b32.xlu1 %v4766_v63, %s5583_s0 }
 0x752   :  { %4979 = vmatpush3.bf16.xpose.msra.mxu0 %v1427_v34 }
 0x753   :  { %4990 = vmatprep.subr.bf16.mxu0 %v8043_v29 }
 0x755   :  { %1354 = vrot.lane.b32.xlu0 %v4766_v63, %s5582_s27  ;;  %1357 = vrot.lane.b32.xlu1 %v4766_v63, %s5584_s26 }
 0x759   :  { %4981 = vmatmul.mubr.msk.bf16.vlgmr.msra.gmra.mrb[20].mxu0 %vm307_vm2, %v6374_v40 }
 0x75a   :  { %4992 = vmatprep.mubr.msk.bf16.mxu0 %vm5581_vm0, %v8043_v29 }
 0x774   :  { %1389 = vadd.xlane.f32.xlu0 %v1388_v11 }
 0x779   :  { %1392 = vadd.xlane.f32.xlu1 %v1391_v17 }
 0x77d   :  { %1645 = vadd.xlane.f32.xlu1 %v1644_v47 }
 0x7bb   :  { %v1472_v23 = vpop.permute.xlu0 %1471 }
 0x7bc   :  { %v1477_v7 = vsel %vm307_vm2, %v1472_v23, 0 }
 0x7bd   :  { %4985 = vmatpush3.bf16.xpose.msra.mxu1 %v1477_v7 }
 0x7be   :  { %4996 = vmatprep.subr.bf16.mxu1 %v8043_v29 }
 0x7bf   :  { %v1522_v53 = vpop.permute.xlu1 %1521 }
 0x7c0   :  { %v1527_v54 = vsel %vm307_vm2, %v1522_v53, 0 }
 0x7c1   :  { %4991 = vmatpush3.bf16.xpose.msra.mxu0 %v1527_v54 }
 0x7c2   :  { %5002 = vmatprep.subr.bf16.mxu0 %v8043_v29 }
 0x7c3   :  { %v1572_v4 = vpop.permute.xlu0 %1571  ;;  %v1352_v61 = vpop.permute.xlu1 %1351 }
 0x7c4   :  { %v1577_v55 = vsel %vm307_vm2, %v1572_v4, 0  ;;  %v6441_v45 = vrot.slane %v1352_v61, %v8053_v52  ;;  %v6444_v5 = vrot.slane %v1352_v61, %v8055_v15  ;;  %4987 = vmatmul.mubr.msk.bf16.vlgmr.msra.gmra.mrb[20].mxu1 %vm307_vm2, %v6384_v16  ;;  %v6465_v32 = vrot.slane %v1352_v61, %v8057_v31 }
 0x7c5   :  { %4997 = vmatpush3.bf16.xpose.msra.mxu1 %v1577_v55  ;;  %4998 = vmatprep.mubr.msk.bf16.mxu1 %vm5581_vm0, %v8043_v29  ;;  %v6487_v3 = vrot.slane %v1352_v61, %v8059_v2 }
 0x7c6   :  { %v1638_v27 = vmul.f32 %v6444_v5, %v6378_v39  ;;  %v1382_v19 = vmul.f32 %v6441_v45, %v6378_v39  ;;  %5008 = vmatprep.subr.bf16.mxu1 %v8043_v29  ;;  %v1702_v46 = vmul.f32 %v6465_v32, %v6378_v39  ;;  %v1383_v18 = vmul.f32 %v6441_v45, %v6380_v43 }
 0x7c7   :  { %v1355_v24 = vpop.permute.xlu0 %1354  ;;  %v1766_v41 = vmul.f32 %v6487_v3, %v6378_v39  ;;  %v1358_v1 = vpop.permute.xlu1 %1357  ;;  %v1639_v13 = vmul.f32 %v6444_v5, %v6380_v43  ;;  %v1703_v39 = vmul.f32 %v6465_v32, %v6380_v43  ;;  %v1767_v23 = vmul.f32 %v6487_v3, %v6380_v43 }
 0x7c8   :  { %4993 = vmatmul.mubr.msk.bf16.vlgmr.msra.gmra.mrb[24].mxu0 %vm307_vm2, %v6394_v33  ;;  %v1650_v37 = vsel %vm307_vm2, %v1638_v27, 0.0  ;;  %v1394_v59 = vsel %vm307_vm2, %v1382_v19, 0.0  ;;  %v1714_v35 = vsel %vm307_vm2, %v1702_v46, 0.0  ;;  %v6495_v48 = vrot.slane %v1355_v24, %v8053_v52 }
 0x7c9   :  { %5004 = vmatprep.mubr.msk.bf16.mxu0 %vm5581_vm0, %v8043_v29  ;;  %1651 = vadd.xlane.f32.xlu1 %v1650_v37  ;;  %v6505_v63 = vrot.slane %v1358_v1, %v8053_v52  ;;  %v1778_v34 = vsel %vm307_vm2, %v1766_v41, 0.0  ;;  %v1397_v60 = vsel %vm307_vm2, %v1383_v18, 0.0  ;;  %v6514_v10 = vrot.slane %v1355_v24, %v8055_v15 }
 0x7ca   :  { %1395 = vadd.xlane.f32.xlu0 %v1394_v59  ;;  %v1384_v11 = vmul.f32 %v6495_v48, %v6386_v9  ;;  %v1653_v20 = vsel %vm307_vm2, %v1639_v13, 0.0  ;;  %v6523_v7 = vrot.slane %v1358_v1, %v8055_v15  ;;  %v1717_v53 = vsel %vm307_vm2, %v1703_v39, 0.0 }
 0x7cb   :  { %v1386_v47 = vmul.f32 %v6505_v63, %v6396_v6  ;;  %v1640_v4 = vmul.f32 %v6514_v10, %v6386_v9  ;;  %v6530_v61 = vrot.slane %v1355_v24, %v8057_v31  ;;  %v1781_v55 = vsel %vm307_vm2, %v1767_v23, 0.0 }
 0x7cc   :  { %4999 = vmatmul.mubr.msk.bf16.vlgmr.msra.gmra.mrb[24].mxu1 %vm307_vm2, %v6404_v51  ;;  %v1400_v17 = vsel %vm307_vm2, %v1384_v11, 0.0  ;;  %v1385_v43 = vmul.f32 %v6495_v48, %v6390_v44  ;;  %v1642_v19 = vmul.f32 %v6523_v7, %v6396_v6  ;;  %v6539_v42 = vrot.slane %v1358_v1, %v8057_v31 }
 0x7cd   :  { %5010 = vmatprep.mubr.msk.bf16.mxu1 %vm5581_vm0, %v8043_v29  ;;  %1709 = vadd.xlane.f32.xlu1 %v1708_v30  ;;  %v1406_v54 = vsel %vm307_vm2, %v1386_v47, 0.0  ;;  %v1656_v27 = vsel %vm307_vm2, %v1640_v4, 0.0  ;;  %v1387_v36 = vmul.f32 %v6505_v63, %v6400_v12  ;;  %v1704_v30 = vmul.f32 %v6530_v61, %v6386_v9 }
 0x7ce   :  { %1648 = vadd.xlane.f32.xlu0 %v1647_v26  ;;  %8061 = vst [vmem:[#allocation31_spill] sm:$0xff] %v6539_v42  ;;  %v1403_v37 = vsel %vm307_vm2, %v1385_v43, 0.0  ;;  %v1662_v59 = vsel %vm307_vm2, %v1642_v19, 0.0  ;;  %v6548_v26 = vrot.slane %v1355_v24, %v8059_v2  ;;  %v1641_v22 = vmul.f32 %v6514_v10, %v6390_v44 }
 0x7cf   :  { %v1409_v46 = vsel %vm307_vm2, %v1387_v36, 0.0  ;;  %v1720_v56 = vsel %vm307_vm2, %v1704_v30, 0.0  ;;  %v6591_v36 = vld [vmem:[%s7946_s2 + $0x8] sm:$0xff] }
 0x7d0   :  { %v1659_v25 = vsel %vm307_vm2, %v1641_v22, 0.0  ;;  %v1769_v39 = vmul.f32 %v6548_v26, %v6390_v44 }
 0x7d1   :  { %1715 = vadd.xlane.f32.xlu1 %v1714_v35  ;;  %v1706_v35 = vmul.f32 %v6539_v42, %v6396_v6 }
 0x7d2   :  { %1712 = vadd.xlane.f32.xlu0 %v1711_v58  ;;  %v6557_v58 = vrot.slane %v1358_v1, %v8059_v2  ;;  %v1705_v1 = vmul.f32 %v6530_v61, %v6390_v44 }
 0x7d3   :  { %v1726_v24 = vsel %vm307_vm2, %v1706_v35, 0.0 }
 0x7d4   :  { %8062 = vst [vmem:[#allocation33_spill] sm:$0xff] %v6557_v58  ;;  %v1770_v13 = vmul.f32 %v6557_v58, %v6396_v6  ;;  %v1771_v6 = vmul.f32 %v6557_v58, %v6400_v12 }
 0x7d5   :  { %1773 = vadd.xlane.f32.xlu1 %v1772_v57  ;;  %v1643_v57 = vmul.f32 %v6523_v7, %v6400_v12 }
 0x7d6   :  { %1776 = vadd.xlane.f32.xlu0 %v1775_v21  ;;  %v1768_v21 = vmul.f32 %v6548_v26, %v6386_v9  ;;  %v1707_v9 = vmul.f32 %v6539_v42, %v6400_v12 }
 0x7d7   :  { %v1665_v41 = vsel %vm307_vm2, %v1643_v57, 0.0 }
 0x7d8   :  { %v1784_v18 = vsel %vm307_vm2, %v1768_v21, 0.0  ;;  %v1729_v11 = vsel %vm307_vm2, %v1707_v9, 0.0 }
 0x7d9   :  { %1779 = vadd.xlane.f32.xlu1 %v1778_v34  ;;  %v1723_v34 = vsel %vm307_vm2, %v1705_v1, 0.0  ;;  %v6615_v1 = vld [vmem:[%s7946_s2 + $0x28] sm:$0xff] }
 0x7da   :  { %1398 = vadd.xlane.f32.xlu0 %v1397_v60  ;;  %v1790_v60 = vsel %vm307_vm2, %v1770_v13, 0.0 }
 0x7dd   :  { %1401 = vadd.xlane.f32.xlu1 %v1400_v17  ;;  %v1787_v17 = vsel %vm307_vm2, %v1769_v39, 0.0 }
 0x7de   :  { %1654 = vadd.xlane.f32.xlu0 %v1653_v20  ;;  %v1793_v20 = vsel %vm307_vm2, %v1771_v6, 0.0  ;;  %v6621_v6 = vld [vmem:[%s7946_s2 + $0x38] sm:$0xff] }
 0x7e1   :  { %1407 = vadd.xlane.f32.xlu1 %v1406_v54 }
 0x7e2   :  { %1718 = vadd.xlane.f32.xlu0 %v1717_v53 }
 0x7e5   :  { %1657 = vadd.xlane.f32.xlu1 %v1656_v27 }
 0x7e6   :  { %1782 = vadd.xlane.f32.xlu0 %v1781_v55 }
 0x7e9   :  { %1663 = vadd.xlane.f32.xlu1 %v1662_v59  ;;  %v6585_v59 = vld [vmem:[%s7946_s2] sm:$0xff] }
 0x7ea   :  { %1404 = vadd.xlane.f32.xlu0 %v1403_v37 }
 0x7ed   :  { %1721 = vadd.xlane.f32.xlu1 %v1720_v56  ;;  %v6597_v56 = vld [vmem:[%s7946_s2 + $0x18] sm:$0xff] }
 0x7ee   :  { %1410 = vadd.xlane.f32.xlu0 %v1409_v46 }
 0x7f1   :  { %1727 = vadd.xlane.f32.xlu1 %v1726_v24  ;;  %v6603_v24 = vld [vmem:[%s7946_s2 + $0x10] sm:$0xff] }
 0x7f2   :  { %1660 = vadd.xlane.f32.xlu0 %v1659_v25 }
 0x7f5   :  { %1785 = vadd.xlane.f32.xlu1 %v1784_v18 }
 0x7f6   :  { %1666 = vadd.xlane.f32.xlu0 %v1665_v41  ;;  %v6609_v41 = vld [vmem:[%s7946_s2 + $0x20] sm:$0xff] }
 0x7f9   :  { %1791 = vadd.xlane.f32.xlu1 %v1790_v60 }
 0x7fa   :  { %1724 = vadd.xlane.f32.xlu0 %v1723_v34 }
 0x7fe   :  { %1730 = vadd.xlane.f32.xlu0 %v1729_v11 }
 0x801   :  { %v1390_v55 = vpop.xlane.xlu0 %1389 }
 0x802   :  { %1788 = vadd.xlane.f32.xlu0 %v1787_v17  ;;  %v1412_v12 = vmul.f32 %v6585_v59, %v1390_v55 }
 0x806   :  { %1794 = vadd.xlane.f32.xlu0 %v1793_v20  ;;  %v1393_v4 = vpop.xlane.xlu1 %1392 }
 0x807   :  { %v1413_v30 = vmul.f32 %v6591_v36, %v1393_v4 }
 0x80a   :  { %v1646_v27 = vpop.xlane.xlu1 %1645 }
 0x80b   :  { %v1668_v57 = vmul.f32 %v6603_v24, %v1646_v27 }
 0x82c   :  { %v1463_v47 = vpop.f32.mrb[20].mxu0 }
 0x82d   :  { %v4982_v23 = vpop.f32.mrb[21].mxu0  ;;  %v1464_v46 = vadd.f32 %v1463_v47, %v1412_v12  ;;  %v6627_v47 = vld [vmem:[%s7946_s2 + $0x30] sm:$0xff] }
 0x82e   :  { %v1466_v53 = vpop.f32.mrb[22].mxu0 }
 0x82f   :  { %v4983_v54 = vpop.f32.mrb[23].mxu0  ;;  %v1467_v21 = vadd.f32 %v1466_v53, %v1413_v30  ;;  %v1676_v34 = vadd.f32 %v1668_v57, %v1464_v46 }
 0x856   :  { %v1652_v19 = vpop.xlane.xlu1 %1651 }
 0x857   :  { %v1396_v43 = vpop.xlane.xlu0 %1395 }
 0x85a   :  { %v1710_v37 = vpop.xlane.xlu1 %1709 }
 0x85b   :  { %v1649_v44 = vpop.xlane.xlu0 %1648  ;;  %v1732_v18 = vmul.f32 %v6609_v41, %v1710_v37 }
 0x85c   :  { %v1669_v22 = vmul.f32 %v6597_v56, %v1649_v44 }
 0x85d   :  { %v1740_v39 = vadd.f32 %v1732_v18, %v1676_v34 }
 0x85e   :  { %v1716_v25 = vpop.xlane.xlu1 %1715  ;;  %v1677_v60 = vadd.f32 %v1669_v22, %v1467_v21 }
 0x85f   :  { %v1713_v35 = vpop.xlane.xlu0 %1712  ;;  %v1734_v31 = vmul.f32 %v6609_v41, %v1716_v25 }
 0x860   :  { %v1733_v13 = vmul.f32 %v6615_v1, %v1713_v35 }
 0x862   :  { %v1774_v11 = vpop.xlane.xlu1 %1773  ;;  %v1741_v17 = vadd.f32 %v1733_v13, %v1677_v60 }
 0x863   :  { %v1777_v9 = vpop.xlane.xlu0 %1776  ;;  %v1796_v23 = vmul.f32 %v6627_v47, %v1774_v11 }
 0x864   :  { %v1797_v20 = vmul.f32 %v6621_v6, %v1777_v9 }
 0x865   :  { %v1804_v54 = vadd.f32 %v1796_v23, %v1740_v39 }
 0x866   :  { %v1805_v53 = vadd.f32 %v1797_v20, %v1741_v17  ;;  %v1780_v22 = vpop.xlane.xlu1 %1779 }
 0x867   :  { %v1399_v4 = vpop.xlane.xlu0 %1398  ;;  %v1812_v27 = vmul.f32 0.35355338, %v1804_v54 }
 0x868   :  { %v1813_v55 = vmul.f32 0.35355338, %v1805_v53  ;;  %v1414_v53 = vmul.f32 %v6585_v59, %v1396_v43  ;;  %v1798_v43 = vmul.f32 %v6627_v47, %v1780_v22 }
 0x869   :  { %v6636_v37 = vsel %vm167_vm5, %v1812_v27, -1e+30  ;;  %v1670_v27 = vmul.f32 %v6603_v24, %v1652_v19 }
 0x86a   :  { %v6632_v44 = vsel %vm168_vm3, %v1813_v55, -1e+30  ;;  %v1828_v46 = vsel %vm752_vm4, %v6636_v37, -inf  ;;  %v1402_v21 = vpop.xlane.xlu1 %1401 }
 0x86b   :  { %v1655_v12 = vpop.xlane.xlu0 %1654  ;;  %v1831_v30 = vsel %vm752_vm4, %v6632_v44, -inf  ;;  %1829 = vmax.xlane.f32.xlu1 %v1828_v46  ;;  %v1416_v28 = vmul.f32 %v6585_v59, %v1402_v21 }
 0x86c   :  { %1832 = vmax.xlane.f32.xlu0 %v1831_v30  ;;  %v1415_v30 = vmul.f32 %v6591_v36, %v1399_v4  ;;  %v1671_v52 = vmul.f32 %v6597_v56, %v1655_v12 }
 0x86e   :  { %v1408_v13 = vpop.xlane.xlu1 %1407 }
 0x86f   :  { %v1719_v35 = vpop.xlane.xlu0 %1718  ;;  %v1418_v21 = vmul.f32 %v6585_v59, %v1408_v13 }
 0x870   :  { %v1735_v49 = vmul.f32 %v6615_v1, %v1719_v35 }
 0x872   :  { %v1658_v60 = vpop.xlane.xlu1 %1657 }
 0x873   :  { %v1783_v57 = vpop.xlane.xlu0 %1782  ;;  %v1672_v19 = vmul.f32 %v6603_v24, %v1658_v60 }
 0x876   :  { %v1664_v11 = vpop.xlane.xlu1 %1663 }
 0x877   :  { %v1405_v18 = vpop.xlane.xlu0 %1404 }
 0x87a   :  { %v1722_v17 = vpop.xlane.xlu1 %1721 }
 0x87b   :  { %v1411_v34 = vpop.xlane.xlu0 %1410 }
 0x87e   :  { %v1728_v23 = vpop.xlane.xlu1 %1727 }
 0x87f   :  { %v1661_v9 = vpop.xlane.xlu0 %1660 }
 0x882   :  { %v1786_v8 = vpop.xlane.xlu1 %1785 }
 0x883   :  { %v1667_v39 = vpop.xlane.xlu0 %1666 }
 0x887   :  { %v1725_v20 = vpop.xlane.xlu0 %1724 }
 0x88b   :  { %v1731_v54 = vpop.xlane.xlu0 %1730 }
 0x897   :  { %v1513_v55 = vpop.f32.mrb[20].mxu1 }
 0x898   :  { %v1514_v46 = vadd.f32 %v1513_v55, %v1414_v53  ;;  %v4988_v2 = vpop.f32.mrb[21].mxu1  ;;  %v1789_v53 = vpop.xlane.xlu0 %1788 }
 0x899   :  { %v1516_v15 = vpop.f32.mrb[22].mxu1  ;;  %v1417_v2 = vmul.f32 %v6591_v36, %v1405_v18  ;;  %v1674_v18 = vmul.f32 %v6603_v24, %v1664_v11 }
 0x89a   :  { %v1678_v14 = vadd.f32 %v1670_v27, %v1514_v46  ;;  %v1517_v38 = vadd.f32 %v1516_v15, %v1415_v30  ;;  %v4989_v0 = vpop.f32.mrb[23].mxu1  ;;  %v1799_v27 = vmul.f32 %v6621_v6, %v1783_v57  ;;  %v1673_v15 = vmul.f32 %v6597_v56, %v1661_v9 }
 0x89b   :  { %v1563_v4 = vpop.f32.mrb[24].mxu0  ;;  %v1736_v0 = vmul.f32 %v6609_v41, %v1722_v17 }
 0x89c   :  { %v1742_v25 = vadd.f32 %v1734_v31, %v1678_v14  ;;  %v1679_v55 = vadd.f32 %v1671_v52, %v1517_v38  ;;  %v1564_v58 = vadd.f32 %v1563_v4, %v1416_v28  ;;  %v4994_v12 = vpop.f32.mrb[25].mxu0  ;;  %v1419_v52 = vmul.f32 %v6591_v36, %v1411_v34  ;;  %v1792_v28 = vpop.xlane.xlu1 %1791 }
 0x89d   :  { %v1566_v22 = vpop.f32.mrb[26].mxu0  ;;  %v1738_v38 = vmul.f32 %v6609_v41, %v1728_v23  ;;  %v1737_v14 = vmul.f32 %v6615_v1, %v1725_v20  ;;  %v1795_v34 = vpop.xlane.xlu0 %1794  ;;  %v1802_v12 = vmul.f32 %v6627_v47, %v1792_v28 }
 0x89e   :  { %v1743_v35 = vadd.f32 %v1735_v49, %v1679_v55  ;;  %v1680_v30 = vadd.f32 %v1672_v19, %v1564_v58  ;;  %v1567_v60 = vadd.f32 %v1566_v22, %v1417_v2  ;;  %v4995_v46 = vpop.f32.mrb[27].mxu0  ;;  %v1806_v42 = vadd.f32 %v1798_v43, %v1742_v25 }
 0x89f   :  { %v1613_v31 = vpop.f32.mrb[24].mxu1  ;;  %v1675_v49 = vmul.f32 %v6597_v56, %v1667_v39  ;;  %v1800_v58 = vmul.f32 %v6627_v47, %v1786_v8  ;;  %v1801_v43 = vmul.f32 %v6621_v6, %v1789_v53  ;;  %v1739_v8 = vmul.f32 %v6615_v1, %v1731_v54 }
 0x8a0   :  { %v1744_v57 = vadd.f32 %v1736_v0, %v1680_v30  ;;  %v1681_v13 = vadd.f32 %v1673_v15, %v1567_v60  ;;  %v1614_v17 = vadd.f32 %v1613_v31, %v1418_v21  ;;  %v5000_v9 = vpop.f32.mrb[25].mxu1  ;;  %v1814_v4 = vmul.f32 0.35355338, %v1806_v42 }
 0x8a1   :  { %v1616_v11 = vpop.f32.mrb[26].mxu1  ;;  %v1807_v19 = vadd.f32 %v1799_v27, %v1743_v35  ;;  %v1803_v15 = vmul.f32 %v6621_v6, %v1795_v34 }
 0x8a2   :  { %v1745_v2 = vadd.f32 %v1737_v14, %v1681_v13  ;;  %v1682_v23 = vadd.f32 %v1674_v18, %v1614_v17  ;;  %v1617_v25 = vadd.f32 %v1616_v11, %v1419_v52  ;;  %v5001_v20 = vpop.f32.mrb[27].mxu1  ;;  %v1822_v55 = vsel %vm167_vm5, %v1814_v4, -1e+30 }
 0x8a3   :  { %v1834_v42 = vsel %vm752_vm4, %v1822_v55, -inf  ;;  %v1815_v21 = vmul.f32 0.35355338, %v1807_v19  ;;  %v1808_v39 = vadd.f32 %v1800_v58, %v1744_v57 }
 0x8a4   :  { %v1746_v0 = vadd.f32 %v1738_v38, %v1682_v23  ;;  %v1683_v53 = vadd.f32 %v1675_v49, %v1617_v25  ;;  %1835 = vmax.xlane.f32.xlu1 %v1834_v42  ;;  %v1809_v27 = vadd.f32 %v1801_v43, %v1745_v2 }
 0x8a5   :  { %v1823_v22 = vsel %vm168_vm3, %v1815_v21, -1e+30  ;;  %v1816_v35 = vmul.f32 0.35355338, %v1808_v39 }
 0x8a6   :  { %v1747_v30 = vadd.f32 %v1739_v8, %v1683_v53  ;;  %v1837_v60 = vsel %vm752_vm4, %v1823_v22, -inf  ;;  %v1817_v46 = vmul.f32 0.35355338, %v1809_v27  ;;  %v1810_v18 = vadd.f32 %v1802_v12, %v1746_v0 }
 0x8a7   :  { %1838 = vmax.xlane.f32.xlu0 %v1837_v60  ;;  %v1824_v52 = vsel %vm167_vm5, %v1816_v35, -1e+30 }
 0x8a8   :  { %v1840_v54 = vsel %vm752_vm4, %v1824_v52, -inf  ;;  %v1825_v38 = vsel %vm168_vm3, %v1817_v46, -1e+30  ;;  %v1818_v14 = vmul.f32 0.35355338, %v1810_v18  ;;  %v1811_v31 = vadd.f32 %v1803_v15, %v1747_v30 }
 0x8a9   :  { %1841 = vmax.xlane.f32.xlu1 %v1840_v54  ;;  %v1843_v28 = vsel %vm752_vm4, %v1825_v38, -inf }
 0x8aa   :  { %v1826_v57 = vsel %vm167_vm5, %v1818_v14, -1e+30  ;;  %v1819_v13 = vmul.f32 0.35355338, %v1811_v31 }
 0x8ab   :  { %1844 = vmax.xlane.f32.xlu0 %v1843_v28  ;;  %v1846_v17 = vsel %vm752_vm4, %v1826_v57, -inf }
 0x8ac   :  { %v1827_v9 = vsel %vm168_vm3, %v1819_v13, -1e+30 }
 0x8ad   :  { %1847 = vmax.xlane.f32.xlu1 %v1846_v17  ;;  %v1849_v4 = vsel %vm752_vm4, %v1827_v9, -inf }
 0x8af   :  { %1850 = vmax.xlane.f32.xlu0 %v1849_v4 }
 0x8be   :  { %1960 = vrot.lane.b32.xlu1 %v6374_v40, %s5571_s23 }
 0x8f8   :  { %v1830_v58 = vpop.xlane.xlu1 %1829 }
 0x8f9   :  { %v1833_v49 = vpop.xlane.xlu0 %1832  ;;  %v1852_v11 = vsub.f32 %v6636_v37, %v1830_v58 }
 0x8fa   :  { %v1853_v43 = vsub.f32 %v6632_v44, %v1833_v49 }
 0x8fb   :  { %v1860_v34 = vmul.f32 1.442695, %v1852_v11 }
 0x8fc   :  { %v1862_v19 = vmul.f32 1.442695, %v1853_v43 }
 0x8fe   :  { %5237 = vpow2.f32 %v1862_v19 }
 0x8ff   :  { %5239 = vpow2.f32 %v1860_v34 }
 0x908   :  { %v5238_v2 = vpop.eup %5237 }
 0x909   :  { %v5240_v23 = vpop.eup %5239  ;;  %v1879_v25 = vsel %vm752_vm4, %v5238_v2, 0.0 }
 0x90a   :  { %v1876_v20 = vsel %vm752_vm4, %v5240_v23, 0.0  ;;  %1880 = vadd.xlane.f32.xlu0 %v1879_v25 }
 0x90b   :  { %1877 = vadd.xlane.f32.xlu1 %v1876_v20 }
 0x931   :  { %v1836_v12 = vpop.xlane.xlu1 %1835 }
 0x932   :  { %v1854_v40 = vsub.f32 %v1822_v55, %v1836_v12 }
 0x934   :  { %v1864_v42 = vmul.f32 1.442695, %v1854_v40  ;;  %v1839_v21 = vpop.xlane.xlu0 %1838 }
 0x935   :  { %v1855_v39 = vsub.f32 %v1823_v22, %v1839_v21 }
 0x936   :  { %5241 = vpow2.f32 %v1864_v42  ;;  %v1842_v44 = vpop.xlane.xlu1 %1841 }
 0x937   :  { %v1866_v37 = vmul.f32 1.442695, %v1855_v39  ;;  %v1856_v8 = vsub.f32 %v1824_v52, %v1842_v44 }
 0x938   :  { %v1845_v0 = vpop.xlane.xlu0 %1844 }
 0x939   :  { %5243 = vpow2.f32 %v1866_v37  ;;  %v1868_v53 = vmul.f32 1.442695, %v1856_v8  ;;  %v1857_v27 = vsub.f32 %v1825_v38, %v1845_v0 }
 0x93a   :  { %v1848_v15 = vpop.xlane.xlu1 %1847 }
 0x93b   :  { %5245 = vpow2.f32 %v1868_v53  ;;  %v1870_v35 = vmul.f32 1.442695, %v1857_v27  ;;  %v1858_v30 = vsub.f32 %v1826_v57, %v1848_v15 }
 0x93c   :  { %v1851_v60 = vpop.xlane.xlu0 %1850 }
 0x93d   :  { %5247 = vpow2.f32 %v1870_v35  ;;  %v1872_v46 = vmul.f32 1.442695, %v1858_v30  ;;  %v1859_v18 = vsub.f32 %v1827_v9, %v1851_v60 }
 0x93e   :  { %v1961_v55 = vpop.permute.xlu1 %1960 }
 0x93f   :  { %5249 = vpow2.f32 %v1872_v46  ;;  %v1874_v54 = vmul.f32 1.442695, %v1859_v18  ;;  %5003 = vmatpush3.bf16.msra.mxu0 %v1961_v55 }
 0x940   :  { %v5242_v22 = vpop.eup %5241  ;;  %5014 = vmatprep.subr.bf16.mxu0 %v8043_v29 }
 0x941   :  { %5251 = vpow2.f32 %v1874_v54  ;;  %v1882_v52 = vsel %vm752_vm4, %v5242_v22, 0.0 }
 0x942   :  { %1883 = vadd.xlane.f32.xlu1 %v1882_v52 }
 0x943   :  { %v5244_v38 = vpop.eup %5243 }
 0x944   :  { %v1885_v14 = vsel %vm752_vm4, %v5244_v38, 0.0 }
 0x945   :  { %v5246_v31 = vpop.eup %5245  ;;  %1886 = vadd.xlane.f32.xlu0 %v1885_v14 }
 0x946   :  { %v1888_v28 = vsel %vm752_vm4, %v5246_v31, 0.0 }
 0x947   :  { %v5248_v57 = vpop.eup %5247  ;;  %1889 = vadd.xlane.f32.xlu1 %v1888_v28 }
 0x948   :  { %v1891_v13 = vsel %vm752_vm4, %v5248_v57, 0.0 }
 0x949   :  { %v6695_v17 = vpop.eup %5249  ;;  %1892 = vadd.xlane.f32.xlu0 %v1891_v13 }
 0x94a   :  { %v1894_v9 = vsel %vm752_vm4, %v6695_v17, 0.0 }
 0x94b   :  { %v6699_v4 = vpop.eup %5251  ;;  %1895 = vadd.xlane.f32.xlu1 %v1894_v9 }
 0x94c   :  { %v1897_v49 = vsel %vm752_vm4, %v6699_v4, 0.0 }
 0x94d   :  { %1898 = vadd.xlane.f32.xlu0 %v1897_v49 }
 0x95c   :  { %2054 = vrot.lane.b32.xlu1 %v6394_v33, %s5571_s23 }
 0x960   :  { %2101 = vrot.lane.b32.xlu1 %v6404_v51, %s5571_s23 }
 0x963   :  { %2007 = vrot.lane.b32.xlu0 %v6384_v16, %s5571_s23 }
 0x997   :  { %v1881_v58 = vpop.xlane.xlu0 %1880 }
 0x998   :  { %v1878_v43 = vpop.xlane.xlu1 %1877  ;;  %5253 = vrcp.f32 %v1881_v58 }
 0x999   :  { %5255 = vrcp.f32 %v1878_v43 }
 0x9a2   :  { %v5254_v11 = vpop.eup %5253 }
 0x9a3   :  { %v5256_v19 = vpop.eup %5255  ;;  %v6709_v34 = vmul.f32 %v5254_v11, %v5238_v2 }
 0x9a4   :  { %v6711_v25 = vmul.f32 %v5256_v19, %v5240_v23 }
 0x9a6   :  { %v1916_v20 = vpack.c.bf16 %v6709_v34, %v6711_v25 }
 0x9a8   :  { %5005 = vmatmul.mubr.msk.bf16.vlgmr.msra.gmra.mrb[28].mxu0 %vm752_vm4, %v1916_v20 }
 0x9a9   :  { %5016 = vmatprep.mubr.msk.bf16.mxu0 %vm5581_vm0, %v8043_v29 }
 0x9cf   :  { %v1884_v33 = vpop.xlane.xlu1 %1883 }
 0x9d0   :  { %5257 = vrcp.f32 %v1884_v33 }
 0x9d2   :  { %v1887_v16 = vpop.xlane.xlu0 %1886 }
 0x9d3   :  { %5259 = vrcp.f32 %v1887_v16 }
 0x9d4   :  { %v1890_v51 = vpop.xlane.xlu1 %1889 }
 0x9d5   :  { %5261 = vrcp.f32 %v1890_v51 }
 0x9d6   :  { %v1893_v12 = vpop.xlane.xlu0 %1892 }
 0x9d7   :  { %5263 = vrcp.f32 %v1893_v12 }
 0x9d8   :  { %v1896_v2 = vpop.xlane.xlu1 %1895 }
 0x9d9   :  { %5265 = vrcp.f32 %v1896_v2 }
 0x9da   :  { %v5258_v23 = vpop.eup %5257  ;;  %v1899_v40 = vpop.xlane.xlu0 %1898 }
 0x9db   :  { %v1910_v42 = vmul.f32 %v5258_v23, %v5242_v22  ;;  %5267 = vrcp.f32 %v1899_v40 }
 0x9dc   :  { %v2055_v21 = vpop.permute.xlu1 %2054 }
 0x9dd   :  { %v5260_v39 = vpop.eup %5259  ;;  %5015 = vmatpush3.bf16.msra.mxu0 %v2055_v21  ;;  %v2150_v44 = vmul.f32 %v6603_v24, %v1910_v42  ;;  %v1922_v37 = vmul.f32 %v6585_v59, %v1910_v42  ;;  %v2198_v52 = vmul.f32 %v6609_v41, %v1910_v42  ;;  %v2246_v20 = vmul.f32 %v6627_v47, %v1910_v42 }
 0x9de   :  { %v6720_v8 = vmul.f32 %v5260_v39, %v5244_v38  ;;  %v2008_v0 = vpop.permute.xlu0 %2007  ;;  %5026 = vmatprep.subr.bf16.mxu0 %v8043_v29 }
 0x9df   :  { %v5262_v53 = vpop.eup %5261  ;;  %5009 = vmatpush3.bf16.msra.mxu1 %v2008_v0  ;;  %v2162_v27 = vsel %vm752_vm4, %v2150_v44, 0.0  ;;  %v1934_v15 = vsel %vm752_vm4, %v1922_v37, 0.0  ;;  %v2210_v49 = vsel %vm752_vm4, %v2198_v52, 0.0  ;;  %v2258_v16 = vsel %vm752_vm4, %v2246_v20, 0.0 }
 0x9e0   :  { %v1912_v35 = vmul.f32 %v5262_v53, %v5246_v31  ;;  %2163 = vadd.xlane.f32.xlu1 %v2162_v27  ;;  %1935 = vadd.xlane.f32.xlu0 %v1934_v15  ;;  %v1917_v30 = vpack.c.bf16 %v6720_v8, %v1910_v42  ;;  %v2102_v18 = vpop.permute.xlu1 %2101  ;;  %v2151_v19 = vmul.f32 %v6597_v56, %v6720_v8 }
 0x9e1   :  { %v5264_v60 = vpop.eup %5263  ;;  %5020 = vmatprep.subr.bf16.mxu1 %v8043_v29  ;;  %v2199_v2 = vmul.f32 %v6615_v1, %v6720_v8  ;;  %v1923_v42 = vmul.f32 %v6591_v36, %v6720_v8  ;;  %v2247_v0 = vmul.f32 %v6621_v6, %v6720_v8 }
 0x9e2   :  { %v1913_v46 = vmul.f32 %v5264_v60, %v5248_v57  ;;  %5011 = vmatmul.mubr.msk.bf16.vlgmr.msra.gmra.mrb[28].mxu1 %vm752_vm4, %v1917_v30  ;;  %v2152_v55 = vmul.f32 %v6603_v24, %v1912_v35  ;;  %v1924_v54 = vmul.f32 %v6585_v59, %v1912_v35  ;;  %v2200_v11 = vmul.f32 %v6609_v41, %v1912_v35 }
 0x9e3   :  { %v5266_v22 = vpop.eup %5265  ;;  %5021 = vmatpush3.bf16.msra.mxu1 %v2102_v18  ;;  %5022 = vmatprep.mubr.msk.bf16.mxu1 %vm5581_vm0, %v8043_v29  ;;  %v2248_v12 = vmul.f32 %v6627_v47, %v1912_v35  ;;  %v2213_v40 = vsel %vm752_vm4, %v2199_v2, 0.0  ;;  %v1937_v39 = vsel %vm752_vm4, %v1923_v42, 0.0  ;;  %v2261_v27 = vsel %vm752_vm4, %v2247_v0, 0.0 }
 0x9e4   :  { %v2168_v38 = vsel %vm752_vm4, %v2152_v55, 0.0  ;;  %v1940_v14 = vsel %vm752_vm4, %v1924_v54, 0.0  ;;  %v1918_v31 = vpack.c.bf16 %v1913_v46, %v1912_v35  ;;  %5034 = vmatprep.subr.bf16.mxu1 %v8043_v29  ;;  %v1925_v57 = vmul.f32 %v6591_v36, %v1913_v46 }
 0x9e5   :  { %v5268_v28 = vpop.eup %5267  ;;  %2169 = vadd.xlane.f32.xlu1 %v2168_v38  ;;  %1941 = vadd.xlane.f32.xlu0 %v1940_v14  ;;  %v1914_v13 = vmul.f32 %v5266_v22, %v6695_v17  ;;  %v2216_v17 = vsel %vm752_vm4, %v2200_v11, 0.0  ;;  %v2153_v33 = vmul.f32 %v6597_v56, %v1913_v46  ;;  %v2264_v23 = vsel %vm752_vm4, %v2248_v12, 0.0 }
 0x9e6   :  { %v6739_v9 = vmul.f32 %v5268_v28, %v6699_v4  ;;  %5017 = vmatmul.mubr.msk.bf16.vlgmr.msra.gmra.mrb[32].mxu0 %vm752_vm4, %v1918_v31  ;;  %v1943_v58 = vsel %vm752_vm4, %v1925_v57, 0.0  ;;  %v2165_v4 = vsel %vm752_vm4, %v2151_v19, 0.0  ;;  %v2201_v21 = vmul.f32 %v6615_v1, %v1913_v46 }
 0x9e7   :  { %5030 = vmatprep.mubr.msk.bf16.mxu0 %vm5581_vm0, %v8043_v29  ;;  %v2171_v51 = vsel %vm752_vm4, %v2153_v33, 0.0  ;;  %v1926_v37 = vmul.f32 %v6585_v59, %v1914_v13  ;;  %v2154_v15 = vmul.f32 %v6603_v24, %v1914_v13  ;;  %v2249_v35 = vmul.f32 %v6621_v6, %v1913_v46 }
 0x9e8   :  { %v1919_v43 = vpack.c.bf16 %v6739_v9, %v1914_v13  ;;  %v2219_v44 = vsel %vm752_vm4, %v2201_v21, 0.0  ;;  %v2202_v18 = vmul.f32 %v6609_v41, %v1914_v13  ;;  %v1927_v8 = vmul.f32 %v6591_v36, %v6739_v9 }
 0x9e9   :  { %2211 = vadd.xlane.f32.xlu1 %v2210_v49  ;;  %1944 = vadd.xlane.f32.xlu0 %v1943_v58  ;;  %v1946_v53 = vsel %vm752_vm4, %v1926_v37, 0.0  ;;  %v2174_v30 = vsel %vm752_vm4, %v2154_v15, 0.0  ;;  %v2267_v60 = vsel %vm752_vm4, %v2249_v35, 0.0  ;;  %v2250_v22 = vmul.f32 %v6627_v47, %v1914_v13 }
 0x9ea   :  { %5023 = vmatmul.mubr.msk.bf16.vlgmr.msra.gmra.mrb[32].mxu1 %vm752_vm4, %v1919_v43  ;;  %v2222_v55 = vsel %vm752_vm4, %v2202_v18, 0.0  ;;  %v1949_v54 = vsel %vm752_vm4, %v1927_v8, 0.0  ;;  %v2155_v46 = vmul.f32 %v6597_v56, %v6739_v9  ;;  %v1920_v14 = vmul.f32 %v6585_v59, %v6711_v25 }
 0x9eb   :  { %5036 = vmatprep.mubr.msk.bf16.mxu1 %vm5581_vm0, %v8043_v29  ;;  %v2270_v52 = vsel %vm752_vm4, %v2250_v22, 0.0  ;;  %v2203_v31 = vmul.f32 %v6615_v1, %v6739_v9  ;;  %v2148_v13 = vmul.f32 %v6603_v24, %v6711_v25  ;;  %v2251_v49 = vmul.f32 %v6621_v6, %v6739_v9 }
 0x9ec   :  { %v2177_v38 = vsel %vm752_vm4, %v2155_v46, 0.0  ;;  %v1928_v28 = vsel %vm752_vm4, %v1920_v14, 0.0  ;;  %v2196_v43 = vmul.f32 %v6609_v41, %v6711_v25  ;;  %v1921_v11 = vmul.f32 %v6591_v36, %v6709_v34 }
 0x9ed   :  { %2217 = vadd.xlane.f32.xlu1 %v2216_v17  ;;  %2166 = vadd.xlane.f32.xlu0 %v2165_v4  ;;  %v2225_v57 = vsel %vm752_vm4, %v2203_v31, 0.0  ;;  %v2156_v58 = vsel %vm752_vm4, %v2148_v13, 0.0  ;;  %v2273_v59 = vsel %vm752_vm4, %v2251_v49, 0.0  ;;  %v2244_v9 = vmul.f32 %v6627_v47, %v6711_v25 }
 0x9ee   :  { %v2204_v19 = vsel %vm752_vm4, %v2196_v43, 0.0  ;;  %v1931_v24 = vsel %vm752_vm4, %v1921_v11, 0.0  ;;  %v2149_v17 = vmul.f32 %v6597_v56, %v6709_v34  ;;  %v2197_v36 = vmul.f32 %v6615_v1, %v6709_v34 }
 0x9ef   :  { %v2252_v4 = vsel %vm752_vm4, %v2244_v9, 0.0  ;;  %v2245_v33 = vmul.f32 %v6621_v6, %v6709_v34 }
 0x9f0   :  { %v2159_v41 = vsel %vm752_vm4, %v2149_v17, 0.0  ;;  %v2207_v20 = vsel %vm752_vm4, %v2197_v36, 0.0 }
 0x9f1   :  { %2259 = vadd.xlane.f32.xlu1 %v2258_v16  ;;  %2172 = vadd.xlane.f32.xlu0 %v2171_v51  ;;  %v2255_v47 = vsel %vm752_vm4, %v2245_v33, 0.0 }
 0x9f5   :  { %2265 = vadd.xlane.f32.xlu1 %v2264_v23  ;;  %2214 = vadd.xlane.f32.xlu0 %v2213_v40 }
 0x9f9   :  { %1938 = vadd.xlane.f32.xlu1 %v1937_v39  ;;  %2220 = vadd.xlane.f32.xlu0 %v2219_v44 }
 0x9fd   :  { %1947 = vadd.xlane.f32.xlu1 %v1946_v53  ;;  %2262 = vadd.xlane.f32.xlu0 %v2261_v27 }
 0xa01   :  { %2175 = vadd.xlane.f32.xlu1 %v2174_v30  ;;  %2268 = vadd.xlane.f32.xlu0 %v2267_v60 }
 0xa05   :  { %2223 = vadd.xlane.f32.xlu1 %v2222_v55  ;;  %1950 = vadd.xlane.f32.xlu0 %v1949_v54 }
 0xa09   :  { %2271 = vadd.xlane.f32.xlu1 %v2270_v52  ;;  %2178 = vadd.xlane.f32.xlu0 %v2177_v38 }
 0xa0d   :  { %1929 = vadd.xlane.f32.xlu1 %v1928_v28  ;;  %2226 = vadd.xlane.f32.xlu0 %v2225_v57 }
 0xa11   :  { %2157 = vadd.xlane.f32.xlu1 %v2156_v58  ;;  %2274 = vadd.xlane.f32.xlu0 %v2273_v59 }
 0xa15   :  { %2205 = vadd.xlane.f32.xlu1 %v2204_v19  ;;  %1932 = vadd.xlane.f32.xlu0 %v1931_v24 }
 0xa19   :  { %2253 = vadd.xlane.f32.xlu1 %v2252_v4  ;;  %2160 = vadd.xlane.f32.xlu0 %v2159_v41 }
 0xa1d   :  { %2208 = vadd.xlane.f32.xlu0 %v2207_v20 }
 0xa21   :  { %2256 = vadd.xlane.f32.xlu0 %v2255_v47 }
 0xa6d   :  { %v1936_v56 = vpop.xlane.xlu0 %1935  ;;  %v2164_v1 = vpop.xlane.xlu1 %2163 }
 0xa6e   :  { %v1954_v18 = vmul.f32 %v1936_v56, %v6441_v45  ;;  %v2182_v55 = vmul.f32 %v2164_v1, %v6444_v5 }
 0xa72   :  { %v1942_v2 = vpop.xlane.xlu0 %1941  ;;  %v2170_v40 = vpop.xlane.xlu1 %2169 }
 0xa73   :  { %v1956_v52 = vmul.f32 %v1942_v2, %v6495_v48  ;;  %v2184_v59 = vmul.f32 %v2170_v40, %v6514_v10 }
 0xa76   :  { %v1945_v23 = vpop.xlane.xlu0 %1944  ;;  %v2212_v21 = vpop.xlane.xlu1 %2211 }
 0xa77   :  { %v2230_v31 = vmul.f32 %v2212_v21, %v6465_v32  ;;  %v1957_v43 = vmul.f32 %v1945_v23, %v6495_v48 }
 0xa7a   :  { %v2167_v42 = vpop.xlane.xlu0 %2166  ;;  %v2218_v44 = vpop.xlane.xlu1 %2217 }
 0xa7b   :  { %v6818_v25 = vpop.f32.mrb[28].mxu0  ;;  %v2183_v28 = vmul.f32 %v2167_v42, %v6444_v5  ;;  %v2232_v41 = vmul.f32 %v2218_v44, %v6530_v61 }
 0xa7c   :  { %v5006_v16 = vpop.f32.mrb[29].mxu0 }
 0xa7d   :  { %v6820_v51 = vpop.f32.mrb[30].mxu0 }
 0xa7e   :  { %v5007_v12 = vpop.f32.mrb[31].mxu0  ;;  %v2173_v39 = vpop.xlane.xlu0 %2172 }
 0xa7f   :  { %v2260_v34 = vpop.xlane.xlu1 %2259  ;;  %v2185_v5 = vmul.f32 %v2173_v39, %v6514_v10 }
 0xa82   :  { %v2215_v6 = vpop.xlane.xlu0 %2214 }
 0xa83   :  { %v2266_v0 = vpop.xlane.xlu1 %2265  ;;  %v2231_v19 = vmul.f32 %v2215_v6, %v6465_v32 }
 0xa84   :  { %v2280_v32 = vmul.f32 %v2266_v0, %v6548_v26 }
 0xa86   :  { %v2221_v37 = vpop.xlane.xlu0 %2220 }
 0xa87   :  { %v1939_v27 = vpop.xlane.xlu1 %1938  ;;  %v2233_v2 = vmul.f32 %v2221_v37, %v6530_v61  ;;  %v5195_v61 = vld [vmem:[%s7949_s5 + $0x20] sm:$0xff]  }
 0xa88   :  { %v1955_v54 = vmul.f32 %v1939_v27, %v6441_v45  ;;  %v2278_v45 = vmul.f32 %v2260_v34, %v6487_v3  ;;  %v8063_v34 = vld [vmem:[#allocation31_spill] sm:$0xff]  ;;  %5027 = vmatpush3.bf16.msra.mxu0 %v5195_v61 }
 0xa89   :  { %5028 = vmatprep.subr.bf16.mxu0 %v8043_v29 }
 0xa8a   :  { %v2263_v53 = vpop.xlane.xlu0 %2262 }
 0xa8b   :  { %v1948_v35 = vpop.xlane.xlu1 %1947  ;;  %v2279_v20 = vmul.f32 %v2263_v53, %v6487_v3 }
 0xa8c   :  { %v1958_v36 = vmul.f32 %v1948_v35, %v6505_v63 }
 0xa8e   :  { %v2269_v15 = vpop.xlane.xlu0 %2268 }
 0xa8f   :  { %v2176_v60 = vpop.xlane.xlu1 %2175 }
 0xa90   :  { %v2186_v1 = vmul.f32 %v2176_v60, %v6523_v7 }
 0xa92   :  { %v1951_v30 = vpop.xlane.xlu0 %1950 }
 0xa93   :  { %v2224_v57 = vpop.xlane.xlu1 %2223  ;;  %v1959_v23 = vmul.f32 %v1951_v30, %v6505_v63 }
 0xa94   :  { %v2234_v53 = vmul.f32 %v2224_v57, %v8063_v34  ;;  %v8066_v57 = vld [vmem:[#allocation23_spill] sm:$0xff] }
 0xa96   :  { %v2179_v38 = vpop.xlane.xlu0 %2178 }
 0xa97   :  { %v2272_v42 = vpop.xlane.xlu1 %2271  ;;  %v2187_v0 = vmul.f32 %v2179_v38, %v6523_v7 }
 0xa9a   :  { %v2227_v40 = vpop.xlane.xlu0 %2226 }
 0xab5   :  { %v2047_v8 = vpop.f32.mrb[28].mxu1 }
 0xab6   :  { %v2048_v22 = vadd.f32 %v2047_v8, %v1954_v18  ;;  %v5012_v46 = vpop.f32.mrb[29].mxu1  ;;  %v2281_v18 = vmul.f32 %v2269_v15, %v6548_v26  ;;  %v8064_v8 = vld [vmem:[#allocation33_spill] sm:$0xff] }
 0xab7   :  { %v2050_v14 = vpop.f32.mrb[30].mxu1  ;;  %v2275_v46 = vpop.xlane.xlu0 %2274 }
 0xab8   :  { %v2190_v13 = vadd.f32 %v2182_v55, %v2048_v22  ;;  %v2051_v49 = vadd.f32 %v2050_v14, %v1955_v54  ;;  %v5013_v58 = vpop.f32.mrb[31].mxu1  ;;  %v2282_v55 = vmul.f32 %v2272_v42, %v8064_v8  ;;  %v2235_v54 = vmul.f32 %v2227_v40, %v8063_v34 }
 0xab9   :  { %v2094_v11 = vpop.f32.mrb[32].mxu0  ;;  %v2283_v26 = vmul.f32 %v2275_v46, %v8064_v8  ;;  %v4784_v8 = vld [vmem:[#allocation8 + $0x2] ss:$0 sm:$0xff] }
 0xaba   :  { %v2238_v24 = vadd.f32 %v2230_v31, %v2190_v13  ;;  %v2191_v9 = vadd.f32 %v2183_v28, %v2051_v49  ;;  %v2095_v17 = vadd.f32 %v2094_v11, %v1956_v52  ;;  %v5018_v4 = vpop.f32.mrb[33].mxu0  ;;  %v5196_v31 = vld [vmem:[%s7949_s5 + $0x28] sm:$0xff]   ;;  %v1930_v13 = vpop.xlane.xlu1 %1929 }
 0xabb   :  { %v2097_v33 = vpop.f32.mrb[34].mxu0  ;;  %5029 = vmatpush3.bf16.msra.mxu0 %v5196_v31  ;;  %v8065_v28 = vld [vmem:[#allocation32_spill] sm:$0xff]  ;;  %v1933_v49 = vpop.xlane.xlu0 %1932  ;;  %v8068_v4 = vld [vmem:[#allocation25_spill] sm:$0xff] }
 0xabc   :  { %v2239_v47 = vadd.f32 %v2231_v19, %v2191_v9  ;;  %v2192_v48 = vadd.f32 %v2184_v59, %v2095_v17  ;;  %v2098_v56 = vadd.f32 %v2097_v33, %v1957_v43  ;;  %v5019_v16 = vpop.f32.mrb[35].mxu0  ;;  %v2286_v12 = vadd.f32 %v2278_v45, %v2238_v24  ;;  %5040 = vmatprep.subr.bf16.mxu0 %v8043_v29  ;;  %v8067_v19 = vld [vmem:[#allocation22_spill] sm:$0xff] }
 0xabd   :  { %v2141_v10 = vpop.f32.mrb[32].mxu1  ;;  %v1952_v24 = vmul.f32 %v1930_v13, %v8067_v19 }
 0xabe   :  { %v2240_v21 = vadd.f32 %v2232_v41, %v2192_v48  ;;  %v2193_v39 = vadd.f32 %v2185_v5, %v2098_v56  ;;  %v2142_v3 = vadd.f32 %v2141_v10, %v1958_v36  ;;  %2294 = vrot.lane.b32.xlu1 %v2286_v12, %s5575_s17  ;;  %v5024_v44 = vpop.f32.mrb[33].mxu1  ;;  %v2287_v6 = vadd.f32 %v2279_v20, %v2239_v47  ;;  %v2158_v58 = vpop.xlane.xlu1 %2157  ;;  %v8069_v20 = vld [vmem:[#allocation27_spill] sm:$0xff] }
 0xabf   :  { %v2144_v27 = vpop.f32.mrb[34].mxu1  ;;  %v2161_v59 = vpop.xlane.xlu0 %2160  ;;  %v2180_v41 = vmul.f32 %v2158_v58, %v8068_v4  ;;  %v1953_v5 = vmul.f32 %v1933_v49, %v8067_v19  ;;  %v2001_v36 = vadd.f32 %v6818_v25, %v1952_v24 }
 0xac0   :  { %v2241_v63 = vadd.f32 %v2233_v2, %v2193_v39  ;;  %v2194_v37 = vadd.f32 %v2186_v1, %v2142_v3  ;;  %v2145_v35 = vadd.f32 %v2144_v27, %v1959_v23  ;;  %2296 = vrot.lane.b32.xlu0 %v2287_v6, %s5575_s17  ;;  %v5025_v30 = vpop.f32.mrb[35].mxu1  ;;  %v2288_v60 = vadd.f32 %v2280_v32, %v2240_v21  ;;  %v8070_v32 = vld [vmem:[#allocation29_spill] sm:$0xff] }
 0xac1   :  { %v2181_v47 = vmul.f32 %v2161_v59, %v8068_v4  ;;  %v2188_v16 = vadd.f32 %v2180_v41, %v2001_v36  ;;  %v2004_v12 = vadd.f32 %v6820_v51, %v1953_v5  ;;  %v8075_v4 = vld [vmem:[#allocation26_spill] sm:$0xff] }
 0xac2   :  { %v2242_v7 = vadd.f32 %v2234_v53, %v2194_v37  ;;  %v2195_v22 = vadd.f32 %v2187_v0, %v2145_v35  ;;  %2302 = vrot.lane.b32.xlu1 %v2288_v60, %s5567_s3  ;;  %v2289_v14 = vadd.f32 %v2281_v18, %v2241_v63  ;;  %v2206_v43 = vpop.xlane.xlu1 %2205 }
 0xac3   :  { %v2209_v45 = vpop.xlane.xlu0 %2208  ;;  %v2228_v33 = vmul.f32 %v2206_v43, %v8069_v20  ;;  %v2189_v40 = vadd.f32 %v2181_v47, %v2004_v12  ;;  %v4783_v43 = vld [vmem:[%s7951_s7 + $0x8] sm:$0xf] }
 0xac4   :  { %v2290_v52 = vadd.f32 %v2282_v55, %v2242_v7  ;;  %v2243_v38 = vadd.f32 %v2235_v54, %v2195_v22  ;;  %v2229_v1 = vmul.f32 %v2209_v45, %v8069_v20  ;;  %v6956_v41 = vrot.slane %v4783_v43, %v8075_v4  ;;  %v8077_v20 = vld [vmem:[#allocation28_spill] sm:$0xff] }
 0xac5   :  { %v2236_v23 = vadd.f32 %v2228_v33, %v2188_v16  ;;  %v6962_v33 = vrot.slane %v4783_v43, %v8077_v20 }
 0xac6   :  { %2304 = vrot.lane.b32.xlu1 %v2289_v14, %s5567_s3  ;;  %2310 = vrot.lane.b32.xlu0 %v2290_v52, %s5586_s4  ;;  %v2291_v15 = vadd.f32 %v2283_v26, %v2243_v38  ;;  %v2254_v11 = vpop.xlane.xlu1 %2253  ;;  %v2237_v39 = vadd.f32 %v2229_v1, %v2189_v40  ;;  %8076 = vst [vmem:[#allocation23_spill] sm:$0xff] %v6956_v41 }
 0xac7   :  { %v2257_v9 = vpop.xlane.xlu0 %2256  ;;  %v2276_v2 = vmul.f32 %v2254_v11, %v8070_v32  ;;  %v8073_v11 = vld [vmem:[#allocation24_spill] sm:$0xff]  ;;  %8078 = vst [vmem:[#allocation22_spill] sm:$0xff] %v6962_v33 }
 0xac8   :  { %v2277_v10 = vmul.f32 %v2257_v9, %v8070_v32  ;;  %v6948_v19 = vrot.slane %v4783_v43, %v8073_v11 }
 0xac9   :  { %v2284_v25 = vadd.f32 %v2276_v2, %v2236_v23 }
 0xaca   :  { %2322 = vrot.lane.b32.xlu0 %v8065_v28, %s5587_s30  ;;  %2312 = vrot.lane.b32.xlu1 %v2291_v15, %s5586_s4  ;;  %v2285_v3 = vadd.f32 %v2277_v10, %v2237_v39  ;;  %8074 = vst [vmem:[#allocation32_spill] sm:$0xff] %v6948_v19 }
 0xace   :  { %2324 = vrot.lane.b32.xlu1 %v8066_v57, %s5587_s30 }
 0xb30   :  { %v2295_v17 = vpop.permute.xlu1 %2294 }
 0xb31   :  { %v2316_v44 = vsel %vm307_vm2, %v2284_v25, %v2295_v17 }
 0xb32   :  { %v2297_v48 = vpop.permute.xlu0 %2296 }
 0xb33   :  { %v2317_v51 = vsel %vm307_vm2, %v2285_v3, %v2297_v48 }
 0xb34   :  { %v2303_v56 = vpop.permute.xlu1 %2302 }
 0xb35   :  { %v2318_v53 = vsel %vm752_vm4, %v2316_v44, %v2303_v56  ;;  %v8079_v56 = vld [vmem:[#allocation30_spill] sm:$0xff] }
 0xb36   :  { %v6968_v16 = vrot.slane %v4783_v43, %v8079_v56 }
 0xb38   :  { %v2305_v42 = vpop.permute.xlu1 %2304  ;;  %v2311_v21 = vpop.permute.xlu0 %2310  ;;  %8080 = vst [vmem:[#allocation25_spill] sm:$0xff] %v6968_v16 }
 0xb39   :  { %v2320_v0 = vsel %vm1245_vm6, %v2318_v53, %v2311_v21  ;;  %v2319_v27 = vsel %vm752_vm4, %v2317_v51, %v2305_v42 }
 0xb3c   :  { %v2323_v6 = vpop.permute.xlu0 %2322  ;;  %v2313_v34 = vpop.permute.xlu1 %2312 }
 0xb3d   :  { %v2328_v61 = vadd.f32 %v2323_v6, %v2320_v0  ;;  %v2321_v63 = vsel %vm1245_vm6, %v2319_v27, %v2313_v34 }
 0xb3f   :  { %v2330_v30 = vmax.f32 %v2328_v61, 0.0 }
 0xb40   :  { %v2325_v37 = vpop.permute.xlu1 %2324 }
 0xb41   :  { %v2329_v35 = vadd.f32 %v2325_v37, %v2321_v63 }
 0xb43   :  { %v2331_v60 = vmax.f32 %v2329_v35, 0.0 }
 0xb45   :  { %v2341_v18 = vpack.c.bf16 %v2331_v60, %v2330_v30 }
 0xb47   :  { %5031 = vmatmul.mubr.msk.bf16.vlgmr.msra.gmra.mrb[36].mxu0 %vm204_vm1, %v2341_v18 }
 0xb48   :  { %5042 = vmatprep.mubr.msk.bf16.mxu0 %vm5581_vm0, %v8043_v29 }
 0xc1a   :  { %v2397_v55 = vpop.f32.mrb[36].mxu0 }
 0xc1b   :  { %v6883_v54 = vadd.f32 %v4784_v8, %v2397_v55  ;;  %v5032_v7 = vpop.f32.mrb[37].mxu0 }
 0xc1c   :  { %v2400_v22 = vpop.f32.mrb[38].mxu0 }
 0xc1d   :  { %8071 = vst [vmem:[#allocation31_spill] sm:$0xff] %v6883_v54  ;;  %v6885_v46 = vadd.f32 %v4784_v8, %v2400_v22  ;;  %2406 = vrot.lane.b32.xlu0 %v6883_v54, %s5583_s0  ;;  %v5033_v52 = vpop.f32.mrb[39].mxu0  ;;  %v2454_v17 = vmul.f32 %v6948_v19, %v6883_v54  ;;  %v2710_v34 = vmul.f32 %v6956_v41, %v6883_v54 }
 0xc1e   :  { %v2774_v18 = vmul.f32 %v6962_v33, %v6883_v54 }
 0xc1f   :  { %8072 = vst [vmem:[#allocation33_spill] sm:$0xff] %v6885_v46  ;;  %2408 = vrot.lane.b32.xlu1 %v6885_v46, %s5583_s0  ;;  %v6901_v38 = vpack.c.bf16 %v6885_v46, %v6883_v54  ;;  %v2455_v24 = vmul.f32 %v6948_v19, %v6885_v46  ;;  %v2462_v5 = vsel %vm307_vm2, %v2454_v17, 0.0  ;;  %v2711_v36 = vmul.f32 %v6956_v41, %v6885_v46 }
 0xc20   :  { %v2775_v48 = vmul.f32 %v6962_v33, %v6885_v46  ;;  %v2839_v32 = vmul.f32 %v6968_v16, %v6885_v46  ;;  %v2718_v61 = vsel %vm307_vm2, %v2710_v34, 0.0 }
 0xc21   :  { %2412 = vrot.lane.b32.xlu0 %v6883_v54, %s5582_s27  ;;  %v2465_v9 = vsel %vm307_vm2, %v2455_v24, 0.0  ;;  %v2721_v47 = vsel %vm307_vm2, %v2711_v36, 0.0 }
 0xc22   :  { %v2785_v12 = vsel %vm307_vm2, %v2775_v48, 0.0  ;;  %v2849_v2 = vsel %vm307_vm2, %v2839_v32, 0.0 }
 0xc23   :  { %2414 = vrot.lane.b32.xlu1 %v6885_v46, %s5582_s27 }
 0xc25   :  { %2418 = vrot.lane.b32.xlu0 %v6883_v54, %s5584_s26 }
 0xc27   :  { %2420 = vrot.lane.b32.xlu1 %v6885_v46, %s5584_s26 }
 0xc29   :  { %2495 = vrot.lane.b32.xlu0 %v6901_v38, %s5585_s25 }
 0xc8f   :  { %v6905_v14 = vpop.permute.xlu0 %2406 }
 0xc91   :  { %v6907_v31 = vpop.permute.xlu1 %2408 }
 0xc92   :  { %v6911_v26 = vpack.c.bf16 %v6907_v31, %v6905_v14 }
 0xc93   :  { %v6913_v15 = vpop.permute.xlu0 %2412 }
 0xc94   :  { %2545 = vrot.lane.b32.xlu1 %v6911_v26, %s5585_s25 }
 0xc95   :  { %v6917_v28 = vpop.permute.xlu1 %2414 }
 0xc96   :  { %v6921_v57 = vpack.c.bf16 %v6917_v28, %v6913_v15 }
 0xc97   :  { %v6923_v13 = vpop.permute.xlu0 %2418 }
 0xc98   :  { %2595 = vrot.lane.b32.xlu0 %v6921_v57, %s5585_s25 }
 0xc99   :  { %v6927_v49 = vpop.permute.xlu1 %2420 }
 0xc9a   :  { %v6931_v58 = vpack.c.bf16 %v6927_v49, %v6923_v13 }
 0xc9b   :  { %v2496_v59 = vpop.permute.xlu0 %2495 }
 0xc9c   :  { %v2501_v45 = vsel %vm307_vm2, %v2496_v59, 0  ;;  %2645 = vrot.lane.b32.xlu1 %v6931_v58, %s5585_s25  ;;  %2425 = vrot.lane.b32.xlu0 %v4783_v43, %s5583_s0  ;;  %v2782_v59 = vsel %vm307_vm2, %v2774_v18, 0.0 }
 0xc9d   :  { %5035 = vmatpush3.bf16.xpose.msra.mxu1 %v2501_v45 }
 0xc9e   :  { %5046 = vmatprep.subr.bf16.mxu1 %v8043_v29 }
 0xca0   :  { %2428 = vrot.lane.b32.xlu1 %v4783_v43, %s5582_s27  ;;  %2431 = vrot.lane.b32.xlu0 %v4783_v43, %s5584_s26 }
 0xca4   :  { %5037 = vmatmul.mubr.msk.bf16.vlgmr.msra.gmra.mrb[36].mxu1 %vm307_vm2, %v6901_v38 }
 0xca5   :  { %5048 = vmatprep.mubr.msk.bf16.mxu1 %vm5581_vm0, %v8043_v29 }
 0xcbf   :  { %2466 = vadd.xlane.f32.xlu0 %v2465_v9 }
 0xcc4   :  { %2463 = vadd.xlane.f32.xlu1 %v2462_v5 }
 0xcc8   :  { %2722 = vadd.xlane.f32.xlu1 %v2721_v47 }
 0xccc   :  { %2786 = vadd.xlane.f32.xlu1 %v2785_v12 }
 0xcd0   :  { %2850 = vadd.xlane.f32.xlu1 %v2849_v2 }
 0xd06   :  { %v2546_v1 = vpop.permute.xlu1 %2545 }
 0xd07   :  { %v2551_v23 = vsel %vm307_vm2, %v2546_v1, 0 }
 0xd08   :  { %5041 = vmatpush3.bf16.xpose.msra.mxu0 %v2551_v23 }
 0xd09   :  { %5052 = vmatprep.subr.bf16.mxu0 %v8043_v29 }
 0xd0a   :  { %v2596_v40 = vpop.permute.xlu0 %2595 }
 0xd0b   :  { %v2601_v10 = vsel %vm307_vm2, %v2596_v40, 0 }
 0xd0c   :  { %5047 = vmatpush3.bf16.xpose.msra.mxu1 %v2601_v10 }
 0xd0d   :  { %5058 = vmatprep.subr.bf16.mxu1 %v8043_v29 }
 0xd0e   :  { %v2646_v42 = vpop.permute.xlu1 %2645  ;;  %v2426_v21 = vpop.permute.xlu0 %2425 }
 0xd0f   :  { %v2651_v25 = vsel %vm307_vm2, %v2646_v42, 0  ;;  %v6980_v39 = vrot.slane %v2426_v21, %v8073_v11  ;;  %5043 = vmatmul.mubr.msk.bf16.vlgmr.msra.gmra.mrb[40].mxu0 %vm307_vm2, %v6911_v26  ;;  %v6987_v3 = vrot.slane %v2426_v21, %v8075_v4  ;;  %v7001_v53 = vrot.slane %v2426_v21, %v8077_v20 }
 0xd10   :  { %5053 = vmatpush3.bf16.xpose.msra.mxu0 %v2651_v25  ;;  %5054 = vmatprep.mubr.msk.bf16.mxu0 %vm5581_vm0, %v8043_v29  ;;  %v7013_v63 = vrot.slane %v2426_v21, %v8079_v56 }
 0xd11   :  { %v2457_v44 = vmul.f32 %v6980_v39, %v6907_v31  ;;  %v2456_v6 = vmul.f32 %v6980_v39, %v6905_v14  ;;  %5064 = vmatprep.subr.bf16.mxu0 %v8043_v29  ;;  %v2713_v27 = vmul.f32 %v6987_v3, %v6907_v31  ;;  %v2777_v35 = vmul.f32 %v7001_v53, %v6907_v31 }
 0xd12   :  { %v2712_v30 = vmul.f32 %v6987_v3, %v6905_v14  ;;  %v2429_v60 = vpop.permute.xlu1 %2428  ;;  %v2841_v22 = vmul.f32 %v7013_v63, %v6907_v31  ;;  %v2432_v52 = vpop.permute.xlu0 %2431  ;;  %v2776_v9 = vmul.f32 %v7001_v53, %v6905_v14  ;;  %v2838_v31 = vmul.f32 %v6968_v16, %v6883_v54 }
 0xd13   :  { %5049 = vmatmul.mubr.msk.bf16.vlgmr.msra.gmra.mrb[40].mxu1 %vm307_vm2, %v6921_v57  ;;  %v2471_v51 = vsel %vm307_vm2, %v2457_v44, 0.0  ;;  %v2468_v0 = vsel %vm307_vm2, %v2456_v6, 0.0  ;;  %v2727_v37 = vsel %vm307_vm2, %v2713_v27, 0.0  ;;  %v7023_v8 = vrot.slane %v2429_v60, %v8073_v11 }
 0xd14   :  { %5060 = vmatprep.mubr.msk.bf16.mxu1 %vm5581_vm0, %v8043_v29  ;;  %2472 = vadd.xlane.f32.xlu1 %v2471_v51  ;;  %v2791_v55 = vsel %vm307_vm2, %v2777_v35, 0.0  ;;  %v2724_v7 = vsel %vm307_vm2, %v2712_v30, 0.0  ;;  %v7031_v43 = vrot.slane %v2432_v52, %v8073_v11  ;;  %v2855_v45 = vsel %vm307_vm2, %v2841_v22, 0.0 }
 0xd15   :  { %2469 = vadd.xlane.f32.xlu0 %v2468_v0  ;;  %v2459_v24 = vmul.f32 %v7023_v8, %v6917_v28  ;;  %v7041_v17 = vrot.slane %v2429_v60, %v8075_v4  ;;  %v2788_v36 = vsel %vm307_vm2, %v2776_v9, 0.0  ;;  %v2846_v48 = vsel %vm307_vm2, %v2838_v31, 0.0 }
 0xd16   :  { %v2461_v47 = vmul.f32 %v7031_v43, %v6927_v49  ;;  %v7049_v12 = vrot.slane %v2432_v52, %v8075_v4  ;;  %v2840_v2 = vmul.f32 %v7013_v63, %v6905_v14  ;;  %v7057_v23 = vrot.slane %v2429_v60, %v8077_v20 }
 0xd17   :  { %5055 = vmatmul.mubr.msk.bf16.vlgmr.msra.gmra.mrb[44].mxu0 %vm307_vm2, %v6931_v58  ;;  %v2477_v5 = vsel %vm307_vm2, %v2459_v24, 0.0  ;;  %v2715_v1 = vmul.f32 %v7041_v17, %v6917_v28  ;;  %v2458_v42 = vmul.f32 %v7023_v8, %v6913_v15  ;;  %v7066_v14 = vrot.slane %v2432_v52, %v8077_v20 }
 0xd18   :  { %5066 = vmatprep.mubr.msk.bf16.mxu0 %vm5581_vm0, %v8043_v29  ;;  %2728 = vadd.xlane.f32.xlu1 %v2727_v37  ;;  %v2483_v32 = vsel %vm307_vm2, %v2461_v47, 0.0  ;;  %v2852_v40 = vsel %vm307_vm2, %v2840_v2, 0.0  ;;  %v2717_v21 = vmul.f32 %v7049_v12, %v6927_v49  ;;  %v2779_v6 = vmul.f32 %v7057_v23, %v6917_v28 }
 0xd19   :  { %2719 = vadd.xlane.f32.xlu0 %v2718_v61  ;;  %v2733_v10 = vsel %vm307_vm2, %v2715_v1, 0.0  ;;  %8081 = vst [vmem:[#allocation27_spill] sm:$0xff] %v7066_v14  ;;  %v2474_v25 = vsel %vm307_vm2, %v2458_v42, 0.0  ;;  %v2460_v34 = vmul.f32 %v7031_v43, %v6923_v13  ;;  %v7075_v51 = vrot.slane %v2429_v60, %v8079_v56 }
 0xd1a   :  { %v2739_v44 = vsel %vm307_vm2, %v2717_v21, 0.0  ;;  %v2797_v0 = vsel %vm307_vm2, %v2779_v6, 0.0  ;;  %v2781_v61 = vmul.f32 %v7066_v14, %v6927_v49  ;;  %v2714_v37 = vmul.f32 %v7041_v17, %v6913_v15 }
 0xd1b   :  { %v2480_v27 = vsel %vm307_vm2, %v2460_v34, 0.0  ;;  %v7084_v35 = vrot.slane %v2432_v52, %v8079_v56  ;;  %v2843_v18 = vmul.f32 %v7075_v51, %v6917_v28  ;;  %v2780_v24 = vmul.f32 %v7066_v14, %v6923_v13  ;;  %v7124_v34 = vld [vmem:[%s7946_s2 + $0x28] sm:$0xff] }
 0xd1c   :  { %2792 = vadd.xlane.f32.xlu1 %v2791_v55  ;;  %v2803_v30 = vsel %vm307_vm2, %v2781_v61, 0.0  ;;  %v2730_v60 = vsel %vm307_vm2, %v2714_v37, 0.0  ;;  %v2716_v55 = vmul.f32 %v7049_v12, %v6923_v13  ;;  %v2842_v31 = vmul.f32 %v7075_v51, %v6913_v15  ;;  %v7130_v61 = vld [vmem:[%s7946_s2 + $0x38] sm:$0xff] }
 0xd1d   :  { %2725 = vadd.xlane.f32.xlu0 %v2724_v7  ;;  %8082 = vst [vmem:[#allocation29_spill] sm:$0xff] %v7084_v35  ;;  %v2861_v7 = vsel %vm307_vm2, %v2843_v18, 0.0  ;;  %v2845_v52 = vmul.f32 %v7084_v35, %v6927_v49  ;;  %v2800_v9 = vsel %vm307_vm2, %v2780_v24, 0.0 }
 0xd1e   :  { %v2736_v22 = vsel %vm307_vm2, %v2716_v55, 0.0  ;;  %v2858_v49 = vsel %vm307_vm2, %v2842_v31, 0.0 }
 0xd20   :  { %2856 = vadd.xlane.f32.xlu1 %v2855_v45  ;;  %v2867_v45 = vsel %vm307_vm2, %v2845_v52, 0.0 }
 0xd21   :  { %2783 = vadd.xlane.f32.xlu0 %v2782_v59  ;;  %v2778_v59 = vmul.f32 %v7057_v23, %v6913_v15 }
 0xd23   :  { %v2794_v28 = vsel %vm307_vm2, %v2778_v59, 0.0 }
 0xd24   :  { %2478 = vadd.xlane.f32.xlu1 %v2477_v5  ;;  %v2844_v5 = vmul.f32 %v7084_v35, %v6923_v13  ;;  %v7118_v13 = vld [vmem:[%s7946_s2 + $0x18] sm:$0xff] }
 0xd25   :  { %2789 = vadd.xlane.f32.xlu0 %v2788_v36 }
 0xd26   :  { %v2864_v36 = vsel %vm307_vm2, %v2844_v5, 0.0 }
 0xd28   :  { %2484 = vadd.xlane.f32.xlu1 %v2483_v32 }
 0xd29   :  { %2847 = vadd.xlane.f32.xlu0 %v2846_v48 }
 0xd2c   :  { %2734 = vadd.xlane.f32.xlu1 %v2733_v10 }
 0xd2d   :  { %2853 = vadd.xlane.f32.xlu0 %v2852_v40  ;;  %v7112_v40 = vld [vmem:[%s7946_s2 + $0x8] sm:$0xff] }
 0xd30   :  { %2740 = vadd.xlane.f32.xlu1 %v2739_v44 }
 0xd31   :  { %2475 = vadd.xlane.f32.xlu0 %v2474_v25 }
 0xd34   :  { %2798 = vadd.xlane.f32.xlu1 %v2797_v0 }
 0xd35   :  { %2481 = vadd.xlane.f32.xlu0 %v2480_v27 }
 0xd38   :  { %2804 = vadd.xlane.f32.xlu1 %v2803_v30 }
 0xd39   :  { %2731 = vadd.xlane.f32.xlu0 %v2730_v60 }
 0xd3c   :  { %2862 = vadd.xlane.f32.xlu1 %v2861_v7 }
 0xd3d   :  { %2737 = vadd.xlane.f32.xlu0 %v2736_v22 }
 0xd40   :  { %2868 = vadd.xlane.f32.xlu1 %v2867_v45 }
 0xd41   :  { %2795 = vadd.xlane.f32.xlu0 %v2794_v28 }
 0xd45   :  { %2801 = vadd.xlane.f32.xlu0 %v2800_v9  ;;  %v7142_v9 = vld [vmem:[%s7946_s2] sm:$0xff] }
 0xd49   :  { %2859 = vadd.xlane.f32.xlu0 %v2858_v49  ;;  %v7148_v49 = vld [vmem:[%s7946_s2 + $0x10] sm:$0xff] }
 0xd4c   :  { %v2467_v32 = vpop.xlane.xlu0 %2466 }
 0xd4d   :  { %2865 = vadd.xlane.f32.xlu0 %v2864_v36  ;;  %v2487_v15 = vmul.f32 %v7112_v40, %v2467_v32  ;;  %v7154_v32 = vld [vmem:[%s7946_s2 + $0x20] sm:$0xff] }
 0xd51   :  { %v2464_v47 = vpop.xlane.xlu1 %2463 }
 0xd52   :  { %v2486_v31 = vmul.f32 %v7142_v9, %v2464_v47 }
 0xd55   :  { %v2723_v48 = vpop.xlane.xlu1 %2722 }
 0xd56   :  { %v2743_v21 = vmul.f32 %v7118_v13, %v2723_v48 }
 0xd59   :  { %v2787_v2 = vpop.xlane.xlu1 %2786 }
 0xd5a   :  { %v2807_v0 = vmul.f32 %v7124_v34, %v2787_v2 }
 0xd5d   :  { %v2851_v6 = vpop.xlane.xlu1 %2850 }
 0xd5e   :  { %v2871_v37 = vmul.f32 %v7130_v61, %v2851_v6 }
 0xd77   :  { %v2537_v1 = vpop.f32.mrb[36].mxu1 }
 0xd78   :  { %v5038_v10 = vpop.f32.mrb[37].mxu1  ;;  %v2538_v48 = vadd.f32 %v2537_v1, %v2486_v31 }
 0xd79   :  { %v2540_v42 = vpop.f32.mrb[38].mxu1 }
 0xd7a   :  { %v2541_v25 = vadd.f32 %v2540_v42, %v2487_v15  ;;  %v5039_v44 = vpop.f32.mrb[39].mxu1 }
 0xd7c   :  { %v2751_v27 = vadd.f32 %v2743_v21, %v2541_v25  ;;  %v7160_v21 = vld [vmem:[%s7946_s2 + $0x30] sm:$0xff] }
 0xd7e   :  { %v2815_v30 = vadd.f32 %v2807_v0, %v2751_v27 }
 0xd80   :  { %v2879_v60 = vadd.f32 %v2871_v37, %v2815_v30 }
 0xd82   :  { %v2887_v18 = vmul.f32 0.35355338, %v2879_v60 }
 0xd84   :  { %v7135_v55 = vsel %vm168_vm3, %v2887_v18, -1e+30 }
 0xd85   :  { %v2905_v7 = vsel %vm752_vm4, %v7135_v55, -inf }
 0xd86   :  { %2906 = vmax.xlane.f32.xlu1 %v2905_v7 }
 0xda1   :  { %v2473_v59 = vpop.xlane.xlu1 %2472 }
 0xda2   :  { %v2470_v22 = vpop.xlane.xlu0 %2469 }
 0xda5   :  { %v2729_v24 = vpop.xlane.xlu1 %2728 }
 0xda6   :  { %v2720_v52 = vpop.xlane.xlu0 %2719  ;;  %v2745_v20 = vmul.f32 %v7118_v13, %v2729_v24 }
 0xda7   :  { %v2742_v5 = vmul.f32 %v7148_v49, %v2720_v52 }
 0xda9   :  { %v2750_v15 = vadd.f32 %v2742_v5, %v2538_v48  ;;  %v2793_v10 = vpop.xlane.xlu1 %2792 }
 0xdaa   :  { %v2726_v45 = vpop.xlane.xlu0 %2725 }
 0xdad   :  { %v2857_v0 = vpop.xlane.xlu1 %2856 }
 0xdae   :  { %v2784_v28 = vpop.xlane.xlu0 %2783 }
 0xdaf   :  { %v2806_v2 = vmul.f32 %v7154_v32, %v2784_v28 }
 0xdb1   :  { %v2814_v47 = vadd.f32 %v2806_v2, %v2750_v15  ;;  %v2479_v60 = vpop.xlane.xlu1 %2478 }
 0xdb2   :  { %v2790_v36 = vpop.xlane.xlu0 %2789  ;;  %v2491_v54 = vmul.f32 %v7112_v40, %v2479_v60 }
 0xdb3   :  { %v2808_v11 = vmul.f32 %v7154_v32, %v2790_v36 }
 0xdb5   :  { %v2485_v7 = vpop.xlane.xlu1 %2484 }
 0xdb6   :  { %v2848_v42 = vpop.xlane.xlu0 %2847 }
 0xdb7   :  { %v2870_v25 = vmul.f32 %v7160_v21, %v2848_v42  ;;  %v2488_v42 = vmul.f32 %v7142_v9, %v2470_v22  ;;  %v2809_v22 = vmul.f32 %v7124_v34, %v2793_v10 }
 0xdb9   :  { %v2878_v44 = vadd.f32 %v2870_v25, %v2814_v47  ;;  %v2735_v28 = vpop.xlane.xlu1 %2734 }
 0xdba   :  { %v2854_v6 = vpop.xlane.xlu0 %2853 }
 0xdbb   :  { %v2886_v1 = vmul.f32 0.35355338, %v2878_v44  ;;  %v2489_v44 = vmul.f32 %v7112_v40, %v2473_v59  ;;  %v2872_v59 = vmul.f32 %v7160_v21, %v2854_v6 }
 0xdbd   :  { %v7165_v27 = vsel %vm167_vm5, %v2886_v1, -1e+30  ;;  %v2741_v5 = vpop.xlane.xlu1 %2740  ;;  %v2744_v1 = vmul.f32 %v7148_v49, %v2726_v45 }
 0xdbe   :  { %v2902_v37 = vsel %vm752_vm4, %v7165_v27, -inf  ;;  %v2476_v30 = vpop.xlane.xlu0 %2475 }
 0xdbf   :  { %2903 = vmax.xlane.f32.xlu0 %v2902_v37  ;;  %v2490_v16 = vmul.f32 %v7142_v9, %v2476_v30  ;;  %v2873_v30 = vmul.f32 %v7130_v61, %v2857_v0 }
 0xdc1   :  { %v2799_v2 = vpop.xlane.xlu1 %2798 }
 0xdc2   :  { %v2482_v18 = vpop.xlane.xlu0 %2481 }
 0xdc5   :  { %v2805_v47 = vpop.xlane.xlu1 %2804 }
 0xdc6   :  { %v2732_v52 = vpop.xlane.xlu0 %2731 }
 0xdca   :  { %v2738_v31 = vpop.xlane.xlu0 %2737 }
 0xdce   :  { %v2796_v48 = vpop.xlane.xlu0 %2795 }
 0xdcf   :  { %v2810_v10 = vmul.f32 %v7154_v32, %v2796_v48 }
 0xdd2   :  { %v2802_v15 = vpop.xlane.xlu0 %2801 }
 0xdd6   :  { %v2860_v46 = vpop.xlane.xlu0 %2859 }
 0xde2   :  { %v2587_v25 = vpop.f32.mrb[40].mxu0 }
 0xde3   :  { %v2588_v37 = vadd.f32 %v2587_v25, %v2488_v42  ;;  %v5044_v56 = vpop.f32.mrb[41].mxu0  ;;  %v2863_v42 = vpop.xlane.xlu1 %2862 }
 0xde4   :  { %v2590_v4 = vpop.f32.mrb[42].mxu0  ;;  %v2746_v56 = vmul.f32 %v7148_v49, %v2732_v52  ;;  %v2493_v52 = vmul.f32 %v7112_v40, %v2485_v7 }
 0xde5   :  { %v2752_v33 = vadd.f32 %v2744_v1, %v2588_v37  ;;  %v2591_v41 = vadd.f32 %v2590_v4, %v2489_v44  ;;  %v5045_v19 = vpop.f32.mrb[43].mxu0  ;;  %v2747_v4 = vmul.f32 %v7118_v13, %v2735_v28 }
 0xde6   :  { %v2637_v45 = vpop.f32.mrb[40].mxu1  ;;  %v2492_v19 = vmul.f32 %v7142_v9, %v2482_v18 }
 0xde7   :  { %v2816_v24 = vadd.f32 %v2808_v11, %v2752_v33  ;;  %v2753_v25 = vadd.f32 %v2745_v20, %v2591_v41  ;;  %v2638_v35 = vadd.f32 %v2637_v45, %v2490_v16  ;;  %v5050_v36 = vpop.f32.mrb[41].mxu1  ;;  %v2749_v11 = vmul.f32 %v7118_v13, %v2741_v5  ;;  %v2869_v5 = vpop.xlane.xlu1 %2868 }
 0xde8   :  { %v2640_v60 = vpop.f32.mrb[42].mxu1  ;;  %v2811_v41 = vmul.f32 %v7124_v34, %v2799_v2  ;;  %v2748_v20 = vmul.f32 %v7148_v49, %v2738_v31  ;;  %v2813_v36 = vmul.f32 %v7124_v34, %v2805_v47 }
 0xde9   :  { %v2817_v44 = vadd.f32 %v2809_v22, %v2753_v25  ;;  %v2754_v6 = vadd.f32 %v2746_v56, %v2638_v35  ;;  %v2641_v1 = vadd.f32 %v2640_v60, %v2491_v54  ;;  %v5051_v37 = vpop.f32.mrb[43].mxu1  ;;  %v2880_v14 = vadd.f32 %v2872_v59, %v2816_v24  ;;  %v2866_v59 = vpop.xlane.xlu0 %2865 }
 0xdea   :  { %v2687_v33 = vpop.f32.mrb[44].mxu0  ;;  %v2875_v22 = vmul.f32 %v7130_v61, %v2863_v42  ;;  %v2812_v54 = vmul.f32 %v7154_v32, %v2802_v15  ;;  %v2874_v35 = vmul.f32 %v7160_v21, %v2860_v46  ;;  %v2876_v15 = vmul.f32 %v7160_v21, %v2866_v59 }
 0xdeb   :  { %v2818_v16 = vadd.f32 %v2810_v10, %v2754_v6  ;;  %v2755_v0 = vadd.f32 %v2747_v4, %v2641_v1  ;;  %v2688_v18 = vadd.f32 %v2687_v33, %v2492_v19  ;;  %v5056_v28 = vpop.f32.mrb[45].mxu0  ;;  %v2888_v48 = vmul.f32 0.35355338, %v2880_v14 }
 0xdec   :  { %v2690_v7 = vpop.f32.mrb[46].mxu0  ;;  %v2881_v45 = vadd.f32 %v2873_v30, %v2817_v44  ;;  %v2877_v10 = vmul.f32 %v7130_v61, %v2869_v5 }
 0xded   :  { %v2819_v56 = vadd.f32 %v2811_v41, %v2755_v0  ;;  %v2756_v2 = vadd.f32 %v2748_v20, %v2688_v18  ;;  %v2691_v24 = vadd.f32 %v2690_v7, %v2493_v52  ;;  %v5057_v31 = vpop.f32.mrb[47].mxu0  ;;  %v2896_v25 = vsel %vm167_vm5, %v2888_v48, -1e+30 }
 0xdee   :  { %v2908_v14 = vsel %vm752_vm4, %v2896_v25, -inf  ;;  %v2889_v42 = vmul.f32 0.35355338, %v2881_v45  ;;  %v2882_v4 = vadd.f32 %v2874_v35, %v2818_v16 }
 0xdef   :  { %v2820_v46 = vadd.f32 %v2812_v54, %v2756_v2  ;;  %v2757_v19 = vadd.f32 %v2749_v11, %v2691_v24  ;;  %2909 = vmax.xlane.f32.xlu0 %v2908_v14  ;;  %v2883_v30 = vadd.f32 %v2875_v22, %v2819_v56 }
 0xdf0   :  { %v2897_v60 = vsel %vm168_vm3, %v2889_v42, -1e+30  ;;  %v2890_v44 = vmul.f32 0.35355338, %v2882_v4 }
 0xdf1   :  { %v2821_v6 = vadd.f32 %v2813_v36, %v2757_v19  ;;  %v2911_v1 = vsel %vm752_vm4, %v2897_v60, -inf  ;;  %v2891_v47 = vmul.f32 0.35355338, %v2883_v30  ;;  %v2884_v37 = vadd.f32 %v2876_v15, %v2820_v46 }
 0xdf2   :  { %2912 = vmax.xlane.f32.xlu1 %v2911_v1  ;;  %v2898_v52 = vsel %vm167_vm5, %v2890_v44, -1e+30 }
 0xdf3   :  { %v2914_v41 = vsel %vm752_vm4, %v2898_v52, -inf  ;;  %v2899_v11 = vsel %vm168_vm3, %v2891_v47, -1e+30  ;;  %v2892_v20 = vmul.f32 0.35355338, %v2884_v37  ;;  %v2885_v33 = vadd.f32 %v2877_v10, %v2821_v6 }
 0xdf4   :  { %2915 = vmax.xlane.f32.xlu0 %v2914_v41  ;;  %v2917_v16 = vsel %vm752_vm4, %v2899_v11, -inf }
 0xdf5   :  { %v2900_v0 = vsel %vm167_vm5, %v2892_v20, -1e+30  ;;  %v2893_v18 = vmul.f32 0.35355338, %v2885_v33 }
 0xdf6   :  { %2918 = vmax.xlane.f32.xlu1 %v2917_v16  ;;  %v2920_v28 = vsel %vm752_vm4, %v2900_v0, -inf }
 0xdf7   :  { %v2901_v48 = vsel %vm168_vm3, %v2893_v18, -1e+30 }
 0xdf8   :  { %2921 = vmax.xlane.f32.xlu0 %v2920_v28  ;;  %v2923_v22 = vsel %vm752_vm4, %v2901_v48, -inf }
 0xdfa   :  { %2924 = vmax.xlane.f32.xlu1 %v2923_v22 }
 0xe0b   :  { %3081 = vrot.lane.b32.xlu1 %v6911_v26, %s5571_s23 }
 0xe0e   :  { %3034 = vrot.lane.b32.xlu0 %v6901_v38, %s5571_s23 }
 0xe13   :  { %v2907_v54 = vpop.xlane.xlu1 %2906 }
 0xe14   :  { %v2927_v35 = vsub.f32 %v7135_v55, %v2907_v54 }
 0xe16   :  { %v2936_v59 = vmul.f32 1.442695, %v2927_v35 }
 0xe18   :  { %5269 = vpow2.f32 %v2936_v59 }
 0xe22   :  { %v7216_v7 = vpop.eup %5269 }
 0xe23   :  { %v2953_v45 = vsel %vm752_vm4, %v7216_v7, 0.0 }
 0xe2f   :  { %2954 = vadd.xlane.f32.xlu1 %v2953_v45 }
 0xe4c   :  { %v2904_v5 = vpop.xlane.xlu0 %2903 }
 0xe4d   :  { %v2926_v56 = vsub.f32 %v7165_v27, %v2904_v5 }
 0xe4f   :  { %v2934_v2 = vmul.f32 1.442695, %v2926_v56 }
 0xe51   :  { %5271 = vpow2.f32 %v2934_v2 }
 0xe5b   :  { %v5272_v26 = vpop.eup %5271 }
 0xe5c   :  { %v2950_v24 = vsel %vm752_vm4, %v5272_v26, 0.0 }
 0xe5d   :  { %2951 = vadd.xlane.f32.xlu0 %v2950_v24 }
 0xe7c   :  { %v2910_v38 = vpop.xlane.xlu0 %2909 }
 0xe7d   :  { %v2928_v31 = vsub.f32 %v2896_v25, %v2910_v38 }
 0xe7f   :  { %v2938_v55 = vmul.f32 1.442695, %v2928_v31  ;;  %v2913_v36 = vpop.xlane.xlu1 %2912 }
 0xe80   :  { %v2929_v14 = vsub.f32 %v2897_v60, %v2913_v36 }
 0xe81   :  { %5273 = vpow2.f32 %v2938_v55  ;;  %v2916_v42 = vpop.xlane.xlu0 %2915 }
 0xe82   :  { %v2940_v4 = vmul.f32 1.442695, %v2929_v14  ;;  %v2930_v15 = vsub.f32 %v2898_v52, %v2916_v42 }
 0xe83   :  { %v2919_v46 = vpop.xlane.xlu1 %2918 }
 0xe84   :  { %5275 = vpow2.f32 %v2940_v4  ;;  %v2942_v19 = vmul.f32 1.442695, %v2930_v15  ;;  %v2931_v30 = vsub.f32 %v2899_v11, %v2919_v46 }
 0xe85   :  { %v2922_v27 = vpop.xlane.xlu0 %2921 }
 0xe86   :  { %5277 = vpow2.f32 %v2942_v19  ;;  %v2944_v10 = vmul.f32 1.442695, %v2931_v30  ;;  %v2932_v44 = vsub.f32 %v2900_v0, %v2922_v27 }
 0xe87   :  { %v2925_v6 = vpop.xlane.xlu1 %2924 }
 0xe88   :  { %5279 = vpow2.f32 %v2944_v10  ;;  %v2946_v1 = vmul.f32 1.442695, %v2932_v44  ;;  %v2933_v47 = vsub.f32 %v2901_v48, %v2925_v6 }
 0xe89   :  { %v3035_v25 = vpop.permute.xlu0 %3034 }
 0xe8a   :  { %5281 = vpow2.f32 %v2946_v1  ;;  %v2948_v37 = vmul.f32 1.442695, %v2933_v47  ;;  %5059 = vmatpush3.bf16.msra.mxu1 %v3035_v25 }
 0xe8b   :  { %v5274_v60 = vpop.eup %5273  ;;  %v3082_v41 = vpop.permute.xlu1 %3081  ;;  %5070 = vmatprep.subr.bf16.mxu1 %v8043_v29 }
 0xe8c   :  { %5283 = vpow2.f32 %v2948_v37  ;;  %5065 = vmatpush3.bf16.msra.mxu0 %v3082_v41  ;;  %v2956_v52 = vsel %vm752_vm4, %v5274_v60, 0.0 }
 0xe8d   :  { %2957 = vadd.xlane.f32.xlu0 %v2956_v52  ;;  %5076 = vmatprep.subr.bf16.mxu0 %v8043_v29 }
 0xe8e   :  { %v5276_v11 = vpop.eup %5275 }
 0xe8f   :  { %v2959_v20 = vsel %vm752_vm4, %v5276_v11, 0.0 }
 0xe90   :  { %v5278_v33 = vpop.eup %5277  ;;  %2960 = vadd.xlane.f32.xlu1 %v2959_v20 }
 0xe91   :  { %v2962_v16 = vsel %vm752_vm4, %v5278_v33, 0.0 }
 0xe92   :  { %v5280_v0 = vpop.eup %5279  ;;  %2963 = vadd.xlane.f32.xlu0 %v2962_v16 }
 0xe93   :  { %v2965_v18 = vsel %vm752_vm4, %v5280_v0, 0.0 }
 0xe94   :  { %v5282_v28 = vpop.eup %5281  ;;  %2966 = vadd.xlane.f32.xlu1 %v2965_v18 }
 0xe95   :  { %v2968_v48 = vsel %vm752_vm4, %v5282_v28, 0.0 }
 0xe96   :  { %v5284_v22 = vpop.eup %5283  ;;  %2969 = vadd.xlane.f32.xlu0 %v2968_v48 }
 0xe97   :  { %v2971_v54 = vsel %vm752_vm4, %v5284_v22, 0.0 }
 0xe98   :  { %2972 = vadd.xlane.f32.xlu1 %v2971_v54 }
 0xea9   :  { %3128 = vrot.lane.b32.xlu1 %v6921_v57, %s5571_s23 }
 0xeac   :  { %3175 = vrot.lane.b32.xlu0 %v6931_v58, %s5571_s23 }
 0xebc   :  { %v2955_v35 = vpop.xlane.xlu1 %2954 }
 0xebd   :  { %5285 = vrcp.f32 %v2955_v35 }
 0xec7   :  { %v5286_v45 = vpop.eup %5285 }
 0xec8   :  { %v7235_v56 = vmul.f32 %v5286_v45, %v7216_v7 }
 0xeea   :  { %v2952_v59 = vpop.xlane.xlu0 %2951 }
 0xeeb   :  { %5287 = vrcp.f32 %v2952_v59 }
 0xef5   :  { %v5288_v5 = vpop.eup %5287 }
 0xef6   :  { %v7237_v2 = vmul.f32 %v5288_v5, %v5272_v26 }
 0xef8   :  { %v2990_v24 = vpack.c.bf16 %v7235_v56, %v7237_v2 }
 0xefa   :  { %5061 = vmatmul.mubr.msk.bf16.vlgmr.msra.gmra.mrb[44].mxu1 %vm752_vm4, %v2990_v24 }
 0xefb   :  { %5072 = vmatprep.mubr.msk.bf16.mxu1 %vm5581_vm0, %v8043_v29 }
 0xf1a   :  { %v2958_v57 = vpop.xlane.xlu0 %2957 }
 0xf1b   :  { %5289 = vrcp.f32 %v2958_v57 }
 0xf1d   :  { %v2961_v58 = vpop.xlane.xlu1 %2960 }
 0xf1e   :  { %5291 = vrcp.f32 %v2961_v58 }
 0xf1f   :  { %v2964_v38 = vpop.xlane.xlu0 %2963 }
 0xf20   :  { %5293 = vrcp.f32 %v2964_v38 }
 0xf21   :  { %v2967_v31 = vpop.xlane.xlu1 %2966 }
 0xf22   :  { %5295 = vrcp.f32 %v2967_v31 }
 0xf23   :  { %v2970_v7 = vpop.xlane.xlu0 %2969 }
 0xf24   :  { %5297 = vrcp.f32 %v2970_v7 }
 0xf25   :  { %v5290_v26 = vpop.eup %5289  ;;  %v2973_v55 = vpop.xlane.xlu1 %2972 }
 0xf26   :  { %v2984_v36 = vmul.f32 %v5290_v26, %v5274_v60  ;;  %5299 = vrcp.f32 %v2973_v55 }
 0xf27   :  { %v3176_v6 = vpop.permute.xlu0 %3175 }
 0xf28   :  { %v5292_v14 = vpop.eup %5291  ;;  %v2996_v42 = vmul.f32 %v7142_v9, %v2984_v36  ;;  %v3224_v41 = vmul.f32 %v7148_v49, %v2984_v36  ;;  %v3272_v35 = vmul.f32 %v7154_v32, %v2984_v36  ;;  %v3320_v31 = vmul.f32 %v7160_v21, %v2984_v36 }
 0xf29   :  { %v7245_v4 = vmul.f32 %v5292_v14, %v5276_v11  ;;  %v3129_v15 = vpop.permute.xlu1 %3128 }
 0xf2a   :  { %v5294_v46 = vpop.eup %5293  ;;  %5071 = vmatpush3.bf16.msra.mxu1 %v3129_v15  ;;  %v3008_v19 = vsel %vm752_vm4, %v2996_v42, 0.0  ;;  %v3284_v5 = vsel %vm752_vm4, %v3272_v35, 0.0  ;;  %v3332_v55 = vsel %vm752_vm4, %v3320_v31, 0.0  ;;  %v3271_v35 = vmul.f32 %v7124_v34, %v7235_v56 }
 0xf2b   :  { %v2986_v30 = vmul.f32 %v5294_v46, %v5278_v33  ;;  %3009 = vadd.xlane.f32.xlu1 %v3008_v19  ;;  %v2991_v27 = vpack.c.bf16 %v7245_v4, %v2984_v36  ;;  %5082 = vmatprep.subr.bf16.mxu1 %v8043_v29  ;;  %v3225_v16 = vmul.f32 %v7118_v13, %v7245_v4 }
 0xf2c   :  { %v5296_v10 = vpop.eup %5295  ;;  %v3273_v45 = vmul.f32 %v7124_v34, %v7245_v4  ;;  %v3321_v26 = vmul.f32 %v7130_v61, %v7245_v4  ;;  %v2997_v36 = vmul.f32 %v7112_v40, %v7245_v4 }
 0xf2d   :  { %v2987_v44 = vmul.f32 %v5296_v10, %v5280_v0  ;;  %5067 = vmatmul.mubr.msk.bf16.vlgmr.msra.gmra.mrb[48].mxu0 %vm752_vm4, %v2991_v27  ;;  %v2998_v1 = vmul.f32 %v7142_v9, %v2986_v30  ;;  %v3236_v0 = vsel %vm752_vm4, %v3224_v41, 0.0  ;;  %v3226_v48 = vmul.f32 %v7148_v49, %v2986_v30 }
 0xf2e   :  { %v5298_v47 = vpop.eup %5297  ;;  %5077 = vmatpush3.bf16.msra.mxu0 %v3176_v6  ;;  %5078 = vmatprep.mubr.msk.bf16.mxu0 %vm5581_vm0, %v8043_v29  ;;  %v3274_v24 = vmul.f32 %v7154_v32, %v2986_v30  ;;  %v3287_v57 = vsel %vm752_vm4, %v3273_v45, 0.0  ;;  %v3322_v14 = vmul.f32 %v7160_v21, %v2986_v30  ;;  %v3335_v42 = vsel %vm752_vm4, %v3321_v26, 0.0 }
 0xf2f   :  { %v3014_v25 = vsel %vm752_vm4, %v2998_v1, 0.0  ;;  %v2992_v37 = vpack.c.bf16 %v2987_v44, %v2986_v30  ;;  %v2999_v60 = vmul.f32 %v7112_v40, %v2987_v44  ;;  %5090 = vmatprep.subr.bf16.mxu0 %v8043_v29  ;;  %v7258_v11 = vmul.f32 %v5298_v47, %v5282_v28 }
 0xf30   :  { %v5300_v52 = vpop.eup %5299  ;;  %3015 = vadd.xlane.f32.xlu0 %v3014_v25  ;;  %v3239_v28 = vsel %vm752_vm4, %v3225_v16, 0.0  ;;  %v3242_v54 = vsel %vm752_vm4, %v3226_v48, 0.0  ;;  %v3275_v58 = vmul.f32 %v7124_v34, %v2987_v44  ;;  %v3290_v38 = vsel %vm752_vm4, %v3274_v24, 0.0 }
 0xf31   :  { %v2989_v20 = vmul.f32 %v5300_v52, %v5284_v22  ;;  %5073 = vmatmul.mubr.msk.bf16.vlgmr.msra.gmra.mrb[48].mxu1 %vm752_vm4, %v2992_v37  ;;  %v3017_v33 = vsel %vm752_vm4, %v2999_v60, 0.0  ;;  %v3227_v22 = vmul.f32 %v7118_v13, %v2987_v44  ;;  %v3323_v15 = vmul.f32 %v7130_v61, %v2987_v44 }
 0xf32   :  { %3018 = vadd.xlane.f32.xlu1 %v3017_v33  ;;  %5086 = vmatprep.mubr.msk.bf16.mxu1 %vm5581_vm0, %v8043_v29  ;;  %v3293_v7 = vsel %vm752_vm4, %v3275_v58, 0.0  ;;  %v3338_v46 = vsel %vm752_vm4, %v3322_v14, 0.0  ;;  %v3011_v10 = vsel %vm752_vm4, %v2997_v36, 0.0  ;;  %v3000_v30 = vmul.f32 %v7142_v9, %v7258_v11 }
 0xf33   :  { %v2993_v18 = vpack.c.bf16 %v2989_v20, %v7258_v11  ;;  %v3245_v59 = vsel %vm752_vm4, %v3227_v22, 0.0  ;;  %v3341_v19 = vsel %vm752_vm4, %v3323_v15, 0.0  ;;  %v3001_v27 = vmul.f32 %v7112_v40, %v2989_v20 }
 0xf34   :  { %3237 = vadd.xlane.f32.xlu0 %v3236_v0  ;;  %v3229_v6 = vmul.f32 %v7118_v13, %v2989_v20  ;;  %v3020_v1 = vsel %vm752_vm4, %v3000_v30, 0.0  ;;  %v3228_v4 = vmul.f32 %v7148_v49, %v7258_v11  ;;  %v3277_v25 = vmul.f32 %v7124_v34, %v2989_v20 }
 0xf35   :  { %5079 = vmatmul.mubr.msk.bf16.vlgmr.msra.gmra.mrb[52].mxu0 %vm752_vm4, %v2993_v18  ;;  %v3023_v44 = vsel %vm752_vm4, %v3001_v27, 0.0  ;;  %v3276_v60 = vmul.f32 %v7154_v32, %v7258_v11  ;;  %v3325_v52 = vmul.f32 %v7130_v61, %v2989_v20  ;;  %v3324_v16 = vmul.f32 %v7160_v21, %v7258_v11 }
 0xf36   :  { %3240 = vadd.xlane.f32.xlu1 %v3239_v28  ;;  %5092 = vmatprep.mubr.msk.bf16.mxu0 %vm5581_vm0, %v8043_v29  ;;  %v3251_v47 = vsel %vm752_vm4, %v3229_v6, 0.0  ;;  %v3248_v37 = vsel %vm752_vm4, %v3228_v4, 0.0  ;;  %v3299_v41 = vsel %vm752_vm4, %v3277_v25, 0.0  ;;  %v2995_v18 = vmul.f32 %v7112_v40, %v7235_v56 }
 0xf37   :  { %v3296_v33 = vsel %vm752_vm4, %v3276_v60, 0.0  ;;  %v3347_v0 = vsel %vm752_vm4, %v3325_v52, 0.0  ;;  %v3344_v48 = vsel %vm752_vm4, %v3324_v16, 0.0  ;;  %v2994_v28 = vmul.f32 %v7142_v9, %v7237_v2 }
 0xf38   :  { %3243 = vadd.xlane.f32.xlu0 %v3242_v54  ;;  %v3005_v20 = vsel %vm752_vm4, %v2995_v18, 0.0  ;;  %v3223_v22 = vmul.f32 %v7118_v13, %v7235_v56  ;;  %v3222_v54 = vmul.f32 %v7148_v49, %v7237_v2  ;;  %v3281_v13 = vsel %vm752_vm4, %v3271_v35, 0.0 }
 0xf39   :  { %v3002_v11 = vsel %vm752_vm4, %v2994_v28, 0.0  ;;  %v3319_v45 = vmul.f32 %v7130_v61, %v7235_v56 }
 0xf3a   :  { %3246 = vadd.xlane.f32.xlu1 %v3245_v59  ;;  %v3233_v40 = vsel %vm752_vm4, %v3223_v22, 0.0  ;;  %v3230_v9 = vsel %vm752_vm4, %v3222_v54, 0.0  ;;  %v3270_v59 = vmul.f32 %v7154_v32, %v7237_v2 }
 0xf3b   :  { %v3329_v34 = vsel %vm752_vm4, %v3319_v45, 0.0 }
 0xf3c   :  { %3285 = vadd.xlane.f32.xlu0 %v3284_v5  ;;  %v3278_v49 = vsel %vm752_vm4, %v3270_v59, 0.0  ;;  %v3318_v5 = vmul.f32 %v7160_v21, %v7237_v2 }
 0xf3e   :  { %3288 = vadd.xlane.f32.xlu1 %v3287_v57  ;;  %v3326_v24 = vsel %vm752_vm4, %v3318_v5, 0.0 }
 0xf40   :  { %3291 = vadd.xlane.f32.xlu0 %v3290_v38 }
 0xf42   :  { %3294 = vadd.xlane.f32.xlu1 %v3293_v7 }
 0xf44   :  { %3333 = vadd.xlane.f32.xlu0 %v3332_v55 }
 0xf46   :  { %3336 = vadd.xlane.f32.xlu1 %v3335_v42 }
 0xf48   :  { %3339 = vadd.xlane.f32.xlu0 %v3338_v46 }
 0xf4a   :  { %3342 = vadd.xlane.f32.xlu1 %v3341_v19 }
 0xf4c   :  { %3012 = vadd.xlane.f32.xlu0 %v3011_v10 }
 0xf4e   :  { %3024 = vadd.xlane.f32.xlu1 %v3023_v44 }
 0xf50   :  { %3021 = vadd.xlane.f32.xlu0 %v3020_v1 }
 0xf52   :  { %3252 = vadd.xlane.f32.xlu1 %v3251_v47 }
 0xf54   :  { %3249 = vadd.xlane.f32.xlu0 %v3248_v37 }
 0xf56   :  { %3300 = vadd.xlane.f32.xlu1 %v3299_v41 }
 0xf58   :  { %3297 = vadd.xlane.f32.xlu0 %v3296_v33 }
 0xf5a   :  { %3348 = vadd.xlane.f32.xlu1 %v3347_v0 }
 0xf5c   :  { %3345 = vadd.xlane.f32.xlu0 %v3344_v48 }
 0xf5e   :  { %3006 = vadd.xlane.f32.xlu1 %v3005_v20 }
 0xf60   :  { %3003 = vadd.xlane.f32.xlu0 %v3002_v11 }
 0xf62   :  { %3234 = vadd.xlane.f32.xlu1 %v3233_v40 }
 0xf64   :  { %3231 = vadd.xlane.f32.xlu0 %v3230_v9 }
 0xf66   :  { %3282 = vadd.xlane.f32.xlu1 %v3281_v13 }
 0xf68   :  { %3279 = vadd.xlane.f32.xlu0 %v3278_v49 }
 0xf6a   :  { %3330 = vadd.xlane.f32.xlu1 %v3329_v34 }
 0xf6c   :  { %3327 = vadd.xlane.f32.xlu0 %v3326_v24 }
 0xfb8   :  { %v3010_v32 = vpop.xlane.xlu1 %3009 }
 0xfb9   :  { %v3028_v6 = vmul.f32 %v3010_v32, %v6980_v39 }
 0xfbd   :  { %v3016_v57 = vpop.xlane.xlu0 %3015 }
 0xfbe   :  { %v3030_v33 = vmul.f32 %v3016_v57, %v7023_v8 }
 0xfbf   :  { %v3019_v38 = vpop.xlane.xlu1 %3018 }
 0xfc0   :  { %v3031_v28 = vmul.f32 %v3019_v38, %v7023_v8 }
 0xfc1   :  { %v3238_v7 = vpop.xlane.xlu0 %3237 }
 0xfc2   :  { %v3256_v47 = vmul.f32 %v3238_v7, %v6987_v3 }
 0xfc3   :  { %v3241_v26 = vpop.xlane.xlu1 %3240 }
 0xfc4   :  { %v3257_v20 = vmul.f32 %v3241_v26, %v6987_v3 }
 0xfc5   :  { %v3244_v55 = vpop.xlane.xlu0 %3243 }
 0xfc6   :  { %v3258_v11 = vmul.f32 %v3244_v55, %v7041_v17 }
 0xfc7   :  { %v3247_v21 = vpop.xlane.xlu1 %3246 }
 0xfc8   :  { %v3259_v59 = vmul.f32 %v3247_v21, %v7041_v17 }
 0xfc9   :  { %v3286_v2 = vpop.xlane.xlu0 %3285 }
 0xfca   :  { %v3304_v16 = vmul.f32 %v3286_v2, %v7001_v53 }
 0xfcb   :  { %v3289_v14 = vpop.xlane.xlu1 %3288 }
 0xfcc   :  { %v3305_v32 = vmul.f32 %v3289_v14, %v7001_v53 }
 0xfcd   :  { %v7341_v58 = vpop.f32.mrb[44].mxu1  ;;  %v3292_v42 = vpop.xlane.xlu0 %3291 }
 0xfce   :  { %v5062_v31 = vpop.f32.mrb[45].mxu1  ;;  %v3306_v13 = vmul.f32 %v3292_v42, %v7057_v23 }
 0xfcf   :  { %v7343_v61 = vpop.f32.mrb[46].mxu1  ;;  %v3295_v15 = vpop.xlane.xlu1 %3294 }
 0xfd0   :  { %v5063_v56 = vpop.f32.mrb[47].mxu1  ;;  %v3307_v57 = vmul.f32 %v3295_v15, %v7057_v23 }
 0xfd1   :  { %v3334_v46 = vpop.xlane.xlu0 %3333 }
 0xfd3   :  { %v3337_v36 = vpop.xlane.xlu1 %3336 }
 0xfd5   :  { %v3340_v19 = vpop.xlane.xlu0 %3339 }
 0xfd6   :  { %v3354_v38 = vmul.f32 %v3340_v19, %v7075_v51 }
 0xfd7   :  { %v3343_v27 = vpop.xlane.xlu1 %3342 }
 0xfd8   :  { %v3355_v42 = vmul.f32 %v3343_v27, %v7075_v51 }
 0xfd9   :  { %v3013_v10 = vpop.xlane.xlu0 %3012 }
 0xfda   :  { %v3029_v25 = vmul.f32 %v3013_v10, %v6980_v39  ;;  %v3352_v39 = vmul.f32 %v3334_v46, %v7013_v63 }
 0xfdb   :  { %v3025_v30 = vpop.xlane.xlu1 %3024 }
 0xfdc   :  { %v3033_v31 = vmul.f32 %v3025_v30, %v7031_v43 }
 0xfdd   :  { %v3022_v44 = vpop.xlane.xlu0 %3021 }
 0xfde   :  { %v3032_v5 = vmul.f32 %v3022_v44, %v7031_v43  ;;  %v3353_v44 = vmul.f32 %v3337_v36, %v7013_v63  ;;  %v5198_v36 = vld [vmem:[%s7949_s5 + $0x38] sm:$0xff]  }
 0xfdf   :  { %v3253_v1 = vpop.xlane.xlu1 %3252 }
 0xfe0   :  { %v3261_v53 = vmul.f32 %v3253_v1, %v7049_v12  ;;  %v8084_v1 = vld [vmem:[#allocation29_spill] sm:$0xff] }
 0xfe1   :  { %v3250_v41 = vpop.xlane.xlu0 %3249 }
 0xfe2   :  { %v3260_v7 = vmul.f32 %v3250_v41, %v7049_v12 }
 0xfe3   :  { %v3301_v54 = vpop.xlane.xlu1 %3300 }
 0xfe5   :  { %v3298_v56 = vpop.xlane.xlu0 %3297 }
 0xfe7   :  { %v3349_v15 = vpop.xlane.xlu1 %3348 }
0x1000   :  { %v3121_v4 = vpop.f32.mrb[48].mxu0 }
0x1001   :  { %v3122_v37 = vadd.f32 %v3121_v4, %v3028_v6  ;;  %v5068_v60 = vpop.f32.mrb[49].mxu0  ;;  %v5197_v6 = vld [vmem:[%s7949_s5 + $0x30] sm:$0xff]   ;;  %v8083_v4 = vld [vmem:[#allocation27_spill] sm:$0xff] }
0x1002   :  { %v3124_v52 = vpop.f32.mrb[50].mxu0  ;;  %v3308_v51 = vmul.f32 %v3298_v56, %v8083_v4  ;;  %5083 = vmatpush3.bf16.msra.mxu1 %v5197_v6 }
0x1003   :  { %v3264_v0 = vadd.f32 %v3256_v47, %v3122_v37  ;;  %v3125_v18 = vadd.f32 %v3124_v52, %v3029_v25  ;;  %v5069_v48 = vpop.f32.mrb[51].mxu0  ;;  %v3309_v47 = vmul.f32 %v3301_v54, %v8083_v4  ;;  %v3357_v25 = vmul.f32 %v3349_v15, %v8084_v1  ;;  %v3346_v37 = vpop.xlane.xlu0 %3345  ;;  %5084 = vmatprep.subr.bf16.mxu1 %v8043_v29  ;;  %v8087_v54 = vld [vmem:[#allocation32_spill] sm:$0xff] }
0x1004   :  { %v3168_v22 = vpop.f32.mrb[48].mxu1  ;;  %v3356_v52 = vmul.f32 %v3346_v37, %v8084_v1 }
0x1005   :  { %v3312_v40 = vadd.f32 %v3304_v16, %v3264_v0  ;;  %v3169_v35 = vadd.f32 %v3168_v22, %v3030_v33  ;;  %v5074_v9 = vpop.f32.mrb[49].mxu1  ;;  %v3265_v45 = vadd.f32 %v3257_v20, %v3125_v18  ;;  %v8085_v0 = vld [vmem:[#allocation33_spill] sm:$0xff]  ;;  %v8086_v18 = vld [vmem:[#allocation31_spill] sm:$0xff] }
0x1006   :  { %v3171_v49 = vpop.f32.mrb[50].mxu1  ;;  %5085 = vmatpush3.bf16.msra.mxu1 %v5198_v36  ;;  %v8088_v9 = vld [vmem:[#allocation23_spill] sm:$0xff] }
0x1007   :  { %v3266_v8 = vadd.f32 %v3258_v11, %v3169_v35  ;;  %v3172_v34 = vadd.f32 %v3171_v49, %v3031_v28  ;;  %v5075_v3 = vpop.f32.mrb[51].mxu1  ;;  %v3360_v24 = vadd.f32 %v3352_v39, %v3312_v40  ;;  %v3313_v14 = vadd.f32 %v3305_v32, %v3265_v45  ;;  %5096 = vmatprep.subr.bf16.mxu1 %v8043_v29  ;;  %v3004_v48 = vpop.xlane.xlu0 %3003  ;;  %v8089_v49 = vld [vmem:[#allocation22_spill] sm:$0xff] }
0x1008   :  { %v3215_v17 = vpop.f32.mrb[52].mxu0  ;;  %v3007_v28 = vpop.xlane.xlu1 %3006 }
0x1009   :  { %v3314_v26 = vadd.f32 %v3306_v13, %v3266_v8  ;;  %v3267_v55 = vadd.f32 %v3259_v59, %v3172_v34  ;;  %v3216_v21 = vadd.f32 %v3215_v17, %v3032_v5  ;;  %v5080_v2 = vpop.f32.mrb[53].mxu0  ;;  %3368 = vrot.lane.b32.xlu0 %v3360_v24, %s5575_s17  ;;  %v3361_v63 = vadd.f32 %v3353_v44, %v3313_v14  ;;  %v8090_v24 = vld [vmem:[#allocation25_spill] sm:$0xff] }
0x100a   :  { %v3218_v23 = vpop.f32.mrb[54].mxu0  ;;  %v3027_v40 = vmul.f32 %v3007_v28, %v8087_v54  ;;  %v3026_v8 = vmul.f32 %v3004_v48, %v8087_v54  ;;  %v8093_v54 = vld [vmem:[#allocation24_spill] sm:$0xff] }
0x100b   :  { %v3315_v46 = vadd.f32 %v3307_v57, %v3267_v55  ;;  %v3268_v19 = vadd.f32 %v3260_v7, %v3216_v21  ;;  %v3219_v43 = vadd.f32 %v3218_v23, %v3033_v31  ;;  %v5081_v10 = vpop.f32.mrb[55].mxu0  ;;  %v3362_v30 = vadd.f32 %v3354_v38, %v3314_v26  ;;  %v3232_v20 = vpop.xlane.xlu0 %3231 }
0x100c   :  { %v3235_v22 = vpop.xlane.xlu1 %3234  ;;  %v3078_v45 = vadd.f32 %v7343_v61, %v3027_v40  ;;  %v3254_v57 = vmul.f32 %v3232_v20, %v8088_v9  ;;  %v3075_v56 = vadd.f32 %v7341_v58, %v3026_v8 }
0x100d   :  { %v3269_v27 = vadd.f32 %v3261_v53, %v3219_v43  ;;  %3376 = vrot.lane.b32.xlu1 %v3362_v30, %s5567_s3  ;;  %v3363_v12 = vadd.f32 %v3355_v42, %v3315_v46  ;;  %v3316_v60 = vadd.f32 %v3308_v51, %v3268_v19  ;;  %v3255_v59 = vmul.f32 %v3235_v22, %v8088_v9 }
0x100e   :  { %v3262_v55 = vadd.f32 %v3254_v57, %v3075_v56 }
0x100f   :  { %v3317_v41 = vadd.f32 %v3309_v47, %v3269_v27  ;;  %3378 = vrot.lane.b32.xlu0 %v3363_v12, %s5567_s3  ;;  %v3364_v16 = vadd.f32 %v3356_v52, %v3316_v60  ;;  %v3280_v11 = vpop.xlane.xlu0 %3279  ;;  %v3263_v3 = vadd.f32 %v3255_v59, %v3078_v45  ;;  %v4801_v27 = vld [vmem:[#allocation8 + $0x3] ss:$0 sm:$0xff] }
0x1010   :  { %v3283_v39 = vpop.xlane.xlu1 %3282  ;;  %v3302_v17 = vmul.f32 %v3280_v11, %v8089_v49  ;;  %v4800_v11 = vld [vmem:[%s7951_s7 + $0xc] sm:$0xf] }
0x1011   :  { %v3365_v33 = vadd.f32 %v3357_v25, %v3317_v41  ;;  %3370 = vrot.lane.b32.xlu1 %v3361_v63, %s5575_s17  ;;  %v3303_v5 = vmul.f32 %v3283_v39, %v8089_v49  ;;  %v7471_v40 = vrot.slane %v4800_v11, %v8093_v54 }
0x1012   :  { %v3310_v42 = vadd.f32 %v3302_v17, %v3262_v55 }
0x1013   :  { %3386 = vrot.lane.b32.xlu0 %v3365_v33, %s5586_s4  ;;  %v3328_v35 = vpop.xlane.xlu0 %3327  ;;  %v3311_v31 = vadd.f32 %v3303_v5, %v3263_v3  ;;  %8094 = vst [vmem:[#allocation33_spill] sm:$0xff] %v7471_v40 }
0x1014   :  { %v3331_v13 = vpop.xlane.xlu1 %3330  ;;  %v3350_v61 = vmul.f32 %v3328_v35, %v8090_v24 }
0x1015   :  { %3384 = vrot.lane.b32.xlu1 %v3364_v16, %s5586_s4  ;;  %v3351_v32 = vmul.f32 %v3331_v13, %v8090_v24  ;;  %v8095_v13 = vld [vmem:[#allocation26_spill] sm:$0xff] }
0x1016   :  { %v3358_v23 = vadd.f32 %v3350_v61, %v3310_v42  ;;  %v7479_v45 = vrot.slane %v4800_v11, %v8095_v13 }
0x1017   :  { %3398 = vrot.lane.b32.xlu0 %v8085_v0, %s5587_s30  ;;  %v3359_v26 = vadd.f32 %v3351_v32, %v3311_v31 }
0x1018   :  { %8096 = vst [vmem:[#allocation31_spill] sm:$0xff] %v7479_v45 }
0x1019   :  { %3396 = vrot.lane.b32.xlu1 %v8086_v18, %s5587_s30 }
0x107b   :  { %v3369_v34 = vpop.permute.xlu0 %3368 }
0x107c   :  { %v3390_v46 = vsel %vm307_vm2, %v3358_v23, %v3369_v34  ;;  %v8099_v23 = vld [vmem:[#allocation30_spill] sm:$0xff] }
0x107f   :  { %v3377_v38 = vpop.permute.xlu1 %3376 }
0x1080   :  { %v3392_v43 = vsel %vm752_vm4, %v3390_v46, %v3377_v38 }
0x1081   :  { %v3379_v7 = vpop.permute.xlu0 %3378 }
0x1083   :  { %v3371_v21 = vpop.permute.xlu1 %3370 }
0x1084   :  { %v3391_v2 = vsel %vm307_vm2, %v3359_v26, %v3371_v21 }
0x1085   :  { %v3387_v53 = vpop.permute.xlu0 %3386  ;;  %v3393_v14 = vsel %vm752_vm4, %v3391_v2, %v3379_v7  ;;  %v8097_v7 = vld [vmem:[#allocation28_spill] sm:$0xff] }
0x1086   :  { %v3395_v58 = vsel %vm1245_vm6, %v3393_v14, %v3387_v53  ;;  %v7501_v26 = vrot.slane %v4800_v11, %v8097_v7 }
0x1087   :  { %v3385_v15 = vpop.permute.xlu1 %3384 }
0x1088   :  { %v3394_v30 = vsel %vm1245_vm6, %v3392_v43, %v3385_v15  ;;  %8098 = vst [vmem:[#allocation32_spill] sm:$0xff] %v7501_v26  ;;  %v7524_v15 = vrot.slane %v4800_v11, %v8099_v23 }
0x1089   :  { %v3399_v19 = vpop.permute.xlu0 %3398 }
0x108a   :  { %v3403_v10 = vadd.f32 %v3399_v19, %v3395_v58  ;;  %8100 = vst [vmem:[#allocation23_spill] sm:$0xff] %v7524_v15 }
0x108b   :  { %v3397_v44 = vpop.permute.xlu1 %3396 }
0x108c   :  { %v3402_v6 = vadd.f32 %v3397_v44, %v3394_v30  ;;  %v3405_v4 = vmax.f32 %v3403_v10, 0.0 }
0x108e   :  { %v3404_v47 = vmax.f32 %v3402_v6, 0.0 }
0x1090   :  { %v3415_v51 = vpack.c.bf16 %v3405_v4, %v3404_v47 }
0x1092   :  { %5087 = vmatmul.mubr.msk.bf16.vlgmr.msra.gmra.mrb[52].mxu1 %vm204_vm1, %v3415_v51 }
0x1093   :  { %5098 = vmatprep.mubr.msk.bf16.mxu1 %vm5581_vm0, %v8043_v29 }
0x1165   :  { %v3471_v12 = vpop.f32.mrb[52].mxu1 }
0x1166   :  { %v7406_v1 = vadd.f32 %v4801_v27, %v3471_v12  ;;  %v5088_v25 = vpop.f32.mrb[53].mxu1 }
0x1167   :  { %v3474_v37 = vpop.f32.mrb[54].mxu1 }
0x1168   :  { %8091 = vst [vmem:[#allocation27_spill] sm:$0xff] %v7406_v1  ;;  %v7408_v60 = vadd.f32 %v4801_v27, %v3474_v37  ;;  %3480 = vrot.lane.b32.xlu1 %v7406_v1, %s5583_s0  ;;  %v5089_v41 = vpop.f32.mrb[55].mxu1  ;;  %v3528_v35 = vmul.f32 %v7471_v40, %v7406_v1  ;;  %v3784_v5 = vmul.f32 %v7479_v45, %v7406_v1 }
0x1169   :  { %v3848_v21 = vmul.f32 %v7501_v26, %v7406_v1  ;;  %v3912_v10 = vmul.f32 %v7524_v15, %v7406_v1 }
0x116a   :  { %8092 = vst [vmem:[#allocation29_spill] sm:$0xff] %v7408_v60  ;;  %3482 = vrot.lane.b32.xlu0 %v7408_v60, %s5583_s0  ;;  %v7424_v63 = vpack.c.bf16 %v7408_v60, %v7406_v1  ;;  %v3536_v9 = vsel %vm307_vm2, %v3528_v35, 0.0  ;;  %v3529_v59 = vmul.f32 %v7471_v40, %v7408_v60  ;;  %v3792_v8 = vsel %vm307_vm2, %v3784_v5, 0.0 }
0x116b   :  { %v3785_v14 = vmul.f32 %v7479_v45, %v7408_v60  ;;  %v3856_v46 = vsel %vm307_vm2, %v3848_v21, 0.0  ;;  %v3849_v43 = vmul.f32 %v7501_v26, %v7408_v60  ;;  %v3913_v4 = vmul.f32 %v7524_v15, %v7408_v60 }
0x116c   :  { %3486 = vrot.lane.b32.xlu1 %v7406_v1, %s5582_s27  ;;  %v3539_v49 = vsel %vm307_vm2, %v3529_v59, 0.0  ;;  %v3920_v51 = vsel %vm307_vm2, %v3912_v10, 0.0 }
0x116d   :  { %v3795_v58 = vsel %vm307_vm2, %v3785_v14, 0.0  ;;  %v3859_v6 = vsel %vm307_vm2, %v3849_v43, 0.0  ;;  %v3923_v12 = vsel %vm307_vm2, %v3913_v4, 0.0 }
0x116e   :  { %3488 = vrot.lane.b32.xlu0 %v7408_v60, %s5582_s27 }
0x1170   :  { %3492 = vrot.lane.b32.xlu1 %v7406_v1, %s5584_s26 }
0x1172   :  { %3494 = vrot.lane.b32.xlu0 %v7408_v60, %s5584_s26 }
0x1174   :  { %3569 = vrot.lane.b32.xlu1 %v7424_v63, %s5585_s25 }
0x11da   :  { %v7428_v36 = vpop.permute.xlu1 %3480 }
0x11dc   :  { %v7430_v52 = vpop.permute.xlu0 %3482 }
0x11dd   :  { %v7434_v33 = vpack.c.bf16 %v7430_v52, %v7428_v36 }
0x11de   :  { %v7436_v16 = vpop.permute.xlu1 %3486 }
0x11df   :  { %3619 = vrot.lane.b32.xlu0 %v7434_v33, %s5585_s25 }
0x11e0   :  { %v7440_v0 = vpop.permute.xlu0 %3488 }
0x11e1   :  { %v7444_v18 = vpack.c.bf16 %v7440_v0, %v7436_v16 }
0x11e2   :  { %v7446_v48 = vpop.permute.xlu1 %3492 }
0x11e3   :  { %3669 = vrot.lane.b32.xlu1 %v7444_v18, %s5585_s25 }
0x11e4   :  { %v7450_v28 = vpop.permute.xlu0 %3494 }
0x11e5   :  { %v7454_v20 = vpack.c.bf16 %v7450_v28, %v7446_v48 }
0x11e6   :  { %v3570_v22 = vpop.permute.xlu1 %3569 }
0x11e7   :  { %v3575_v39 = vsel %vm307_vm2, %v3570_v22, 0  ;;  %3719 = vrot.lane.b32.xlu0 %v7454_v20, %s5585_s25  ;;  %3499 = vrot.lane.b32.xlu1 %v4800_v11, %s5583_s0 }
0x11e8   :  { %5091 = vmatpush3.bf16.xpose.msra.mxu0 %v3575_v39 }
0x11e9   :  { %5102 = vmatprep.subr.bf16.mxu0 %v8043_v29 }
0x11eb   :  { %3502 = vrot.lane.b32.xlu0 %v4800_v11, %s5582_s27  ;;  %3505 = vrot.lane.b32.xlu1 %v4800_v11, %s5584_s26 }
0x11ef   :  { %5093 = vmatmul.mubr.msk.bf16.vlgmr.msra.gmra.mrb[56].mxu0 %vm307_vm2, %v7424_v63 }
0x11f0   :  { %5104 = vmatprep.mubr.msk.bf16.mxu0 %vm5581_vm0, %v8043_v29 }
0x120a   :  { %3537 = vadd.xlane.f32.xlu0 %v3536_v9 }
0x120f   :  { %3540 = vadd.xlane.f32.xlu1 %v3539_v49 }
0x1213   :  { %3793 = vadd.xlane.f32.xlu1 %v3792_v8 }
0x1251   :  { %v3620_v34 = vpop.permute.xlu0 %3619 }
0x1252   :  { %v3625_v3 = vsel %vm307_vm2, %v3620_v34, 0 }
0x1253   :  { %5097 = vmatpush3.bf16.xpose.msra.mxu1 %v3625_v3 }
0x1254   :  { %5108 = vmatprep.subr.bf16.mxu1 %v8043_v29 }
0x1255   :  { %v3670_v24 = vpop.permute.xlu1 %3669 }
0x1256   :  { %v3675_v32 = vsel %vm307_vm2, %v3670_v24, 0 }
0x1257   :  { %5103 = vmatpush3.bf16.xpose.msra.mxu0 %v3675_v32 }
0x1258   :  { %5114 = vmatprep.subr.bf16.mxu0 %v8043_v29 }
0x1259   :  { %v3720_v57 = vpop.permute.xlu0 %3719  ;;  %v3500_v38 = vpop.permute.xlu1 %3499 }
0x125a   :  { %v3725_v31 = vsel %vm307_vm2, %v3720_v57, 0  ;;  %v7491_v56 = vrot.slane %v3500_v38, %v8093_v54  ;;  %v7494_v17 = vrot.slane %v3500_v38, %v8095_v13  ;;  %5099 = vmatmul.mubr.msk.bf16.vlgmr.msra.gmra.mrb[56].mxu1 %vm307_vm2, %v7434_v33  ;;  %v7515_v2 = vrot.slane %v3500_v38, %v8097_v7 }
0x125b   :  { %5109 = vmatpush3.bf16.xpose.msra.mxu1 %v3725_v31  ;;  %5110 = vmatprep.mubr.msk.bf16.mxu1 %vm5581_vm0, %v8043_v29  ;;  %v7537_v30 = vrot.slane %v3500_v38, %v8099_v23 }
0x125c   :  { %v3786_v55 = vmul.f32 %v7494_v17, %v7428_v36  ;;  %v3530_v61 = vmul.f32 %v7491_v56, %v7428_v36  ;;  %5120 = vmatprep.subr.bf16.mxu1 %v8043_v29  ;;  %v3850_v19 = vmul.f32 %v7515_v2, %v7428_v36  ;;  %v3531_v37 = vmul.f32 %v7491_v56, %v7430_v52 }
0x125d   :  { %v3503_v47 = vpop.permute.xlu0 %3502  ;;  %v3914_v25 = vmul.f32 %v7537_v30, %v7428_v36  ;;  %v3506_v41 = vpop.permute.xlu1 %3505  ;;  %v3787_v22 = vmul.f32 %v7494_v17, %v7430_v52  ;;  %v3851_v36 = vmul.f32 %v7515_v2, %v7430_v52  ;;  %v3915_v8 = vmul.f32 %v7537_v30, %v7430_v52 }
0x125e   :  { %5105 = vmatmul.mubr.msk.bf16.vlgmr.msra.gmra.mrb[60].mxu0 %vm307_vm2, %v7444_v18  ;;  %v3798_v42 = vsel %vm307_vm2, %v3786_v55, 0.0  ;;  %v3542_v53 = vsel %vm307_vm2, %v3530_v61, 0.0  ;;  %v3862_v44 = vsel %vm307_vm2, %v3850_v19, 0.0  ;;  %v7545_v27 = vrot.slane %v3503_v47, %v8093_v54 }
0x125f   :  { %5116 = vmatprep.mubr.msk.bf16.mxu0 %vm5581_vm0, %v8043_v29  ;;  %3799 = vadd.xlane.f32.xlu1 %v3798_v42  ;;  %v7555_v11 = vrot.slane %v3506_v41, %v8093_v54  ;;  %v3926_v39 = vsel %vm307_vm2, %v3914_v25, 0.0  ;;  %v3545_v35 = vsel %vm307_vm2, %v3531_v37, 0.0  ;;  %v7564_v59 = vrot.slane %v3503_v47, %v8095_v13 }
0x1260   :  { %3543 = vadd.xlane.f32.xlu0 %v3542_v53  ;;  %v3532_v9 = vmul.f32 %v7545_v27, %v7436_v16  ;;  %v3801_v54 = vsel %vm307_vm2, %v3787_v22, 0.0  ;;  %v7573_v34 = vrot.slane %v3506_v41, %v8095_v13  ;;  %v3865_v3 = vsel %vm307_vm2, %v3851_v36, 0.0 }
0x1261   :  { %v3534_v5 = vmul.f32 %v7555_v11, %v7446_v48  ;;  %v3788_v32 = vmul.f32 %v7564_v59, %v7436_v16  ;;  %v7580_v57 = vrot.slane %v3503_v47, %v8097_v7  ;;  %v3929_v38 = vsel %vm307_vm2, %v3915_v8, 0.0 }
0x1262   :  { %5111 = vmatmul.mubr.msk.bf16.vlgmr.msra.gmra.mrb[60].mxu1 %vm307_vm2, %v7454_v20  ;;  %v3548_v49 = vsel %vm307_vm2, %v3532_v9, 0.0  ;;  %v3533_v52 = vmul.f32 %v7545_v27, %v7440_v0  ;;  %v3790_v13 = vmul.f32 %v7573_v34, %v7446_v48  ;;  %v7589_v55 = vrot.slane %v3506_v41, %v8097_v7 }
0x1263   :  { %5122 = vmatprep.mubr.msk.bf16.mxu1 %vm5581_vm0, %v8043_v29  ;;  %3857 = vadd.xlane.f32.xlu1 %v3856_v46  ;;  %v3554_v24 = vsel %vm307_vm2, %v3534_v5, 0.0  ;;  %v3804_v31 = vsel %vm307_vm2, %v3788_v32, 0.0  ;;  %v3535_v42 = vmul.f32 %v7555_v11, %v7450_v28  ;;  %v3852_v53 = vmul.f32 %v7580_v57, %v7436_v16 }
0x1264   :  { %3796 = vadd.xlane.f32.xlu0 %v3795_v58  ;;  %8101 = vst [vmem:[#allocation22_spill] sm:$0xff] %v7589_v55  ;;  %v3551_v61 = vsel %vm307_vm2, %v3533_v52, 0.0  ;;  %v3810_v21 = vsel %vm307_vm2, %v3790_v13, 0.0  ;;  %v7598_v14 = vrot.slane %v3503_v47, %v8099_v23  ;;  %v3789_v58 = vmul.f32 %v7564_v59, %v7440_v0  ;;  %v7641_v52 = vld [vmem:[%s7946_s2 + $0x8] sm:$0xff] }
0x1265   :  { %v3557_v46 = vsel %vm307_vm2, %v3535_v42, 0.0  ;;  %v3868_v7 = vsel %vm307_vm2, %v3852_v53, 0.0  ;;  %v3854_v19 = vmul.f32 %v7589_v55, %v7446_v48  ;;  %v7607_v43 = vrot.slane %v3506_v41, %v8099_v23 }
0x1266   :  { %v3807_v10 = vsel %vm307_vm2, %v3789_v58, 0.0  ;;  %v3916_v4 = vmul.f32 %v7598_v14, %v7436_v16  ;;  %v3853_v23 = vmul.f32 %v7580_v57, %v7440_v0  ;;  %v3855_v16 = vmul.f32 %v7589_v55, %v7450_v28 }
0x1267   :  { %3863 = vadd.xlane.f32.xlu1 %v3862_v44  ;;  %8102 = vst [vmem:[#allocation25_spill] sm:$0xff] %v7607_v43  ;;  %v3874_v44 = vsel %vm307_vm2, %v3854_v19, 0.0  ;;  %v3917_v22 = vmul.f32 %v7598_v14, %v7440_v0 }
0x1268   :  { %3860 = vadd.xlane.f32.xlu0 %v3859_v6  ;;  %v3791_v6 = vmul.f32 %v7573_v34, %v7450_v28  ;;  %v3871_v25 = vsel %vm307_vm2, %v3853_v23, 0.0  ;;  %v3877_v41 = vsel %vm307_vm2, %v3855_v16, 0.0  ;;  %v7671_v16 = vld [vmem:[%s7946_s2 + $0x38] sm:$0xff] }
0x126a   :  { %v3813_v47 = vsel %vm307_vm2, %v3791_v6, 0.0  ;;  %v7665_v6 = vld [vmem:[%s7946_s2 + $0x28] sm:$0xff] }
0x126b   :  { %3921 = vadd.xlane.f32.xlu1 %v3920_v51  ;;  %v3932_v51 = vsel %vm307_vm2, %v3916_v4, 0.0 }
0x126c   :  { %3924 = vadd.xlane.f32.xlu0 %v3923_v12  ;;  %v3918_v12 = vmul.f32 %v7607_v43, %v7446_v48  ;;  %v3919_v48 = vmul.f32 %v7607_v43, %v7450_v28 }
0x126e   :  { %v3938_v37 = vsel %vm307_vm2, %v3918_v12, 0.0 }
0x126f   :  { %3927 = vadd.xlane.f32.xlu1 %v3926_v39  ;;  %v3935_v39 = vsel %vm307_vm2, %v3917_v22, 0.0  ;;  %v7677_v22 = vld [vmem:[%s7946_s2 + $0x30] sm:$0xff] }
0x1270   :  { %3546 = vadd.xlane.f32.xlu0 %v3545_v35  ;;  %v3941_v35 = vsel %vm307_vm2, %v3919_v48, 0.0 }
0x1273   :  { %3549 = vadd.xlane.f32.xlu1 %v3548_v49 }
0x1274   :  { %3802 = vadd.xlane.f32.xlu0 %v3801_v54 }
0x1277   :  { %3555 = vadd.xlane.f32.xlu1 %v3554_v24 }
0x1278   :  { %3866 = vadd.xlane.f32.xlu0 %v3865_v3 }
0x127b   :  { %3805 = vadd.xlane.f32.xlu1 %v3804_v31  ;;  %v7635_v31 = vld [vmem:[%s7946_s2] sm:$0xff] }
0x127c   :  { %3930 = vadd.xlane.f32.xlu0 %v3929_v38 }
0x127f   :  { %3811 = vadd.xlane.f32.xlu1 %v3810_v21  ;;  %v7647_v21 = vld [vmem:[%s7946_s2 + $0x18] sm:$0xff] }
0x1280   :  { %3552 = vadd.xlane.f32.xlu0 %v3551_v61 }
0x1283   :  { %3869 = vadd.xlane.f32.xlu1 %v3868_v7  ;;  %v7653_v7 = vld [vmem:[%s7946_s2 + $0x10] sm:$0xff] }
0x1284   :  { %3558 = vadd.xlane.f32.xlu0 %v3557_v46 }
0x1287   :  { %3875 = vadd.xlane.f32.xlu1 %v3874_v44 }
0x1288   :  { %3808 = vadd.xlane.f32.xlu0 %v3807_v10  ;;  %v7659_v10 = vld [vmem:[%s7946_s2 + $0x20] sm:$0xff] }
0x128b   :  { %3933 = vadd.xlane.f32.xlu1 %v3932_v51 }
0x128c   :  { %3814 = vadd.xlane.f32.xlu0 %v3813_v47 }
0x128f   :  { %3939 = vadd.xlane.f32.xlu1 %v3938_v37 }
0x1290   :  { %3872 = vadd.xlane.f32.xlu0 %v3871_v25 }
0x1294   :  { %3878 = vadd.xlane.f32.xlu0 %v3877_v41 }
0x1297   :  { %v3538_v8 = vpop.xlane.xlu0 %3537 }
0x1298   :  { %3936 = vadd.xlane.f32.xlu0 %v3935_v39  ;;  %v3560_v28 = vmul.f32 %v7635_v31, %v3538_v8 }
0x129c   :  { %3942 = vadd.xlane.f32.xlu0 %v3941_v35  ;;  %v3541_v5 = vpop.xlane.xlu1 %3540 }
0x129d   :  { %v3561_v13 = vmul.f32 %v7641_v52, %v3541_v5 }
0x12a0   :  { %v3794_v3 = vpop.xlane.xlu1 %3793 }
0x12a1   :  { %v3816_v58 = vmul.f32 %v7653_v7, %v3794_v3 }
0x12c2   :  { %v3611_v9 = vpop.f32.mrb[56].mxu0 }
0x12c3   :  { %v5094_v36 = vpop.f32.mrb[57].mxu0  ;;  %v3612_v61 = vadd.f32 %v3611_v9, %v3560_v28 }
0x12c4   :  { %v3614_v49 = vpop.f32.mrb[58].mxu0 }
0x12c5   :  { %v5095_v54 = vpop.f32.mrb[59].mxu0  ;;  %v3615_v19 = vadd.f32 %v3614_v49, %v3561_v13  ;;  %v3824_v47 = vadd.f32 %v3816_v58, %v3612_v61 }
0x12ec   :  { %v3800_v32 = vpop.xlane.xlu1 %3799 }
0x12ed   :  { %v3544_v24 = vpop.xlane.xlu0 %3543 }
0x12f0   :  { %v3858_v38 = vpop.xlane.xlu1 %3857 }
0x12f1   :  { %v3797_v0 = vpop.xlane.xlu0 %3796  ;;  %v3880_v44 = vmul.f32 %v7659_v10, %v3858_v38 }
0x12f2   :  { %v3817_v42 = vmul.f32 %v7647_v21, %v3797_v0 }
0x12f3   :  { %v3888_v25 = vadd.f32 %v3880_v44, %v3824_v47 }
0x12f4   :  { %v3864_v46 = vpop.xlane.xlu1 %3863  ;;  %v3825_v51 = vadd.f32 %v3817_v42, %v3615_v19 }
0x12f5   :  { %v3861_v53 = vpop.xlane.xlu0 %3860 }
0x12f6   :  { %v3881_v4 = vmul.f32 %v7665_v6, %v3861_v53 }
0x12f8   :  { %v3922_v12 = vpop.xlane.xlu1 %3921  ;;  %v3889_v37 = vadd.f32 %v3881_v4, %v3825_v51 }
0x12f9   :  { %v3925_v23 = vpop.xlane.xlu0 %3924  ;;  %v3944_v39 = vmul.f32 %v7677_v22, %v3922_v12 }
0x12fa   :  { %v3945_v41 = vmul.f32 %v7671_v16, %v3925_v23 }
0x12fb   :  { %v3952_v35 = vadd.f32 %v3944_v39, %v3888_v25  ;;  %v3562_v25 = vmul.f32 %v7635_v31, %v3544_v24  ;;  %v3818_v39 = vmul.f32 %v7653_v7, %v3800_v32 }
0x12fc   :  { %v3953_v48 = vadd.f32 %v3945_v41, %v3889_v37  ;;  %v3928_v38 = vpop.xlane.xlu1 %3927 }
0x12fd   :  { %v3547_v9 = vpop.xlane.xlu0 %3546  ;;  %v3960_v49 = vmul.f32 0.35355338, %v3952_v35  ;;  %v3946_v24 = vmul.f32 %v7677_v22, %v3928_v38 }
0x12fe   :  { %v3961_v36 = vmul.f32 0.35355338, %v3953_v48  ;;  %v3563_v48 = vmul.f32 %v7641_v52, %v3547_v9 }
0x12ff   :  { %v7686_v5 = vsel %vm167_vm5, %v3960_v49, -1e+30  ;;  %v3882_v49 = vmul.f32 %v7659_v10, %v3864_v46 }
0x1300   :  { %v7682_v54 = vsel %vm168_vm3, %v3961_v36, -1e+30  ;;  %v3976_v0 = vsel %vm752_vm4, %v7686_v5, -inf  ;;  %v3550_v61 = vpop.xlane.xlu1 %3549 }
0x1301   :  { %v3803_v8 = vpop.xlane.xlu0 %3802  ;;  %v3979_v3 = vsel %vm752_vm4, %v7682_v54, -inf  ;;  %3977 = vmax.xlane.f32.xlu1 %v3976_v0  ;;  %v3564_v15 = vmul.f32 %v7635_v31, %v3550_v61 }
0x1302   :  { %3980 = vmax.xlane.f32.xlu0 %v3979_v3  ;;  %v3819_v0 = vmul.f32 %v7647_v21, %v3803_v8 }
0x1304   :  { %v3556_v53 = vpop.xlane.xlu1 %3555 }
0x1305   :  { %v3867_v28 = vpop.xlane.xlu0 %3866  ;;  %v3566_v61 = vmul.f32 %v7635_v31, %v3556_v53 }
0x1306   :  { %v3883_v1 = vmul.f32 %v7665_v6, %v3867_v28 }
0x1308   :  { %v3806_v19 = vpop.xlane.xlu1 %3805 }
0x1309   :  { %v3931_v13 = vpop.xlane.xlu0 %3930  ;;  %v3820_v32 = vmul.f32 %v7653_v7, %v3806_v19 }
0x130c   :  { %v3812_v4 = vpop.xlane.xlu1 %3811 }
0x130d   :  { %v3553_v42 = vpop.xlane.xlu0 %3552 }
0x1310   :  { %v3870_v51 = vpop.xlane.xlu1 %3869 }
0x1311   :  { %v3559_v58 = vpop.xlane.xlu0 %3558 }
0x1314   :  { %v3876_v12 = vpop.xlane.xlu1 %3875 }
0x1315   :  { %v3809_v44 = vpop.xlane.xlu0 %3808 }
0x1316   :  { %v3821_v38 = vmul.f32 %v7647_v21, %v3809_v44 }
0x1318   :  { %v3934_v26 = vpop.xlane.xlu1 %3933 }
0x1319   :  { %v3815_v47 = vpop.xlane.xlu0 %3814 }
0x131d   :  { %v3873_v23 = vpop.xlane.xlu0 %3872 }
0x1321   :  { %v3879_v37 = vpop.xlane.xlu0 %3878 }
0x132d   :  { %v3661_v41 = vpop.f32.mrb[56].mxu1 }
0x132e   :  { %v3662_v35 = vadd.f32 %v3661_v41, %v3562_v25  ;;  %v5100_v36 = vpop.f32.mrb[57].mxu1  ;;  %v3565_v25 = vmul.f32 %v7641_v52, %v3553_v42  ;;  %v3937_v41 = vpop.xlane.xlu0 %3936  ;;  %v3822_v42 = vmul.f32 %v7653_v7, %v3812_v4 }
0x132f   :  { %v3664_v3 = vpop.f32.mrb[58].mxu1 }
0x1330   :  { %v3826_v45 = vadd.f32 %v3818_v39, %v3662_v35  ;;  %v3665_v40 = vadd.f32 %v3664_v3, %v3563_v48  ;;  %v5101_v60 = vpop.f32.mrb[59].mxu1  ;;  %v3947_v39 = vmul.f32 %v7671_v16, %v3931_v13  ;;  %v3940_v13 = vpop.xlane.xlu1 %3939 }
0x1331   :  { %v3711_v9 = vpop.f32.mrb[60].mxu0  ;;  %v3884_v60 = vmul.f32 %v7659_v10, %v3870_v51 }
0x1332   :  { %v3890_v46 = vadd.f32 %v3882_v49, %v3826_v45  ;;  %v3827_v36 = vadd.f32 %v3819_v0, %v3665_v40  ;;  %v3712_v43 = vadd.f32 %v3711_v9, %v3564_v15  ;;  %v5106_v8 = vpop.f32.mrb[61].mxu0  ;;  %v3567_v40 = vmul.f32 %v7641_v52, %v3559_v58  ;;  %v3943_v58 = vpop.xlane.xlu0 %3942 }
0x1333   :  { %v3714_v48 = vpop.f32.mrb[62].mxu0  ;;  %v3886_v45 = vmul.f32 %v7659_v10, %v3876_v12  ;;  %v3885_v15 = vmul.f32 %v7665_v6, %v3873_v23  ;;  %v3950_v8 = vmul.f32 %v7677_v22, %v3940_v13 }
0x1334   :  { %v3891_v28 = vadd.f32 %v3883_v1, %v3827_v36  ;;  %v3828_v35 = vadd.f32 %v3820_v32, %v3712_v43  ;;  %v3715_v19 = vadd.f32 %v3714_v48, %v3565_v25  ;;  %v5107_v3 = vpop.f32.mrb[63].mxu0  ;;  %v3954_v55 = vadd.f32 %v3946_v24, %v3890_v46 }
0x1335   :  { %v3761_v53 = vpop.f32.mrb[60].mxu1  ;;  %v3823_v1 = vmul.f32 %v7647_v21, %v3815_v47  ;;  %v3948_v43 = vmul.f32 %v7677_v22, %v3934_v26  ;;  %v3949_v24 = vmul.f32 %v7671_v16, %v3937_v41  ;;  %v3887_v26 = vmul.f32 %v7665_v6, %v3879_v37 }
0x1336   :  { %v3892_v49 = vadd.f32 %v3884_v60, %v3828_v35  ;;  %v3829_v51 = vadd.f32 %v3821_v38, %v3715_v19  ;;  %v3762_v0 = vadd.f32 %v3761_v53, %v3566_v61  ;;  %v5112_v44 = vpop.f32.mrb[61].mxu1  ;;  %v3962_v9 = vmul.f32 0.35355338, %v3954_v55 }
0x1337   :  { %v3764_v4 = vpop.f32.mrb[62].mxu1  ;;  %v3955_v32 = vadd.f32 %v3947_v39, %v3891_v28  ;;  %v3951_v38 = vmul.f32 %v7671_v16, %v3943_v58 }
0x1338   :  { %v3893_v25 = vadd.f32 %v3885_v15, %v3829_v51  ;;  %v3830_v12 = vadd.f32 %v3822_v42, %v3762_v0  ;;  %v3765_v46 = vadd.f32 %v3764_v4, %v3567_v40  ;;  %v5113_v23 = vpop.f32.mrb[63].mxu1  ;;  %v3970_v36 = vsel %vm167_vm5, %v3962_v9, -1e+30 }
0x1339   :  { %v3982_v55 = vsel %vm752_vm4, %v3970_v36, -inf  ;;  %v3963_v61 = vmul.f32 0.35355338, %v3955_v32  ;;  %v3956_v47 = vadd.f32 %v3948_v43, %v3892_v49 }
0x133a   :  { %v3894_v60 = vadd.f32 %v3886_v45, %v3830_v12  ;;  %v3831_v41 = vadd.f32 %v3823_v1, %v3765_v46  ;;  %3983 = vmax.xlane.f32.xlu1 %v3982_v55  ;;  %v3957_v39 = vadd.f32 %v3949_v24, %v3893_v25 }
0x133b   :  { %v3971_v48 = vsel %vm168_vm3, %v3963_v61, -1e+30  ;;  %v3964_v28 = vmul.f32 0.35355338, %v3956_v47 }
0x133c   :  { %v3895_v35 = vadd.f32 %v3887_v26, %v3831_v41  ;;  %v3985_v19 = vsel %vm752_vm4, %v3971_v48, -inf  ;;  %v3965_v3 = vmul.f32 0.35355338, %v3957_v39  ;;  %v3958_v42 = vadd.f32 %v3950_v8, %v3894_v60 }
0x133d   :  { %3986 = vmax.xlane.f32.xlu0 %v3985_v19  ;;  %v3972_v40 = vsel %vm167_vm5, %v3964_v28, -1e+30 }
0x133e   :  { %v3988_v37 = vsel %vm752_vm4, %v3972_v40, -inf  ;;  %v3973_v45 = vsel %vm168_vm3, %v3965_v3, -1e+30  ;;  %v3966_v15 = vmul.f32 0.35355338, %v3958_v42  ;;  %v3959_v53 = vadd.f32 %v3951_v38, %v3895_v35 }
0x133f   :  { %3989 = vmax.xlane.f32.xlu1 %v3988_v37  ;;  %v3991_v13 = vsel %vm752_vm4, %v3973_v45, -inf }
0x1340   :  { %v3974_v49 = vsel %vm167_vm5, %v3966_v15, -1e+30  ;;  %v3967_v51 = vmul.f32 0.35355338, %v3959_v53 }
0x1341   :  { %3992 = vmax.xlane.f32.xlu0 %v3991_v13  ;;  %v3994_v0 = vsel %vm752_vm4, %v3974_v49, -inf }
0x1342   :  { %v3975_v44 = vsel %vm168_vm3, %v3967_v51, -1e+30 }
0x1343   :  { %3995 = vmax.xlane.f32.xlu1 %v3994_v0  ;;  %v3997_v9 = vsel %vm752_vm4, %v3975_v44, -inf }
0x1345   :  { %3998 = vmax.xlane.f32.xlu0 %v3997_v9 }
0x1354   :  { %4108 = vrot.lane.b32.xlu1 %v7424_v63, %s5571_s23 }
0x138e   :  { %v3978_v43 = vpop.xlane.xlu1 %3977 }
0x138f   :  { %v3981_v1 = vpop.xlane.xlu0 %3980  ;;  %v4000_v50 = vsub.f32 %v7686_v5, %v3978_v43 }
0x1390   :  { %v4001_v24 = vsub.f32 %v7682_v54, %v3981_v1 }
0x1391   :  { %v4008_v32 = vmul.f32 1.442695, %v4000_v50 }
0x1392   :  { %v4010_v4 = vmul.f32 1.442695, %v4001_v24 }
0x1394   :  { %5301 = vpow2.f32 %v4010_v4 }
0x1395   :  { %5303 = vpow2.f32 %v4008_v32 }
0x139e   :  { %v5302_v58 = vpop.eup %5301 }
0x139f   :  { %v5304_v62 = vpop.eup %5303  ;;  %v4027_v25 = vsel %vm752_vm4, %v5302_v58, 0.0 }
0x13a0   :  { %v4024_v12 = vsel %vm752_vm4, %v5304_v62, 0.0  ;;  %4028 = vadd.xlane.f32.xlu0 %v4027_v25 }
0x13a1   :  { %4025 = vadd.xlane.f32.xlu1 %v4024_v12 }
0x13c7   :  { %v3984_v46 = vpop.xlane.xlu1 %3983 }
0x13c8   :  { %v4002_v63 = vsub.f32 %v3970_v36, %v3984_v46 }
0x13ca   :  { %v4012_v23 = vmul.f32 1.442695, %v4002_v63  ;;  %v3987_v8 = vpop.xlane.xlu0 %3986 }
0x13cb   :  { %v4003_v55 = vsub.f32 %v3971_v48, %v3987_v8 }
0x13cc   :  { %5305 = vpow2.f32 %v4012_v23  ;;  %v3990_v54 = vpop.xlane.xlu1 %3989 }
0x13cd   :  { %v4014_v5 = vmul.f32 1.442695, %v4003_v55  ;;  %v4004_v61 = vsub.f32 %v3972_v40, %v3990_v54 }
0x13ce   :  { %v3993_v47 = vpop.xlane.xlu0 %3992 }
0x13cf   :  { %5307 = vpow2.f32 %v4014_v5  ;;  %v4016_v26 = vmul.f32 1.442695, %v4004_v61  ;;  %v4005_v60 = vsub.f32 %v3973_v45, %v3993_v47 }
0x13d0   :  { %v3996_v41 = vpop.xlane.xlu1 %3995 }
0x13d1   :  { %5309 = vpow2.f32 %v4016_v26  ;;  %v4018_v39 = vmul.f32 1.442695, %v4005_v60  ;;  %v4006_v38 = vsub.f32 %v3974_v49, %v3996_v41 }
0x13d2   :  { %v3999_v28 = vpop.xlane.xlu0 %3998 }
0x13d3   :  { %5311 = vpow2.f32 %v4018_v39  ;;  %v4020_v35 = vmul.f32 1.442695, %v4006_v38  ;;  %v4007_v19 = vsub.f32 %v3975_v44, %v3999_v28 }
0x13d4   :  { %v4109_v36 = vpop.permute.xlu1 %4108 }
0x13d5   :  { %5313 = vpow2.f32 %v4020_v35  ;;  %v4022_v3 = vmul.f32 1.442695, %v4007_v19  ;;  %5115 = vmatpush3.bf16.msra.mxu0 %v4109_v36 }
0x13d6   :  { %v5306_v48 = vpop.eup %5305  ;;  %5126 = vmatprep.subr.bf16.mxu0 %v8043_v29 }
0x13d7   :  { %5315 = vpow2.f32 %v4022_v3  ;;  %v4030_v42 = vsel %vm752_vm4, %v5306_v48, 0.0 }
0x13d8   :  { %4031 = vadd.xlane.f32.xlu1 %v4030_v42 }
0x13d9   :  { %v5308_v40 = vpop.eup %5307 }
0x13da   :  { %v4033_v37 = vsel %vm752_vm4, %v5308_v40, 0.0 }
0x13db   :  { %v5310_v45 = vpop.eup %5309  ;;  %4034 = vadd.xlane.f32.xlu0 %v4033_v37 }
0x13dc   :  { %v4036_v15 = vsel %vm752_vm4, %v5310_v45, 0.0 }
0x13dd   :  { %v5312_v53 = vpop.eup %5311  ;;  %4037 = vadd.xlane.f32.xlu1 %v4036_v15 }
0x13de   :  { %v4039_v13 = vsel %vm752_vm4, %v5312_v53, 0.0 }
0x13df   :  { %v7745_v49 = vpop.eup %5313  ;;  %4040 = vadd.xlane.f32.xlu0 %v4039_v13 }
0x13e0   :  { %v4042_v51 = vsel %vm752_vm4, %v7745_v49, 0.0 }
0x13e1   :  { %v7749_v0 = vpop.eup %5315  ;;  %4043 = vadd.xlane.f32.xlu1 %v4042_v51 }
0x13e2   :  { %v4045_v44 = vsel %vm752_vm4, %v7749_v0, 0.0 }
0x13e3   :  { %4046 = vadd.xlane.f32.xlu0 %v4045_v44 }
0x13f2   :  { %4202 = vrot.lane.b32.xlu1 %v7444_v18, %s5571_s23 }
0x13f6   :  { %4249 = vrot.lane.b32.xlu1 %v7454_v20, %s5571_s23 }
0x13f9   :  { %4155 = vrot.lane.b32.xlu0 %v7434_v33, %s5571_s23 }
0x142d   :  { %v4029_v9 = vpop.xlane.xlu0 %4028 }
0x142e   :  { %v4026_v1 = vpop.xlane.xlu1 %4025  ;;  %5317 = vrcp.f32 %v4029_v9 }
0x142f   :  { %5319 = vrcp.f32 %v4026_v1 }
0x1438   :  { %v5318_v43 = vpop.eup %5317 }
0x1439   :  { %v5320_v24 = vpop.eup %5319  ;;  %v7759_v50 = vmul.f32 %v5318_v43, %v5302_v58 }
0x143a   :  { %v7761_v4 = vmul.f32 %v5320_v24, %v5304_v62 }
0x143c   :  { %v4064_v32 = vpack.c.bf16 %v7759_v50, %v7761_v4 }
0x143e   :  { %5117 = vmatmul.mubr.msk.bf16.vlgmr.msra.gmra.mrb[64].mxu0 %vm752_vm4, %v4064_v32 }
0x143f   :  { %5128 = vmatprep.mubr.msk.bf16.mxu0 %vm5581_vm0, %v8043_v29 }
0x1465   :  { %v4032_v18 = vpop.xlane.xlu1 %4031 }
0x1466   :  { %5321 = vrcp.f32 %v4032_v18 }
0x1468   :  { %v4035_v33 = vpop.xlane.xlu0 %4034 }
0x1469   :  { %5323 = vrcp.f32 %v4035_v33 }
0x146a   :  { %v4038_v20 = vpop.xlane.xlu1 %4037 }
0x146b   :  { %5325 = vrcp.f32 %v4038_v20 }
0x146c   :  { %v4041_v25 = vpop.xlane.xlu0 %4040 }
0x146d   :  { %5327 = vrcp.f32 %v4041_v25 }
0x146e   :  { %v4044_v58 = vpop.xlane.xlu1 %4043 }
0x146f   :  { %5329 = vrcp.f32 %v4044_v58 }
0x1470   :  { %v5322_v62 = vpop.eup %5321  ;;  %v4047_v12 = vpop.xlane.xlu0 %4046 }
0x1471   :  { %v4058_v46 = vmul.f32 %v5322_v62, %v5306_v48  ;;  %5331 = vrcp.f32 %v4047_v12 }
0x1472   :  { %v4203_v63 = vpop.permute.xlu1 %4202 }
0x1473   :  { %v5324_v23 = vpop.eup %5323  ;;  %5127 = vmatpush3.bf16.msra.mxu0 %v4203_v63  ;;  %v4298_v8 = vmul.f32 %v7653_v7, %v4058_v46  ;;  %v4070_v55 = vmul.f32 %v7635_v31, %v4058_v46  ;;  %v4346_v3 = vmul.f32 %v7659_v10, %v4058_v46  ;;  %v4394_v43 = vmul.f32 %v7677_v22, %v4058_v46 }
0x1474   :  { %v7770_v54 = vmul.f32 %v5324_v23, %v5308_v40  ;;  %v4156_v5 = vpop.permute.xlu0 %4155  ;;  %5138 = vmatprep.subr.bf16.mxu0 %v8043_v29 }
0x1475   :  { %v5326_v61 = vpop.eup %5325  ;;  %5121 = vmatpush3.bf16.msra.mxu1 %v4156_v5  ;;  %v4310_v47 = vsel %vm752_vm4, %v4298_v8, 0.0  ;;  %v4082_v26 = vsel %vm752_vm4, %v4070_v55, 0.0  ;;  %v4358_v13 = vsel %vm752_vm4, %v4346_v3, 0.0  ;;  %v4406_v32 = vsel %vm752_vm4, %v4394_v43, 0.0 }
0x1476   :  { %v4060_v60 = vmul.f32 %v5326_v61, %v5310_v45  ;;  %4311 = vadd.xlane.f32.xlu1 %v4310_v47  ;;  %4083 = vadd.xlane.f32.xlu0 %v4082_v26  ;;  %v4065_v41 = vpack.c.bf16 %v7770_v54, %v4058_v46  ;;  %v4250_v28 = vpop.permute.xlu1 %4249  ;;  %v4299_v1 = vmul.f32 %v7647_v21, %v7770_v54 }
0x1477   :  { %v5328_v39 = vpop.eup %5327  ;;  %5132 = vmatprep.subr.bf16.mxu1 %v8043_v29  ;;  %v4347_v20 = vmul.f32 %v7665_v6, %v7770_v54  ;;  %v4071_v62 = vmul.f32 %v7641_v52, %v7770_v54  ;;  %v4395_v8 = vmul.f32 %v7671_v16, %v7770_v54  ;;  %v4068_v3 = vmul.f32 %v7635_v31, %v7761_v4 }
0x1478   :  { %v4061_v38 = vmul.f32 %v5328_v39, %v5312_v53  ;;  %5123 = vmatmul.mubr.msk.bf16.vlgmr.msra.gmra.mrb[64].mxu1 %vm752_vm4, %v4065_v41  ;;  %v4300_v35 = vmul.f32 %v7653_v7, %v4060_v60  ;;  %v4072_v19 = vmul.f32 %v7635_v31, %v4060_v60  ;;  %v4348_v9 = vmul.f32 %v7659_v10, %v4060_v60 }
0x1479   :  { %v5330_v36 = vpop.eup %5329  ;;  %5133 = vmatpush3.bf16.msra.mxu1 %v4250_v28  ;;  %5134 = vmatprep.mubr.msk.bf16.mxu1 %vm5581_vm0, %v8043_v29  ;;  %v4396_v33 = vmul.f32 %v7677_v22, %v4060_v60  ;;  %v4361_v58 = vsel %vm752_vm4, %v4347_v20, 0.0  ;;  %v4085_v46 = vsel %vm752_vm4, %v4071_v62, 0.0  ;;  %v4409_v5 = vsel %vm752_vm4, %v4395_v8, 0.0 }
0x147a   :  { %v4316_v48 = vsel %vm752_vm4, %v4300_v35, 0.0  ;;  %v4088_v42 = vsel %vm752_vm4, %v4072_v19, 0.0  ;;  %v4066_v40 = vpack.c.bf16 %v4061_v38, %v4060_v60  ;;  %5144 = vmatprep.subr.bf16.mxu1 %v8043_v29  ;;  %v4073_v45 = vmul.f32 %v7641_v52, %v4061_v38 }
0x147b   :  { %v5332_v37 = vpop.eup %5331  ;;  %4317 = vadd.xlane.f32.xlu1 %v4316_v48  ;;  %4089 = vadd.xlane.f32.xlu0 %v4088_v42  ;;  %v4062_v15 = vmul.f32 %v5330_v36, %v7745_v49  ;;  %v4364_v49 = vsel %vm752_vm4, %v4348_v9, 0.0  ;;  %v4301_v24 = vmul.f32 %v7647_v21, %v4061_v38  ;;  %v4412_v25 = vsel %vm752_vm4, %v4396_v33, 0.0 }
0x147c   :  { %v7789_v53 = vmul.f32 %v5332_v37, %v7749_v0  ;;  %5129 = vmatmul.mubr.msk.bf16.vlgmr.msra.gmra.mrb[68].mxu0 %vm752_vm4, %v4066_v40  ;;  %v4091_v51 = vsel %vm752_vm4, %v4073_v45, 0.0  ;;  %v4313_v0 = vsel %vm752_vm4, %v4299_v1, 0.0  ;;  %v4349_v12 = vmul.f32 %v7665_v6, %v4061_v38 }
0x147d   :  { %5140 = vmatprep.mubr.msk.bf16.mxu0 %vm5581_vm0, %v8043_v29  ;;  %v4319_v18 = vsel %vm752_vm4, %v4301_v24, 0.0  ;;  %v4074_v23 = vmul.f32 %v7635_v31, %v4062_v15  ;;  %v4302_v61 = vmul.f32 %v7653_v7, %v4062_v15  ;;  %v4397_v47 = vmul.f32 %v7671_v16, %v4061_v38 }
0x147e   :  { %v4067_v44 = vpack.c.bf16 %v7789_v53, %v4062_v15  ;;  %v4367_v63 = vsel %vm752_vm4, %v4349_v12, 0.0  ;;  %v4350_v41 = vmul.f32 %v7659_v10, %v4062_v15  ;;  %v4075_v54 = vmul.f32 %v7641_v52, %v7789_v53 }
0x147f   :  { %4359 = vadd.xlane.f32.xlu1 %v4358_v13  ;;  %4092 = vadd.xlane.f32.xlu0 %v4091_v51  ;;  %v4094_v55 = vsel %vm752_vm4, %v4074_v23, 0.0  ;;  %v4322_v26 = vsel %vm752_vm4, %v4302_v61, 0.0  ;;  %v4415_v60 = vsel %vm752_vm4, %v4397_v47, 0.0  ;;  %v4398_v35 = vmul.f32 %v7677_v22, %v4062_v15 }
0x1480   :  { %5135 = vmatmul.mubr.msk.bf16.vlgmr.msra.gmra.mrb[68].mxu1 %vm752_vm4, %v4067_v44  ;;  %v4370_v39 = vsel %vm752_vm4, %v4350_v41, 0.0  ;;  %v4097_v28 = vsel %vm752_vm4, %v4075_v54, 0.0  ;;  %v4303_v38 = vmul.f32 %v7647_v21, %v7789_v53  ;;  %v4351_v48 = vmul.f32 %v7665_v6, %v7789_v53 }
0x1481   :  { %5148 = vmatprep.mubr.msk.bf16.mxu1 %vm5581_vm0, %v8043_v29  ;;  %v4418_v19 = vsel %vm752_vm4, %v4398_v35, 0.0  ;;  %v4076_v42 = vsel %vm752_vm4, %v4068_v3, 0.0  ;;  %v4296_v37 = vmul.f32 %v7653_v7, %v7761_v4  ;;  %v4399_v45 = vmul.f32 %v7671_v16, %v7789_v53 }
0x1482   :  { %v4325_v36 = vsel %vm752_vm4, %v4303_v38, 0.0  ;;  %v4373_v40 = vsel %vm752_vm4, %v4351_v48, 0.0  ;;  %v4344_v13 = vmul.f32 %v7659_v10, %v7761_v4  ;;  %v4069_v51 = vmul.f32 %v7641_v52, %v7759_v50 }
0x1483   :  { %4365 = vadd.xlane.f32.xlu1 %v4364_v49  ;;  %4314 = vadd.xlane.f32.xlu0 %v4313_v0  ;;  %v4304_v15 = vsel %vm752_vm4, %v4296_v37, 0.0  ;;  %v4421_v31 = vsel %vm752_vm4, %v4399_v45, 0.0  ;;  %v4392_v53 = vmul.f32 %v7677_v22, %v7761_v4  ;;  %v4297_v9 = vmul.f32 %v7647_v21, %v7759_v50 }
0x1484   :  { %v4352_v44 = vsel %vm752_vm4, %v4344_v13, 0.0  ;;  %v4079_v7 = vsel %vm752_vm4, %v4069_v51, 0.0  ;;  %v4345_v52 = vmul.f32 %v7665_v6, %v7759_v50  ;;  %v4393_v0 = vmul.f32 %v7671_v16, %v7759_v50 }
0x1485   :  { %v4400_v1 = vsel %vm752_vm4, %v4392_v53, 0.0  ;;  %v4307_v10 = vsel %vm752_vm4, %v4297_v9, 0.0 }
0x1486   :  { %v4355_v49 = vsel %vm752_vm4, %v4345_v52, 0.0  ;;  %v4403_v22 = vsel %vm752_vm4, %v4393_v0, 0.0 }
0x1487   :  { %4407 = vadd.xlane.f32.xlu1 %v4406_v32  ;;  %4320 = vadd.xlane.f32.xlu0 %v4319_v18 }
0x148b   :  { %4413 = vadd.xlane.f32.xlu1 %v4412_v25  ;;  %4362 = vadd.xlane.f32.xlu0 %v4361_v58 }
0x148f   :  { %4086 = vadd.xlane.f32.xlu1 %v4085_v46  ;;  %4368 = vadd.xlane.f32.xlu0 %v4367_v63 }
0x1493   :  { %4095 = vadd.xlane.f32.xlu1 %v4094_v55  ;;  %4410 = vadd.xlane.f32.xlu0 %v4409_v5 }
0x1497   :  { %4323 = vadd.xlane.f32.xlu1 %v4322_v26  ;;  %4416 = vadd.xlane.f32.xlu0 %v4415_v60 }
0x149b   :  { %4371 = vadd.xlane.f32.xlu1 %v4370_v39  ;;  %4098 = vadd.xlane.f32.xlu0 %v4097_v28 }
0x149f   :  { %4419 = vadd.xlane.f32.xlu1 %v4418_v19  ;;  %4326 = vadd.xlane.f32.xlu0 %v4325_v36 }
0x14a3   :  { %4077 = vadd.xlane.f32.xlu1 %v4076_v42  ;;  %4374 = vadd.xlane.f32.xlu0 %v4373_v40 }
0x14a7   :  { %4305 = vadd.xlane.f32.xlu1 %v4304_v15  ;;  %4422 = vadd.xlane.f32.xlu0 %v4421_v31 }
0x14ab   :  { %4353 = vadd.xlane.f32.xlu1 %v4352_v44  ;;  %4080 = vadd.xlane.f32.xlu0 %v4079_v7 }
0x14af   :  { %4401 = vadd.xlane.f32.xlu1 %v4400_v1  ;;  %4308 = vadd.xlane.f32.xlu0 %v4307_v10 }
0x14b3   :  { %4356 = vadd.xlane.f32.xlu0 %v4355_v49 }
0x14b7   :  { %4404 = vadd.xlane.f32.xlu0 %v4403_v22 }
0x1503   :  { %v4084_v21 = vpop.xlane.xlu0 %4083  ;;  %v4312_v6 = vpop.xlane.xlu1 %4311 }
0x1504   :  { %v4102_v26 = vmul.f32 %v4084_v21, %v7491_v56  ;;  %v4330_v41 = vmul.f32 %v4312_v6, %v7494_v17 }
0x1508   :  { %v4090_v18 = vpop.xlane.xlu0 %4089  ;;  %v4318_v20 = vpop.xlane.xlu1 %4317 }
0x1509   :  { %v4104_v35 = vmul.f32 %v4090_v18, %v7545_v27  ;;  %v4332_v37 = vmul.f32 %v4318_v20, %v7564_v59 }
0x150c   :  { %v4093_v33 = vpop.xlane.xlu0 %4092  ;;  %v4360_v58 = vpop.xlane.xlu1 %4359 }
0x150d   :  { %v4378_v36 = vmul.f32 %v4360_v58, %v7515_v2  ;;  %v4105_v45 = vmul.f32 %v4093_v33, %v7545_v27 }
0x1510   :  { %v4315_v25 = vpop.xlane.xlu0 %4314  ;;  %v4366_v12 = vpop.xlane.xlu1 %4365 }
0x1511   :  { %v7868_v4 = vpop.f32.mrb[64].mxu0  ;;  %v4331_v3 = vmul.f32 %v4315_v25, %v7494_v17  ;;  %v4380_v9 = vmul.f32 %v4366_v12, %v7580_v57 }
0x1512   :  { %v5118_v43 = vpop.f32.mrb[65].mxu0 }
0x1513   :  { %v7870_v24 = vpop.f32.mrb[66].mxu0 }
0x1514   :  { %v5119_v32 = vpop.f32.mrb[67].mxu0  ;;  %v4321_v62 = vpop.xlane.xlu0 %4320 }
0x1515   :  { %v4408_v50 = vpop.xlane.xlu1 %4407  ;;  %v4333_v17 = vmul.f32 %v4321_v62, %v7564_v59  ;;  %v8103_v62 = vld [vmem:[#allocation22_spill] sm:$0xff] }
0x1516   :  { %v4426_v15 = vmul.f32 %v4408_v50, %v7537_v30 }
0x1518   :  { %v4363_v16 = vpop.xlane.xlu0 %4362 }
0x1519   :  { %v4414_v63 = vpop.xlane.xlu1 %4413  ;;  %v4379_v13 = vmul.f32 %v4363_v16, %v7515_v2 }
0x151a   :  { %v4428_v2 = vmul.f32 %v4414_v63, %v7598_v14 }
0x151c   :  { %v4369_v46 = vpop.xlane.xlu0 %4368 }
0x151d   :  { %v4087_v8 = vpop.xlane.xlu1 %4086  ;;  %v4381_v43 = vmul.f32 %v4369_v46, %v7580_v57 }
0x151e   :  { %v4103_v54 = vmul.f32 %v4087_v8, %v7491_v56 }
0x1520   :  { %v4411_v23 = vpop.xlane.xlu0 %4410 }
0x1521   :  { %v4096_v5 = vpop.xlane.xlu1 %4095  ;;  %v4427_v10 = vmul.f32 %v4411_v23, %v7537_v30 }
0x1522   :  { %v4106_v1 = vmul.f32 %v4096_v5, %v7555_v11 }
0x1524   :  { %v4417_v55 = vpop.xlane.xlu0 %4416 }
0x1525   :  { %v4324_v47 = vpop.xlane.xlu1 %4323  ;;  %v4429_v5 = vmul.f32 %v4417_v55, %v7598_v14  ;;  %v8105_v14 = vld [vmem:[#allocation27_spill] sm:$0xff] }
0x1526   :  { %v4334_v32 = vmul.f32 %v4324_v47, %v7573_v34  ;;  %v5199_v55 = vld [vmem:[#allocation11] sm:$0xff]  }
0x1527   :  { %5145 = vmatpush3.bf16.msra.mxu1 %v5199_v55 }
0x1528   :  { %v4099_v61 = vpop.xlane.xlu0 %4098  ;;  %5146 = vmatprep.subr.bf16.mxu1 %v8043_v29 }
0x1529   :  { %v4372_v56 = vpop.xlane.xlu1 %4371  ;;  %v4107_v18 = vmul.f32 %v4099_v61, %v7555_v11  ;;  %v8104_v61 = vld [vmem:[#allocation25_spill] sm:$0xff] }
0x152a   :  { %v4382_v12 = vmul.f32 %v4372_v56, %v8103_v62 }
0x152c   :  { %v4327_v38 = vpop.xlane.xlu0 %4326 }
0x152d   :  { %v4420_v16 = vpop.xlane.xlu1 %4419  ;;  %v4335_v50 = vmul.f32 %v4327_v38, %v7573_v34 }
0x152e   :  { %v4430_v47 = vmul.f32 %v4420_v16, %v8104_v61 }
0x1530   :  { %v4375_v6 = vpop.xlane.xlu0 %4374 }
0x154b   :  { %v4195_v60 = vpop.f32.mrb[64].mxu1 }
0x154c   :  { %v4196_v39 = vadd.f32 %v4195_v60, %v4102_v26  ;;  %v5124_v28 = vpop.f32.mrb[65].mxu1  ;;  %v4383_v26 = vmul.f32 %v4375_v6, %v8103_v62 }
0x154d   :  { %v4198_v19 = vpop.f32.mrb[66].mxu1 }
0x154e   :  { %v4338_v48 = vadd.f32 %v4330_v41, %v4196_v39  ;;  %v4199_v42 = vadd.f32 %v4198_v19, %v4103_v54  ;;  %v5125_v40 = vpop.f32.mrb[67].mxu1  ;;  %v4423_v54 = vpop.xlane.xlu0 %4422  ;;  %v8106_v19 = vld [vmem:[#allocation29_spill] sm:$0xff] }
0x154f   :  { %v4242_v31 = vpop.f32.mrb[68].mxu0 }
0x1550   :  { %v4386_v51 = vadd.f32 %v4378_v36, %v4338_v48  ;;  %v4339_v44 = vadd.f32 %v4331_v3, %v4199_v42  ;;  %v4243_v7 = vadd.f32 %v4242_v31, %v4104_v35  ;;  %v5130_v53 = vpop.f32.mrb[69].mxu0  ;;  %v4431_v35 = vmul.f32 %v4423_v54, %v8104_v61  ;;  %v4078_v36 = vpop.xlane.xlu1 %4077  ;;  %v5200_v61 = vld [vmem:[#allocation10] sm:$0xff]  }
0x1551   :  { %v4245_v52 = vpop.f32.mrb[70].mxu0 }
0x1552   :  { %v4387_v27 = vadd.f32 %v4379_v13, %v4339_v44  ;;  %v4340_v49 = vadd.f32 %v4332_v37, %v4243_v7  ;;  %v4246_v0 = vadd.f32 %v4245_v52, %v4105_v45  ;;  %v5131_v22 = vpop.f32.mrb[71].mxu0  ;;  %v4434_v21 = vadd.f32 %v4426_v15, %v4386_v51  ;;  %v4081_v3 = vpop.xlane.xlu0 %4080  ;;  %v8107_v15 = vld [vmem:[#allocation33_spill] sm:$0xff]  ;;  %v8108_v51 = vld [vmem:[#allocation31_spill] sm:$0xff] }
0x1553   :  { %v4289_v59 = vpop.f32.mrb[68].mxu1  ;;  %v4100_v56 = vmul.f32 %v4078_v36, %v8107_v15  ;;  %v4101_v7 = vmul.f32 %v4081_v3, %v8107_v15  ;;  %v5203_v36 = vld [vmem:[%s7957_s13] sm:$0xff]   ;;  %v5204_v3 = vld [vmem:[%s7957_s13 + $0x8] sm:$0xff]  }
0x1554   :  { %v4388_v33 = vadd.f32 %v4380_v9, %v4340_v49  ;;  %v4341_v20 = vadd.f32 %v4333_v17, %v4246_v0  ;;  %v4290_v25 = vadd.f32 %v4289_v59, %v4106_v1  ;;  %4442 = vrot.lane.b32.xlu1 %v4434_v21, %s5575_s17  ;;  %v5136_v30 = vpop.f32.mrb[69].mxu1  ;;  %v4435_v58 = vadd.f32 %v4427_v10, %v4387_v27  ;;  %v4306_v48 = vpop.xlane.xlu1 %4305  ;;  %v8109_v9 = vld [vmem:[#allocation32_spill] sm:$0xff]  ;;  %v8110_v0 = vld [vmem:[#allocation23_spill] sm:$0xff] }
0x1555   :  { %v4292_v63 = vpop.f32.mrb[70].mxu1  ;;  %v4328_v44 = vmul.f32 %v4306_v48, %v8108_v51  ;;  %v4149_v53 = vadd.f32 %v7868_v4, %v4100_v56  ;;  %v4152_v49 = vadd.f32 %v7870_v24, %v4101_v7 }
0x1556   :  { %v4389_v57 = vadd.f32 %v4381_v43, %v4341_v20  ;;  %v4342_v46 = vadd.f32 %v4334_v32, %v4290_v25  ;;  %v4293_v23 = vadd.f32 %v4292_v63, %v4107_v18  ;;  %4444 = vrot.lane.b32.xlu0 %v4435_v58, %s5575_s17  ;;  %v5137_v11 = vpop.f32.mrb[71].mxu1  ;;  %v4436_v8 = vadd.f32 %v4428_v2, %v4388_v33  ;;  %v4309_v42 = vpop.xlane.xlu0 %4308 }
0x1557   :  { %v4329_v1 = vmul.f32 %v4309_v42, %v8108_v51  ;;  %v4336_v27 = vadd.f32 %v4328_v44, %v4149_v53  ;;  %v4480_v11 = vld [vmem:[#allocation5] sm:$0x3]  ;;  %v4820_v42 = vld [vmem:[#allocation13] ss:$0 sm:$0xff] }
0x1558   :  { %v4390_v60 = vadd.f32 %v4382_v12, %v4342_v46  ;;  %v4343_v41 = vadd.f32 %v4335_v50, %v4293_v23  ;;  %4450 = vrot.lane.b32.xlu1 %v4436_v8, %s5567_s3  ;;  %v4437_v28 = vadd.f32 %v4429_v5, %v4389_v57  ;;  %v4354_v40 = vpop.xlane.xlu1 %4353  ;;  %v4481_v5 = vpack.c.bf16 %v4480_v11, %v4480_v11 }
0x1559   :  { %v4376_v17 = vmul.f32 %v4354_v40, %v8109_v9  ;;  %v4337_v43 = vadd.f32 %v4329_v1, %v4152_v49 }
0x155a   :  { %v4438_v34 = vadd.f32 %v4430_v47, %v4390_v60  ;;  %v4391_v39 = vadd.f32 %v4383_v26, %v4343_v41  ;;  %v4357_v37 = vpop.xlane.xlu0 %4356  ;;  %v5201_v47 = vld [vmem:[#allocation11 + $0x8] sm:$0xff]   ;;  %v5202_v26 = vld [vmem:[#allocation10 + $0x8] sm:$0xff]  }
0x155b   :  { %v4377_v21 = vmul.f32 %v4357_v37, %v8109_v9  ;;  %v4384_v2 = vadd.f32 %v4376_v17, %v4336_v27  ;;  %5147 = vmatpush3.bf16.msra.mxu1 %v5201_v47  ;;  %v4531_v60 = vld [vmem:[#allocation7] sm:$0x3]  ;;  %v4823_v9 = vld [vmem:[#allocation2] ss:$0 sm:$0xff] }
0x155c   :  { %4452 = vrot.lane.b32.xlu1 %v4437_v28, %s5567_s3  ;;  %4458 = vrot.lane.b32.xlu0 %v4438_v34, %s5586_s4  ;;  %v4439_v38 = vadd.f32 %v4431_v35, %v4391_v39  ;;  %v4402_v45 = vpop.xlane.xlu1 %4401  ;;  %v4532_v41 = vpack.c.bf16 %v4531_v60, %v4531_v60 }
0x155d   :  { %v4424_v22 = vmul.f32 %v4402_v45, %v8110_v0  ;;  %v4385_v59 = vadd.f32 %v4377_v21, %v4337_v43  ;;  %5160 = vmatprep.subr.bf16.mxu1 %v8043_v29  ;;  %v4821_v45 = vld [vmem:[#allocation14] ss:$0 sm:$0xff] }
0x155e   :  { %v4405_v31 = vpop.xlane.xlu0 %4404  ;;  %5149 = vmatmul.mubr.msk.bf16.vlgmr.msra.gmra.mrb[72].mxu1 %vm204_vm1, %v4532_v41 }
0x155f   :  { %v4425_v32 = vmul.f32 %v4405_v31, %v8110_v0  ;;  %v4432_v4 = vadd.f32 %v4424_v22, %v4384_v2  ;;  %5164 = vmatprep.mubr.msk.bf16.mxu1 %vm5581_vm0, %v8043_v29  ;;  %5161 = vmatpush3.bf16.msra.mxu1 %v5203_v36 }
0x1560   :  { %4470 = vrot.lane.b32.xlu0 %v8105_v14, %s5587_s30  ;;  %4460 = vrot.lane.b32.xlu1 %v4439_v38, %s5586_s4 }
0x1561   :  { %v4433_v33 = vadd.f32 %v4425_v32, %v4385_v59  ;;  %5162 = vmatprep.subr.bf16.mxu1 %v8043_v29 }
0x1563   :  { %5163 = vmatpush3.bf16.msra.mxu1 %v5204_v3 }
0x1564   :  { %4472 = vrot.lane.b32.xlu1 %v8106_v19, %s5587_s30 }
0x15c6   :  { %v4443_v13 = vpop.permute.xlu1 %4442 }
0x15c7   :  { %v4464_v20 = vsel %vm307_vm2, %v4432_v4, %v4443_v13  ;;  %v4822_v13 = vld [vmem:[#allocation16] ss:$0 sm:$0xff] }
0x15c8   :  { %v4445_v10 = vpop.permute.xlu0 %4444 }
0x15c9   :  { %v4465_v24 = vsel %vm307_vm2, %v4433_v33, %v4445_v10 }
0x15ca   :  { %v4451_v52 = vpop.permute.xlu1 %4450 }
0x15cb   :  { %v4466_v58 = vsel %vm752_vm4, %v4464_v20, %v4451_v52 }
0x15ce   :  { %v4453_v18 = vpop.permute.xlu1 %4452  ;;  %v4459_v6 = vpop.permute.xlu0 %4458 }
0x15cf   :  { %v4468_v62 = vsel %vm1245_vm6, %v4466_v58, %v4459_v6  ;;  %v4467_v12 = vsel %vm752_vm4, %v4465_v24, %v4453_v18 }
0x15d2   :  { %v4471_v25 = vpop.permute.xlu0 %4470  ;;  %v4461_v30 = vpop.permute.xlu1 %4460 }
0x15d3   :  { %v4476_v16 = vadd.f32 %v4471_v25, %v4468_v62  ;;  %v4469_v50 = vsel %vm1245_vm6, %v4467_v12, %v4461_v30 }
0x15d5   :  { %v4478_v46 = vmax.f32 %v4476_v16, 0.0 }
0x15d6   :  { %v4473_v63 = vpop.permute.xlu1 %4472 }
0x15d7   :  { %v4477_v57 = vadd.f32 %v4473_v63, %v4469_v50 }
0x15d9   :  { %v4479_v23 = vmax.f32 %v4477_v57, 0.0 }
0x15db   :  { %v4482_v8 = vpack.c.bf16 %v4479_v23, %v4478_v46 }
0x15dd   :  { %5139 = vmatpush3.bf16.msra.mxu0 %v4482_v8 }
0x15de   :  { %5152 = vmatprep.subr.bf16.mxu0 %v8043_v29 }
0x15e0   :  { %5141 = vmatmul.mubr.msk.bf16.vlgmr.msra.gmra.mrb[72].mxu0 %vm752_vm4, %v4481_v5 }
0x15e1   :  { %5153 = vmatpush3.bf16.msra.mxu0 %v5200_v61  ;;  %5156 = vmatprep.mubr.msk.bf16.mxu0 %vm5581_vm0, %v8043_v29 }
0x15e2   :  { %5154 = vmatprep.subr.bf16.mxu0 %v8043_v29 }
0x15e5   :  { %5155 = vmatpush3.bf16.msra.mxu0 %v5202_v26 }
0x1631   :  { %v4586_v38 = vpop.f32.mrb[72].mxu1 }
0x1632   :  { %v5150_v14 = vpop.f32.mrb[73].mxu1 }
0x1633   :  { %v4589_v55 = vpop.f32.mrb[74].mxu1 }
0x1634   :  { %v5151_v19 = vpop.f32.mrb[75].mxu1 }
0x16b3   :  { %v4520_v54 = vpop.f32.mrb[72].mxu0 }
0x16b4   :  { %v4526_v34 = vpack.c.bf16 %v4520_v54, %v4520_v54  ;;  %v5142_v39 = vpop.f32.mrb[73].mxu0 }
0x16b5   :  { %v4523_v28 = vpop.f32.mrb[74].mxu0 }
0x16b6   :  { %v5143_v35 = vpop.f32.mrb[75].mxu0  ;;  %5157 = vmatmul.mubr.msk.bf16.vlgmr.msra.gmra.mrb[76].mxu0 %vm204_vm1, %v4526_v34 }
0x1789   :  { %v4641_v48 = vpop.f32.mrb[76].mxu0 }
0x178a   :  { %v4642_v40 = vadd.f32 %v4641_v48, %v4586_v38  ;;  %v5158_v37 = vpop.f32.mrb[77].mxu0 }
0x178b   :  { %v4644_v15 = vpop.f32.mrb[78].mxu0 }
0x178c   :  { %v4654_v56 = vadd.f32 %v4820_v42, %v4642_v40  ;;  %v5159_v31 = vpop.f32.mrb[79].mxu0 }
0x178e   :  { %v4662_v51 = vmul.f32 %v4821_v45, %v4654_v56 }
0x1790   :  { %v4670_v44 = vadd.f32 %v4822_v13, %v4662_v51 }
0x1792   :  { %v4671_v7 = vmax.f32 %v4670_v44, 0.0 }
0x1794   :  { %v4672_v53 = vpack.c.bf16 %v4671_v7, %v4671_v7 }
0x1796   :  { %5165 = vmatmul.mubr.msk.bf16.vlgmr.msra.gmra.mrb[76].mxu1 %vm204_vm1, %v4672_v53 }
0x1869   :  { %v4733_v17 = vpop.f32.mrb[76].mxu1 }
0x186a   :  { %v4734_v29 = vadd.f32 %v4823_v9, %v4733_v17  ;;  %v5166_v1 = vpop.f32.mrb[77].mxu1 }
0x186b   :  { %v4736_v10 = vpop.f32.mrb[78].mxu1 }
0x186c   :  { %4740 = vst.msk [vmem:[%s7959_s15] sm:$0x3] %vm4739_vm7, %v4734_v29  ;;  %v5167_v52 = vpop.f32.mrb[79].mxu1 }
0x186d   :  { %4745 = vsyncpa [#allocation4], 1 }
0x186e   :  { %4746 = vsyncpa [#allocation6], 1 }
0x186f   :  { %4747 = vsyncpa [#allocation9], 1 }
0x1870   :  { %4748 = vsyncpa [#allocation12], 1 }
0x1871   :  { %4749 = vsyncpa [#allocation15], 1 }

</bundles_post_ra>
